<compile_context>
chip_gen: v7x
topology: tpu7x:2x2x1
jax: 0.10.0
libtpu: 0.0.40
codegen_flags: <defaults>
</compile_context>

<pallas_src>
import functools

import jax
import jax.numpy as jnp
from jax import lax
from jax.experimental import pallas as pl
from jax.experimental.pallas import tpu as pltpu


def _attn_kernel(q_ref, k_ref, v_ref, o_ref, *, heads, dim_head):
    """One (batch, q-tile) grid step; all heads + full kv sequence per step.

    q_ref : (1, tq, heads*dim_head)  bf16 query tile (scale already folded in)
    k_ref : (1, N,  heads*dim_head)  bf16 full key sequence
    v_ref : (1, N,  heads*dim_head)  bf16 full value sequence
    o_ref : (1, tq, heads*dim_head)  bf16 output tile (lane-dense, 128 wide)
    """
    head_outs = []
    for h in range(heads):  # static unroll over the (few) heads
        sl = slice(h * dim_head, (h + 1) * dim_head)
        q = q_ref[0, :, sl]                                   # (tq, d) bf16
        k = k_ref[0, :, sl]                                   # (N,  d) bf16
        v = v_ref[0, :, sl]                                   # (N,  d) bf16

        # s[i, j] = sum_d q[i, d] * k[j, d] -- contract last dims, no k.T copy.
        s = lax.dot_general(
            q, k,
            dimension_numbers=(((1,), (1,)), ((), ())),
            preferred_element_type=jnp.float32)               # (tq, N) f32

        # Single-pass numerically-stable softmax (no kv loop -> no m/l scratch).
        m = jnp.max(s, axis=-1, keepdims=True)                # (tq, 1) f32
        p = jnp.exp(s - m)                                    # (tq, N) f32
        l = jnp.sum(p, axis=-1, keepdims=True)                # (tq, 1) f32

        o = jnp.dot(p.astype(v.dtype), v,
                    preferred_element_type=jnp.float32)       # (tq, d) f32
        head_outs.append(o / l)                               # exact divide (cheap: tq*d)

    # Concatenate heads along lanes -> one lane-dense (tq, 128) store, already
    # in '(h d)' channel order for the output projection.
    o_ref[0] = jnp.concatenate(head_outs, axis=-1).astype(o_ref.dtype)


def _pick_block(n, desired, multiple=16):
    """Largest block <= desired that divides n and is a multiple of `multiple`;
    falls back to the full extent n. multiple=16 keeps bf16 sublane packing happy."""
    b = min(desired, n)
    if b >= n:
        return n
    b -= b % multiple
    while b >= multiple:
        if n % b == 0:
            return b
        b -= multiple
    return n


def attention_forward(x_nchw, w_qkv, w_out, b_out, *, heads=4, dim_head=32,
                      block_q=256):
    """x_nchw: (B, C, H, W); w_qkv: (3*hidden, C); w_out: (C, hidden); b_out: (C,)."""
    B, C, H, W = x_nchw.shape
    N = H * W
    hidden = heads * dim_head
    scale = dim_head ** (-0.5)

    # Fold the softmax scale into the q rows of the qkv weight (weight is tiny).
    w_qkv_scaled = jnp.concatenate([w_qkv[:hidden] * scale, w_qkv[hidden:]], axis=0)

    # ---- 1x1 qkv conv in XLA (lane-thin C=4 stays out of the kernel) --------
    xf = jnp.transpose(x_nchw, (0, 2, 3, 1)).reshape(B, N, C)        # (B, N, C)
    qkv = jnp.dot(xf, w_qkv_scaled.T)                                # (B, N, 3*hidden)
    q, k, v = jnp.split(qkv, 3, axis=-1)                             # (B, N, hidden), '(h d)' cols
    q = q.astype(jnp.bfloat16)
    k = k.astype(jnp.bfloat16)
    v = v.astype(jnp.bfloat16)

    tq = _pick_block(N, block_q)
    n_q = N // tq

    kernel = functools.partial(_attn_kernel, heads=heads, dim_head=dim_head)

    attn_out = pl.pallas_call(
        kernel,
        out_shape=jax.ShapeDtypeStruct((B, N, hidden), jnp.bfloat16),
        grid=(B, n_q),
        in_specs=[
            pl.BlockSpec((1, tq, hidden), lambda b, qi: (b, qi, 0)),
            pl.BlockSpec((1, N, hidden), lambda b, qi: (b, 0, 0)),
            pl.BlockSpec((1, N, hidden), lambda b, qi: (b, 0, 0)),
        ],
        out_specs=pl.BlockSpec((1, tq, hidden), lambda b, qi: (b, qi, 0)),
        compiler_params=pltpu.CompilerParams(
            dimension_semantics=("parallel", "parallel")),
    )(q, k, v)

    # ---- output already in '(h d)' lane order; 1x1 output conv in XLA -------
    out = jnp.dot(attn_out.astype(jnp.float32), w_out.T) + b_out[None, None, :]  # (B, N, C)
    return jnp.transpose(out.reshape(B, H, W, C), (0, 3, 1, 2))                  # NCHW


def attention_reference(x_nchw, w_qkv, w_out, b_out, *, heads=4, dim_head=32):
    """Pure-JAX (f32) reference mirroring the PyTorch forward exactly."""
    B, C, H, W = x_nchw.shape
    N = H * W
    hidden = heads * dim_head
    scale = dim_head ** (-0.5)

    x_flat = x_nchw.reshape(B, C, N)                               # (B, C, N)
    qkv = jnp.einsum('oc,bcn->bon', w_qkv, x_flat)                 # (B, 3*hidden, N)
    q, k, v = jnp.split(qkv, 3, axis=1)
    q = q.reshape(B, heads, dim_head, N) * scale
    k = k.reshape(B, heads, dim_head, N)
    v = v.reshape(B, heads, dim_head, N)
    sim = jnp.einsum('bhdi,bhdj->bhij', q, k)
    sim = sim - jnp.max(sim, axis=-1, keepdims=True)
    attn = jax.nn.softmax(sim, axis=-1)
    out = jnp.einsum('bhij,bhdj->bhid', attn, v)                   # (B, h, N, d)
    out = jnp.transpose(out, (0, 1, 3, 2)).reshape(B, hidden, N)   # 'b h n d -> b (h d) n'
    proj = jnp.einsum('oc,bcn->bon', w_out, out) + b_out[None, :, None]
    return proj.reshape(B, C, H, W)


if __name__ == "__main__":
    B, C, H, W = 2, 4, 16, 16
    heads, dim_head = 4, 32
    hidden = heads * dim_head

    key = jax.random.PRNGKey(0)
    kx, kw1, kw2, kb = jax.random.split(key, 4)

    x = jax.random.normal(kx, (B, C, H, W), dtype=jnp.float32)
    # deterministic synthetic parameters (Conv2d 1x1 weights, squeezed)
    w_qkv = jax.random.normal(kw1, (3 * hidden, C), dtype=jnp.float32) * 0.1
    w_out = jax.random.normal(kw2, (C, hidden), dtype=jnp.float32) * 0.1
    b_out = jax.random.normal(kb, (C,), dtype=jnp.float32) * 0.1

    out = attention_forward(x, w_qkv, w_out, b_out, heads=heads, dim_head=dim_head)
    out = jax.block_until_ready(out)

    ref = attention_reference(x, w_qkv, w_out, b_out, heads=heads, dim_head=dim_head)
    assert out.shape == (B, C, H, W)
    # bf16 MXU operands + bf16 kernel output (f32 accumulation / softmax inside)
    # -> slightly looser tolerance than a pure-f32 path.
    assert jnp.allclose(out, ref, atol=1e-2, rtol=1e-2), "mismatch vs reference"

    print("KERNEL_OK")
</pallas_src>

<mosaic_0001>
module attributes {stable_mosaic.version = 11 : i64} {
  func.func @_attn_kernel(%arg0: i32, %arg1: i32, %arg2: memref<1x256x128xbf16, #tpu.memory_space<vmem>>, %arg3: memref<1x256x128xbf16, #tpu.memory_space<vmem>>, %arg4: memref<1x256x128xbf16, #tpu.memory_space<vmem>>, %arg5: memref<1x256x128xbf16, #tpu.memory_space<vmem>>) attributes {dimension_semantics = [#tpu.dimension_semantics<parallel>, #tpu.dimension_semantics<parallel>], iteration_bounds = array<i64: 2, 1>, scalar_prefetch = 0 : i64, scratch_operands = 0 : i64, tpu.core_type = #tpu.core_type<tc>, window_params = [{transform_indices = @transform_0, window_bounds = array<i64: 1, 256, 128>}, {transform_indices = @transform_1, window_bounds = array<i64: 1, 256, 128>}, {transform_indices = @transform_2, window_bounds = array<i64: 1, 256, 128>}, {transform_indices = @transform_3, window_bounds = array<i64: 1, 256, 128>}]} {
    %c0 = arith.constant 0 : index
    %c0_0 = arith.constant 0 : index
    %c0_1 = arith.constant 0 : index
    %0 = vector.load %arg2[%c0, %c0_0, %c0_1] : memref<1x256x128xbf16, #tpu.memory_space<vmem>>, vector<1x256x32xbf16>
    %1 = vector.shape_cast %0 : vector<1x256x32xbf16> to vector<256x32xbf16>
    %c0_2 = arith.constant 0 : index
    %c0_3 = arith.constant 0 : index
    %c0_4 = arith.constant 0 : index
    %2 = vector.load %arg3[%c0_2, %c0_3, %c0_4] : memref<1x256x128xbf16, #tpu.memory_space<vmem>>, vector<1x256x32xbf16>
    %3 = vector.shape_cast %2 : vector<1x256x32xbf16> to vector<256x32xbf16>
    %c0_5 = arith.constant 0 : index
    %c0_6 = arith.constant 0 : index
    %c0_7 = arith.constant 0 : index
    %4 = vector.load %arg4[%c0_5, %c0_6, %c0_7] : memref<1x256x128xbf16, #tpu.memory_space<vmem>>, vector<1x256x32xbf16>
    %5 = vector.shape_cast %4 : vector<1x256x32xbf16> to vector<256x32xbf16>
    %cst = arith.constant dense<0.000000e+00> : vector<256x256xf32>
    %6 = tpu.matmul %1, %3, %cst {dimension_numbers = #tpu.dot_dimension_numbers<[1], [1], [0], [0], [0, 0, 1, 0], [], []>} : vector<256x32xbf16>, vector<256x32xbf16>, vector<256x256xf32> -> vector<256x256xf32>
    %cst_8 = arith.constant dense<0xFF800000> : vector<256xf32>
    %7 = vector.multi_reduction <maximumf>, %6, %cst_8 [1] : vector<256x256xf32> to vector<256xf32>
    %8 = vector.shape_cast %7 : vector<256xf32> to vector<256x1xf32>
    %9 = vector.broadcast %8 : vector<256x1xf32> to vector<256x256xf32>
    %10 = arith.subf %6, %9 : vector<256x256xf32>
    %11 = math.exp %10 : vector<256x256xf32>
    %cst_9 = arith.constant dense<0.000000e+00> : vector<256xf32>
    %12 = vector.multi_reduction <add>, %11, %cst_9 [1] : vector<256x256xf32> to vector<256xf32>
    %13 = vector.shape_cast %12 : vector<256xf32> to vector<256x1xf32>
    %14 = arith.truncf %11 : vector<256x256xf32> to vector<256x256xbf16>
    %cst_10 = arith.constant dense<0.000000e+00> : vector<256x32xf32>
    %15 = tpu.matmul %14, %5, %cst_10 {dimension_numbers = #tpu.dot_dimension_numbers<[1], [0], [0], [1], [0, 0, 1, 1], [], []>} : vector<256x256xbf16>, vector<256x32xbf16>, vector<256x32xf32> -> vector<256x32xf32>
    %16 = vector.broadcast %13 : vector<256x1xf32> to vector<256x32xf32>
    %17 = arith.divf %15, %16 : vector<256x32xf32>
    %c0_11 = arith.constant 0 : index
    %c0_12 = arith.constant 0 : index
    %c32 = arith.constant 32 : index
    %18 = vector.load %arg2[%c0_11, %c0_12, %c32] : memref<1x256x128xbf16, #tpu.memory_space<vmem>>, vector<1x256x32xbf16>
    %19 = vector.shape_cast %18 : vector<1x256x32xbf16> to vector<256x32xbf16>
    %c0_13 = arith.constant 0 : index
    %c0_14 = arith.constant 0 : index
    %c32_15 = arith.constant 32 : index
    %20 = vector.load %arg3[%c0_13, %c0_14, %c32_15] : memref<1x256x128xbf16, #tpu.memory_space<vmem>>, vector<1x256x32xbf16>
    %21 = vector.shape_cast %20 : vector<1x256x32xbf16> to vector<256x32xbf16>
    %c0_16 = arith.constant 0 : index
    %c0_17 = arith.constant 0 : index
    %c32_18 = arith.constant 32 : index
    %22 = vector.load %arg4[%c0_16, %c0_17, %c32_18] : memref<1x256x128xbf16, #tpu.memory_space<vmem>>, vector<1x256x32xbf16>
    %23 = vector.shape_cast %22 : vector<1x256x32xbf16> to vector<256x32xbf16>
    %cst_19 = arith.constant dense<0.000000e+00> : vector<256x256xf32>
    %24 = tpu.matmul %19, %21, %cst_19 {dimension_numbers = #tpu.dot_dimension_numbers<[1], [1], [0], [0], [0, 0, 1, 0], [], []>} : vector<256x32xbf16>, vector<256x32xbf16>, vector<256x256xf32> -> vector<256x256xf32>
    %cst_20 = arith.constant dense<0xFF800000> : vector<256xf32>
    %25 = vector.multi_reduction <maximumf>, %24, %cst_20 [1] : vector<256x256xf32> to vector<256xf32>
    %26 = vector.shape_cast %25 : vector<256xf32> to vector<256x1xf32>
    %27 = vector.broadcast %26 : vector<256x1xf32> to vector<256x256xf32>
    %28 = arith.subf %24, %27 : vector<256x256xf32>
    %29 = math.exp %28 : vector<256x256xf32>
    %cst_21 = arith.constant dense<0.000000e+00> : vector<256xf32>
    %30 = vector.multi_reduction <add>, %29, %cst_21 [1] : vector<256x256xf32> to vector<256xf32>
    %31 = vector.shape_cast %30 : vector<256xf32> to vector<256x1xf32>
    %32 = arith.truncf %29 : vector<256x256xf32> to vector<256x256xbf16>
    %cst_22 = arith.constant dense<0.000000e+00> : vector<256x32xf32>
    %33 = tpu.matmul %32, %23, %cst_22 {dimension_numbers = #tpu.dot_dimension_numbers<[1], [0], [0], [1], [0, 0, 1, 1], [], []>} : vector<256x256xbf16>, vector<256x32xbf16>, vector<256x32xf32> -> vector<256x32xf32>
    %34 = vector.broadcast %31 : vector<256x1xf32> to vector<256x32xf32>
    %35 = arith.divf %33, %34 : vector<256x32xf32>
    %c0_23 = arith.constant 0 : index
    %c0_24 = arith.constant 0 : index
    %c64 = arith.constant 64 : index
    %36 = vector.load %arg2[%c0_23, %c0_24, %c64] : memref<1x256x128xbf16, #tpu.memory_space<vmem>>, vector<1x256x32xbf16>
    %37 = vector.shape_cast %36 : vector<1x256x32xbf16> to vector<256x32xbf16>
    %c0_25 = arith.constant 0 : index
    %c0_26 = arith.constant 0 : index
    %c64_27 = arith.constant 64 : index
    %38 = vector.load %arg3[%c0_25, %c0_26, %c64_27] : memref<1x256x128xbf16, #tpu.memory_space<vmem>>, vector<1x256x32xbf16>
    %39 = vector.shape_cast %38 : vector<1x256x32xbf16> to vector<256x32xbf16>
    %c0_28 = arith.constant 0 : index
    %c0_29 = arith.constant 0 : index
    %c64_30 = arith.constant 64 : index
    %40 = vector.load %arg4[%c0_28, %c0_29, %c64_30] : memref<1x256x128xbf16, #tpu.memory_space<vmem>>, vector<1x256x32xbf16>
    %41 = vector.shape_cast %40 : vector<1x256x32xbf16> to vector<256x32xbf16>
    %cst_31 = arith.constant dense<0.000000e+00> : vector<256x256xf32>
    %42 = tpu.matmul %37, %39, %cst_31 {dimension_numbers = #tpu.dot_dimension_numbers<[1], [1], [0], [0], [0, 0, 1, 0], [], []>} : vector<256x32xbf16>, vector<256x32xbf16>, vector<256x256xf32> -> vector<256x256xf32>
    %cst_32 = arith.constant dense<0xFF800000> : vector<256xf32>
    %43 = vector.multi_reduction <maximumf>, %42, %cst_32 [1] : vector<256x256xf32> to vector<256xf32>
    %44 = vector.shape_cast %43 : vector<256xf32> to vector<256x1xf32>
    %45 = vector.broadcast %44 : vector<256x1xf32> to vector<256x256xf32>
    %46 = arith.subf %42, %45 : vector<256x256xf32>
    %47 = math.exp %46 : vector<256x256xf32>
    %cst_33 = arith.constant dense<0.000000e+00> : vector<256xf32>
    %48 = vector.multi_reduction <add>, %47, %cst_33 [1] : vector<256x256xf32> to vector<256xf32>
    %49 = vector.shape_cast %48 : vector<256xf32> to vector<256x1xf32>
    %50 = arith.truncf %47 : vector<256x256xf32> to vector<256x256xbf16>
    %cst_34 = arith.constant dense<0.000000e+00> : vector<256x32xf32>
    %51 = tpu.matmul %50, %41, %cst_34 {dimension_numbers = #tpu.dot_dimension_numbers<[1], [0], [0], [1], [0, 0, 1, 1], [], []>} : vector<256x256xbf16>, vector<256x32xbf16>, vector<256x32xf32> -> vector<256x32xf32>
    %52 = vector.broadcast %49 : vector<256x1xf32> to vector<256x32xf32>
    %53 = arith.divf %51, %52 : vector<256x32xf32>
    %c0_35 = arith.constant 0 : index
    %c0_36 = arith.constant 0 : index
    %c96 = arith.constant 96 : index
    %54 = vector.load %arg2[%c0_35, %c0_36, %c96] : memref<1x256x128xbf16, #tpu.memory_space<vmem>>, vector<1x256x32xbf16>
    %55 = vector.shape_cast %54 : vector<1x256x32xbf16> to vector<256x32xbf16>
    %c0_37 = arith.constant 0 : index
    %c0_38 = arith.constant 0 : index
    %c96_39 = arith.constant 96 : index
    %56 = vector.load %arg3[%c0_37, %c0_38, %c96_39] : memref<1x256x128xbf16, #tpu.memory_space<vmem>>, vector<1x256x32xbf16>
    %57 = vector.shape_cast %56 : vector<1x256x32xbf16> to vector<256x32xbf16>
    %c0_40 = arith.constant 0 : index
    %c0_41 = arith.constant 0 : index
    %c96_42 = arith.constant 96 : index
    %58 = vector.load %arg4[%c0_40, %c0_41, %c96_42] : memref<1x256x128xbf16, #tpu.memory_space<vmem>>, vector<1x256x32xbf16>
    %59 = vector.shape_cast %58 : vector<1x256x32xbf16> to vector<256x32xbf16>
    %cst_43 = arith.constant dense<0.000000e+00> : vector<256x256xf32>
    %60 = tpu.matmul %55, %57, %cst_43 {dimension_numbers = #tpu.dot_dimension_numbers<[1], [1], [0], [0], [0, 0, 1, 0], [], []>} : vector<256x32xbf16>, vector<256x32xbf16>, vector<256x256xf32> -> vector<256x256xf32>
    %cst_44 = arith.constant dense<0xFF800000> : vector<256xf32>
    %61 = vector.multi_reduction <maximumf>, %60, %cst_44 [1] : vector<256x256xf32> to vector<256xf32>
    %62 = vector.shape_cast %61 : vector<256xf32> to vector<256x1xf32>
    %63 = vector.broadcast %62 : vector<256x1xf32> to vector<256x256xf32>
    %64 = arith.subf %60, %63 : vector<256x256xf32>
    %65 = math.exp %64 : vector<256x256xf32>
    %cst_45 = arith.constant dense<0.000000e+00> : vector<256xf32>
    %66 = vector.multi_reduction <add>, %65, %cst_45 [1] : vector<256x256xf32> to vector<256xf32>
    %67 = vector.shape_cast %66 : vector<256xf32> to vector<256x1xf32>
    %68 = arith.truncf %65 : vector<256x256xf32> to vector<256x256xbf16>
    %cst_46 = arith.constant dense<0.000000e+00> : vector<256x32xf32>
    %69 = tpu.matmul %68, %59, %cst_46 {dimension_numbers = #tpu.dot_dimension_numbers<[1], [0], [0], [1], [0, 0, 1, 1], [], []>} : vector<256x256xbf16>, vector<256x32xbf16>, vector<256x32xf32> -> vector<256x32xf32>
    %70 = vector.broadcast %67 : vector<256x1xf32> to vector<256x32xf32>
    %71 = arith.divf %69, %70 : vector<256x32xf32>
    %72 = tpu.concatenate %17, %35, %53, %71 in 1 : vector<256x32xf32>, vector<256x32xf32>, vector<256x32xf32>, vector<256x32xf32> -> vector<256x128xf32>
    %73 = arith.truncf %72 : vector<256x128xf32> to vector<256x128xbf16>
    %c0_47 = arith.constant 0 : index
    %c0_48 = arith.constant 0 : index
    %c0_49 = arith.constant 0 : index
    %74 = vector.load %arg5[%c0_47, %c0_48, %c0_49] : memref<1x256x128xbf16, #tpu.memory_space<vmem>>, vector<1x256x128xbf16>
    %75 = vector.shape_cast %74 : vector<1x256x128xbf16> to vector<256x128xbf16>
    %76 = vector.shape_cast %73 : vector<256x128xbf16> to vector<1x256x128xbf16>
    tpu.vector_store %arg5[%c0_47, %c0_48, %c0_49], %76 {strides = array<i32>} : memref<1x256x128xbf16, #tpu.memory_space<vmem>>, vector<1x256x128xbf16>,
    return
  }
  func.func @transform_0(%arg0: i32, %arg1: i32) -> (i32, i32, i32) {
    %c0_i32 = arith.constant 0 : i32
    %c0_i32_0 = arith.constant 0 : i32
    return %arg0, %arg1, %c0_i32 : i32, i32, i32
  }
  func.func @transform_1(%arg0: i32, %arg1: i32) -> (i32, i32, i32) {
    %c0_i32 = arith.constant 0 : i32
    %c0_i32_0 = arith.constant 0 : i32
    %c0_i32_1 = arith.constant 0 : i32
    return %arg0, %c0_i32, %c0_i32_0 : i32, i32, i32
  }
  func.func @transform_2(%arg0: i32, %arg1: i32) -> (i32, i32, i32) {
    %c0_i32 = arith.constant 0 : i32
    %c0_i32_0 = arith.constant 0 : i32
    %c0_i32_1 = arith.constant 0 : i32
    return %arg0, %c0_i32, %c0_i32_0 : i32, i32, i32
  }
  func.func @transform_3(%arg0: i32, %arg1: i32) -> (i32, i32, i32) {
    %c0_i32 = arith.constant 0 : i32
    %c0_i32_0 = arith.constant 0 : i32
    return %arg0, %arg1, %c0_i32 : i32, i32, i32
  }
}

</mosaic_0001>

<bundles_post_ra>
// kernel: tpu_custom_call.1
= control target key start
LH: loop header
LB: loop body
LE: loop exit
PB: predicated region body
PF: predicated region fallthrough
CT: control target
= control target key end

     0   :  { %s12348_s0 = inlined_call_operand.hbm [shape: bf16[2,256,128], index: 0, kind: input, shape index: {}]   ;;  %s12349_s1 = inlined_call_operand.hbm [shape: bf16[2,256,128], index: 1, kind: input, shape index: {}]   ;;  %s12350_s2 = inlined_call_operand.hbm [shape: bf16[2,256,128], index: 2, kind: input, shape index: {}]   ;;  %s12351_s3 = inlined_call_operand.hbm [shape: bf16[2,256,128], index: 3, kind: output, shape index: {}]  }
   0x1   :  { %12637 = sst [smem:[#allocation218_spill]] %s12349_s1 }
   0x2   :  { %8 = vsyncpa [#allocation3], 0 }
   0x3   :  { %10 = vsyncpa [#allocation3 + $0x1], 0 }
   0x4   :  { %11 = vsyncpa [#allocation6], 0 }
   0x5   :  { %13 = vsyncpa [#allocation6 + $0x1], 0 }
   0x6   :  { %14 = vsyncpa [#allocation4], 0 }
   0x7   :  { %16 = vsyncpa [#allocation4 + $0x1], 0  ;;  %s7865_s12 = smov 0   ;;  %s7867_s13 = smov 0  }
   0x8   :  { %s7869_s14 = smov 0   ;;  %s7871_s15 = smov 0  }
   0x9   :  { %s7873_s16 = smov 0   ;;  %s7875_s17 = smov 0  }
   0xa LB: > { %12638 = sst [smem:[#allocation12_spill]] %s7829_s16  ;;  %s7896_s18 = sadd.s32 4294967295, %s7833_s17   ;;  %s7833_s17 = sphi %s7875_s17, %s22_s17   ;;  %s7829_s16 = sphi %s7873_s16, %s13631_s16   ;;  %s7825_s15 = sphi %s7871_s15, %s13630_s15   ;;  %s7821_s14 = sphi %s7869_s14, %s13634_s14   ;;  %s7817_s13 = sphi %s7867_s13, %s13633_s13   ;;  %s7813_s12 = sphi %s7865_s12, %s13632_s12  }
   0xb   : > { %s5485_s19 = sadd.s32 4294967294, %s7833_s17   ;;  %s34_s20 = sadd.s32 1, %s7829_s16 }
   0xc   : > { %s43_s21 = sadd.s32 1, %s7821_s14  ;;  %p36_p0 = scmp.ge.s32.totalorder %s34_s20, 2 }
   0xd   : > { %p50_p1 = scmp.ne.s32.totalorder %s7821_s14, %s7817_s13  ;;  %p51_p2 = scmp.eq.s32.totalorder %s7833_s17, 0 }
   0xe   : > { %p56_p3 = scmp.ne.s32.totalorder %s7817_s13, %s7813_s12  ;;  %s13636_s20 = smov (%p36_p0, %s34_s20), 0 }
   0xf   : > { %12639 = sst [smem:[#allocation13_spill]] %s13636_s20  ;;  %p7908_p4 = por %p51_p2, %p50_p1 }
  0x10   : > { %p57_p5 = scmp.eq.s32.totalorder %s7896_s18, 0  ;;  %s38_s23 = ssub.s32 %s7829_s16, %s13636_s20 }
  0x11   : > { %p134_p6 = scmp.eq.s32.totalorder %s7896_s18, 1  ;;  %p41_p7 = scmp.eq.s32.totalorder %s38_s23, 0 }
  0x12   : > { %p7916_p8 = por %p57_p5, %p56_p3  ;;  %p140_p10 = scmp.eq.s32.totalorder %s5485_s19, 1 }
  0x13   : > { %p7920_p9 = por %p134_p6, %p50_p1  ;;  %p6492_p13 = scmp.lt.s32.totalorder %s7833_s17, 2 }
  0x14   : > { %s12641_s24 = scalar_select %p7916_p8, 1, 0 }
  0x15   : > { %s12642_s25 = scalar_select %p7920_p9, 1, 0 }
  0x16   : > { %s7925_s26 = scalar_select %p41_p7, %s7821_s14, %s43_s21  }
  0x17   : > { %p7927_p11 = por %p140_p10, %p56_p3  ;;  %s12354_s28 = sand.u32 1, %s7821_s14  }
  0x18   : > { %12643 = sst [smem:[#allocation14_spill]] %s7925_s26  ;;  %s7936_s29 = sshll.u32 %s12354_s28, 7 }
  0x19   : > { %s12644_s27 = scalar_select %p7927_p11, 1, 0 }
  0x1a   : > { %s7939_s30 = sshll.u32 %s7829_s16, 11  ;;  %p7943_p0 = pnand %p6492_p13, %p7908_p4 }
  0x1b   : > { %s183_s5 = sand.u32 1, %s7833_s17   ;;  %s12646_s1 = sld [smem:[#allocation218_spill]] }
  0x1c   : > { %s187_s9 = scalar_lea.vmem [#allocation5], %s7936_s29  ;;  %s7959_s11 = scalar_lea.sflag [#allocation6], %s183_s5 }
  0x1d   : > { %s194_s10 = sshll.u32 %s187_s9, 4  ;;  %p7965_p4 = pneg %p7943_p0  ;;  %s7956_s10 = int_to_ptr.vmem [resolvable:$true] %s194_s10 }
  0x21   : > { %s7952_s8 = scalar_lea.hbm %s12646_s1, %s7939_s30  ;;  %s7662_s6 = scalar_lea.hbm %s12646_s1, 4096 }
  0x22   : > { %s7657_s19 = scalar_lea.hbm %s7952_s8, 2048  ;;  %p7663_p7 = scmp.lt.u32.totalorder %s7952_s8, %s12646_s1 }
  0x23   : > { %p7658_p3 = scmp.ne.s32.totalorder %s7952_s8, %s7657_s19  ;;  %p7664_p10 = scmp.lt.u32.totalorder %s7662_s6, %s7657_s19 }
  0x24   : > { %p7666_p12 = scmp.lt.u32.totalorder %s7657_s19, %s7952_s8 }
  0x25   : > { %p7660_p5 = pnand %p7965_p4, %p7658_p3  ;;  %p7665_p13 = por %p7664_p10, %p7663_p7 }
  0x27   : > { %p7661_p6 = pneg %p7660_p5  ;;  %p7667_p1 = por %p7666_p12, %p7665_p13 }
  0x29   : > { %p7668_p2 = pnand %p7667_p1, %p7661_p6 }
  0x2b   : > { %7671 = shalt.err (!%p7668_p2)
}
  0x2c   : > { %s7672_s5 = scalar_lea.vmem %s7956_s10, 2048  ;;  %s7835_s22 = smov [#allocation5]  }
  0x2d   : > { %p7673_p3 = scmp.ne.s32.totalorder %s7956_s10, %s7672_s5  ;;  %s7677_s23 = sshll.u32 %s7835_s22, 4  ;;  %s7678_s23 = int_to_ptr.vmem [resolvable:$false] %s7677_s23 }
  0x2e   : > { %s7679_s7 = scalar_lea.vmem %s7678_s23, 4096  ;;  %p7680_p9 = scmp.lt.s32.totalorder %s7956_s10, %s7678_s23 }
  0x2f   : > { %p7675_p5 = pnand %p7673_p3, %p7965_p4  ;;  %p7681_p8 = scmp.lt.s32.totalorder %s7679_s7, %s7672_s5 }
  0x31   : > { %p7676_p11 = pneg %p7675_p5  ;;  %p7682_p7 = por %p7681_p8, %p7680_p9 }
  0x33   : > { %p7683_p10 = pnand %p7682_p7, %p7676_p11 }
  0x35   : > { %7686 = shalt.err (!%p7683_p10)
}
  0x36   : > { %s12355_s19 = smov 64   ;;  %s12357_s6 = smov 4  }
  0x37   : > { %6484 = dma.hbm_to_vmem [thread:$0]  (!%p7943_p0), %s7952_s8, 2048, %s7956_s10, %s7959_s11, %s12355_s19, %s12355_s19, %s12357_s6  }
  0x38   : > { %p12648_p8 = scmp.lt.s32.totalorder %s7833_s17, 3  ;;  %p12649_p9 = scmp.ge.s32.totalorder %s7833_s17, 1 }
  0x39   : > { %s8004_s23 = scalar_lea.hbm %s12348_s0, %s7939_s30  ;;  %s164_s7 = scalar_lea.vmem [#allocation2], %s7936_s29 }
  0x3a   : > { %p7996_p11 = pnand %p12649_p9, %p12648_p8  ;;  %s173_s28 = sshll.u32 %s164_s7, 4  ;;  %s8007_s28 = int_to_ptr.vmem [resolvable:$true] %s173_s28 }
  0x3b   : > { %s8013_s19 = scalar_lea.hbm %s12350_s2, %s7939_s30  ;;  %s12651_s6 = sand.u32 1, %s7821_s14  }
  0x3c   : > { %s12650_s9 = scalar_select %p7996_p11, 1, 0 }
  0x3d   : > { %s8017_s1 = scalar_lea.sflag [#allocation3], %s12651_s6  ;;  %s7687_s20 = scalar_lea.hbm %s8004_s23, 2048 }
  0x3e   : > { %p7688_p12 = scmp.ne.s32.totalorder %s8004_s23, %s7687_s20  ;;  %s7692_s16 = scalar_lea.hbm %s12348_s0, 4096 }
  0x3f   : > { %p7693_p6 = scmp.lt.u32.totalorder %s8004_s23, %s12348_s0  ;;  %p7694_p13 = scmp.lt.u32.totalorder %s7692_s16, %s7687_s20 }
  0x40   : > { %p7690_p1 = pnand %p7688_p12, %p7965_p4  ;;  %p7696_p5 = scmp.lt.u32.totalorder %s7687_s20, %s8004_s23 }
  0x41   : > { %p7695_p3 = por %p7694_p13, %p7693_p6 }
  0x42   : > { %p7691_p2 = pneg %p7690_p1 }
  0x43   : > { %p7697_p7 = por %p7696_p5, %p7695_p3 }
  0x45   : > { %p7698_p10 = pnand %p7697_p7, %p7691_p2 }
  0x47   : > { %7701 = shalt.err (!%p7698_p10)
}
  0x48   : > { %s7702_s30 = scalar_lea.vmem %s8007_s28, 2048  ;;  %s7838_s6 = smov [#allocation2]  }
  0x49   : > { %p7703_p8 = scmp.ne.s32.totalorder %s8007_s28, %s7702_s30  ;;  %s7707_s8 = sshll.u32 %s7838_s6, 4  ;;  %s7708_s8 = int_to_ptr.vmem [resolvable:$false] %s7707_s8 }
  0x4a   : > { %s7709_s26 = scalar_lea.vmem %s7708_s8, 4096  ;;  %p7710_p1 = scmp.lt.s32.totalorder %s8007_s28, %s7708_s8 }
  0x4b   : > { %p7705_p9 = pnand %p7703_p8, %p7965_p4  ;;  %p7711_p11 = scmp.lt.s32.totalorder %s7709_s26, %s7702_s30 }
  0x4d   : > { %p7706_p12 = pneg %p7705_p9  ;;  %p7712_p6 = por %p7711_p11, %p7710_p1 }
  0x4f   : > { %p7713_p13 = pnand %p7712_p6, %p7706_p12 }
  0x51   : > { %7716 = shalt.err (!%p7713_p13)
}
  0x52   : > { %s12652_s16 = smov 4   ;;  %s12653_s20 = smov 64  }
  0x53   : > { %6481 = dma.hbm_to_vmem [thread:$0]  (!%p7943_p0), %s8004_s23, 2048, %s8007_s28, %s8017_s1, %s12653_s20, %s12653_s20, %s12652_s16  }
  0x54   : > { %s208_s10 = scalar_lea.vmem [#allocation7], %s7936_s29  ;;  %s7717_s22 = scalar_lea.hbm %s8013_s19, 2048 }
  0x55   : > { %s215_s5 = sshll.u32 %s208_s10, 4  ;;  %p7718_p11 = scmp.ne.s32.totalorder %s8013_s19, %s7717_s22  ;;  %s8045_s5 = int_to_ptr.vmem [resolvable:$true] %s215_s5 }
  0x56   : > { %s7722_s6 = scalar_lea.hbm %s12350_s2, 4096  ;;  %p7723_p5 = scmp.lt.u32.totalorder %s8013_s19, %s12350_s2 }
  0x57   : > { %p7720_p2 = pnand %p7718_p11, %p7965_p4  ;;  %p7724_p7 = scmp.lt.u32.totalorder %s7722_s6, %s7717_s22 }
  0x58   : > { %p7726_p8 = scmp.lt.u32.totalorder %s7717_s22, %s8013_s19 }
  0x59   : > { %p7721_p3 = pneg %p7720_p2  ;;  %p7725_p10 = por %p7724_p7, %p7723_p5 }
  0x5b   : > { %p7727_p9 = por %p7726_p8, %p7725_p10 }
  0x5d   : > { %p7728_p12 = pnand %p7727_p9, %p7721_p3 }
  0x5f   : > { %7731 = shalt.err (!%p7728_p12)
}
  0x60   : > { %s7732_s1 = scalar_lea.vmem %s8045_s5, 2048  ;;  %s7839_s28 = smov [#allocation7]  }
  0x61   : > { %p7733_p1 = scmp.ne.s32.totalorder %s8045_s5, %s7732_s1  ;;  %s7737_s29 = sshll.u32 %s7839_s28, 4  ;;  %s7738_s29 = int_to_ptr.vmem [resolvable:$false] %s7737_s29 }
  0x62   : > { %s7739_s23 = scalar_lea.vmem %s7738_s29, 4096  ;;  %p7740_p11 = scmp.lt.s32.totalorder %s8045_s5, %s7738_s29 }
  0x63   : > { %p7735_p6 = pnand %p7733_p1, %p7965_p4  ;;  %p7741_p2 = scmp.lt.s32.totalorder %s7739_s23, %s7732_s1 }
  0x65   : > { %p7736_p13 = pneg %p7735_p6  ;;  %p7742_p5 = por %p7741_p2, %p7740_p11 }
  0x67   : > { %p7743_p7 = pnand %p7742_p5, %p7736_p13 }
  0x69   : > { %7746 = shalt.err (!%p7743_p7)
}
  0x6a   : > { %6487 = dma.hbm_to_vmem [thread:$0]  (!%p7943_p0), %s8013_s19, 2048, %s8045_s5, %s7959_s11, %s12653_s20, %s12653_s20, %s12652_s16  }
  0x6b   : > { %p12654_p4 = scmp.ne.s32.totalorder %s12650_s9, 0 }
  0x6d   : > { %227 = sbr.rel (%p12654_p4) target bundleno = 2143 (0x85f), region = 32 }
  0x74   : > { %s8075_s21 = sand.u32 1, %s7817_s13   ;;  %p12655_p3 = scmp.ne.s32.totalorder %s12641_s24, 0 }
  0x75   : > { %s8078_s10 = sshll.u32 %s8075_s21, 7  ;;  %s230_s4 = scalar_lea.sflag [#allocation3], %s8075_s21 }
  0x76   : > { %s8082_s22 = scalar_lea.vmem [#allocation2], %s8078_s10 }
  0x77   : > { %7800 = dma.done.wait (%p12655_p3), %s230_s4, 2048  }
  0x78   : > { %7802 = vsyncadd (%p12655_p3), %s230_s4, 4294965248  ;;  %s238_s11 = sand.u32 1, %s7896_s18   ;;  %s8090_s9 = scalar_lea.vmem [#allocation5], %s8078_s10 }
  0x79   : > { %s239_s19 = scalar_lea.sflag [#allocation6], %s238_s11 }
  0x7a   : > { %7804 = dma.done.wait (%p12655_p3), %s239_s19, 4096  }
  0x7b   : > { %7806 = vsyncadd (%p12655_p3), %s239_s19, 4294963200  ;;  %vm543_vm0 = vcmask 261120   ;;  %v8097_v0 = vld [vmem:[%s8090_s9 + $0x40] sm:$0xff]   ;;  %v8105_v2 = vld [vmem:[%s8090_s9 + $0x48] sm:$0xff]   ;;  %s7840_s18 = smov 96   ;;  %s8203_s24 = scalar_lea.vmem [#allocation7], %s8078_s10 }
  0x7c   : > { %v8100_v1 = vld [vmem:[%s8090_s9] sm:$0xff]   ;;  %6438 = vmatprep.subr.msk.bf16.mxu0 %vm543_vm0, %v8097_v0  ;;  %1618 = vrot.lane.b32.xlu1 %v8097_v0, %s7840_s18  ;;  %v8116_v4 = vld [vmem:[%s8090_s9 + $0x8] sm:$0xff]   ;;  %v8123_v5 = vld [vmem:[%s8090_s9 + $0x50] sm:$0xff]   ;;  %s7841_s16 = smov 64   ;;  %s7842_s20 = smov 32   ;;  %vm5112_vm1 = vcmask 523264  }
  0x7d   : > { %v593_v3 = vsel %vm543_vm0, %v8100_v1, 0  ;;  %1602 = vrot.lane.b32.xlu0 %v8100_v1, %s7840_s18  ;;  %v596_v6 = vsel %vm543_vm0, %v8116_v4, 0  ;;  %v8128_v7 = vld [vmem:[%s8090_s9 + $0x10] sm:$0xff]   ;;  %v8135_v8 = vld [vmem:[%s8090_s9 + $0x58] sm:$0xff]   ;;  %v8145_v10 = vld [vmem:[%s8090_s9 + $0x20] sm:$0xff]   ;;  %vm5145_vm2 = vcmask 785408  }
  0x7e   : > { %5783 = vmatpush3.bf16.xpose.msra.mxu0 %v593_v3  ;;  %v8140_v9 = vld [vmem:[%s8090_s9 + $0x18] sm:$0xff]   ;;  %v8150_v11 = vld [vmem:[%s8082_s22] sm:$0xff]   ;;  %v599_v12 = vsel %vm543_vm0, %v8128_v7, 0  ;;  %v8155_v13 = vld [vmem:[%s8090_s9 + $0x28] sm:$0xff]   ;;  %v605_v24 = vsel %vm543_vm0, %v8145_v10, 0  ;;  %s12152_s5 = scalar_lea.vmem [#allocation8], %s8078_s10 }
  0x7f   : > { %6439 = vmatprep.subr.msk.bf16.mxu0 %vm543_vm0, %v8105_v2  ;;  %5798 = vmatprep.mubr.msk.bf16.mxu0 %vm543_vm0, %v8150_v11  ;;  %v8164_v14 = vld [vmem:[%s8090_s9 + $0x60] sm:$0xff]   ;;  %v8169_v15 = vld [vmem:[%s8090_s9 + $0x30] sm:$0xff]   ;;  %v8176_v16 = vld [vmem:[%s8090_s9 + $0x68] sm:$0xff]   ;;  %v602_v17 = vsel %vm543_vm0, %v8140_v9, 0  ;;  %v608_v33 = vsel %vm543_vm0, %v8155_v13, 0  ;;  %s5686_s7 = sshll.u32 %s7825_s15, 11 }
  0x80   : > { %1620 = vrot.lane.b32.xlu1 %v8105_v2, %s7840_s18  ;;  %v8181_v18 = vld [vmem:[%s8090_s9 + $0x38] sm:$0xff]   ;;  %v8188_v19 = vld [vmem:[%s8090_s9 + $0x70] sm:$0xff]   ;;  %v8206_v22 = vld [vmem:[%s8203_s24 + $0x40] sm:$0xff]   ;;  %v611_v42 = vsel %vm543_vm0, %v8169_v15, 0  ;;  %s5354_s30 = sshll.u32 %s12152_s5, 4  ;;  %s12294_s26 = scalar_lea.hbm %s12351_s3, %s5686_s7  ;;  %s12296_s30 = int_to_ptr.vmem [resolvable:$true] %s5354_s30 }
  0x81   : > { %1604 = vrot.lane.b32.xlu0 %v8116_v4, %s7840_s18  ;;  %v8193_v20 = vld [vmem:[%s8090_s9 + $0x78] sm:$0xff]   ;;  %v8198_v21 = vld [vmem:[%s8082_s22 + $0x10] sm:$0xff]   ;;  %v8209_v23 = vld [vmem:[%s8203_s24] sm:$0xff]   ;;  %5830 = vmatprep.subr.bf16.mxu1 %v8206_v22  ;;  %v614_v49 = vsel %vm543_vm0, %v8181_v18, 0  ;;  %s5339_s15 = scalar_lea.sflag [#allocation4], %s8075_s21  ;;  %s7747_s1 = scalar_lea.vmem %s12296_s30, 2048 }
  0x82   : > { %v8215_v25 = vld [vmem:[%s8203_s24 + $0x48] sm:$0xff]   ;;  %5831 = vmatpush3.bf16.msra.mxu1 %v8209_v23  ;;  %v6823_v27 = vld [vmem:[%s8203_s24 + $0x50] sm:$0xff]   ;;  %v8233_v29 = vld [vmem:[%s8082_s22 + $0x20] sm:$0xff]   ;;  %p7748_p0 = scmp.ne.s32.totalorder %s12296_s30, %s7747_s1  ;;  %p13626_p10 = scmp.ne.s32.totalorder %s12642_s25, 0 }
  0x83   : > { %v8221_v26 = vld [vmem:[%s8203_s24 + $0x8] sm:$0xff]   ;;  %5832 = vmatprep.subr.bf16.mxu1 %v8215_v25  ;;  %v8236_v30 = vld [vmem:[%s8082_s22 + $0x18] sm:$0xff]   ;;  %v8242_v31 = vld [vmem:[%s8203_s24 + $0x10] sm:$0xff]   ;;  %s7843_s28 = smov [#allocation8]  }
  0x84   : > { %1622 = vrot.lane.b32.xlu1 %v8123_v5, %s7840_s18  ;;  %v8228_v28 = vld [vmem:[%s8082_s22 + $0x8] sm:$0xff]   ;;  %v6826_v32 = vld [vmem:[%s8203_s24 + $0x58] sm:$0xff]   ;;  %v8253_v35 = vld [vmem:[%s8082_s22 + $0x30] sm:$0xff]   ;;  %p7749_p8 = pnand %p7748_p0, %p13626_p10  ;;  %s7751_s29 = sshll.u32 %s7843_s28, 4  ;;  %s7752_s29 = int_to_ptr.vmem [resolvable:$false] %s7751_s29 }
  0x85   : > { %1606 = vrot.lane.b32.xlu0 %v8128_v7, %s7840_s18  ;;  %v8250_v34 = vld [vmem:[%s8082_s22 + $0x28] sm:$0xff]   ;;  %v6827_v36 = vld [vmem:[%s8203_s24 + $0x18] sm:$0xff]   ;;  %v8262_v37 = vld [vmem:[%s8082_s22 + $0x40] sm:$0xff]   ;;  %s7753_s23 = scalar_lea.vmem %s7752_s29, 4096  ;;  %p7754_p12 = scmp.lt.s32.totalorder %s12296_s30, %s7752_s29 }
  0x86   : > { %5785 = vmatpush3.bf16.xpose.msra.mxu0 %v596_v6  ;;  %5833 = vmatpush3.bf16.msra.mxu1 %v8221_v26  ;;  %v6828_v38 = vld [vmem:[%s8203_s24 + $0x60] sm:$0xff]   ;;  %v8266_v39 = vld [vmem:[%s8082_s22 + $0x38] sm:$0xff]   ;;  %v6830_v41 = vld [vmem:[%s8203_s24 + $0x68] sm:$0xff]   ;;  %p7750_p9 = pneg %p7749_p8  ;;  %p7755_p1 = scmp.lt.s32.totalorder %s7753_s23, %s7747_s1 }
  0x87   : > { %6440 = vmatprep.subr.msk.bf16.mxu0 %vm543_vm0, %v8123_v5  ;;  %5834 = vmatprep.subr.bf16.mxu1 %v6823_v27  ;;  %v6829_v40 = vld [vmem:[%s8203_s24 + $0x20] sm:$0xff]   ;;  %v6831_v43 = vld [vmem:[%s8203_s24 + $0x28] sm:$0xff]   ;;  %v6832_v44 = vld [vmem:[%s8203_s24 + $0x70] sm:$0xff]  }
  0x88   : > { %1624 = vrot.lane.b32.xlu1 %v8135_v8, %s7840_s18  ;;  %v8289_v45 = vld [vmem:[%s8082_s22 + $0x48] sm:$0xff]   ;;  %v6833_v46 = vld [vmem:[%s8203_s24 + $0x30] sm:$0xff]   ;;  %v6834_v48 = vld [vmem:[%s8203_s24 + $0x78] sm:$0xff]   ;;  %p7756_p6 = por %p7755_p1, %p7754_p12 }
  0x89   : > { %1608 = vrot.lane.b32.xlu0 %v8140_v9, %s7840_s18  ;;  %v8295_v47 = vld [vmem:[%s8082_s22 + $0x50] sm:$0xff]   ;;  %v6835_v50 = vld [vmem:[%s8203_s24 + $0x38] sm:$0xff]   ;;  %v8319_v52 = vld [vmem:[%s8082_s22 + $0x60] sm:$0xff]  }
  0x8a   : > { %5835 = vmatpush3.bf16.msra.mxu1 %v8242_v31  ;;  %v8312_v51 = vld [vmem:[%s8082_s22 + $0x58] sm:$0xff]   ;;  %v8338_v53 = vld [vmem:[%s8082_s22 + $0x68] sm:$0xff]   ;;  %v8343_v54 = vld [vmem:[%s8082_s22 + $0x70] sm:$0xff]   ;;  %p7757_p13 = pnand %p7756_p6, %p7750_p9 }
  0x8b   : > { %5836 = vmatprep.subr.bf16.mxu1 %v6826_v32  ;;  %v8360_v55 = vld [vmem:[%s8082_s22 + $0x78] sm:$0xff]  }
  0x8c   : > { %1610 = vrot.lane.b32.xlu1 %v8145_v10, %s7840_s18 }
  0x8d   : > { %1612 = vrot.lane.b32.xlu0 %v8155_v13, %s7840_s18 }
  0x8e   : > { %5787 = vmatpush3.bf16.xpose.msra.mxu0 %v599_v12  ;;  %5837 = vmatpush3.bf16.msra.mxu1 %v6827_v36 }
  0x8f   : > { %6441 = vmatprep.subr.msk.bf16.mxu0 %vm543_vm0, %v8135_v8  ;;  %5838 = vmatprep.subr.bf16.mxu1 %v6828_v38 }
  0x90   : > { %1626 = vrot.lane.b32.xlu1 %v8164_v14, %s7840_s18 }
  0x91   : > { %1614 = vrot.lane.b32.xlu0 %v8169_v15, %s7840_s18 }
  0x92   : > { %5839 = vmatpush3.bf16.msra.mxu1 %v6829_v40 }
  0x93   : > { %5840 = vmatprep.subr.bf16.mxu1 %v6830_v41 }
  0x94   : > { %1628 = vrot.lane.b32.xlu1 %v8176_v16, %s7840_s18 }
  0x95   : > { %1616 = vrot.lane.b32.xlu0 %v8181_v18, %s7840_s18 }
  0x96   : > { %5789 = vmatpush3.bf16.xpose.msra.mxu0 %v602_v17  ;;  %5841 = vmatpush3.bf16.msra.mxu1 %v6831_v43 }
  0x97   : > { %6442 = vmatprep.subr.msk.bf16.mxu0 %vm543_vm0, %v8164_v14  ;;  %5842 = vmatprep.subr.bf16.mxu1 %v6832_v44 }
  0x98   : > { %1630 = vrot.lane.b32.xlu1 %v8188_v19, %s7840_s18 }
  0x99   : > { %1570 = vrot.lane.b32.xlu0 %v8150_v11, %s7840_s18 }
  0x9a   : > { %5843 = vmatpush3.bf16.msra.mxu1 %v6833_v46 }
  0x9b   : > { %5844 = vmatprep.subr.bf16.mxu1 %v6834_v48 }
  0x9c   : > { %1632 = vrot.lane.b32.xlu1 %v8193_v20, %s7840_s18 }
  0x9d   : > { %1574 = vrot.lane.b32.xlu0 %v8198_v21, %s7840_s18 }
  0x9e   : > { %5791 = vmatpush3.bf16.xpose.msra.mxu0 %v605_v24  ;;  %5845 = vmatpush3.bf16.msra.mxu1 %v6835_v50 }
  0x9f   : > { %6443 = vmatprep.subr.msk.bf16.mxu0 %vm543_vm0, %v8176_v16 }
  0xa0   : > { %1572 = vrot.lane.b32.xlu1 %v8228_v28, %s7840_s18 }
  0xa1   : > { %1578 = vrot.lane.b32.xlu0 %v8233_v29, %s7840_s18 }
  0xa4   : > { %1576 = vrot.lane.b32.xlu1 %v8236_v30, %s7840_s18 }
  0xa5   : > { %1582 = vrot.lane.b32.xlu0 %v8253_v35, %s7840_s18 }
  0xa6   : > { %5793 = vmatpush3.bf16.xpose.msra.mxu0 %v608_v33 }
  0xa7   : > { %6444 = vmatprep.subr.msk.bf16.mxu0 %vm543_vm0, %v8188_v19 }
  0xa8   : > { %1580 = vrot.lane.b32.xlu1 %v8250_v34, %s7840_s18 }
  0xa9   : > { %1586 = vrot.lane.b32.xlu0 %v8262_v37, %s7840_s18 }
  0xac   : > { %1584 = vrot.lane.b32.xlu1 %v8266_v39, %s7840_s18 }
  0xad   : > { %2660 = vrot.lane.b32.xlu0 %v8097_v0, %s7841_s16 }
  0xae   : > { %5795 = vmatpush3.bf16.xpose.msra.mxu0 %v611_v42 }
  0xaf   : > { %6445 = vmatprep.subr.msk.bf16.mxu0 %vm543_vm0, %v8193_v20 }
  0xb0   : > { %2644 = vrot.lane.b32.xlu1 %v8100_v1, %s7841_s16 }
  0xb1   : > { %2646 = vrot.lane.b32.xlu0 %v8116_v4, %s7841_s16 }
  0xb4   : > { %1588 = vrot.lane.b32.xlu1 %v8289_v45, %s7840_s18 }
  0xb5   : > { %1590 = vrot.lane.b32.xlu0 %v8295_v47, %s7840_s18 }
  0xb6   : > { %5797 = vmatpush3.bf16.xpose.msra.mxu0 %v614_v49 }
  0xb8   : > { %2662 = vrot.lane.b32.xlu1 %v8105_v2, %s7841_s16 }
  0xb9   : > { %2664 = vrot.lane.b32.xlu0 %v8123_v5, %s7841_s16 }
  0xbc   : > { %2648 = vrot.lane.b32.xlu1 %v8128_v7, %s7841_s16 }
  0xbd   : > { %5799 = vmatmul.mubr.msk.bf16.vlgmr.msra.gmra.mrb[0].mxu0 %vm543_vm0, %v8150_v11  ;;  %2650 = vrot.lane.b32.xlu0 %v8140_v9, %s7841_s16 }
  0xbe   : > { %5800 = vmatprep.mubr.msk.bf16.mxu0 %vm543_vm0, %v8228_v28 }
  0xc0   : > { %1592 = vrot.lane.b32.xlu1 %v8312_v51, %s7840_s18 }
  0xc1   : > { %1594 = vrot.lane.b32.xlu0 %v8319_v52, %s7840_s18 }
  0xc4   : > { %2666 = vrot.lane.b32.xlu1 %v8135_v8, %s7841_s16 }
  0xc5   : > { %5801 = vmatmul.mubr.msk.bf16.gmra.mrb[4].mxu0 %vm543_vm0, %v8228_v28  ;;  %2668 = vrot.lane.b32.xlu0 %v8164_v14, %s7841_s16 }
  0xc6   : > { %5802 = vmatprep.mubr.msk.bf16.mxu0 %vm543_vm0, %v8198_v21 }
  0xc8   : > { %2652 = vrot.lane.b32.xlu1 %v8145_v10, %s7841_s16 }
  0xc9   : > { %2654 = vrot.lane.b32.xlu0 %v8155_v13, %s7841_s16 }
  0xcc   : > { %1596 = vrot.lane.b32.xlu1 %v8338_v53, %s7840_s18 }
  0xcd   : > { %5803 = vmatmul.mubr.msk.bf16.gmra.mrb[8].mxu0 %vm543_vm0, %v8198_v21  ;;  %1598 = vrot.lane.b32.xlu0 %v8343_v54, %s7840_s18 }
  0xce   : > { %5804 = vmatprep.mubr.msk.bf16.mxu0 %vm543_vm0, %v8236_v30 }
  0xd0   : > { %2670 = vrot.lane.b32.xlu1 %v8176_v16, %s7841_s16 }
  0xd1   : > { %2672 = vrot.lane.b32.xlu0 %v8188_v19, %s7841_s16 }
  0xd4   : > { %2656 = vrot.lane.b32.xlu1 %v8169_v15, %s7841_s16 }
  0xd5   : > { %5805 = vmatmul.mubr.msk.bf16.gmra.mrb[12].mxu0 %vm543_vm0, %v8236_v30  ;;  %2658 = vrot.lane.b32.xlu0 %v8181_v18, %s7841_s16 }
  0xd6   : > { %5806 = vmatprep.mubr.msk.bf16.mxu0 %vm543_vm0, %v8233_v29 }
  0xd8   : > { %1600 = vrot.lane.b32.xlu1 %v8360_v55, %s7840_s18 }
  0xd9   : > { %2612 = vrot.lane.b32.xlu0 %v8150_v11, %s7841_s16 }
  0xdc   : > { %2674 = vrot.lane.b32.xlu1 %v8193_v20, %s7841_s16 }
  0xdd   : > { %5807 = vmatmul.mubr.msk.bf16.gmra.mrb[16].mxu0 %vm543_vm0, %v8233_v29  ;;  %2616 = vrot.lane.b32.xlu0 %v8198_v21, %s7841_s16 }
  0xde   : > { %5808 = vmatprep.mubr.msk.bf16.mxu0 %vm543_vm0, %v8250_v34 }
  0xe0   : > { %2614 = vrot.lane.b32.xlu1 %v8228_v28, %s7841_s16 }
  0xe1   : > { %2620 = vrot.lane.b32.xlu0 %v8233_v29, %s7841_s16 }
  0xe4   : > { %2618 = vrot.lane.b32.xlu1 %v8236_v30, %s7841_s16 }
  0xe5   : > { %5809 = vmatmul.mubr.msk.bf16.gmra.mrb[20].mxu0 %vm543_vm0, %v8250_v34  ;;  %2624 = vrot.lane.b32.xlu0 %v8253_v35, %s7841_s16 }
  0xe6   : > { %5810 = vmatprep.mubr.msk.bf16.mxu0 %vm543_vm0, %v8253_v35 }
  0xe8   : > { %2622 = vrot.lane.b32.xlu1 %v8250_v34, %s7841_s16 }
  0xe9   : > { %2628 = vrot.lane.b32.xlu0 %v8262_v37, %s7841_s16 }
  0xec   : > { %2626 = vrot.lane.b32.xlu1 %v8266_v39, %s7841_s16 }
  0xed   : > { %5811 = vmatmul.mubr.msk.bf16.gmra.mrb[24].mxu0 %vm543_vm0, %v8253_v35  ;;  %3702 = vrot.lane.b32.xlu0 %v8097_v0, %s7842_s20 }
  0xee   : > { %5812 = vmatprep.mubr.msk.bf16.mxu0 %vm543_vm0, %v8266_v39  ;;  %v1619_v56 = vpop.permute.xlu1 %1618 }
  0xef   : > { %6446 = vmatprep.subr.msk.bf16.mxu1 %vm543_vm0, %v1619_v56  ;;  %v8405_v57 = vpop.permute.xlu0 %1602 }
  0xf0   : > { %3686 = vrot.lane.b32.xlu1 %v8100_v1, %s7842_s20 }
  0xf1   : > { %3688 = vrot.lane.b32.xlu0 %v8116_v4, %s7842_s20 }
  0xf2   : > { %v8411_v58 = vpop.permute.xlu1 %1620 }
  0xf3   : > { %v8413_v59 = vpop.permute.xlu0 %1604 }
  0xf4   : > { %2630 = vrot.lane.b32.xlu1 %v8289_v45, %s7841_s16 }
  0xf5   : > { %5813 = vmatmul.mubr.msk.bf16.gmra.mrb[28].mxu0 %vm543_vm0, %v8266_v39  ;;  %2632 = vrot.lane.b32.xlu0 %v8295_v47, %s7841_s16 }
  0xf6   : > { %5814 = vmatprep.mubr.msk.bf16.mxu0 %vm543_vm0, %v8262_v37  ;;  %v8423_v60 = vpop.permute.xlu1 %1622 }
  0xf7   : > { %v8425_v61 = vpop.permute.xlu0 %1606 }
  0xf8   : > { %3704 = vrot.lane.b32.xlu1 %v8105_v2, %s7842_s20 }
  0xf9   : > { %3706 = vrot.lane.b32.xlu0 %v8123_v5, %s7842_s20 }
  0xfa   : > { %v8431_v62 = vpop.permute.xlu1 %1624 }
  0xfb   : > { %v8433_v63 = vpop.permute.xlu0 %1608 }
  0xfc   : > { %3690 = vrot.lane.b32.xlu1 %v8128_v7, %s7842_s20 }
  0xfd   : > { %5815 = vmatmul.mubr.msk.bf16.gmra.mrb[32].mxu0 %vm543_vm0, %v8262_v37  ;;  %3692 = vrot.lane.b32.xlu0 %v8140_v9, %s7842_s20 }
  0xfe   : > { %5816 = vmatprep.mubr.msk.bf16.mxu0 %vm543_vm0, %v8289_v45  ;;  %v8443_v0 = vpop.permute.xlu1 %1610 }
  0xff   : > { %v8445_v1 = vpop.permute.xlu0 %1612 }
 0x100   : > { %2634 = vrot.lane.b32.xlu1 %v8312_v51, %s7841_s16 }
 0x101   : > { %2636 = vrot.lane.b32.xlu0 %v8319_v52, %s7841_s16 }
 0x102   : > { %v8451_v2 = vpop.permute.xlu1 %1626 }
 0x103   : > { %v8453_v3 = vpop.permute.xlu0 %1614 }
 0x104   : > { %12656 = vst [vmem:[#allocation15_spill] sm:$0xff] %v8453_v3  ;;  %3708 = vrot.lane.b32.xlu1 %v8135_v8, %s7842_s20 }
 0x105   : > { %5817 = vmatmul.mubr.msk.bf16.gmra.mrb[36].mxu0 %vm543_vm0, %v8289_v45  ;;  %3710 = vrot.lane.b32.xlu0 %v8164_v14, %s7842_s20 }
 0x106   : > { %5818 = vmatprep.mubr.msk.bf16.mxu0 %vm543_vm0, %v8295_v47  ;;  %v8463_v4 = vpop.permute.xlu1 %1628 }
 0x107   : > { %v8465_v5 = vpop.permute.xlu0 %1616 }
 0x108   : > { %12657 = vst [vmem:[#allocation16_spill] sm:$0xff] %v8465_v5  ;;  %3694 = vrot.lane.b32.xlu1 %v8145_v10, %s7842_s20 }
 0x109   : > { %3696 = vrot.lane.b32.xlu0 %v8155_v13, %s7842_s20 }
 0x10a   : > { %v8471_v6 = vpop.permute.xlu1 %1630 }
 0x10b   : > { %v8473_v7 = vpop.permute.xlu0 %1570 }
 0x10c   : > { %12658 = vst [vmem:[#allocation17_spill] sm:$0xff] %v8473_v7  ;;  %2638 = vrot.lane.b32.xlu1 %v8338_v53, %s7841_s16 }
 0x10d   : > { %5819 = vmatmul.mubr.msk.bf16.gmra.mrb[40].mxu0 %vm543_vm0, %v8295_v47  ;;  %2640 = vrot.lane.b32.xlu0 %v8343_v54, %s7841_s16 }
 0x10e   : > { %5820 = vmatprep.mubr.msk.bf16.mxu0 %vm543_vm0, %v8312_v51  ;;  %v8483_v8 = vpop.permute.xlu1 %1632 }
 0x10f   : > { %12659 = vst [vmem:[#allocation18_spill] sm:$0xff] %v8483_v8  ;;  %v8485_v9 = vpop.permute.xlu0 %1574 }
 0x110   : > { %12660 = vst [vmem:[#allocation19_spill] sm:$0xff] %v8485_v9  ;;  %3712 = vrot.lane.b32.xlu1 %v8176_v16, %s7842_s20 }
 0x111   : > { %3714 = vrot.lane.b32.xlu0 %v8188_v19, %s7842_s20 }
 0x112   : > { %v8491_v10 = vpop.permute.xlu1 %1572 }
 0x113   : > { %12661 = vst [vmem:[#allocation20_spill] sm:$0xff] %v8491_v10  ;;  %v8493_v12 = vpop.permute.xlu0 %1578 }
 0x114   : > { %12662 = vst [vmem:[#allocation21_spill] sm:$0xff] %v8493_v12  ;;  %3698 = vrot.lane.b32.xlu1 %v8169_v15, %s7842_s20 }
 0x115   : > { %5821 = vmatmul.mubr.msk.bf16.gmra.mrb[44].mxu0 %vm543_vm0, %v8312_v51  ;;  %3700 = vrot.lane.b32.xlu0 %v8181_v18, %s7842_s20 }
 0x116   : > { %5822 = vmatprep.mubr.msk.bf16.mxu0 %vm543_vm0, %v8319_v52  ;;  %v8503_v13 = vpop.permute.xlu1 %1576 }
 0x117   : > { %12663 = vst [vmem:[#allocation22_spill] sm:$0xff] %v8503_v13  ;;  %v8505_v14 = vpop.permute.xlu0 %1582 }
 0x118   : > { %12664 = vst [vmem:[#allocation23_spill] sm:$0xff] %v8505_v14  ;;  %2642 = vrot.lane.b32.xlu1 %v8360_v55, %s7841_s16 }
 0x119   : > { %2355 = vrot.lane.b32.xlu0 %v8206_v22, %s7840_s18 }
 0x11a   : > { %v8511_v15 = vpop.permute.xlu1 %1580 }
 0x11b   : > { %12665 = vst [vmem:[#allocation24_spill] sm:$0xff] %v8511_v15  ;;  %v8513_v16 = vpop.permute.xlu0 %1586 }
 0x11c   : > { %12666 = vst [vmem:[#allocation25_spill] sm:$0xff] %v8513_v16  ;;  %3716 = vrot.lane.b32.xlu1 %v8193_v20, %s7842_s20 }
 0x11d   : > { %5823 = vmatmul.mubr.msk.bf16.gmra.mrb[48].mxu0 %vm543_vm0, %v8319_v52  ;;  %2357 = vrot.lane.b32.xlu0 %v8215_v25, %s7840_s18 }
 0x11e   : > { %5824 = vmatprep.mubr.msk.bf16.mxu0 %vm543_vm0, %v8338_v53  ;;  %v8523_v17 = vpop.permute.xlu1 %1584 }
 0x11f   : > { %12667 = vst [vmem:[#allocation26_spill] sm:$0xff] %v8523_v17  ;;  %v8525_v18 = vpop.permute.xlu0 %2660 }
 0x120   : > { %12668 = vst [vmem:[#allocation27_spill] sm:$0xff] %v8525_v18  ;;  %3654 = vrot.lane.b32.xlu1 %v8150_v11, %s7842_s20 }
 0x121   : > { %3664 = vrot.lane.b32.xlu0 %v8250_v34, %s7842_s20 }
 0x122   : > { %v8531_v19 = vpop.permute.xlu1 %2644 }
 0x123   : > { %12669 = vst [vmem:[#allocation28_spill] sm:$0xff] %v8531_v19  ;;  %v8533_v20 = vpop.permute.xlu0 %2646 }
 0x124   : > { %12670 = vst [vmem:[#allocation29_spill] sm:$0xff] %v8533_v20  ;;  %3656 = vrot.lane.b32.xlu1 %v8228_v28, %s7842_s20 }
 0x125   : > { %5825 = vmatmul.mubr.msk.bf16.gmra.mrb[52].mxu0 %vm543_vm0, %v8338_v53  ;;  %2341 = vrot.lane.b32.xlu0 %v8221_v26, %s7840_s18 }
 0x126   : > { %5826 = vmatprep.mubr.msk.bf16.mxu0 %vm543_vm0, %v8343_v54  ;;  %v8543_v11 = vpop.permute.xlu1 %1588 }
 0x127   : > { %12671 = vst [vmem:[#allocation30_spill] sm:$0xff] %v8543_v11  ;;  %v8545_v22 = vpop.permute.xlu0 %1590 }
 0x128   : > { %12672 = vst [vmem:[#allocation31_spill] sm:$0xff] %v8545_v22  ;;  %3658 = vrot.lane.b32.xlu1 %v8198_v21, %s7842_s20 }
 0x12a   : > { %v8549_v24 = vpop.permute.xlu1 %2662 }
 0x12b   : > { %12673 = vst [vmem:[#allocation32_spill] sm:$0xff] %v8549_v24  ;;  %v8551_v25 = vpop.permute.xlu0 %2664 }
 0x12c   : > { %12674 = vst [vmem:[#allocation33_spill] sm:$0xff] %v8551_v25  ;;  %3660 = vrot.lane.b32.xlu1 %v8236_v30, %s7842_s20 }
 0x12d   : > { %5827 = vmatmul.mubr.msk.bf16.gmra.mrb[56].mxu0 %vm543_vm0, %v8343_v54 }
 0x12e   : > { %5828 = vmatprep.mubr.msk.bf16.mxu0 %vm543_vm0, %v8360_v55  ;;  %v8559_v26 = vpop.permute.xlu1 %2648 }
 0x12f   : > { %12675 = vst [vmem:[#allocation34_spill] sm:$0xff] %v8559_v26  ;;  %v8561_v27 = vpop.permute.xlu0 %2650 }
 0x130   : > { %12676 = vst [vmem:[#allocation35_spill] sm:$0xff] %v8561_v27  ;;  %3662 = vrot.lane.b32.xlu1 %v8233_v29, %s7842_s20 }
 0x132   : > { %v8565_v21 = vpop.permute.xlu1 %1592 }
 0x133   : > { %12677 = vst [vmem:[#allocation36_spill] sm:$0xff] %v8565_v21  ;;  %v8567_v28 = vpop.permute.xlu0 %1594 }
 0x134   : > { %12678 = vst [vmem:[#allocation37_spill] sm:$0xff] %v8567_v28  ;;  %2339 = vrot.lane.b32.xlu1 %v8209_v23, %s7840_s18 }
 0x135   : > { %5829 = vmatmul.mubr.msk.bf16.gmra.mrb[60].mxu0 %vm543_vm0, %v8360_v55 }
 0x136   : > { %v8573_v30 = vpop.permute.xlu1 %2666 }
 0x137   : > { %12679 = vst [vmem:[#allocation38_spill] sm:$0xff] %v8573_v30  ;;  %v8575_v32 = vpop.permute.xlu0 %2668 }
 0x138   : > { %12680 = vst [vmem:[#allocation39_spill] sm:$0xff] %v8575_v32 }
 0x13a   : > { %v8577_v33 = vpop.permute.xlu1 %2652 }
 0x13b   : > { %12681 = vst [vmem:[#allocation40_spill] sm:$0xff] %v8577_v33  ;;  %v8579_v34 = vpop.permute.xlu0 %2654 }
 0x13c   : > { %12682 = vst [vmem:[#allocation41_spill] sm:$0xff] %v8579_v34 }
 0x13e   : > { %v8581_v35 = vpop.permute.xlu1 %1596 }
 0x13f   : > { %12683 = vst [vmem:[#allocation42_spill] sm:$0xff] %v8581_v35  ;;  %v8583_v29 = vpop.permute.xlu0 %1598 }
 0x140   : > { %12684 = vst [vmem:[#allocation43_spill] sm:$0xff] %v8583_v29 }
 0x142   : > { %v8585_v36 = vpop.permute.xlu1 %2670 }
 0x143   : > { %12685 = vst [vmem:[#allocation44_spill] sm:$0xff] %v8585_v36  ;;  %v8587_v37 = vpop.permute.xlu0 %2672 }
 0x144   : > { %12686 = vst [vmem:[#allocation45_spill] sm:$0xff] %v8587_v37 }
 0x146   : > { %v8589_v23 = vpop.permute.xlu1 %2656 }
 0x147   : > { %12687 = vst [vmem:[#allocation46_spill] sm:$0xff] %v8589_v23  ;;  %v8591_v38 = vpop.permute.xlu0 %2658 }
 0x148   : > { %12688 = vst [vmem:[#allocation47_spill] sm:$0xff] %v8591_v38 }
 0x14a   : > { %v8593_v39 = vpop.permute.xlu1 %1600 }
 0x14b   : > { %12689 = vst [vmem:[#allocation48_spill] sm:$0xff] %v8593_v39  ;;  %v8595_v40 = vpop.permute.xlu0 %2612 }
 0x14c   : > { %12690 = vst [vmem:[#allocation49_spill] sm:$0xff] %v8595_v40 }
 0x14e   : > { %v8597_v41 = vpop.permute.xlu1 %2674 }
 0x14f   : > { %12691 = vst [vmem:[#allocation50_spill] sm:$0xff] %v8597_v41  ;;  %v8599_v42 = vpop.permute.xlu0 %2616 }
 0x150   : > { %12692 = vst [vmem:[#allocation51_spill] sm:$0xff] %v8599_v42 }
 0x152   : > { %v8601_v43 = vpop.permute.xlu1 %2614 }
 0x153   : > { %12693 = vst [vmem:[#allocation52_spill] sm:$0xff] %v8601_v43  ;;  %v8603_v44 = vpop.permute.xlu0 %2620 }
 0x154   : > { %12694 = vst [vmem:[#allocation53_spill] sm:$0xff] %v8603_v44 }
 0x156   : > { %v8605_v45 = vpop.permute.xlu1 %2618 }
 0x157   : > { %12695 = vst [vmem:[#allocation54_spill] sm:$0xff] %v8605_v45  ;;  %v8607_v46 = vpop.permute.xlu0 %2624 }
 0x158   : > { %12696 = vst [vmem:[#allocation55_spill] sm:$0xff] %v8607_v46 }
 0x15a   : > { %v8609_v47 = vpop.permute.xlu1 %2622 }
 0x15b   : > { %12697 = vst [vmem:[#allocation56_spill] sm:$0xff] %v8609_v47  ;;  %v8611_v48 = vpop.permute.xlu0 %2628 }
 0x15c   : > { %12698 = vst [vmem:[#allocation57_spill] sm:$0xff] %v8611_v48 }
 0x15e   : > { %v8613_v49 = vpop.permute.xlu1 %2626 }
 0x15f   : > { %12699 = vst [vmem:[#allocation58_spill] sm:$0xff] %v8613_v49  ;;  %v8615_v50 = vpop.permute.xlu0 %3702 }
 0x160   : > { %12700 = vst [vmem:[#allocation59_spill] sm:$0xff] %v8615_v50 }
 0x162   : > { %v8617_v51 = vpop.permute.xlu1 %3686 }
 0x163   : > { %12701 = vst [vmem:[#allocation60_spill] sm:$0xff] %v8617_v51  ;;  %v8619_v52 = vpop.permute.xlu0 %3688 }
 0x164   : > { %12702 = vst [vmem:[#allocation61_spill] sm:$0xff] %v8619_v52 }
 0x166   : > { %v8621_v53 = vpop.permute.xlu1 %2630 }
 0x167   : > { %12703 = vst [vmem:[#allocation62_spill] sm:$0xff] %v8621_v53  ;;  %v8623_v54 = vpop.permute.xlu0 %2632 }
 0x168   : > { %12704 = vst [vmem:[#allocation63_spill] sm:$0xff] %v8623_v54 }
 0x16a   : > { %v8625_v55 = vpop.permute.xlu1 %3704 }
 0x16b   : > { %12705 = vst [vmem:[#allocation64_spill] sm:$0xff] %v8625_v55  ;;  %v8627_v56 = vpop.permute.xlu0 %3706 }
 0x16c   : > { %12706 = vst [vmem:[#allocation65_spill] sm:$0xff] %v8627_v56 }
 0x16e   : > { %v8629_v46 = vpop.permute.xlu1 %3690 }
 0x16f   : > { %12707 = vst [vmem:[#allocation66_spill] sm:$0xff] %v8629_v46  ;;  %v8631_v47 = vpop.permute.xlu0 %3692 }
 0x170   : > { %12708 = vst [vmem:[#allocation67_spill] sm:$0xff] %v8631_v47 }
 0x172   : > { %v8633_v48 = vpop.permute.xlu1 %2634 }
 0x173   : > { %12709 = vst [vmem:[#allocation68_spill] sm:$0xff] %v8633_v48  ;;  %v8635_v49 = vpop.permute.xlu0 %2636 }
 0x174   : > { %12710 = vst [vmem:[#allocation69_spill] sm:$0xff] %v8635_v49 }
 0x176   : > { %v8637_v44 = vpop.permute.xlu1 %3708 }
 0x177   : > { %12711 = vst [vmem:[#allocation70_spill] sm:$0xff] %v8637_v44  ;;  %v8639_v45 = vpop.permute.xlu0 %3710 }
 0x178   : > { %12712 = vst [vmem:[#allocation71_spill] sm:$0xff] %v8639_v45 }
 0x17a   : > { %v8641_v42 = vpop.permute.xlu1 %3694 }
 0x17b   : > { %12713 = vst [vmem:[#allocation72_spill] sm:$0xff] %v8641_v42  ;;  %v8643_v53 = vpop.permute.xlu0 %3696 }
 0x17c   : > { %12714 = vst [vmem:[#allocation73_spill] sm:$0xff] %v8643_v53 }
 0x17e   : > { %v8645_v54 = vpop.permute.xlu1 %2638 }
 0x17f   : > { %12715 = vst [vmem:[#allocation74_spill] sm:$0xff] %v8645_v54  ;;  %v8647_v52 = vpop.permute.xlu0 %2640 }
 0x180   : > { %12716 = vst [vmem:[#allocation75_spill] sm:$0xff] %v8647_v52 }
 0x182   : > { %v8649_v56 = vpop.permute.xlu1 %3712 }
 0x183   : > { %12717 = vst [vmem:[#allocation76_spill] sm:$0xff] %v8649_v56  ;;  %v8651_v46 = vpop.permute.xlu0 %3714 }
 0x184   : > { %12718 = vst [vmem:[#allocation77_spill] sm:$0xff] %v8651_v46 }
 0x186   : > { %v8653_v47 = vpop.permute.xlu1 %3698 }
 0x187   : > { %12719 = vst [vmem:[#allocation78_spill] sm:$0xff] %v8653_v47  ;;  %v8655_v48 = vpop.permute.xlu0 %3700 }
 0x188   : > { %12720 = vst [vmem:[#allocation79_spill] sm:$0xff] %v8655_v48 }
 0x18a   : > { %v8657_v49 = vpop.permute.xlu1 %2642 }
 0x18b   : > { %12721 = vst [vmem:[#allocation80_spill] sm:$0xff] %v8657_v49  ;;  %v2356_v44 = vpop.permute.xlu0 %2355 }
 0x18c   : > { %5990 = vmatprep.subr.bf16.mxu0 %v2356_v44 }
 0x18e   : > { %v8659_v45 = vpop.permute.xlu1 %3716 }
 0x18f   : > { %12722 = vst [vmem:[#allocation81_spill] sm:$0xff] %v8659_v45 }
 0x190   : > { %v8661_v42 = vpop.f32.mrb[0].mxu0 }
 0x191   : > { %v8663_v53 = vpop.f32.mrb[1].mxu0 }
 0x192   : > { %v8665_v54 = vpop.f32.mrb[2].mxu0  ;;  %v833_v52 = vmax.f32 %v8661_v42, %v8663_v53  ;;  %v8669_v46 = vpop.permute.xlu1 %3654 }
 0x193   : > { %12723 = vst [vmem:[#allocation82_spill] sm:$0xff] %v8669_v46  ;;  %v8671_v47 = vpop.f32.mrb[3].mxu0 }
 0x194   : > { %834 = vmax.xlane.f32.xlu0 %v833_v52  ;;  %v836_v49 = vmax.f32 %v8665_v54, %v8671_v47  ;;  %v2358_v52 = vpop.permute.xlu0 %2357 }
 0x196   : > { %v8675_v44 = vpop.permute.xlu1 %3656 }
 0x197   : > { %12724 = vst [vmem:[#allocation83_spill] sm:$0xff] %v8675_v44 }
 0x198   : > { %837 = vmax.xlane.f32.xlu0 %v836_v49  ;;  %v8677_v48 = vpop.f32.mrb[4].mxu0  ;;  %v8697_v39 = vpop.permute.xlu0 %3664 }
 0x199   : > { %v8679_v45 = vpop.f32.mrb[5].mxu0  ;;  %12727 = vst [vmem:[#allocation86_spill] sm:$0xff] %v8697_v39 }
 0x19a   : > { %v8681_v56 = vpop.f32.mrb[6].mxu0  ;;  %v839_v55 = vmax.f32 %v8677_v48, %v8679_v45  ;;  %v8685_v43 = vpop.permute.xlu1 %3658 }
 0x19b   : > { %12725 = vst [vmem:[#allocation84_spill] sm:$0xff] %v8685_v43  ;;  %v8687_v46 = vpop.f32.mrb[7].mxu0 }
 0x19c   : > { %840 = vmax.xlane.f32.xlu1 %v839_v55  ;;  %v842_v51 = vmax.f32 %v8681_v56, %v8687_v46  ;;  %v2342_v39 = vpop.permute.xlu0 %2341 }
 0x19e   : > { %v8691_v44 = vpop.permute.xlu1 %3660 }
 0x19f   : > { %12726 = vst [vmem:[#allocation85_spill] sm:$0xff] %v8691_v44 }
 0x1a0   : > { %843 = vmax.xlane.f32.xlu1 %v842_v51  ;;  %v8693_v49 = vpop.f32.mrb[8].mxu0 }
 0x1a1   : > { %v8695_v40 = vpop.f32.mrb[9].mxu0 }
 0x1a2   : > { %v8699_v29 = vpop.f32.mrb[10].mxu0  ;;  %v845_v43 = vmax.f32 %v8693_v49, %v8695_v40  ;;  %v8703_v35 = vpop.permute.xlu1 %3662 }
 0x1a3   : > { %12728 = vst [vmem:[#allocation87_spill] sm:$0xff] %v8703_v35  ;;  %v8705_v55 = vpop.f32.mrb[11].mxu0 }
 0x1a4   : > { %v848_v28 = vmax.f32 %v8699_v29, %v8705_v55  ;;  %846 = vmax.xlane.f32.xlu0 %v845_v43 }
 0x1a6   : > { %849 = vmax.xlane.f32.xlu1 %v848_v28  ;;  %v2340_v51 = vpop.permute.xlu1 %2339 }
 0x1a7   : > { %5991 = vmatpush3.bf16.msra.mxu0 %v2340_v51 }
 0x1a8   : > { %v8709_v44 = vpop.f32.mrb[12].mxu0  ;;  %5992 = vmatprep.subr.bf16.mxu0 %v2358_v52 }
 0x1a9   : > { %v8711_v21 = vpop.f32.mrb[13].mxu0 }
 0x1aa   : > { %v8713_v22 = vpop.f32.mrb[14].mxu0  ;;  %v851_v35 = vmax.f32 %v8709_v44, %v8711_v21 }
 0x1ab   : > { %v8717_v11 = vpop.f32.mrb[15].mxu0  ;;  %5993 = vmatpush3.bf16.msra.mxu0 %v2342_v39 }
 0x1ac   : > { %v854_v43 = vmax.f32 %v8713_v22, %v8717_v11  ;;  %852 = vmax.xlane.f32.xlu0 %v851_v35 }
 0x1ae   : > { %855 = vmax.xlane.f32.xlu1 %v854_v43 }
 0x1b0   : > { %v8721_v28 = vpop.f32.mrb[16].mxu0 }
 0x1b1   : > { %v8723_v51 = vpop.f32.mrb[17].mxu0 }
 0x1b2   : > { %v8725_v52 = vpop.f32.mrb[18].mxu0  ;;  %v857_v50 = vmax.f32 %v8721_v28, %v8723_v51 }
 0x1b3   : > { %v8729_v16 = vpop.f32.mrb[19].mxu0 }
 0x1b4   : > { %v860_v38 = vmax.f32 %v8725_v52, %v8729_v16  ;;  %858 = vmax.xlane.f32.xlu0 %v857_v50 }
 0x1b6   : > { %861 = vmax.xlane.f32.xlu1 %v860_v38 }
 0x1b8   : > { %v8733_v39 = vpop.f32.mrb[20].mxu0 }
 0x1b9   : > { %v8735_v35 = vpop.f32.mrb[21].mxu0 }
 0x1ba   : > { %v8737_v43 = vpop.f32.mrb[22].mxu0  ;;  %v863_v41 = vmax.f32 %v8733_v39, %v8735_v35 }
 0x1bb   : > { %v8741_v17 = vpop.f32.mrb[23].mxu0 }
 0x1bc   : > { %v866_v23 = vmax.f32 %v8737_v43, %v8741_v17  ;;  %864 = vmax.xlane.f32.xlu0 %v863_v41 }
 0x1be   : > { %867 = vmax.xlane.f32.xlu1 %v866_v23 }
 0x1c0   : > { %v8745_v37 = vpop.f32.mrb[24].mxu0 }
 0x1c1   : > { %v8747_v50 = vpop.f32.mrb[25].mxu0 }
 0x1c2   : > { %v869_v38 = vmax.f32 %v8745_v37, %v8747_v50  ;;  %v8751_v14 = vpop.f32.mrb[26].mxu0 }
 0x1c3   : > { %v8753_v34 = vpop.f32.mrb[27].mxu0 }
 0x1c4   : > { %v872_v36 = vmax.f32 %v8751_v14, %v8753_v34  ;;  %870 = vmax.xlane.f32.xlu0 %v869_v38 }
 0x1c6   : > { %873 = vmax.xlane.f32.xlu1 %v872_v36 }
 0x1c8   : > { %v8757_v15 = vpop.f32.mrb[28].mxu0 }
 0x1c9   : > { %v8759_v41 = vpop.f32.mrb[29].mxu0 }
 0x1ca   : > { %v875_v23 = vmax.f32 %v8757_v15, %v8759_v41  ;;  %v8763_v33 = vpop.f32.mrb[30].mxu0 }
 0x1cb   : > { %v8765_v32 = vpop.f32.mrb[31].mxu0 }
 0x1cc   : > { %v878_v12 = vmax.f32 %v8763_v33, %v8765_v32  ;;  %876 = vmax.xlane.f32.xlu0 %v875_v23 }
 0x1ce   : > { %879 = vmax.xlane.f32.xlu1 %v878_v12 }
 0x1d0   : > { %v8769_v27 = vpop.f32.mrb[32].mxu0 }
 0x1d1   : > { %v8771_v38 = vpop.f32.mrb[33].mxu0 }
 0x1d2   : > { %v881_v36 = vmax.f32 %v8769_v27, %v8771_v38  ;;  %v8775_v30 = vpop.f32.mrb[34].mxu0 }
 0x1d3   : > { %v8777_v13 = vpop.f32.mrb[35].mxu0 }
 0x1d4   : > { %v884_v26 = vmax.f32 %v8775_v30, %v8777_v13  ;;  %882 = vmax.xlane.f32.xlu0 %v881_v36 }
 0x1d6   : > { %885 = vmax.xlane.f32.xlu1 %v884_v26 }
 0x1d8   : > { %v8781_v25 = vpop.f32.mrb[36].mxu0 }
 0x1d9   : > { %12729 = vst [vmem:[#allocation88_spill] sm:$0xff] %v8781_v25  ;;  %v8783_v23 = vpop.f32.mrb[37].mxu0 }
 0x1da   : > { %12730 = vst [vmem:[#allocation89_spill] sm:$0xff] %v8783_v23  ;;  %v887_v12 = vmax.f32 %v8781_v25, %v8783_v23  ;;  %v8787_v9 = vpop.f32.mrb[38].mxu0 }
 0x1db   : > { %12731 = vst [vmem:[#allocation90_spill] sm:$0xff] %v8787_v9  ;;  %v8789_v20 = vpop.f32.mrb[39].mxu0 }
 0x1dc   : > { %12732 = vst [vmem:[#allocation91_spill] sm:$0xff] %v8789_v20  ;;  %v890_v24 = vmax.f32 %v8787_v9, %v8789_v20  ;;  %888 = vmax.xlane.f32.xlu0 %v887_v12 }
 0x1de   : > { %891 = vmax.xlane.f32.xlu1 %v890_v24 }
 0x1e0   : > { %v8793_v10 = vpop.f32.mrb[40].mxu0 }
 0x1e1   : > { %12733 = vst [vmem:[#allocation92_spill] sm:$0xff] %v8793_v10  ;;  %v8795_v36 = vpop.f32.mrb[41].mxu0 }
 0x1e2   : > { %12734 = vst [vmem:[#allocation93_spill] sm:$0xff] %v8795_v36  ;;  %v893_v26 = vmax.f32 %v8793_v10, %v8795_v36  ;;  %v8799_v19 = vpop.f32.mrb[42].mxu0 }
 0x1e3   : > { %12735 = vst [vmem:[#allocation94_spill] sm:$0xff] %v8799_v19  ;;  %v8801_v7 = vpop.f32.mrb[43].mxu0 }
 0x1e4   : > { %12736 = vst [vmem:[#allocation95_spill] sm:$0xff] %v8801_v7  ;;  %v896_v18 = vmax.f32 %v8799_v19, %v8801_v7  ;;  %894 = vmax.xlane.f32.xlu0 %v893_v26 }
 0x1e6   : > { %897 = vmax.xlane.f32.xlu1 %v896_v18 }
 0x1e8   : > { %v8805_v5 = vpop.f32.mrb[44].mxu0 }
 0x1e9   : > { %12737 = vst [vmem:[#allocation96_spill] sm:$0xff] %v8805_v5  ;;  %v8807_v12 = vpop.f32.mrb[45].mxu0 }
 0x1ea   : > { %12738 = vst [vmem:[#allocation97_spill] sm:$0xff] %v8807_v12  ;;  %v899_v24 = vmax.f32 %v8805_v5, %v8807_v12  ;;  %v8811_v20 = vpop.f32.mrb[46].mxu0 }
 0x1eb   : > { %12739 = vst [vmem:[#allocation98_spill] sm:$0xff] %v8811_v20  ;;  %v8813_v9 = vpop.f32.mrb[47].mxu0 }
 0x1ec   : > { %12740 = vst [vmem:[#allocation99_spill] sm:$0xff] %v8813_v9  ;;  %v902_v36 = vmax.f32 %v8811_v20, %v8813_v9  ;;  %900 = vmax.xlane.f32.xlu0 %v899_v24 }
 0x1ee   : > { %903 = vmax.xlane.f32.xlu1 %v902_v36 }
 0x1f0   : > { %v8817_v10 = vpop.f32.mrb[48].mxu0 }
 0x1f1   : > { %12741 = vst [vmem:[#allocation100_spill] sm:$0xff] %v8817_v10  ;;  %v8819_v26 = vpop.f32.mrb[49].mxu0 }
 0x1f2   : > { %12742 = vst [vmem:[#allocation101_spill] sm:$0xff] %v8819_v26  ;;  %v905_v18 = vmax.f32 %v8817_v10, %v8819_v26  ;;  %v8823_v7 = vpop.f32.mrb[50].mxu0 }
 0x1f3   : > { %12743 = vst [vmem:[#allocation102_spill] sm:$0xff] %v8823_v7  ;;  %v8825_v19 = vpop.f32.mrb[51].mxu0 }
 0x1f4   : > { %12744 = vst [vmem:[#allocation103_spill] sm:$0xff] %v8825_v19  ;;  %v908_v12 = vmax.f32 %v8823_v7, %v8825_v19  ;;  %906 = vmax.xlane.f32.xlu0 %v905_v18 }
 0x1f6   : > { %909 = vmax.xlane.f32.xlu1 %v908_v12 }
 0x1f8   : > { %v8829_v5 = vpop.f32.mrb[52].mxu0 }
 0x1f9   : > { %12745 = vst [vmem:[#allocation104_spill] sm:$0xff] %v8829_v5  ;;  %v8831_v24 = vpop.f32.mrb[53].mxu0 }
 0x1fa   : > { %12746 = vst [vmem:[#allocation105_spill] sm:$0xff] %v8831_v24  ;;  %v911_v36 = vmax.f32 %v8829_v5, %v8831_v24  ;;  %v8835_v9 = vpop.f32.mrb[54].mxu0 }
 0x1fb   : > { %12747 = vst [vmem:[#allocation106_spill] sm:$0xff] %v8835_v9  ;;  %v8837_v20 = vpop.f32.mrb[55].mxu0 }
 0x1fc   : > { %12748 = vst [vmem:[#allocation107_spill] sm:$0xff] %v8837_v20  ;;  %v914_v26 = vmax.f32 %v8835_v9, %v8837_v20  ;;  %912 = vmax.xlane.f32.xlu1 %v911_v36 }
 0x1fe   : > { %915 = vmax.xlane.f32.xlu0 %v914_v26 }
 0x200   : > { %v8841_v10 = vpop.f32.mrb[56].mxu0 }
 0x201   : > { %12749 = vst [vmem:[#allocation108_spill] sm:$0xff] %v8841_v10  ;;  %v8843_v18 = vpop.f32.mrb[57].mxu0 }
 0x202   : > { %12750 = vst [vmem:[#allocation109_spill] sm:$0xff] %v8843_v18  ;;  %v917_v12 = vmax.f32 %v8841_v10, %v8843_v18  ;;  %v8847_v19 = vpop.f32.mrb[58].mxu0 }
 0x203   : > { %12751 = vst [vmem:[#allocation110_spill] sm:$0xff] %v8847_v19  ;;  %v8849_v7 = vpop.f32.mrb[59].mxu0 }
 0x204   : > { %12752 = vst [vmem:[#allocation111_spill] sm:$0xff] %v8849_v7  ;;  %v920_v24 = vmax.f32 %v8847_v19, %v8849_v7  ;;  %918 = vmax.xlane.f32.xlu1 %v917_v12 }
 0x206   : > { %921 = vmax.xlane.f32.xlu0 %v920_v24 }
 0x208   : > { %v8853_v5 = vpop.f32.mrb[60].mxu0 }
 0x209   : > { %12753 = vst [vmem:[#allocation112_spill] sm:$0xff] %v8853_v5  ;;  %v8855_v36 = vpop.f32.mrb[61].mxu0 }
 0x20a   : > { %12754 = vst [vmem:[#allocation113_spill] sm:$0xff] %v8855_v36  ;;  %v923_v26 = vmax.f32 %v8853_v5, %v8855_v36  ;;  %v8859_v20 = vpop.f32.mrb[62].mxu0 }
 0x20b   : > { %v8861_v9 = vpop.f32.mrb[63].mxu0 }
 0x20c   : > { %v926_v18 = vmax.f32 %v8859_v20, %v8861_v9  ;;  %924 = vmax.xlane.f32.xlu1 %v923_v26 }
 0x20e   : > { %927 = vmax.xlane.f32.xlu0 %v926_v18 }
 0x221   : > { %v835_v10 = vpop.xlane.xlu0 %834 }
 0x222   : > { %v929_v12 = vsub.f32 %v8661_v42, %v835_v10  ;;  %v930_v24 = vsub.f32 %v8663_v53, %v835_v10 }
 0x224   : > { %v993_v7 = vmul.f32 1.442695, %v929_v12  ;;  %v995_v19 = vmul.f32 1.442695, %v930_v24 }
 0x225   : > { %v838_v8 = vpop.xlane.xlu0 %837 }
 0x226   : > { %6836 = vpow2.f32 %v993_v7  ;;  %v931_v36 = vsub.f32 %v8665_v54, %v838_v8  ;;  %v932_v5 = vsub.f32 %v8671_v47, %v838_v8 }
 0x227   : > { %6838 = vpow2.f32 %v995_v19 }
 0x228   : > { %v997_v23 = vmul.f32 1.442695, %v931_v36  ;;  %v999_v25 = vmul.f32 1.442695, %v932_v5 }
 0x229   : > { %v841_v3 = vpop.xlane.xlu1 %840 }
 0x22a   : > { %6840 = vpow2.f32 %v997_v23  ;;  %v933_v18 = vsub.f32 %v8677_v48, %v841_v3  ;;  %v934_v26 = vsub.f32 %v8679_v45, %v841_v3 }
 0x22b   : > { %6842 = vpow2.f32 %v999_v25 }
 0x22c   : > { %v1001_v42 = vmul.f32 1.442695, %v933_v18  ;;  %v1003_v10 = vmul.f32 1.442695, %v934_v26 }
 0x22d   : > { %v844_v53 = vpop.xlane.xlu1 %843 }
 0x22e   : > { %6844 = vpow2.f32 %v1001_v42  ;;  %v935_v7 = vsub.f32 %v8681_v56, %v844_v53  ;;  %v936_v54 = vsub.f32 %v8687_v46, %v844_v53 }
 0x22f   : > { %6846 = vpow2.f32 %v1003_v10 }
 0x230   : > { %v6837_v8 = vpop.eup %6836  ;;  %v1005_v19 = vmul.f32 1.442695, %v935_v7  ;;  %v1007_v47 = vmul.f32 1.442695, %v936_v54  ;;  %v1683_v54 = vsel %vm543_vm0, %v8405_v57, 0 }
 0x231   : > { %v6839_v5 = vpop.eup %6838  ;;  %v847_v36 = vpop.xlane.xlu0 %846 }
 0x232   : > { %6848 = vpow2.f32 %v1005_v19  ;;  %v937_v48 = vsub.f32 %v8693_v49, %v847_v36  ;;  %v938_v3 = vsub.f32 %v8695_v40, %v847_v36  ;;  %v1121_v25 = vadd.f32 %v6839_v5, %v6837_v8 }
 0x233   : > { %6850 = vpow2.f32 %v1007_v47  ;;  %v850_v45 = vpop.xlane.xlu1 %849 }
 0x234   : > { %v6841_v23 = vpop.eup %6840  ;;  %v1009_v12 = vmul.f32 1.442695, %v937_v48  ;;  %v1011_v24 = vmul.f32 1.442695, %v938_v3  ;;  %v939_v56 = vsub.f32 %v8699_v29, %v850_v45  ;;  %v940_v46 = vsub.f32 %v8705_v55, %v850_v45  ;;  %1122 = vadd.xlane.f32.xlu0 %v1121_v25 }
 0x235   : > { %v6843_v18 = vpop.eup %6842  ;;  %v1217_v26 = vpack.c.bf16 %v6841_v23, %v6837_v8 }
 0x236   : > { %6852 = vpow2.f32 %v1009_v12  ;;  %v1013_v42 = vmul.f32 1.442695, %v939_v56  ;;  %v1015_v10 = vmul.f32 1.442695, %v940_v46  ;;  %v1218_v53 = vpack.c.bf16 %v6843_v18, %v6839_v5 }
 0x237   : > { %6854 = vpow2.f32 %v1011_v24  ;;  %v1124_v49 = vadd.f32 %v6843_v18, %v6841_v23  ;;  %v1686_v56 = vsel %vm543_vm0, %v8413_v59, 0 }
 0x238   : > { %v6845_v40 = vpop.eup %6844  ;;  %6856 = vpow2.f32 %v1013_v42  ;;  %1377 = vmatprep.mubr.bf16.mxu1 %v1218_v53 }
 0x239   : > { %v6847_v7 = vpop.eup %6846  ;;  %6858 = vpow2.f32 %v1015_v10  ;;  %1125 = vadd.xlane.f32.xlu1 %v1124_v49  ;;  %1378 = vmatmul.mubr.bf16.vlgmr.msra.gmra.mrb[0].mxu1 %v1217_v26  ;;  %v853_v29 = vpop.xlane.xlu0 %852 }
 0x23a   : > { %5943 = vmatpush3.bf16.xpose.msra.mxu1 %v1683_v54  ;;  %v941_v55 = vsub.f32 %v8709_v44, %v853_v29  ;;  %v942_v8 = vsub.f32 %v8711_v21, %v853_v29  ;;  %v8881_v19 = vadd.f32 %v6847_v7, %v6845_v40 }
 0x23b   : > { %6447 = vmatprep.subr.msk.bf16.mxu1 %vm543_vm0, %v8411_v58  ;;  %v856_v47 = vpop.xlane.xlu1 %855 }
 0x23c   : > { %12755 = vst [vmem:[#allocation114_spill] sm:$0xff] %v8881_v19  ;;  %v6849_v5 = vpop.eup %6848  ;;  %v1017_v36 = vmul.f32 1.442695, %v941_v55  ;;  %v1019_v48 = vmul.f32 1.442695, %v942_v8  ;;  %v943_v57 = vsub.f32 %v8713_v22, %v856_v47  ;;  %v944_v3 = vsub.f32 %v8717_v11, %v856_v47 }
 0x23d   : > { %v6851_v25 = vpop.eup %6850  ;;  %v1219_v45 = vpack.c.bf16 %v6849_v5, %v6845_v40  ;;  %v1689_v8 = vsel %vm543_vm0, %v8425_v61, 0 }
 0x23e   : > { %6860 = vpow2.f32 %v1017_v36  ;;  %v1021_v23 = vmul.f32 1.442695, %v943_v57  ;;  %v1023_v44 = vmul.f32 1.442695, %v944_v3  ;;  %v1220_v12 = vpack.c.bf16 %v6851_v25, %v6847_v7  ;;  %v7604_v36 = vld [vmem:[%s8203_s24 + $0x50] sm:$0xff]  }
 0x23f   : > { %6862 = vpow2.f32 %v1019_v48  ;;  %v8887_v21 = vadd.f32 %v6851_v25, %v6849_v5 }
 0x240   : > { %v6853_v24 = vpop.eup %6852  ;;  %6864 = vpow2.f32 %v1021_v23  ;;  %1385 = vmatprep.mubr.bf16.mxu1 %v1220_v12 }
 0x241   : > { %12756 = vst [vmem:[#allocation115_spill] sm:$0xff] %v8887_v21  ;;  %v6855_v58 = vpop.eup %6854  ;;  %6866 = vpow2.f32 %v1023_v44  ;;  %1386 = vmatmul.mubr.bf16.gmra.mrb[4].mxu1 %v1219_v45  ;;  %v859_v22 = vpop.xlane.xlu0 %858 }
 0x242   : > { %v6857_v11 = vpop.eup %6856  ;;  %5945 = vmatpush3.bf16.xpose.msra.mxu1 %v1686_v56  ;;  %v945_v46 = vsub.f32 %v8721_v28, %v859_v22  ;;  %v946_v18 = vsub.f32 %v8723_v51, %v859_v22  ;;  %v8893_v26 = vadd.f32 %v6855_v58, %v6853_v24 }
 0x243   : > { %v6859_v42 = vpop.eup %6858  ;;  %6448 = vmatprep.subr.msk.bf16.mxu1 %vm543_vm0, %v8423_v60  ;;  %v862_v10 = vpop.xlane.xlu1 %861  ;;  %v1221_v53 = vpack.c.bf16 %v6857_v11, %v6853_v24 }
 0x244   : > { %12757 = vst [vmem:[#allocation116_spill] sm:$0xff] %v8893_v26  ;;  %v1025_v49 = vmul.f32 1.442695, %v945_v46  ;;  %v1027_v40 = vmul.f32 1.442695, %v946_v18  ;;  %v947_v59 = vsub.f32 %v8725_v52, %v862_v10  ;;  %v948_v7 = vsub.f32 %v8729_v16, %v862_v10  ;;  %v7607_v18 = vld [vmem:[%s8203_s24 + $0x18] sm:$0xff]  }
 0x245   : > { %v1222_v54 = vpack.c.bf16 %v6859_v42, %v6855_v58  ;;  %v8899_v29 = vadd.f32 %v6859_v42, %v6857_v11  ;;  %v7605_v58 = vld [vmem:[%s8203_s24 + $0x58] sm:$0xff]  }
 0x246   : > { %6868 = vpow2.f32 %v1025_v49  ;;  %v1029_v28 = vmul.f32 1.442695, %v947_v59  ;;  %v1031_v51 = vmul.f32 1.442695, %v948_v7  ;;  %v7608_v49 = vld [vmem:[%s8203_s24 + $0x20] sm:$0xff]  }
 0x247   : > { %12758 = vst [vmem:[#allocation117_spill] sm:$0xff] %v8899_v29  ;;  %6870 = vpow2.f32 %v1027_v40  ;;  %1393 = vmatprep.mubr.bf16.mxu1 %v1222_v54 }
 0x248   : > { %v6861_v55 = vpop.eup %6860  ;;  %6872 = vpow2.f32 %v1029_v28 }
 0x249   : > { %v6863_v60 = vpop.eup %6862  ;;  %6874 = vpow2.f32 %v1031_v51  ;;  %1394 = vmatmul.mubr.bf16.gmra.mrb[8].mxu1 %v1221_v53  ;;  %v865_v52 = vpop.xlane.xlu0 %864 }
 0x24a   : > { %v6865_v47 = vpop.eup %6864  ;;  %5947 = vmatpush3.bf16.xpose.msra.mxu1 %v1689_v8  ;;  %v949_v16 = vsub.f32 %v8733_v39, %v865_v52  ;;  %v950_v5 = vsub.f32 %v8735_v35, %v865_v52  ;;  %2359 = vrot.lane.b32.xlu0 %v7604_v36, %s7840_s18  ;;  %v8907_v48 = vadd.f32 %v6863_v60, %v6861_v55 }
 0x24b   : > { %v6867_v57 = vpop.eup %6866  ;;  %6449 = vmatprep.subr.msk.bf16.mxu1 %vm543_vm0, %v8431_v62  ;;  %v868_v61 = vpop.xlane.xlu1 %867  ;;  %v1223_v3 = vpack.c.bf16 %v6865_v47, %v6861_v55  ;;  %2343 = vrot.lane.b32.xlu1 %v8242_v31, %s7840_s18  ;;  %v7606_v62 = vld [vmem:[%s8082_s22 + $0x30] sm:$0xff]   ;;  %v7609_v55 = vld [vmem:[%s8203_s24 + $0x60] sm:$0xff]  }
 0x24c   : > { %12759 = vst [vmem:[#allocation118_spill] sm:$0xff] %v8907_v48  ;;  %v1033_v25 = vmul.f32 1.442695, %v949_v16  ;;  %v1035_v39 = vmul.f32 1.442695, %v950_v5  ;;  %v951_v35 = vsub.f32 %v8737_v43, %v868_v61  ;;  %v952_v45 = vsub.f32 %v8741_v17, %v868_v61  ;;  %v7611_v5 = vld [vmem:[%s8082_s22 + $0x38] sm:$0xff]  }
 0x24d   : > { %v1224_v23 = vpack.c.bf16 %v6867_v57, %v6863_v60  ;;  %v8915_v44 = vadd.f32 %v6867_v57, %v6865_v47  ;;  %v1692_v17 = vsel %vm543_vm0, %v8433_v63, 0  ;;  %v7625_v48 = vld [vmem:[%s8203_s24] sm:$0xff]  }
 0x24e   : > { %6876 = vpow2.f32 %v1033_v25  ;;  %v1037_v12 = vmul.f32 1.442695, %v951_v35  ;;  %v1039_v24 = vmul.f32 1.442695, %v952_v45  ;;  %2361 = vrot.lane.b32.xlu0 %v7605_v58, %s7840_s18 }
 0x24f   : > { %12760 = vst [vmem:[#allocation119_spill] sm:$0xff] %v8915_v44  ;;  %6878 = vpow2.f32 %v1035_v39  ;;  %1401 = vmatprep.mubr.bf16.mxu1 %v1224_v23  ;;  %3666 = vrot.lane.b32.xlu1 %v7606_v62, %s7842_s20 }
 0x250   : > { %v6869_v31 = vpop.eup %6868  ;;  %6880 = vpow2.f32 %v1037_v12 }
 0x251   : > { %v6871_v43 = vpop.eup %6870  ;;  %6882 = vpow2.f32 %v1039_v24  ;;  %1402 = vmatmul.mubr.bf16.gmra.mrb[12].mxu1 %v1223_v3  ;;  %v871_v56 = vpop.xlane.xlu0 %870  ;;  %v7612_v3 = vld [vmem:[%s8203_s24 + $0x28] sm:$0xff]   ;;  %v7613_v24 = vld [vmem:[%s8203_s24 + $0x70] sm:$0xff]  }
 0x252   : > { %v6873_v22 = vpop.eup %6872  ;;  %5949 = vmatpush3.bf16.xpose.msra.mxu1 %v1692_v17  ;;  %v953_v11 = vsub.f32 %v8745_v37, %v871_v56  ;;  %v954_v46 = vsub.f32 %v8747_v50, %v871_v56  ;;  %2345 = vrot.lane.b32.xlu0 %v7607_v18, %s7840_s18  ;;  %v8927_v42 = vadd.f32 %v6871_v43, %v6869_v31  ;;  %v7615_v56 = vld [vmem:[%s8203_s24 + $0x78] sm:$0xff]   ;;  %v7616_v18 = vld [vmem:[%s8082_s22 + $0x40] sm:$0xff]  }
 0x253   : > { %v6875_v10 = vpop.eup %6874  ;;  %6450 = vmatprep.subr.msk.bf16.mxu1 %vm543_vm0, %v8451_v2  ;;  %v874_v63 = vpop.xlane.xlu1 %873  ;;  %v1225_v53 = vpack.c.bf16 %v6873_v22, %v6869_v31  ;;  %2347 = vrot.lane.b32.xlu1 %v7608_v49, %s7840_s18  ;;  %v7610_v2 = vld [vmem:[%s8203_s24 + $0x68] sm:$0xff]  }
 0x254   : > { %12761 = vst [vmem:[#allocation120_spill] sm:$0xff] %v8927_v42  ;;  %v1041_v40 = vmul.f32 1.442695, %v953_v11  ;;  %v1043_v37 = vmul.f32 1.442695, %v954_v46  ;;  %v955_v50 = vsub.f32 %v8751_v14, %v874_v63  ;;  %v956_v59 = vsub.f32 %v8753_v34, %v874_v63 }
 0x255   : > { %v1226_v7 = vpack.c.bf16 %v6875_v10, %v6871_v43  ;;  %v8935_v54 = vadd.f32 %v6875_v10, %v6873_v22  ;;  %v1695_v34 = vsel %vm543_vm0, %v8443_v0, 0 }
 0x256   : > { %6884 = vpow2.f32 %v1041_v40  ;;  %v1045_v28 = vmul.f32 1.442695, %v955_v50  ;;  %v1047_v51 = vmul.f32 1.442695, %v956_v59  ;;  %2363 = vrot.lane.b32.xlu0 %v7609_v55, %s7840_s18  ;;  %v7617_v50 = vld [vmem:[%s8203_s24 + $0x38] sm:$0xff]   ;;  %v12768_v55 = vld [vmem:[#allocation88_spill] sm:$0xff] }
 0x257   : > { %12762 = vst [vmem:[#allocation121_spill] sm:$0xff] %v8935_v54  ;;  %6886 = vpow2.f32 %v1043_v37  ;;  %1409 = vmatprep.mubr.bf16.mxu1 %v1226_v7  ;;  %2365 = vrot.lane.b32.xlu1 %v7610_v2, %s7840_s18  ;;  %v12767_v7 = vld [vmem:[#allocation15_spill] sm:$0xff] }
 0x258   : > { %v6877_v60 = vpop.eup %6876  ;;  %6888 = vpow2.f32 %v1045_v28 }
 0x259   : > { %v6879_v14 = vpop.eup %6878  ;;  %6890 = vpow2.f32 %v1047_v51  ;;  %1410 = vmatmul.mubr.bf16.gmra.mrb[16].mxu1 %v1225_v53  ;;  %v877_v8 = vpop.xlane.xlu0 %876 }
 0x25a   : > { %v6881_v52 = vpop.eup %6880  ;;  %5951 = vmatpush3.bf16.xpose.msra.mxu1 %v1695_v34  ;;  %v957_v47 = vsub.f32 %v8757_v15, %v877_v8  ;;  %v958_v16 = vsub.f32 %v8759_v41, %v877_v8  ;;  %3668 = vrot.lane.b32.xlu0 %v7611_v5, %s7842_s20  ;;  %v8947_v36 = vadd.f32 %v6879_v14, %v6877_v60  ;;  %v7619_v34 = vld [vmem:[%s8082_s22 + $0x48] sm:$0xff]  }
 0x25b   : > { %v6883_v57 = vpop.eup %6882  ;;  %6451 = vmatprep.subr.msk.bf16.mxu1 %vm543_vm0, %v8463_v4  ;;  %v880_v0 = vpop.xlane.xlu1 %879  ;;  %v1227_v61 = vpack.c.bf16 %v6881_v52, %v6877_v60  ;;  %2349 = vrot.lane.b32.xlu1 %v7612_v3, %s7840_s18  ;;  %v7614_v4 = vld [vmem:[%s8203_s24 + $0x30] sm:$0xff]   ;;  %v12772_v3 = vld [vmem:[#allocation90_spill] sm:$0xff] }
 0x25c   : > { %12763 = vst [vmem:[#allocation122_spill] sm:$0xff] %v8947_v36  ;;  %v1049_v25 = vmul.f32 1.442695, %v957_v47  ;;  %v1051_v15 = vmul.f32 1.442695, %v958_v16  ;;  %v959_v41 = vsub.f32 %v8763_v33, %v880_v0  ;;  %v960_v39 = vsub.f32 %v8765_v32, %v880_v0  ;;  %v12769_v60 = vld [vmem:[#allocation89_spill] sm:$0xff] }
 0x25d   : > { %v1228_v35 = vpack.c.bf16 %v6883_v57, %v6879_v14  ;;  %v8955_v45 = vadd.f32 %v6883_v57, %v6881_v52  ;;  %v1698_v32 = vsel %vm543_vm0, %v8445_v1, 0  ;;  %v12771_v47 = vld [vmem:[#allocation18_spill] sm:$0xff]  ;;  %v7620_v57 = vld [vmem:[%s8082_s22 + $0x60] sm:$0xff]  }
 0x25e   : > { %6892 = vpow2.f32 %v1049_v25  ;;  %v1053_v23 = vmul.f32 1.442695, %v959_v41  ;;  %v1055_v12 = vmul.f32 1.442695, %v960_v39  ;;  %2367 = vrot.lane.b32.xlu0 %v7613_v24, %s7840_s18  ;;  %v7621_v24 = vld [vmem:[%s8082_s22 + $0x58] sm:$0xff]  }
 0x25f   : > { %12764 = vst [vmem:[#allocation123_spill] sm:$0xff] %v8955_v45  ;;  %6894 = vpow2.f32 %v1051_v15  ;;  %1417 = vmatprep.mubr.bf16.mxu1 %v1228_v35  ;;  %2351 = vrot.lane.b32.xlu1 %v7614_v4, %s7840_s18  ;;  %v12773_v15 = vld [vmem:[#allocation91_spill] sm:$0xff]  ;;  %v7622_v4 = vld [vmem:[%s8082_s22 + $0x70] sm:$0xff]  }
 0x260   : > { %v6885_v58 = vpop.eup %6884  ;;  %6896 = vpow2.f32 %v1053_v23 }
 0x261   : > { %v6887_v33 = vpop.eup %6886  ;;  %6898 = vpow2.f32 %v1055_v12  ;;  %1418 = vmatmul.mubr.bf16.gmra.mrb[20].mxu1 %v1227_v61  ;;  %v883_v62 = vpop.xlane.xlu0 %882 }
 0x262   : > { %v6889_v31 = vpop.eup %6888  ;;  %5953 = vmatpush3.bf16.xpose.msra.mxu1 %v1698_v32  ;;  %v961_v43 = vsub.f32 %v8769_v27, %v883_v62  ;;  %v962_v17 = vsub.f32 %v8771_v38, %v883_v62  ;;  %2369 = vrot.lane.b32.xlu0 %v7615_v56, %s7840_s18  ;;  %v8967_v22 = vadd.f32 %v6887_v33, %v6885_v58  ;;  %v12775_v32 = vld [vmem:[#allocation16_spill] sm:$0xff] }
 0x263   : > { %v6891_v11 = vpop.eup %6890  ;;  %6452 = vmatprep.subr.msk.bf16.mxu1 %vm543_vm0, %v8471_v6  ;;  %v886_v1 = vpop.xlane.xlu1 %885  ;;  %v1229_v46 = vpack.c.bf16 %v6889_v31, %v6885_v58  ;;  %3670 = vrot.lane.b32.xlu1 %v7616_v18, %s7842_s20  ;;  %v7618_v6 = vld [vmem:[%s8082_s22 + $0x50] sm:$0xff]   ;;  %v1704_v62 = vsel %vm543_vm0, %v12775_v32, 0 }
 0x264   : > { %12765 = vst [vmem:[#allocation124_spill] sm:$0xff] %v8967_v22  ;;  %v1057_v10 = vmul.f32 1.442695, %v961_v43  ;;  %v1059_v27 = vmul.f32 1.442695, %v962_v17  ;;  %v963_v38 = vsub.f32 %v8775_v30, %v886_v1  ;;  %v964_v63 = vsub.f32 %v8777_v13, %v886_v1  ;;  %v12776_v17 = vld [vmem:[#allocation92_spill] sm:$0xff] }
 0x265   : > { %v1230_v53 = vpack.c.bf16 %v6891_v11, %v6887_v33  ;;  %v8975_v49 = vadd.f32 %v6891_v11, %v6889_v31  ;;  %v1701_v13 = vsel %vm543_vm0, %v12767_v7, 0  ;;  %v12777_v11 = vld [vmem:[#allocation93_spill] sm:$0xff] }
 0x266   : > { %6900 = vpow2.f32 %v1057_v10  ;;  %v1061_v40 = vmul.f32 1.442695, %v963_v38  ;;  %v1063_v37 = vmul.f32 1.442695, %v964_v63  ;;  %2353 = vrot.lane.b32.xlu0 %v7617_v50, %s7840_s18 }
 0x267   : > { %12766 = vst [vmem:[#allocation125_spill] sm:$0xff] %v8975_v49  ;;  %6902 = vpow2.f32 %v1059_v27  ;;  %1425 = vmatprep.mubr.bf16.mxu1 %v1230_v53  ;;  %3674 = vrot.lane.b32.xlu1 %v7618_v6, %s7842_s20  ;;  %v12779_v27 = vld [vmem:[#allocation27_spill] sm:$0xff] }
 0x268   : > { %v6893_v59 = vpop.eup %6892  ;;  %6904 = vpow2.f32 %v1061_v40  ;;  %v12781_v6 = vld [vmem:[#allocation95_spill] sm:$0xff] }
 0x269   : > { %v6895_v30 = vpop.eup %6894  ;;  %6906 = vpow2.f32 %v1063_v37  ;;  %1426 = vmatmul.mubr.bf16.gmra.mrb[24].mxu1 %v1229_v46  ;;  %v889_v28 = vpop.xlane.xlu0 %888  ;;  %v7623_v46 = vld [vmem:[%s8082_s22 + $0x68] sm:$0xff]   ;;  %v12780_v37 = vld [vmem:[#allocation94_spill] sm:$0xff] }
 0x26a   : > { %v6897_v51 = vpop.eup %6896  ;;  %5955 = vmatpush3.bf16.xpose.msra.mxu1 %v1701_v13  ;;  %v965_v2 = vsub.f32 %v12768_v55, %v889_v28  ;;  %v966_v14 = vsub.f32 %v12769_v60, %v889_v28  ;;  %3672 = vrot.lane.b32.xlu0 %v7619_v34, %s7842_s20  ;;  %v8987_v8 = vadd.f32 %v6895_v30, %v6893_v59  ;;  %v12783_v34 = vld [vmem:[#allocation96_spill] sm:$0xff] }
 0x26b   : > { %v6899_v52 = vpop.eup %6898  ;;  %6453 = vmatprep.subr.msk.bf16.mxu1 %vm543_vm0, %v12771_v47  ;;  %v892_v16 = vpop.xlane.xlu1 %891  ;;  %v1231_v5 = vpack.c.bf16 %v6897_v51, %v6893_v59  ;;  %3678 = vrot.lane.b32.xlu1 %v7620_v57, %s7842_s20  ;;  %v12784_v47 = vld [vmem:[#allocation97_spill] sm:$0xff] }
 0x26c   : > { %12770 = vst [vmem:[#allocation15_spill] sm:$0xff] %v8987_v8  ;;  %v1065_v0 = vmul.f32 1.442695, %v965_v2  ;;  %v1067_v61 = vmul.f32 1.442695, %v966_v14  ;;  %v967_v25 = vsub.f32 %v12772_v3, %v892_v16  ;;  %v968_v41 = vsub.f32 %v12773_v15, %v892_v16  ;;  %v12786_v15 = vld [vmem:[#allocation98_spill] sm:$0xff] }
 0x26d   : > { %v1232_v39 = vpack.c.bf16 %v6899_v52, %v6895_v30  ;;  %v8995_v35 = vadd.f32 %v6899_v52, %v6897_v51  ;;  %v7624_v51 = vld [vmem:[%s8082_s22 + $0x78] sm:$0xff]  }
 0x26e   : > { %6908 = vpow2.f32 %v1065_v0  ;;  %v1069_v23 = vmul.f32 1.442695, %v967_v25  ;;  %v1071_v12 = vmul.f32 1.442695, %v968_v41  ;;  %3676 = vrot.lane.b32.xlu0 %v7621_v24, %s7842_s20 }
 0x26f   : > { %12774 = vst [vmem:[#allocation88_spill] sm:$0xff] %v8995_v35  ;;  %6910 = vpow2.f32 %v1067_v61  ;;  %1433 = vmatprep.mubr.bf16.mxu1 %v1232_v39  ;;  %3682 = vrot.lane.b32.xlu1 %v7622_v4, %s7842_s20  ;;  %v12787_v39 = vld [vmem:[#allocation99_spill] sm:$0xff] }
 0x270   : > { %v6901_v58 = vpop.eup %6900  ;;  %6912 = vpow2.f32 %v1069_v23 }
 0x271   : > { %v6903_v33 = vpop.eup %6902  ;;  %6914 = vpow2.f32 %v1071_v12  ;;  %1434 = vmatmul.mubr.bf16.gmra.mrb[28].mxu1 %v1231_v5  ;;  %v895_v31 = vpop.xlane.xlu0 %894 }
 0x272   : > { %v6905_v43 = vpop.eup %6904  ;;  %5957 = vmatpush3.bf16.xpose.msra.mxu1 %v1704_v62  ;;  %v969_v56 = vsub.f32 %v12776_v17, %v895_v31  ;;  %v970_v1 = vsub.f32 %v12777_v11, %v895_v31  ;;  %3680 = vrot.lane.b32.xlu0 %v7623_v46, %s7842_s20  ;;  %v9007_v18 = vadd.f32 %v6903_v33, %v6901_v58 }
 0x273   : > { %v6907_v10 = vpop.eup %6906  ;;  %6454 = vmatprep.subr.msk.bf16.mxu1 %vm543_vm0, %v12779_v27  ;;  %v898_v38 = vpop.xlane.xlu1 %897  ;;  %v1233_v63 = vpack.c.bf16 %v6905_v43, %v6901_v58 }
 0x274   : > { %12778 = vst [vmem:[#allocation89_spill] sm:$0xff] %v9007_v18  ;;  %v1073_v53 = vmul.f32 1.442695, %v969_v56  ;;  %v1075_v40 = vmul.f32 1.442695, %v970_v1  ;;  %v971_v50 = vsub.f32 %v12780_v37, %v898_v38  ;;  %v972_v59 = vsub.f32 %v12781_v6, %v898_v38  ;;  %v12790_v56 = vld [vmem:[#allocation101_spill] sm:$0xff] }
 0x275   : > { %v1234_v30 = vpack.c.bf16 %v6907_v10, %v6903_v33  ;;  %v9013_v7 = vadd.f32 %v6907_v10, %v6905_v43  ;;  %v12789_v43 = vld [vmem:[#allocation100_spill] sm:$0xff]  ;;  %v12793_v37 = vld [vmem:[#allocation103_spill] sm:$0xff] }
 0x276   : > { %6916 = vpow2.f32 %v1073_v53  ;;  %v1077_v13 = vmul.f32 1.442695, %v971_v50  ;;  %v1079_v28 = vmul.f32 1.442695, %v972_v59  ;;  %3684 = vrot.lane.b32.xlu0 %v7624_v51, %s7842_s20  ;;  %v12792_v53 = vld [vmem:[#allocation102_spill] sm:$0xff] }
 0x277   : > { %12782 = vst [vmem:[#allocation18_spill] sm:$0xff] %v9013_v7  ;;  %6918 = vpow2.f32 %v1075_v40  ;;  %1441 = vmatprep.mubr.bf16.mxu1 %v1234_v30 }
 0x278   : > { %v6909_v55 = vpop.eup %6908  ;;  %6920 = vpow2.f32 %v1077_v13 }
 0x279   : > { %v6911_v2 = vpop.eup %6910  ;;  %6922 = vpow2.f32 %v1079_v28  ;;  %1442 = vmatmul.mubr.bf16.gmra.mrb[32].mxu1 %v1233_v63  ;;  %v901_v60 = vpop.xlane.xlu0 %900 }
 0x27a   : > { %v6913_v14 = vpop.eup %6912  ;;  %v973_v52 = vsub.f32 %v12783_v34, %v901_v60  ;;  %v974_v16 = vsub.f32 %v12784_v47, %v901_v60  ;;  %v9019_v5 = vadd.f32 %v6911_v2, %v6909_v55  ;;  %v12795_v60 = vld [vmem:[#allocation104_spill] sm:$0xff]  ;;  %v12796_v34 = vld [vmem:[#allocation105_spill] sm:$0xff] }
 0x27b   : > { %v6915_v57 = vpop.eup %6914  ;;  %v904_v0 = vpop.xlane.xlu1 %903  ;;  %v1235_v61 = vpack.c.bf16 %v6913_v14, %v6909_v55 }
 0x27c   : > { %12785 = vst [vmem:[#allocation90_spill] sm:$0xff] %v9019_v5  ;;  %v1081_v3 = vmul.f32 1.442695, %v973_v52  ;;  %v1083_v25 = vmul.f32 1.442695, %v974_v16  ;;  %v975_v41 = vsub.f32 %v12786_v15, %v904_v0  ;;  %v976_v23 = vsub.f32 %v12787_v39, %v904_v0  ;;  %v7626_v5 = vld [vmem:[%s8203_s24 + $0x48] sm:$0xff]  }
 0x27d   : > { %v1236_v12 = vpack.c.bf16 %v6915_v57, %v6911_v2  ;;  %v9023_v24 = vadd.f32 %v6915_v57, %v6913_v14 }
 0x27e   : > { %6924 = vpow2.f32 %v1081_v3  ;;  %v1085_v4 = vmul.f32 1.442695, %v975_v41  ;;  %v1087_v58 = vmul.f32 1.442695, %v976_v23  ;;  %v12799_v41 = vld [vmem:[#allocation107_spill] sm:$0xff] }
 0x27f   : > { %12788 = vst [vmem:[#allocation91_spill] sm:$0xff] %v9023_v24  ;;  %6926 = vpow2.f32 %v1083_v25  ;;  %1449 = vmatprep.mubr.bf16.mxu1 %v1236_v12  ;;  %v12798_v25 = vld [vmem:[#allocation106_spill] sm:$0xff] }
 0x280   : > { %v6917_v33 = vpop.eup %6916  ;;  %6928 = vpow2.f32 %v1085_v4 }
 0x281   : > { %v6919_v32 = vpop.eup %6918  ;;  %6930 = vpow2.f32 %v1087_v58  ;;  %1450 = vmatmul.mubr.bf16.gmra.mrb[36].mxu1 %v1235_v61  ;;  %v907_v62 = vpop.xlane.xlu0 %906 }
 0x282   : > { %v6921_v31 = vpop.eup %6920  ;;  %v977_v17 = vsub.f32 %v12789_v43, %v907_v62  ;;  %v978_v11 = vsub.f32 %v12790_v56, %v907_v62  ;;  %v9027_v1 = vadd.f32 %v6919_v32, %v6917_v33  ;;  %v12801_v43 = vld [vmem:[#allocation108_spill] sm:$0xff]  ;;  %v12802_v56 = vld [vmem:[#allocation109_spill] sm:$0xff] }
 0x283   : > { %v6923_v46 = vpop.eup %6922  ;;  %v910_v10 = vpop.xlane.xlu1 %909  ;;  %v1237_v27 = vpack.c.bf16 %v6921_v31, %v6917_v33 }
 0x284   : > { %12791 = vst [vmem:[#allocation16_spill] sm:$0xff] %v9027_v1  ;;  %v1089_v38 = vmul.f32 1.442695, %v977_v17  ;;  %v1091_v63 = vmul.f32 1.442695, %v978_v11  ;;  %v979_v40 = vsub.f32 %v12792_v53, %v910_v10  ;;  %v980_v50 = vsub.f32 %v12793_v37, %v910_v10 }
 0x285   : > { %v1238_v6 = vpack.c.bf16 %v6923_v46, %v6919_v32  ;;  %v9031_v59 = vadd.f32 %v6923_v46, %v6921_v31 }
 0x286   : > { %6932 = vpow2.f32 %v1089_v38  ;;  %v1093_v30 = vmul.f32 1.442695, %v979_v40  ;;  %v1095_v13 = vmul.f32 1.442695, %v980_v50  ;;  %v12804_v40 = vld [vmem:[#allocation110_spill] sm:$0xff]  ;;  %v12805_v50 = vld [vmem:[#allocation111_spill] sm:$0xff] }
 0x287   : > { %12794 = vst [vmem:[#allocation92_spill] sm:$0xff] %v9031_v59  ;;  %6934 = vpow2.f32 %v1091_v63  ;;  %1457 = vmatprep.mubr.bf16.mxu1 %v1238_v6 }
 0x288   : > { %v6925_v28 = vpop.eup %6924  ;;  %6936 = vpow2.f32 %v1093_v30 }
 0x289   : > { %v6927_v51 = vpop.eup %6926  ;;  %6938 = vpow2.f32 %v1095_v13  ;;  %1458 = vmatmul.mubr.bf16.gmra.mrb[40].mxu1 %v1237_v27  ;;  %v913_v55 = vpop.xlane.xlu1 %912 }
 0x28a   : > { %v6929_v2 = vpop.eup %6928  ;;  %v981_v14 = vsub.f32 %v12795_v60, %v913_v55  ;;  %v982_v52 = vsub.f32 %v12796_v34, %v913_v55  ;;  %v9035_v47 = vadd.f32 %v6927_v51, %v6925_v28  ;;  %v12807_v34 = vld [vmem:[#allocation112_spill] sm:$0xff] }
 0x28b   : > { %v6931_v16 = vpop.eup %6930  ;;  %v916_v57 = vpop.xlane.xlu0 %915  ;;  %v1239_v0 = vpack.c.bf16 %v6929_v2, %v6925_v28 }
 0x28c   : > { %12797 = vst [vmem:[#allocation93_spill] sm:$0xff] %v9035_v47  ;;  %v1097_v61 = vmul.f32 1.442695, %v981_v14  ;;  %v1099_v3 = vmul.f32 1.442695, %v982_v52  ;;  %v983_v15 = vsub.f32 %v12798_v25, %v916_v57  ;;  %v984_v39 = vsub.f32 %v12799_v41, %v916_v57 }
 0x28d   : > { %v1240_v23 = vpack.c.bf16 %v6931_v16, %v6927_v51  ;;  %v9039_v12 = vadd.f32 %v6931_v16, %v6929_v2  ;;  %v12808_v16 = vld [vmem:[#allocation113_spill] sm:$0xff] }
 0x28e   : > { %6940 = vpow2.f32 %v1097_v61  ;;  %v1101_v4 = vmul.f32 1.442695, %v983_v15  ;;  %v1103_v58 = vmul.f32 1.442695, %v984_v39 }
 0x28f   : > { %12800 = vst [vmem:[#allocation27_spill] sm:$0xff] %v9039_v12  ;;  %6942 = vpow2.f32 %v1099_v3  ;;  %1465 = vmatprep.mubr.bf16.mxu1 %v1240_v23 }
 0x290   : > { %v6933_v33 = vpop.eup %6932  ;;  %6944 = vpow2.f32 %v1101_v4 }
 0x291   : > { %v6935_v32 = vpop.eup %6934  ;;  %6946 = vpow2.f32 %v1103_v58  ;;  %1466 = vmatmul.mubr.bf16.gmra.mrb[44].mxu1 %v1239_v0  ;;  %v919_v62 = vpop.xlane.xlu1 %918 }
 0x292   : > { %v6937_v31 = vpop.eup %6936  ;;  %v985_v17 = vsub.f32 %v12801_v43, %v919_v62  ;;  %v986_v11 = vsub.f32 %v12802_v56, %v919_v62  ;;  %v9043_v46 = vadd.f32 %v6935_v32, %v6933_v33 }
 0x293   : > { %v6939_v10 = vpop.eup %6938  ;;  %v922_v27 = vpop.xlane.xlu0 %921  ;;  %v1241_v38 = vpack.c.bf16 %v6937_v31, %v6933_v33 }
 0x294   : > { %12803 = vst [vmem:[#allocation94_spill] sm:$0xff] %v9043_v46  ;;  %v1105_v63 = vmul.f32 1.442695, %v985_v17  ;;  %v1107_v53 = vmul.f32 1.442695, %v986_v11  ;;  %v987_v37 = vsub.f32 %v12804_v40, %v922_v27  ;;  %v988_v6 = vsub.f32 %v12805_v50, %v922_v27 }
 0x295   : > { %v1242_v30 = vpack.c.bf16 %v6939_v10, %v6935_v32  ;;  %v9047_v13 = vadd.f32 %v6939_v10, %v6937_v31 }
 0x296   : > { %6948 = vpow2.f32 %v1105_v63  ;;  %v1109_v28 = vmul.f32 1.442695, %v987_v37  ;;  %v1111_v51 = vmul.f32 1.442695, %v988_v6  ;;  %v12815_v6 = vld [vmem:[#allocation17_spill] sm:$0xff] }
 0x297   : > { %12806 = vst [vmem:[#allocation95_spill] sm:$0xff] %v9047_v13  ;;  %6950 = vpow2.f32 %v1107_v53  ;;  %1473 = vmatprep.mubr.bf16.mxu1 %v1242_v30  ;;  %v12816_v30 = vld [vmem:[#allocation28_spill] sm:$0xff] }
 0x298   : > { %v6941_v55 = vpop.eup %6940  ;;  %6952 = vpow2.f32 %v1109_v28  ;;  %v2725_v28 = vsel %vm543_vm0, %v12816_v30, 0  ;;  %v12842_v30 = vld [vmem:[#allocation36_spill] sm:$0xff] }
 0x299   : > { %v6943_v2 = vpop.eup %6942  ;;  %6954 = vpow2.f32 %v1111_v51  ;;  %1474 = vmatmul.mubr.bf16.gmra.mrb[48].mxu1 %v1241_v38  ;;  %v925_v60 = vpop.xlane.xlu1 %924  ;;  %v12817_v51 = vld [vmem:[#allocation20_spill] sm:$0xff] }
 0x29a   : > { %v6945_v14 = vpop.eup %6944  ;;  %v989_v52 = vsub.f32 %v12807_v34, %v925_v60  ;;  %v990_v57 = vsub.f32 %v12808_v16, %v925_v60  ;;  %v9051_v0 = vadd.f32 %v6943_v2, %v6941_v55  ;;  %v12821_v34 = vld [vmem:[#allocation33_spill] sm:$0xff] }
 0x29b   : > { %v6947_v61 = vpop.eup %6946  ;;  %v928_v3 = vpop.xlane.xlu0 %927  ;;  %v1243_v25 = vpack.c.bf16 %v6945_v14, %v6941_v55  ;;  %v12818_v55 = vld [vmem:[#allocation32_spill] sm:$0xff] }
 0x29c   : > { %12809 = vst [vmem:[#allocation96_spill] sm:$0xff] %v9051_v0  ;;  %v1113_v15 = vmul.f32 1.442695, %v989_v52  ;;  %v1115_v41 = vmul.f32 1.442695, %v990_v57  ;;  %v991_v39 = vsub.f32 %v8859_v20, %v928_v3  ;;  %v992_v23 = vsub.f32 %v8861_v9, %v928_v3  ;;  %v12822_v52 = vld [vmem:[#allocation34_spill] sm:$0xff] }
 0x29d   : > { %v1244_v4 = vpack.c.bf16 %v6947_v61, %v6943_v2  ;;  %v9055_v58 = vadd.f32 %v6947_v61, %v6945_v14  ;;  %v12819_v2 = vld [vmem:[#allocation29_spill] sm:$0xff]  ;;  %v12820_v14 = vld [vmem:[#allocation19_spill] sm:$0xff]  ;;  %v2731_v16 = vsel %vm543_vm0, %v12822_v52, 0  ;;  %v12823_v57 = vld [vmem:[#allocation22_spill] sm:$0xff] }
 0x29e   : > { %6956 = vpow2.f32 %v1113_v15  ;;  %v1117_v33 = vmul.f32 1.442695, %v991_v39  ;;  %v1119_v32 = vmul.f32 1.442695, %v992_v23  ;;  %v2728_v60 = vsel %vm543_vm0, %v12819_v2, 0  ;;  %v12824_v61 = vld [vmem:[#allocation38_spill] sm:$0xff] }
 0x29f   : > { %12810 = vst [vmem:[#allocation97_spill] sm:$0xff] %v9055_v58  ;;  %6958 = vpow2.f32 %v1115_v41  ;;  %1481 = vmatprep.mubr.bf16.mxu1 %v1244_v4  ;;  %v12825_v3 = vld [vmem:[#allocation35_spill] sm:$0xff]  ;;  %v12826_v15 = vld [vmem:[#allocation21_spill] sm:$0xff]  ;;  %v12828_v39 = vld [vmem:[#allocation40_spill] sm:$0xff] }
 0x2a0   : > { %v6949_v62 = vpop.eup %6948  ;;  %6960 = vpow2.f32 %v1117_v33  ;;  %v12827_v41 = vld [vmem:[#allocation39_spill] sm:$0xff]  ;;  %v2737_v23 = vsel %vm543_vm0, %v12828_v39, 0  ;;  %v12829_v4 = vld [vmem:[#allocation24_spill] sm:$0xff] }
 0x2a1   : > { %v6951_v31 = vpop.eup %6950  ;;  %6962 = vpow2.f32 %v1119_v32  ;;  %1482 = vmatmul.mubr.bf16.gmra.mrb[52].mxu1 %v1243_v25  ;;  %v2734_v25 = vsel %vm543_vm0, %v12825_v3, 0  ;;  %v12830_v33 = vld [vmem:[#allocation44_spill] sm:$0xff]  ;;  %v12831_v32 = vld [vmem:[#allocation41_spill] sm:$0xff] }
 0x2a2   : > { %v6953_v43 = vpop.eup %6952  ;;  %v9057_v17 = vadd.f32 %v6951_v31, %v6949_v62 }
 0x2a3   : > { %v6955_v56 = vpop.eup %6954  ;;  %v1245_v20 = vpack.c.bf16 %v6953_v43, %v6949_v62  ;;  %v2740_v62 = vsel %vm543_vm0, %v12831_v32, 0 }
 0x2a4   : > { %12811 = vst [vmem:[#allocation98_spill] sm:$0xff] %v9057_v17  ;;  %v1246_v11 = vpack.c.bf16 %v6955_v56, %v6951_v31  ;;  %v9059_v9 = vadd.f32 %v6955_v56, %v6953_v43  ;;  %v12832_v31 = vld [vmem:[#allocation23_spill] sm:$0xff]  ;;  %v12833_v43 = vld [vmem:[#allocation45_spill] sm:$0xff]  ;;  %v12834_v56 = vld [vmem:[#allocation46_spill] sm:$0xff] }
 0x2a6   : > { %12812 = vst [vmem:[#allocation99_spill] sm:$0xff] %v9059_v9  ;;  %1489 = vmatprep.mubr.bf16.mxu1 %v1246_v11  ;;  %v12835_v11 = vld [vmem:[#allocation26_spill] sm:$0xff] }
 0x2a8   : > { %v6957_v10 = vpop.eup %6956 }
 0x2a9   : > { %v6959_v27 = vpop.eup %6958  ;;  %1490 = vmatmul.mubr.bf16.gmra.mrb[56].mxu1 %v1245_v20  ;;  %v2743_v20 = vsel %vm543_vm0, %v12834_v56, 0 }
 0x2aa   : > { %v6961_v38 = vpop.eup %6960  ;;  %v9061_v63 = vadd.f32 %v6959_v27, %v6957_v10 }
 0x2ab   : > { %v6963_v53 = vpop.eup %6962  ;;  %v1247_v40 = vpack.c.bf16 %v6961_v38, %v6957_v10  ;;  %v12836_v10 = vld [vmem:[#allocation50_spill] sm:$0xff] }
 0x2ac   : > { %12813 = vst [vmem:[#allocation100_spill] sm:$0xff] %v9061_v63  ;;  %v1248_v37 = vpack.c.bf16 %v6963_v53, %v6959_v27  ;;  %v9063_v50 = vadd.f32 %v6963_v53, %v6961_v38  ;;  %v12837_v27 = vld [vmem:[#allocation47_spill] sm:$0xff]  ;;  %v12838_v53 = vld [vmem:[#allocation25_spill] sm:$0xff] }
 0x2ad   : > { %v2746_v38 = vsel %vm543_vm0, %v12837_v27, 0  ;;  %v12854_v27 = vld [vmem:[#allocation48_spill] sm:$0xff] }
 0x2ae   : > { %12814 = vst [vmem:[#allocation101_spill] sm:$0xff] %v9063_v50  ;;  %1497 = vmatprep.mubr.bf16.mxu1 %v1248_v37  ;;  %v12840_v37 = vld [vmem:[#allocation30_spill] sm:$0xff] }
 0x2b1   : > { %1498 = vmatmul.mubr.bf16.gmra.mrb[60].mxu1 %v1247_v40  ;;  %v12839_v40 = vld [vmem:[#allocation59_spill] sm:$0xff] }
 0x2b2   : > { %5958 = vmatprep.mubr.msk.bf16.mxu1 %vm543_vm0, %v12815_v6 }
 0x2b9   : > { %5959 = vmatmul.mubr.msk.bf16.vlgmr.msra.gmra.mrb[64].mxu1 %vm543_vm0, %v12815_v6  ;;  %v12841_v6 = vld [vmem:[#allocation31_spill] sm:$0xff] }
 0x2ba   : > { %6103 = vmatpush3.bf16.xpose.msra.mxu1 %v2725_v28  ;;  %5960 = vmatprep.mubr.msk.bf16.mxu1 %vm543_vm0, %v12817_v51 }
 0x2bb   : > { %6455 = vmatprep.subr.msk.bf16.mxu1 %vm543_vm0, %v12818_v55 }
 0x2c1   : > { %5961 = vmatmul.mubr.msk.bf16.gmra.mrb[68].mxu1 %vm543_vm0, %v12817_v51 }
 0x2c2   : > { %6105 = vmatpush3.bf16.xpose.msra.mxu1 %v2728_v60  ;;  %5962 = vmatprep.mubr.msk.bf16.mxu1 %vm543_vm0, %v12820_v14 }
 0x2c3   : > { %6456 = vmatprep.subr.msk.bf16.mxu1 %vm543_vm0, %v12821_v34  ;;  %v12845_v34 = vld [vmem:[#allocation37_spill] sm:$0xff] }
 0x2c9   : > { %5963 = vmatmul.mubr.msk.bf16.gmra.mrb[72].mxu1 %vm543_vm0, %v12820_v14 }
 0x2ca   : > { %6107 = vmatpush3.bf16.xpose.msra.mxu1 %v2731_v16  ;;  %5964 = vmatprep.mubr.msk.bf16.mxu1 %vm543_vm0, %v12823_v57 }
 0x2cb   : > { %6457 = vmatprep.subr.msk.bf16.mxu1 %vm543_vm0, %v12824_v61 }
 0x2d1   : > { %5965 = vmatmul.mubr.msk.bf16.gmra.mrb[76].mxu1 %vm543_vm0, %v12823_v57 }
 0x2d2   : > { %6109 = vmatpush3.bf16.xpose.msra.mxu1 %v2734_v25  ;;  %5966 = vmatprep.mubr.msk.bf16.mxu1 %vm543_vm0, %v12826_v15 }
 0x2d3   : > { %6458 = vmatprep.subr.msk.bf16.mxu1 %vm543_vm0, %v12827_v41 }
 0x2d9   : > { %5967 = vmatmul.mubr.msk.bf16.gmra.mrb[80].mxu1 %vm543_vm0, %v12826_v15  ;;  %v12848_v15 = vld [vmem:[#allocation42_spill] sm:$0xff] }
 0x2da   : > { %6111 = vmatpush3.bf16.xpose.msra.mxu1 %v2737_v23  ;;  %5968 = vmatprep.mubr.msk.bf16.mxu1 %vm543_vm0, %v12829_v4 }
 0x2db   : > { %6459 = vmatprep.subr.msk.bf16.mxu1 %vm543_vm0, %v12830_v33 }
 0x2e1   : > { %5969 = vmatmul.mubr.msk.bf16.gmra.mrb[84].mxu1 %vm543_vm0, %v12829_v4 }
 0x2e2   : > { %6113 = vmatpush3.bf16.xpose.msra.mxu1 %v2740_v62  ;;  %5970 = vmatprep.mubr.msk.bf16.mxu1 %vm543_vm0, %v12832_v31  ;;  %v12851_v62 = vld [vmem:[#allocation43_spill] sm:$0xff] }
 0x2e3   : > { %6460 = vmatprep.subr.msk.bf16.mxu1 %vm543_vm0, %v12833_v43 }
 0x2e9   : > { %5971 = vmatmul.mubr.msk.bf16.gmra.mrb[88].mxu1 %vm543_vm0, %v12832_v31 }
 0x2ea   : > { %6115 = vmatpush3.bf16.xpose.msra.mxu1 %v2743_v20  ;;  %5972 = vmatprep.mubr.msk.bf16.mxu1 %vm543_vm0, %v12835_v11 }
 0x2eb   : > { %6461 = vmatprep.subr.msk.bf16.mxu1 %vm543_vm0, %v12836_v10 }
 0x2f1   : > { %5973 = vmatmul.mubr.msk.bf16.gmra.mrb[92].mxu1 %vm543_vm0, %v12835_v11 }
 0x2f2   : > { %6117 = vmatpush3.bf16.xpose.msra.mxu1 %v2746_v38  ;;  %5974 = vmatprep.mubr.msk.bf16.mxu1 %vm543_vm0, %v12838_v53 }
 0x2f3   : > { %6462 = vmatprep.subr.msk.bf16.mxu1 %vm543_vm0, %v12839_v40 }
 0x2f9   : > { %5975 = vmatmul.mubr.msk.bf16.gmra.mrb[96].mxu1 %vm543_vm0, %v12838_v53 }
 0x2fa   : > { %5976 = vmatprep.mubr.msk.bf16.mxu1 %vm543_vm0, %v12840_v37 }
 0x301   : > { %5977 = vmatmul.mubr.msk.bf16.gmra.mrb[100].mxu1 %vm543_vm0, %v12840_v37 }
 0x302   : > { %5978 = vmatprep.mubr.msk.bf16.mxu1 %vm543_vm0, %v12841_v6 }
 0x309   : > { %5979 = vmatmul.mubr.msk.bf16.gmra.mrb[104].mxu1 %vm543_vm0, %v12841_v6 }
 0x30a   : > { %5980 = vmatprep.mubr.msk.bf16.mxu1 %vm543_vm0, %v12842_v30 }
 0x30c   : > { %v5846_v28 = vpop.f32.mrb[0].mxu1 }
 0x30d   : > { %v5847_v51 = vpop.f32.mrb[1].mxu1 }
 0x30e   : > { %v9143_v55 = vadd.f32 %v5847_v51, %v5846_v28  ;;  %v5849_v2 = vpop.f32.mrb[2].mxu1  ;;  %v12857_v28 = vld [vmem:[#allocation49_spill] sm:$0xff] }
 0x30f   : > { %v5850_v60 = vpop.f32.mrb[3].mxu1 }
 0x310   : > { %12843 = vst [vmem:[#allocation102_spill] sm:$0xff] %v9143_v55  ;;  %v9145_v14 = vadd.f32 %v5850_v60, %v5849_v2  ;;  %v12897_v55 = vld [vmem:[#allocation79_spill] sm:$0xff] }
 0x311   : > { %5981 = vmatmul.mubr.msk.bf16.gmra.mrb[108].mxu1 %vm543_vm0, %v12842_v30 }
 0x312   : > { %12844 = vst [vmem:[#allocation103_spill] sm:$0xff] %v9145_v14  ;;  %5982 = vmatprep.mubr.msk.bf16.mxu1 %vm543_vm0, %v12845_v34  ;;  %v3788_v14 = vsel %vm543_vm0, %v12897_v55, 0 }
 0x314   : > { %v5852_v52 = vpop.f32.mrb[4].mxu1 }
 0x315   : > { %v5853_v16 = vpop.f32.mrb[5].mxu1 }
 0x316   : > { %v9151_v57 = vadd.f32 %v5853_v16, %v5852_v52  ;;  %v5855_v61 = vpop.f32.mrb[6].mxu1 }
 0x317   : > { %v5856_v3 = vpop.f32.mrb[7].mxu1 }
 0x318   : > { %12846 = vst [vmem:[#allocation104_spill] sm:$0xff] %v9151_v57  ;;  %v9153_v25 = vadd.f32 %v5856_v3, %v5855_v61  ;;  %v12860_v61 = vld [vmem:[#allocation60_spill] sm:$0xff] }
 0x319   : > { %5983 = vmatmul.mubr.msk.bf16.gmra.mrb[112].mxu1 %vm543_vm0, %v12845_v34  ;;  %v3767_v3 = vsel %vm543_vm0, %v12860_v61, 0  ;;  %v12871_v61 = vld [vmem:[#allocation54_spill] sm:$0xff] }
 0x31a   : > { %12847 = vst [vmem:[#allocation105_spill] sm:$0xff] %v9153_v25  ;;  %5984 = vmatprep.mubr.msk.bf16.mxu1 %vm543_vm0, %v12848_v15 }
 0x31c   : > { %v5858_v41 = vpop.f32.mrb[8].mxu1 }
 0x31d   : > { %v5859_v39 = vpop.f32.mrb[9].mxu1 }
 0x31e   : > { %v9159_v23 = vadd.f32 %v5859_v39, %v5858_v41  ;;  %v5861_v4 = vpop.f32.mrb[10].mxu1  ;;  %v12862_v41 = vld [vmem:[#allocation64_spill] sm:$0xff] }
 0x31f   : > { %v5862_v33 = vpop.f32.mrb[11].mxu1 }
 0x320   : > { %12849 = vst [vmem:[#allocation106_spill] sm:$0xff] %v9159_v23  ;;  %v9161_v32 = vadd.f32 %v5862_v33, %v5861_v4 }
 0x321   : > { %5985 = vmatmul.mubr.msk.bf16.gmra.mrb[116].mxu1 %vm543_vm0, %v12848_v15  ;;  %v12861_v15 = vld [vmem:[#allocation52_spill] sm:$0xff] }
 0x322   : > { %12850 = vst [vmem:[#allocation107_spill] sm:$0xff] %v9161_v32  ;;  %5986 = vmatprep.mubr.msk.bf16.mxu1 %vm543_vm0, %v12851_v62 }
 0x324   : > { %v5864_v31 = vpop.f32.mrb[12].mxu1 }
 0x325   : > { %v5865_v43 = vpop.f32.mrb[13].mxu1 }
 0x326   : > { %v9167_v56 = vadd.f32 %v5865_v43, %v5864_v31  ;;  %v5867_v20 = vpop.f32.mrb[14].mxu1 }
 0x327   : > { %v5868_v11 = vpop.f32.mrb[15].mxu1 }
 0x328   : > { %12852 = vst [vmem:[#allocation108_spill] sm:$0xff] %v9167_v56  ;;  %v9169_v10 = vadd.f32 %v5868_v11, %v5867_v20  ;;  %v12865_v20 = vld [vmem:[#allocation61_spill] sm:$0xff] }
 0x329   : > { %5987 = vmatmul.mubr.msk.bf16.gmra.mrb[120].mxu1 %vm543_vm0, %v12851_v62  ;;  %v3770_v11 = vsel %vm543_vm0, %v12865_v20, 0  ;;  %v12875_v20 = vld [vmem:[#allocation67_spill] sm:$0xff] }
 0x32a   : > { %12853 = vst [vmem:[#allocation109_spill] sm:$0xff] %v9169_v10  ;;  %5988 = vmatprep.mubr.msk.bf16.mxu1 %vm543_vm0, %v12854_v27 }
 0x32c   : > { %v5870_v38 = vpop.f32.mrb[16].mxu1 }
 0x32d   : > { %v5871_v53 = vpop.f32.mrb[17].mxu1 }
 0x32e   : > { %v9175_v40 = vadd.f32 %v5871_v53, %v5870_v38  ;;  %v5873_v37 = vpop.f32.mrb[18].mxu1  ;;  %v12867_v38 = vld [vmem:[#allocation65_spill] sm:$0xff] }
 0x32f   : > { %v5874_v6 = vpop.f32.mrb[19].mxu1 }
 0x330   : > { %12855 = vst [vmem:[#allocation110_spill] sm:$0xff] %v9175_v40  ;;  %v9177_v30 = vadd.f32 %v5874_v6, %v5873_v37 }
 0x331   : > { %5989 = vmatmul.mubr.msk.bf16.gmra.mrb[124].mxu1 %vm543_vm0, %v12854_v27  ;;  %v12866_v27 = vld [vmem:[#allocation51_spill] sm:$0xff] }
 0x332   : > { %12856 = vst [vmem:[#allocation111_spill] sm:$0xff] %v9177_v30  ;;  %6118 = vmatprep.mubr.msk.bf16.mxu1 %vm543_vm0, %v12857_v28 }
 0x334   : > { %v5876_v51 = vpop.f32.mrb[20].mxu1 }
 0x335   : > { %v5877_v2 = vpop.f32.mrb[21].mxu1 }
 0x336   : > { %v9183_v60 = vadd.f32 %v5877_v2, %v5876_v51  ;;  %v5879_v34 = vpop.f32.mrb[22].mxu1 }
 0x337   : > { %v5880_v52 = vpop.f32.mrb[23].mxu1 }
 0x338   : > { %12858 = vst [vmem:[#allocation112_spill] sm:$0xff] %v9183_v60  ;;  %v9185_v16 = vadd.f32 %v5880_v52, %v5879_v34  ;;  %v12870_v34 = vld [vmem:[#allocation66_spill] sm:$0xff] }
 0x339   : > { %6119 = vmatmul.mubr.msk.bf16.vlgmr.msra.gmra.mrb[128].mxu1 %vm543_vm0, %v12857_v28  ;;  %v3773_v52 = vsel %vm543_vm0, %v12870_v34, 0 }
 0x33a   : > { %12859 = vst [vmem:[#allocation113_spill] sm:$0xff] %v9185_v16  ;;  %6263 = vmatpush3.bf16.xpose.msra.mxu1 %v3767_v3  ;;  %6120 = vmatprep.mubr.msk.bf16.mxu1 %vm543_vm0, %v12861_v15  ;;  %v12872_v3 = vld [vmem:[#allocation70_spill] sm:$0xff] }
 0x33b   : > { %6463 = vmatprep.subr.msk.bf16.mxu1 %vm543_vm0, %v12862_v41 }
 0x33c   : > { %v5882_v39 = vpop.f32.mrb[24].mxu1 }
 0x33d   : > { %v5883_v4 = vpop.f32.mrb[25].mxu1 }
 0x33e   : > { %v9195_v33 = vadd.f32 %v5883_v4, %v5882_v39  ;;  %v5885_v62 = vpop.f32.mrb[26].mxu1 }
 0x33f   : > { %v5886_v31 = vpop.f32.mrb[27].mxu1 }
 0x340   : > { %12863 = vst [vmem:[#allocation17_spill] sm:$0xff] %v9195_v33  ;;  %v9197_v43 = vadd.f32 %v5886_v31, %v5885_v62 }
 0x341   : > { %6121 = vmatmul.mubr.msk.bf16.gmra.mrb[132].mxu1 %vm543_vm0, %v12861_v15 }
 0x342   : > { %12864 = vst [vmem:[#allocation28_spill] sm:$0xff] %v9197_v43  ;;  %6265 = vmatpush3.bf16.xpose.msra.mxu1 %v3770_v11  ;;  %6122 = vmatprep.mubr.msk.bf16.mxu1 %vm543_vm0, %v12866_v27  ;;  %v3776_v11 = vsel %vm543_vm0, %v12875_v20, 0 }
 0x343   : > { %6464 = vmatprep.subr.msk.bf16.mxu1 %vm543_vm0, %v12867_v38  ;;  %v12877_v38 = vld [vmem:[#allocation71_spill] sm:$0xff] }
 0x344   : > { %v5888_v53 = vpop.f32.mrb[28].mxu1 }
 0x345   : > { %v5889_v37 = vpop.f32.mrb[29].mxu1 }
 0x346   : > { %v9207_v6 = vadd.f32 %v5889_v37, %v5888_v53  ;;  %v5891_v28 = vpop.f32.mrb[30].mxu1 }
 0x347   : > { %v5892_v51 = vpop.f32.mrb[31].mxu1 }
 0x348   : > { %12868 = vst [vmem:[#allocation20_spill] sm:$0xff] %v9207_v6  ;;  %v9209_v2 = vadd.f32 %v5892_v51, %v5891_v28 }
 0x349   : > { %6123 = vmatmul.mubr.msk.bf16.gmra.mrb[136].mxu1 %vm543_vm0, %v12866_v27  ;;  %v12876_v27 = vld [vmem:[#allocation53_spill] sm:$0xff] }
 0x34a   : > { %12869 = vst [vmem:[#allocation32_spill] sm:$0xff] %v9209_v2  ;;  %6267 = vmatpush3.bf16.xpose.msra.mxu1 %v3773_v52  ;;  %6124 = vmatprep.mubr.msk.bf16.mxu1 %vm543_vm0, %v12871_v61 }
 0x34b   : > { %6465 = vmatprep.subr.msk.bf16.mxu1 %vm543_vm0, %v12872_v3  ;;  %v12880_v3 = vld [vmem:[#allocation72_spill] sm:$0xff] }
 0x34c   : > { %v5894_v15 = vpop.f32.mrb[32].mxu1 }
 0x34d   : > { %v5895_v41 = vpop.f32.mrb[33].mxu1 }
 0x34e   : > { %v9219_v39 = vadd.f32 %v5895_v41, %v5894_v15  ;;  %v5897_v4 = vpop.f32.mrb[34].mxu1  ;;  %v3779_v15 = vsel %vm543_vm0, %v12880_v3, 0  ;;  %v12882_v41 = vld [vmem:[#allocation56_spill] sm:$0xff]  ;;  %v12887_v3 = vld [vmem:[#allocation73_spill] sm:$0xff] }
 0x34f   : > { %v5898_v62 = vpop.f32.mrb[35].mxu1 }
 0x350   : > { %12873 = vst [vmem:[#allocation29_spill] sm:$0xff] %v9219_v39  ;;  %v9221_v31 = vadd.f32 %v5898_v62, %v5897_v4  ;;  %v9243_v4 = vpop.xlane.xlu1 %1125  ;;  %v12884_v62 = vld [vmem:[#allocation76_spill] sm:$0xff] }
 0x351   : > { %6125 = vmatmul.mubr.msk.bf16.gmra.mrb[140].mxu1 %vm543_vm0, %v12871_v61  ;;  %v9239_v61 = vpop.xlane.xlu0 %1122  ;;  %12883 = vst [vmem:[#allocation38_spill] sm:$0xff] %v9243_v4 }
 0x352   : > { %12874 = vst [vmem:[#allocation19_spill] sm:$0xff] %v9221_v31  ;;  %6269 = vmatpush3.bf16.xpose.msra.mxu1 %v3776_v11  ;;  %6126 = vmatprep.mubr.msk.bf16.mxu1 %vm543_vm0, %v12876_v27  ;;  %12881 = vst [vmem:[#allocation22_spill] sm:$0xff] %v9239_v61 }
 0x353   : > { %6466 = vmatprep.subr.msk.bf16.mxu1 %vm543_vm0, %v12877_v38 }
 0x354   : > { %v5900_v53 = vpop.f32.mrb[36].mxu1 }
 0x355   : > { %v5901_v37 = vpop.f32.mrb[37].mxu1 }
 0x356   : > { %v9231_v28 = vadd.f32 %v5901_v37, %v5900_v53  ;;  %v5903_v51 = vpop.f32.mrb[38].mxu1  ;;  %v2360_v37 = vpop.permute.xlu0 %2359 }
 0x357   : > { %v5904_v34 = vpop.f32.mrb[39].mxu1  ;;  %5994 = vmatprep.subr.bf16.mxu0 %v2360_v37 }
 0x358   : > { %12878 = vst [vmem:[#allocation33_spill] sm:$0xff] %v9231_v28  ;;  %v9233_v52 = vadd.f32 %v5904_v34, %v5903_v51  ;;  %v2344_v34 = vpop.permute.xlu1 %2343 }
 0x359   : > { %6127 = vmatmul.mubr.msk.bf16.gmra.mrb[144].mxu1 %vm543_vm0, %v12876_v27  ;;  %5995 = vmatpush3.bf16.msra.mxu0 %v2344_v34 }
 0x35a   : > { %12879 = vst [vmem:[#allocation34_spill] sm:$0xff] %v9233_v52  ;;  %6271 = vmatpush3.bf16.xpose.msra.mxu1 %v3779_v15  ;;  %6128 = vmatprep.mubr.msk.bf16.mxu1 %vm543_vm0, %v12882_v41  ;;  %v3782_v15 = vsel %vm543_vm0, %v12887_v3, 0 }
 0x35b   : > { %6467 = vmatprep.subr.msk.bf16.mxu1 %vm543_vm0, %v12884_v62  ;;  %v12888_v62 = vld [vmem:[#allocation55_spill] sm:$0xff] }
 0x35c   : > { %v5906_v20 = vpop.f32.mrb[40].mxu1  ;;  %v9259_v52 = vpop.permute.xlu1 %3666 }
 0x35d   : > { %v5907_v11 = vpop.f32.mrb[41].mxu1 }
 0x35e   : > { %v9247_v38 = vadd.f32 %v5907_v11, %v5906_v20  ;;  %v5909_v53 = vpop.f32.mrb[42].mxu1  ;;  %v2362_v20 = vpop.permute.xlu0 %2361  ;;  %v12889_v11 = vld [vmem:[#allocation77_spill] sm:$0xff] }
 0x35f   : > { %v5910_v51 = vpop.f32.mrb[43].mxu1  ;;  %5996 = vmatprep.subr.bf16.mxu0 %v2362_v20 }
 0x360   : > { %12885 = vst [vmem:[#allocation35_spill] sm:$0xff] %v9247_v38  ;;  %v9249_v27 = vadd.f32 %v5910_v51, %v5909_v53  ;;  %v2348_v31 = vpop.permute.xlu1 %2347 }
 0x361   : > { %6129 = vmatmul.mubr.msk.bf16.gmra.mrb[148].mxu1 %vm543_vm0, %v12882_v41 }
 0x362   : > { %12886 = vst [vmem:[#allocation21_spill] sm:$0xff] %v9249_v27  ;;  %6273 = vmatpush3.bf16.xpose.msra.mxu1 %v3782_v15  ;;  %6130 = vmatprep.mubr.msk.bf16.mxu1 %vm543_vm0, %v12888_v62  ;;  %v2346_v3 = vpop.permute.xlu0 %2345  ;;  %v12892_v15 = vld [vmem:[#allocation78_spill] sm:$0xff] }
 0x363   : > { %6468 = vmatprep.subr.msk.bf16.mxu1 %vm543_vm0, %v12889_v11  ;;  %5997 = vmatpush3.bf16.msra.mxu0 %v2346_v3  ;;  %v3785_v2 = vsel %vm543_vm0, %v12892_v15, 0  ;;  %v12893_v11 = vld [vmem:[#allocation58_spill] sm:$0xff] }
 0x364   : > { %v5912_v53 = vpop.f32.mrb[44].mxu1 }
 0x365   : > { %v5913_v37 = vpop.f32.mrb[45].mxu1 }
 0x366   : > { %v9261_v51 = vadd.f32 %v5913_v37, %v5912_v53  ;;  %v5915_v34 = vpop.f32.mrb[46].mxu1  ;;  %v2364_v20 = vpop.permute.xlu0 %2363  ;;  %v12894_v53 = vld [vmem:[#allocation81_spill] sm:$0xff] }
 0x367   : > { %v5916_v27 = vpop.f32.mrb[47].mxu1  ;;  %5998 = vmatprep.subr.bf16.mxu0 %v2364_v20  ;;  %v2366_v37 = vpop.permute.xlu1 %2365 }
 0x368   : > { %12890 = vst [vmem:[#allocation39_spill] sm:$0xff] %v9261_v51  ;;  %v9263_v41 = vadd.f32 %v5916_v27, %v5915_v34  ;;  %5999 = vmatpush3.bf16.msra.mxu0 %v2348_v31  ;;  %v12898_v31 = vld [vmem:[#allocation57_spill] sm:$0xff] }
 0x369   : > { %6131 = vmatmul.mubr.msk.bf16.gmra.mrb[152].mxu1 %vm543_vm0, %v12888_v62  ;;  %6000 = vmatprep.subr.bf16.mxu0 %v2366_v37 }
 0x36a   : > { %12891 = vst [vmem:[#allocation40_spill] sm:$0xff] %v9263_v41  ;;  %6275 = vmatpush3.bf16.xpose.msra.mxu1 %v3785_v2  ;;  %6132 = vmatprep.mubr.msk.bf16.mxu1 %vm543_vm0, %v12893_v11  ;;  %v9277_v2 = vpop.permute.xlu0 %3668 }
 0x36b   : > { %6469 = vmatprep.subr.msk.bf16.mxu1 %vm543_vm0, %v12894_v53  ;;  %v2350_v41 = vpop.permute.xlu1 %2349 }
 0x36c   : > { %v5918_v43 = vpop.f32.mrb[48].mxu1  ;;  %6001 = vmatpush3.bf16.msra.mxu0 %v2350_v41 }
 0x36d   : > { %v5919_v27 = vpop.f32.mrb[49].mxu1 }
 0x36e   : > { %v9273_v34 = vadd.f32 %v5919_v27, %v5918_v43  ;;  %v5921_v3 = vpop.f32.mrb[50].mxu1  ;;  %v2368_v20 = vpop.permute.xlu0 %2367 }
 0x36f   : > { %v5922_v15 = vpop.f32.mrb[51].mxu1  ;;  %v2352_v37 = vpop.permute.xlu1 %2351  ;;  %6002 = vmatprep.subr.bf16.mxu0 %v2368_v20 }
 0x370   : > { %12895 = vst [vmem:[#allocation24_spill] sm:$0xff] %v9273_v34  ;;  %v9275_v62 = vadd.f32 %v5922_v15, %v5921_v3  ;;  %6003 = vmatpush3.bf16.msra.mxu0 %v2352_v37 }
 0x371   : > { %6133 = vmatmul.mubr.msk.bf16.gmra.mrb[156].mxu1 %vm543_vm0, %v12893_v11 }
 0x372   : > { %12896 = vst [vmem:[#allocation44_spill] sm:$0xff] %v9275_v62  ;;  %6277 = vmatpush3.bf16.xpose.msra.mxu1 %v3788_v14  ;;  %6134 = vmatprep.mubr.msk.bf16.mxu1 %vm543_vm0, %v12898_v31  ;;  %v2370_v55 = vpop.permute.xlu0 %2369  ;;  %v12901_v14 = vld [vmem:[#allocation62_spill] sm:$0xff] }
 0x373   : > { %6004 = vmatprep.subr.bf16.mxu0 %v2370_v55 }
 0x374   : > { %v5924_v43 = vpop.f32.mrb[52].mxu1 }
 0x375   : > { %v5925_v53 = vpop.f32.mrb[53].mxu1 }
 0x376   : > { %v9285_v27 = vadd.f32 %v5925_v53, %v5924_v43  ;;  %v5927_v3 = vpop.f32.mrb[54].mxu1  ;;  %v2354_v62 = vpop.permute.xlu0 %2353 }
 0x377   : > { %v5928_v41 = vpop.f32.mrb[55].mxu1  ;;  %6005 = vmatpush3.bf16.msra.mxu0 %v2354_v62 }
 0x378   : > { %12899 = vst [vmem:[#allocation41_spill] sm:$0xff] %v9285_v27  ;;  %v9287_v15 = vadd.f32 %v5928_v41, %v5927_v3  ;;  %v12904_v3 = vld [vmem:[#allocation63_spill] sm:$0xff] }
 0x379   : > { %6135 = vmatmul.mubr.msk.bf16.gmra.mrb[160].mxu1 %vm543_vm0, %v12898_v31 }
 0x37a   : > { %12900 = vst [vmem:[#allocation23_spill] sm:$0xff] %v9287_v15  ;;  %6136 = vmatprep.mubr.msk.bf16.mxu1 %vm543_vm0, %v12901_v14  ;;  %v3673_v42 = vpop.permute.xlu0 %3672 }
 0x37c   : > { %v5930_v11 = vpop.f32.mrb[56].mxu1 }
 0x37d   : > { %v5931_v16 = vpop.f32.mrb[57].mxu1 }
 0x37e   : > { %v9293_v20 = vadd.f32 %v5931_v16, %v5930_v11  ;;  %v5933_v43 = vpop.f32.mrb[58].mxu1  ;;  %v12907_v16 = vld [vmem:[#allocation68_spill] sm:$0xff] }
 0x37f   : > { %v5934_v53 = vpop.f32.mrb[59].mxu1 }
 0x380   : > { %12902 = vst [vmem:[#allocation45_spill] sm:$0xff] %v9293_v20  ;;  %v9295_v37 = vadd.f32 %v5934_v53, %v5933_v43 }
 0x381   : > { %6137 = vmatmul.mubr.msk.bf16.gmra.mrb[164].mxu1 %vm543_vm0, %v12901_v14 }
 0x382   : > { %12903 = vst [vmem:[#allocation46_spill] sm:$0xff] %v9295_v37  ;;  %6138 = vmatprep.mubr.msk.bf16.mxu1 %vm543_vm0, %v12904_v3 }
 0x384   : > { %v5936_v31 = vpop.f32.mrb[60].mxu1 }
 0x385   : > { %v5937_v41 = vpop.f32.mrb[61].mxu1 }
 0x386   : > { %v9301_v55 = vadd.f32 %v5937_v41, %v5936_v31  ;;  %v5939_v15 = vpop.f32.mrb[62].mxu1 }
 0x387   : > { %v5940_v27 = vpop.f32.mrb[63].mxu1 }
 0x388   : > { %12905 = vst [vmem:[#allocation26_spill] sm:$0xff] %v9301_v55  ;;  %v9303_v34 = vadd.f32 %v5940_v27, %v5939_v15  ;;  %v12908_v15 = vld [vmem:[#allocation69_spill] sm:$0xff] }
 0x389   : > { %6139 = vmatmul.mubr.msk.bf16.gmra.mrb[168].mxu1 %vm543_vm0, %v12904_v3 }
 0x38a   : > { %12906 = vst [vmem:[#allocation50_spill] sm:$0xff] %v9303_v34  ;;  %6140 = vmatprep.mubr.msk.bf16.mxu1 %vm543_vm0, %v12907_v16 }
 0x38c   : > { %v9309_v62 = vpop.f32.mrb[64].mxu1 }
 0x38d   : > { %v9311_v14 = vpop.f32.mrb[65].mxu1 }
 0x38e   : > { %v1923_v11 = vmax.f32 %v9309_v62, %v9311_v14  ;;  %v9315_v43 = vpop.f32.mrb[66].mxu1 }
 0x38f   : > { %v9317_v53 = vpop.f32.mrb[67].mxu1 }
 0x390   : > { %v1926_v27 = vmax.f32 %v9315_v43, %v9317_v53  ;;  %1924 = vmax.xlane.f32.xlu0 %v1923_v11 }
 0x391   : > { %6141 = vmatmul.mubr.msk.bf16.gmra.mrb[172].mxu1 %vm543_vm0, %v12907_v16  ;;  %v12909_v16 = vld [vmem:[#allocation74_spill] sm:$0xff] }
 0x392   : > { %6142 = vmatprep.mubr.msk.bf16.mxu1 %vm543_vm0, %v12908_v15 }
 0x394   : > { %1927 = vmax.xlane.f32.xlu0 %v1926_v27  ;;  %v9325_v3 = vpop.f32.mrb[68].mxu1 }
 0x395   : > { %v9327_v31 = vpop.f32.mrb[69].mxu1 }
 0x396   : > { %v1929_v41 = vmax.f32 %v9325_v3, %v9327_v31  ;;  %v9331_v34 = vpop.f32.mrb[70].mxu1 }
 0x397   : > { %v9333_v37 = vpop.f32.mrb[71].mxu1 }
 0x398   : > { %v1932_v11 = vmax.f32 %v9331_v34, %v9333_v37  ;;  %1930 = vmax.xlane.f32.xlu0 %v1929_v41 }
 0x399   : > { %6143 = vmatmul.mubr.msk.bf16.gmra.mrb[176].mxu1 %vm543_vm0, %v12908_v15  ;;  %v12910_v15 = vld [vmem:[#allocation75_spill] sm:$0xff] }
 0x39a   : > { %6144 = vmatprep.mubr.msk.bf16.mxu1 %vm543_vm0, %v12909_v16  ;;  %1933 = vmax.xlane.f32.xlu1 %v1932_v11 }
 0x39c   : > { %v9341_v27 = vpop.f32.mrb[72].mxu1 }
 0x39d   : > { %v9343_v55 = vpop.f32.mrb[73].mxu1 }
 0x39e   : > { %v1935_v20 = vmax.f32 %v9341_v27, %v9343_v55  ;;  %v9347_v30 = vpop.f32.mrb[74].mxu1 }
 0x39f   : > { %v9349_v51 = vpop.f32.mrb[75].mxu1 }
 0x3a0   : > { %v1938_v41 = vmax.f32 %v9347_v30, %v9349_v51  ;;  %1936 = vmax.xlane.f32.xlu1 %v1935_v20 }
 0x3a1   : > { %6145 = vmatmul.mubr.msk.bf16.gmra.mrb[180].mxu1 %vm543_vm0, %v12909_v16  ;;  %v12911_v16 = vld [vmem:[#allocation80_spill] sm:$0xff] }
 0x3a2   : > { %6146 = vmatprep.mubr.msk.bf16.mxu1 %vm543_vm0, %v12910_v15  ;;  %1939 = vmax.xlane.f32.xlu0 %v1938_v41 }
 0x3a4   : > { %v9357_v11 = vpop.f32.mrb[76].mxu1 }
 0x3a5   : > { %v9359_v10 = vpop.f32.mrb[77].mxu1 }
 0x3a6   : > { %v1941_v38 = vmax.f32 %v9357_v11, %v9359_v10  ;;  %v9363_v32 = vpop.f32.mrb[78].mxu1 }
 0x3a7   : > { %v9365_v28 = vpop.f32.mrb[79].mxu1 }
 0x3a8   : > { %v1944_v20 = vmax.f32 %v9363_v32, %v9365_v28  ;;  %1942 = vmax.xlane.f32.xlu0 %v1941_v38 }
 0x3a9   : > { %6147 = vmatmul.mubr.msk.bf16.gmra.mrb[184].mxu1 %vm543_vm0, %v12910_v15  ;;  %v12912_v15 = vld [vmem:[#allocation82_spill] sm:$0xff] }
 0x3aa   : > { %6148 = vmatprep.mubr.msk.bf16.mxu1 %vm543_vm0, %v12911_v16  ;;  %1945 = vmax.xlane.f32.xlu1 %v1944_v20 }
 0x3ac   : > { %v9373_v41 = vpop.f32.mrb[80].mxu1 }
 0x3ad   : > { %v9375_v4 = vpop.f32.mrb[81].mxu1 }
 0x3ae   : > { %v1947_v25 = vmax.f32 %v9373_v41, %v9375_v4  ;;  %v9379_v61 = vpop.f32.mrb[82].mxu1 }
 0x3af   : > { %v9381_v39 = vpop.f32.mrb[83].mxu1 }
 0x3b0   : > { %v1950_v38 = vmax.f32 %v9379_v61, %v9381_v39  ;;  %1948 = vmax.xlane.f32.xlu1 %v1947_v25 }
 0x3b1   : > { %6149 = vmatmul.mubr.msk.bf16.gmra.mrb[188].mxu1 %vm543_vm0, %v12911_v16  ;;  %v12913_v16 = vld [vmem:[#allocation83_spill] sm:$0xff] }
 0x3b2   : > { %6278 = vmatprep.mubr.msk.bf16.mxu1 %vm543_vm0, %v12912_v15  ;;  %1951 = vmax.xlane.f32.xlu0 %v1950_v38 }
 0x3b4   : > { %v9389_v20 = vpop.f32.mrb[84].mxu1 }
 0x3b5   : > { %v9391_v6 = vpop.f32.mrb[85].mxu1 }
 0x3b6   : > { %v1953_v33 = vmax.f32 %v9389_v20, %v9391_v6  ;;  %v9395_v60 = vpop.f32.mrb[86].mxu1 }
 0x3b7   : > { %v9397_v40 = vpop.f32.mrb[87].mxu1 }
 0x3b8   : > { %v1956_v25 = vmax.f32 %v9395_v60, %v9397_v40  ;;  %1954 = vmax.xlane.f32.xlu1 %v1953_v33 }
 0x3b9   : > { %6279 = vmatmul.mubr.msk.bf16.vlgmr.msra.gmra.mrb[192].mxu1 %vm543_vm0, %v12912_v15  ;;  %v12915_v15 = vld [vmem:[#allocation84_spill] sm:$0xff] }
 0x3ba   : > { %6280 = vmatprep.mubr.msk.bf16.mxu1 %vm543_vm0, %v12913_v16 }
 0x3bc   : > { %1957 = vmax.xlane.f32.xlu1 %v1956_v25  ;;  %v9405_v38 = vpop.f32.mrb[88].mxu1 }
 0x3bd   : > { %v9407_v56 = vpop.f32.mrb[89].mxu1 }
 0x3be   : > { %v1959_v23 = vmax.f32 %v9405_v38, %v9407_v56  ;;  %v9411_v57 = vpop.f32.mrb[90].mxu1 }
 0x3bf   : > { %v9413_v50 = vpop.f32.mrb[91].mxu1 }
 0x3c0   : > { %12914 = vst [vmem:[#allocation47_spill] sm:$0xff] %v9413_v50  ;;  %v1962_v33 = vmax.f32 %v9411_v57, %v9413_v50  ;;  %1960 = vmax.xlane.f32.xlu0 %v1959_v23 }
 0x3c1   : > { %6281 = vmatmul.mubr.msk.bf16.gmra.mrb[196].mxu1 %vm543_vm0, %v12913_v16  ;;  %v12920_v16 = vld [vmem:[#allocation85_spill] sm:$0xff] }
 0x3c2   : > { %6282 = vmatprep.mubr.msk.bf16.mxu1 %vm543_vm0, %v12915_v15  ;;  %1963 = vmax.xlane.f32.xlu1 %v1962_v33 }
 0x3c4   : > { %v9421_v25 = vpop.f32.mrb[92].mxu1 }
 0x3c5   : > { %12916 = vst [vmem:[#allocation25_spill] sm:$0xff] %v9421_v25  ;;  %v9423_v9 = vpop.f32.mrb[93].mxu1 }
 0x3c6   : > { %12917 = vst [vmem:[#allocation59_spill] sm:$0xff] %v9423_v9  ;;  %v1965_v58 = vmax.f32 %v9421_v25, %v9423_v9  ;;  %v9427_v13 = vpop.f32.mrb[94].mxu1 }
 0x3c7   : > { %12918 = vst [vmem:[#allocation30_spill] sm:$0xff] %v9427_v13  ;;  %v9429_v12 = vpop.f32.mrb[95].mxu1 }
 0x3c8   : > { %12919 = vst [vmem:[#allocation31_spill] sm:$0xff] %v9429_v12  ;;  %v1968_v23 = vmax.f32 %v9427_v13, %v9429_v12  ;;  %1966 = vmax.xlane.f32.xlu1 %v1965_v58 }
 0x3c9   : > { %6283 = vmatmul.mubr.msk.bf16.gmra.mrb[200].mxu1 %vm543_vm0, %v12915_v15  ;;  %v12925_v15 = vld [vmem:[#allocation87_spill] sm:$0xff] }
 0x3ca   : > { %6284 = vmatprep.mubr.msk.bf16.mxu1 %vm543_vm0, %v12920_v16 }
 0x3cc   : > { %1969 = vmax.xlane.f32.xlu1 %v1968_v23  ;;  %v9437_v33 = vpop.f32.mrb[96].mxu1 }
 0x3cd   : > { %12921 = vst [vmem:[#allocation36_spill] sm:$0xff] %v9437_v33  ;;  %v9439_v59 = vpop.f32.mrb[97].mxu1 }
 0x3ce   : > { %12922 = vst [vmem:[#allocation37_spill] sm:$0xff] %v9439_v59  ;;  %v1971_v24 = vmax.f32 %v9437_v33, %v9439_v59  ;;  %v9443_v7 = vpop.f32.mrb[98].mxu1 }
 0x3cf   : > { %12923 = vst [vmem:[#allocation42_spill] sm:$0xff] %v9443_v7  ;;  %v9445_v63 = vpop.f32.mrb[99].mxu1 }
 0x3d0   : > { %12924 = vst [vmem:[#allocation43_spill] sm:$0xff] %v9445_v63  ;;  %v1974_v58 = vmax.f32 %v9443_v7, %v9445_v63  ;;  %1972 = vmax.xlane.f32.xlu0 %v1971_v24 }
 0x3d1   : > { %6285 = vmatmul.mubr.msk.bf16.gmra.mrb[204].mxu1 %vm543_vm0, %v12920_v16  ;;  %v12930_v16 = vld [vmem:[#allocation86_spill] sm:$0xff] }
 0x3d2   : > { %6286 = vmatprep.mubr.msk.bf16.mxu1 %vm543_vm0, %v12925_v15  ;;  %1975 = vmax.xlane.f32.xlu1 %v1974_v58 }
 0x3d4   : > { %v9453_v23 = vpop.f32.mrb[100].mxu1 }
 0x3d5   : > { %12926 = vst [vmem:[#allocation48_spill] sm:$0xff] %v9453_v23  ;;  %v9455_v35 = vpop.f32.mrb[101].mxu1 }
 0x3d6   : > { %12927 = vst [vmem:[#allocation49_spill] sm:$0xff] %v9455_v35  ;;  %v1977_v17 = vmax.f32 %v9453_v23, %v9455_v35  ;;  %v9459_v49 = vpop.f32.mrb[102].mxu1 }
 0x3d7   : > { %12928 = vst [vmem:[#allocation60_spill] sm:$0xff] %v9459_v49  ;;  %v9461_v0 = vpop.f32.mrb[103].mxu1 }
 0x3d8   : > { %12929 = vst [vmem:[#allocation52_spill] sm:$0xff] %v9461_v0  ;;  %v1980_v24 = vmax.f32 %v9459_v49, %v9461_v0  ;;  %1978 = vmax.xlane.f32.xlu1 %v1977_v17 }
 0x3d9   : > { %6287 = vmatmul.mubr.msk.bf16.gmra.mrb[208].mxu1 %vm543_vm0, %v12925_v15 }
 0x3da   : > { %6288 = vmatprep.mubr.msk.bf16.mxu1 %vm543_vm0, %v12930_v16  ;;  %1981 = vmax.xlane.f32.xlu0 %v1980_v24 }
 0x3dc   : > { %v9469_v58 = vpop.f32.mrb[104].mxu1 }
 0x3dd   : > { %12931 = vst [vmem:[#allocation64_spill] sm:$0xff] %v9469_v58  ;;  %v9471_v45 = vpop.f32.mrb[105].mxu1 }
 0x3de   : > { %12932 = vst [vmem:[#allocation61_spill] sm:$0xff] %v9471_v45  ;;  %v1983_v46 = vmax.f32 %v9469_v58, %v9471_v45  ;;  %v9475_v54 = vpop.f32.mrb[106].mxu1 }
 0x3df   : > { %12933 = vst [vmem:[#allocation51_spill] sm:$0xff] %v9475_v54  ;;  %v9477_v47 = vpop.f32.mrb[107].mxu1 }
 0x3e0   : > { %12934 = vst [vmem:[#allocation65_spill] sm:$0xff] %v9477_v47  ;;  %v1986_v17 = vmax.f32 %v9475_v54, %v9477_v47  ;;  %1984 = vmax.xlane.f32.xlu1 %v1983_v46 }
 0x3e1   : > { %6289 = vmatmul.mubr.msk.bf16.gmra.mrb[212].mxu1 %vm543_vm0, %v12930_v16 }
 0x3e2   : > { %1987 = vmax.xlane.f32.xlu0 %v1986_v17  ;;  %6290 = vmatprep.mubr.msk.bf16.mxu1 %vm543_vm0, %v9259_v52 }
 0x3e4   : > { %v9485_v15 = vpop.f32.mrb[108].mxu1 }
 0x3e5   : > { %12935 = vst [vmem:[#allocation66_spill] sm:$0xff] %v9485_v15  ;;  %v9487_v24 = vpop.f32.mrb[109].mxu1 }
 0x3e6   : > { %12936 = vst [vmem:[#allocation54_spill] sm:$0xff] %v9487_v24  ;;  %v1989_v44 = vmax.f32 %v9485_v15, %v9487_v24  ;;  %v9491_v1 = vpop.f32.mrb[110].mxu1 }
 0x3e7   : > { %12937 = vst [vmem:[#allocation70_spill] sm:$0xff] %v9491_v1  ;;  %v9493_v29 = vpop.f32.mrb[111].mxu1 }
 0x3e8   : > { %12938 = vst [vmem:[#allocation67_spill] sm:$0xff] %v9493_v29  ;;  %v1992_v46 = vmax.f32 %v9491_v1, %v9493_v29  ;;  %1990 = vmax.xlane.f32.xlu1 %v1989_v44  ;;  %v3671_v44 = vpop.permute.xlu1 %3670 }
 0x3e9   : > { %6291 = vmatmul.mubr.msk.bf16.gmra.mrb[216].mxu1 %vm543_vm0, %v9259_v52 }
 0x3ea   : > { %1993 = vmax.xlane.f32.xlu0 %v1992_v46  ;;  %6292 = vmatprep.mubr.msk.bf16.mxu1 %vm543_vm0, %v9277_v2 }
 0x3ec   : > { %v9501_v16 = vpop.f32.mrb[112].mxu1  ;;  %v3675_v1 = vpop.permute.xlu1 %3674 }
 0x3ed   : > { %v9503_v17 = vpop.f32.mrb[113].mxu1 }
 0x3ee   : > { %v9507_v21 = vpop.f32.mrb[114].mxu1  ;;  %v12944_v50 = vmax.f32 %v9501_v16, %v9503_v17 }
 0x3ef   : > { %v9509_v18 = vpop.f32.mrb[115].mxu1 }
 0x3f0   : > { %v3679_v49 = vpop.permute.xlu1 %3678 }
 0x3f1   : > { %6293 = vmatmul.mubr.msk.bf16.gmra.mrb[220].mxu1 %vm543_vm0, %v9277_v2 }
 0x3f2   : > { %6294 = vmatprep.mubr.msk.bf16.mxu1 %vm543_vm0, %v3671_v44 }
 0x3f4   : > { %v9516_v46 = vpop.f32.mrb[116].mxu1  ;;  %v3683_v25 = vpop.permute.xlu1 %3682 }
 0x3f5   : > { %v9518_v8 = vpop.f32.mrb[117].mxu1 }
 0x3f6   : > { %v9522_v22 = vpop.f32.mrb[118].mxu1 }
 0x3f7   : > { %v9524_v36 = vpop.f32.mrb[119].mxu1 }
 0x3f8   : > { %12939 = vst [vmem:[#allocation53_spill] sm:$0xff] %v9524_v36 }
 0x3f9   : > { %3381 = vrot.lane.b32.xlu1 %v7625_v48, %s7841_s16  ;;  %6295 = vmatmul.mubr.msk.bf16.gmra.mrb[224].mxu1 %vm543_vm0, %v3671_v44  ;;  %v7627_v44 = vld [vmem:[%s8203_s24 + $0x40] sm:$0xff]  }
 0x3fa   : > { %6296 = vmatprep.mubr.msk.bf16.mxu1 %vm543_vm0, %v3673_v42 }
 0x3fc   : > { %v9532_v2 = vpop.f32.mrb[120].mxu1 }
 0x3fd   : > { %3399 = vrot.lane.b32.xlu1 %v7626_v5, %s7841_s16  ;;  %v9536_v26 = vpop.f32.mrb[121].mxu1  ;;  %v7628_v5 = vld [vmem:[%s8203_s24 + $0x8] sm:$0xff]  }
 0x3fe   : > { %v9540_v29 = vpop.f32.mrb[122].mxu1 }
 0x3ff   : > { %v9542_v52 = vpop.f32.mrb[123].mxu1 }
 0x400   : > { %3397 = vrot.lane.b32.xlu0 %v7627_v44, %s7841_s16  ;;  %v3677_v44 = vpop.permute.xlu0 %3676 }
 0x401   : > { %6297 = vmatmul.mubr.msk.bf16.gmra.mrb[228].mxu1 %vm543_vm0, %v3673_v42 }
 0x402   : > { %6298 = vmatprep.mubr.msk.bf16.mxu1 %vm543_vm0, %v3675_v1 }
 0x404   : > { %3383 = vrot.lane.b32.xlu0 %v7628_v5, %s7841_s16  ;;  %v9552_v24 = vpop.f32.mrb[124].mxu1 }
 0x405   : > { %v9554_v19 = vpop.f32.mrb[125].mxu1 }
 0x406   : > { %v9558_v47 = vpop.f32.mrb[126].mxu1 }
 0x407   : > { %v9560_v48 = vpop.f32.mrb[127].mxu1 }
 0x409   : > { %6299 = vmatmul.mubr.msk.bf16.gmra.mrb[232].mxu1 %vm543_vm0, %v3675_v1  ;;  %v3681_v1 = vpop.permute.xlu0 %3680 }
 0x40a   : > { %6300 = vmatprep.mubr.msk.bf16.mxu1 %vm543_vm0, %v3677_v44 }
 0x40c   : > { %v9566_v5 = vpop.f32.mrb[128].mxu1 }
 0x40d   : > { %12940 = vst [vmem:[#allocation71_spill] sm:$0xff] %v9566_v5  ;;  %v9568_v54 = vpop.f32.mrb[129].mxu1  ;;  %v9590_v63 = vpop.permute.xlu0 %3684 }
 0x40e   : > { %12941 = vst [vmem:[#allocation72_spill] sm:$0xff] %v9568_v54  ;;  %v2965_v45 = vmax.f32 %v9566_v5, %v9568_v54  ;;  %v9572_v15 = vpop.f32.mrb[130].mxu1 }
 0x40f   : > { %v9574_v58 = vpop.f32.mrb[131].mxu1 }
 0x411   : > { %6301 = vmatmul.mubr.msk.bf16.gmra.mrb[236].mxu1 %vm543_vm0, %v3677_v44 }
 0x412   : > { %6302 = vmatprep.mubr.msk.bf16.mxu1 %vm543_vm0, %v3679_v49 }
 0x414   : > { %v9580_v42 = vpop.f32.mrb[132].mxu1 }
 0x415   : > { %v9582_v35 = vpop.f32.mrb[133].mxu1 }
 0x416   : > { %v9586_v5 = vpop.f32.mrb[134].mxu1 }
 0x417   : > { %12942 = vst [vmem:[#allocation56_spill] sm:$0xff] %v9586_v5  ;;  %v9588_v23 = vpop.f32.mrb[135].mxu1 }
 0x418   : > { %12943 = vst [vmem:[#allocation76_spill] sm:$0xff] %v9588_v23  ;;  %v2974_v0 = vmax.f32 %v9586_v5, %v9588_v23  ;;  %v12945_v5 = vmax.f32 %v9507_v21, %v9509_v18 }
 0x419   : > { %6303 = vmatmul.mubr.msk.bf16.gmra.mrb[240].mxu1 %vm543_vm0, %v3679_v49 }
 0x41a   : > { %6304 = vmatprep.mubr.msk.bf16.mxu1 %vm543_vm0, %v3681_v1 }
 0x41c   : > { %v9596_v44 = vpop.f32.mrb[136].mxu1 }
 0x41d   : > { %v9598_v7 = vpop.f32.mrb[137].mxu1  ;;  %v1925_v59 = vpop.xlane.xlu0 %1924 }
 0x41e   : > { %v2019_v33 = vsub.f32 %v9309_v62, %v1925_v59  ;;  %v2020_v12 = vsub.f32 %v9311_v14, %v1925_v59  ;;  %v9604_v13 = vpop.f32.mrb[138].mxu1 }
 0x41f   : > { %v9606_v9 = vpop.f32.mrb[139].mxu1 }
 0x420   : > { %v2083_v23 = vmul.f32 1.442695, %v2019_v33  ;;  %v2085_v49 = vmul.f32 1.442695, %v2020_v12 }
 0x421   : > { %1996 = vmax.xlane.f32.xlu1 %v12944_v50  ;;  %6305 = vmatmul.mubr.msk.bf16.gmra.mrb[244].mxu1 %vm543_vm0, %v3681_v1  ;;  %v1928_v54 = vpop.xlane.xlu0 %1927 }
 0x422   : > { %6964 = vpow2.f32 %v2083_v23  ;;  %v2021_v59 = vsub.f32 %v9315_v43, %v1928_v54  ;;  %v2022_v62 = vsub.f32 %v9317_v53, %v1928_v54  ;;  %6306 = vmatprep.mubr.msk.bf16.mxu1 %vm543_vm0, %v3683_v25 }
 0x423   : > { %6966 = vpow2.f32 %v2085_v49  ;;  %2966 = vmax.xlane.f32.xlu0 %v2965_v45 }
 0x424   : > { %v2087_v12 = vmul.f32 1.442695, %v2021_v59  ;;  %v2089_v14 = vmul.f32 1.442695, %v2022_v62  ;;  %v9617_v33 = vpop.f32.mrb[140].mxu1 }
 0x425   : > { %1999 = vmax.xlane.f32.xlu1 %v12945_v5  ;;  %v9622_v50 = vpop.f32.mrb[141].mxu1  ;;  %v1931_v1 = vpop.xlane.xlu0 %1930 }
 0x426   : > { %6968 = vpow2.f32 %v2087_v12  ;;  %v2023_v54 = vsub.f32 %v9325_v3, %v1931_v1  ;;  %v2024_v53 = vsub.f32 %v9327_v31, %v1931_v1  ;;  %v9628_v45 = vpop.f32.mrb[142].mxu1  ;;  %v12948_v3 = vmax.f32 %v9516_v46, %v9518_v8 }
 0x427   : > { %12946 = vst [vmem:[#allocation73_spill] sm:$0xff] %v9628_v45  ;;  %6970 = vpow2.f32 %v2089_v14  ;;  %v1934_v23 = vpop.xlane.xlu1 %1933  ;;  %2975 = vmax.xlane.f32.xlu0 %v2974_v0  ;;  %v9630_v49 = vpop.f32.mrb[143].mxu1 }
 0x428   : > { %12947 = vst [vmem:[#allocation55_spill] sm:$0xff] %v9630_v49  ;;  %v2091_v59 = vmul.f32 1.442695, %v2023_v54  ;;  %v2093_v5 = vmul.f32 1.442695, %v2024_v53  ;;  %v2025_v62 = vsub.f32 %v9331_v34, %v1934_v23  ;;  %v2026_v12 = vsub.f32 %v9333_v37, %v1934_v23 }
 0x429   : > { %2002 = vmax.xlane.f32.xlu1 %v12948_v3  ;;  %6307 = vmatmul.mubr.msk.bf16.gmra.mrb[248].mxu1 %vm543_vm0, %v3683_v25  ;;  %v12950_v54 = vmax.f32 %v9522_v22, %v9524_v36 }
 0x42a   : > { %6972 = vpow2.f32 %v2091_v59  ;;  %v2095_v31 = vmul.f32 1.442695, %v2025_v62  ;;  %v2097_v0 = vmul.f32 1.442695, %v2026_v12  ;;  %6308 = vmatprep.mubr.msk.bf16.mxu1 %vm543_vm0, %v9590_v63 }
 0x42b   : > { %6974 = vpow2.f32 %v2093_v5 }
 0x42c   : > { %v6965_v14 = vpop.eup %6964  ;;  %6976 = vpow2.f32 %v2095_v31  ;;  %v9642_v34 = vpop.f32.mrb[144].mxu1 }
 0x42d   : > { %12949 = vst [vmem:[#allocation77_spill] sm:$0xff] %v9642_v34  ;;  %v6967_v37 = vpop.eup %6966  ;;  %6978 = vpow2.f32 %v2097_v0  ;;  %v1937_v1 = vpop.xlane.xlu1 %1936  ;;  %2005 = vmax.xlane.f32.xlu1 %v12950_v54 }
 0x42e   : > { %v9647_v53 = vpop.f32.mrb[145].mxu1  ;;  %v2027_v25 = vsub.f32 %v9341_v27, %v1937_v1  ;;  %v2028_v23 = vsub.f32 %v9343_v55, %v1937_v1  ;;  %v9655_v62 = vadd.f32 %v6967_v37, %v6965_v14  ;;  %v12953_v1 = vmax.f32 %v9532_v2, %v9536_v26 }
 0x42f   : > { %12951 = vst [vmem:[#allocation78_spill] sm:$0xff] %v9647_v53  ;;  %v9653_v5 = vpop.f32.mrb[146].mxu1  ;;  %v1940_v3 = vpop.xlane.xlu0 %1939 }
 0x430   : > { %12952 = vst [vmem:[#allocation58_spill] sm:$0xff] %v9655_v62  ;;  %v9657_v12 = vpop.f32.mrb[147].mxu1  ;;  %v6969_v31 = vpop.eup %6968  ;;  %v2099_v0 = vmul.f32 1.442695, %v2027_v25  ;;  %v2101_v43 = vmul.f32 1.442695, %v2028_v23  ;;  %v2029_v27 = vsub.f32 %v9347_v30, %v1940_v3  ;;  %v2030_v55 = vsub.f32 %v9349_v51, %v1940_v3 }
 0x431   : > { %v6971_v36 = vpop.eup %6970  ;;  %2008 = vmax.xlane.f32.xlu1 %v12953_v1  ;;  %6309 = vmatmul.mubr.msk.bf16.gmra.mrb[252].mxu1 %vm543_vm0, %v9590_v63  ;;  %v2307_v59 = vpack.c.bf16 %v6969_v31, %v6965_v14  ;;  %v12955_v3 = vmax.f32 %v9540_v29, %v9542_v52 }
 0x432   : > { %6980 = vpow2.f32 %v2099_v0  ;;  %v2103_v62 = vmul.f32 1.442695, %v2029_v27  ;;  %v2308_v25 = vpack.c.bf16 %v6971_v36, %v6967_v37  ;;  %v9668_v23 = vadd.f32 %v6971_v36, %v6969_v31 }
 0x433   : > { %6982 = vpow2.f32 %v2101_v43  ;;  %v2105_v54 = vmul.f32 1.442695, %v2030_v55 }
 0x434   : > { %12954 = vst [vmem:[#allocation81_spill] sm:$0xff] %v9668_v23  ;;  %v6973_v53 = vpop.eup %6972  ;;  %6984 = vpow2.f32 %v2103_v62  ;;  %2419 = vmatprep.mubr.bf16.mxu0 %v2308_v25  ;;  %v9670_v30 = vpop.f32.mrb[148].mxu1 }
 0x435   : > { %v6975_v51 = vpop.eup %6974  ;;  %6986 = vpow2.f32 %v2105_v54  ;;  %2420 = vmatmul.mubr.bf16.vlgmr.msra.gmra.mrb[64].mxu0 %v2307_v59  ;;  %2011 = vmax.xlane.f32.xlu1 %v12955_v3  ;;  %v9675_v63 = vpop.f32.mrb[149].mxu1 }
 0x436   : > { %v1943_v14 = vpop.xlane.xlu0 %1942  ;;  %v6977_v37 = vpop.eup %6976  ;;  %v9683_v0 = vadd.f32 %v6975_v51, %v6973_v53 }
 0x437   : > { %v2031_v43 = vsub.f32 %v9357_v11, %v1943_v14  ;;  %v2032_v62 = vsub.f32 %v9359_v10, %v1943_v14  ;;  %v9681_v31 = vpop.f32.mrb[150].mxu1  ;;  %v6979_v59 = vpop.eup %6978  ;;  %v2309_v55 = vpack.c.bf16 %v6977_v37, %v6973_v53  ;;  %v12959_v10 = vmax.f32 %v9552_v24, %v9554_v19 }
 0x438   : > { %12956 = vst [vmem:[#allocation79_spill] sm:$0xff] %v9681_v31  ;;  %12957 = vst [vmem:[#allocation57_spill] sm:$0xff] %v9683_v0  ;;  %v1946_v54 = vpop.xlane.xlu1 %1945  ;;  %v9685_v27 = vpop.f32.mrb[151].mxu1  ;;  %v2310_v14 = vpack.c.bf16 %v6979_v59, %v6975_v51  ;;  %v9694_v36 = vadd.f32 %v6979_v59, %v6977_v37  ;;  %v12961_v59 = vmax.f32 %v9558_v47, %v9560_v48 }
 0x439   : > { %12958 = vst [vmem:[#allocation62_spill] sm:$0xff] %v9685_v27  ;;  %v2107_v1 = vmul.f32 1.442695, %v2031_v43  ;;  %v2109_v25 = vmul.f32 1.442695, %v2032_v62  ;;  %v2033_v3 = vsub.f32 %v9363_v32, %v1946_v54  ;;  %v2034_v23 = vsub.f32 %v9365_v28, %v1946_v54  ;;  %2014 = vmax.xlane.f32.xlu1 %v12959_v10  ;;  %v7629_v54 = vld [vmem:[%s8203_s24 + $0x50] sm:$0xff]  }
 0x43a   : > { %12960 = vst [vmem:[#allocation63_spill] sm:$0xff] %v9694_v36  ;;  %2427 = vmatprep.mubr.bf16.mxu0 %v2310_v14  ;;  %v12991_v27 = vld [vmem:[#allocation43_spill] sm:$0xff] }
 0x43b   : > { %6988 = vpow2.f32 %v2107_v1  ;;  %v2111_v0 = vmul.f32 1.442695, %v2033_v3  ;;  %v2113_v53 = vmul.f32 1.442695, %v2034_v23 }
 0x43c   : > { %6990 = vpow2.f32 %v2109_v25  ;;  %v6981_v43 = vpop.eup %6980  ;;  %v9696_v32 = vpop.f32.mrb[152].mxu1 }
 0x43d   : > { %6992 = vpow2.f32 %v2111_v0  ;;  %v6983_v28 = vpop.eup %6982  ;;  %2428 = vmatmul.mubr.bf16.gmra.mrb[68].mxu0 %v2309_v55  ;;  %v1949_v62 = vpop.xlane.xlu1 %1948  ;;  %3401 = vrot.lane.b32.xlu0 %v7629_v54, %s7841_s16  ;;  %v7630_v0 = vld [vmem:[%s8203_s24 + $0x18] sm:$0xff]  }
 0x43e   : > { %6994 = vpow2.f32 %v2113_v53  ;;  %v9700_v10 = vpop.f32.mrb[153].mxu1  ;;  %v6985_v51 = vpop.eup %6984  ;;  %v2035_v37 = vsub.f32 %v9373_v41, %v1949_v62  ;;  %v2036_v23 = vsub.f32 %v9375_v4, %v1949_v62  ;;  %2017 = vmax.xlane.f32.xlu1 %v12961_v59  ;;  %v9711_v1 = vadd.f32 %v6983_v28, %v6981_v43 }
 0x43f   : > { %v9709_v55 = vpop.f32.mrb[154].mxu1  ;;  %v6987_v25 = vpop.eup %6986  ;;  %v2311_v53 = vpack.c.bf16 %v6985_v51, %v6981_v43  ;;  %v12966_v43 = vmax.f32 %v9572_v15, %v9574_v58 }
 0x440   : > { %12962 = vst [vmem:[#allocation68_spill] sm:$0xff] %v9709_v55  ;;  %12963 = vst [vmem:[#allocation69_spill] sm:$0xff] %v9711_v1  ;;  %v9713_v3 = vpop.f32.mrb[155].mxu1  ;;  %v1952_v14 = vpop.xlane.xlu0 %1951  ;;  %v2115_v54 = vmul.f32 1.442695, %v2035_v37  ;;  %v2312_v59 = vpack.c.bf16 %v6987_v25, %v6983_v28  ;;  %v9721_v36 = vadd.f32 %v6987_v25, %v6985_v51 }
 0x441   : > { %12964 = vst [vmem:[#allocation74_spill] sm:$0xff] %v9713_v3  ;;  %v2117_v41 = vmul.f32 1.442695, %v2036_v23  ;;  %v2037_v62 = vsub.f32 %v9379_v61, %v1952_v14  ;;  %v2038_v11 = vsub.f32 %v9381_v39, %v1952_v14  ;;  %3387 = vrot.lane.b32.xlu0 %v7630_v0, %s7841_s16 }
 0x442   : > { %12965 = vst [vmem:[#allocation75_spill] sm:$0xff] %v9721_v36  ;;  %6996 = vpow2.f32 %v2115_v54  ;;  %2969 = vmax.xlane.f32.xlu1 %v12966_v43  ;;  %2435 = vmatprep.mubr.bf16.mxu0 %v2312_v59 }
 0x443   : > { %v2119_v1 = vmul.f32 1.442695, %v2037_v62  ;;  %6998 = vpow2.f32 %v2117_v41  ;;  %v2121_v37 = vmul.f32 1.442695, %v2038_v11  ;;  %v12967_v11 = vmax.f32 %v9580_v42, %v9582_v35 }
 0x444   : > { %v9726_v61 = vpop.f32.mrb[156].mxu1 }
 0x445   : > { %v6989_v23 = vpop.eup %6988  ;;  %7000 = vpow2.f32 %v2119_v1  ;;  %2436 = vmatmul.mubr.bf16.gmra.mrb[72].mxu0 %v2311_v53  ;;  %v1955_v0 = vpop.xlane.xlu1 %1954 }
 0x446   : > { %v6991_v39 = vpop.eup %6990  ;;  %7002 = vpow2.f32 %v2121_v37  ;;  %v9728_v28 = vpop.f32.mrb[157].mxu1  ;;  %v2039_v25 = vsub.f32 %v9389_v20, %v1955_v0  ;;  %v2040_v14 = vsub.f32 %v9391_v6, %v1955_v0  ;;  %2972 = vmax.xlane.f32.xlu1 %v12967_v11 }
 0x447   : > { %v6993_v51 = vpop.eup %6992  ;;  %v9737_v1 = vpop.f32.mrb[158].mxu1  ;;  %v9739_v41 = vadd.f32 %v6991_v39, %v6989_v23 }
 0x448   : > { %12968 = vst [vmem:[#allocation80_spill] sm:$0xff] %v9737_v1  ;;  %v6995_v53 = vpop.eup %6994  ;;  %v9741_v62 = vpop.f32.mrb[159].mxu1  ;;  %v2313_v59 = vpack.c.bf16 %v6993_v51, %v6989_v23  ;;  %v2123_v43 = vmul.f32 1.442695, %v2039_v25  ;;  %v2125_v37 = vmul.f32 1.442695, %v2040_v14 }
 0x449   : > { %12969 = vst [vmem:[#allocation82_spill] sm:$0xff] %v9739_v41  ;;  %12970 = vst [vmem:[#allocation83_spill] sm:$0xff] %v9741_v62  ;;  %v2314_v20 = vpack.c.bf16 %v6995_v53, %v6991_v39  ;;  %v1958_v0 = vpop.xlane.xlu1 %1957  ;;  %v9745_v4 = vadd.f32 %v6995_v53, %v6993_v51 }
 0x44a   : > { %7004 = vpow2.f32 %v2123_v43  ;;  %v2041_v11 = vsub.f32 %v9395_v60, %v1958_v0  ;;  %v2042_v54 = vsub.f32 %v9397_v40, %v1958_v0 }
 0x44b   : > { %12971 = vst [vmem:[#allocation84_spill] sm:$0xff] %v9745_v4  ;;  %2443 = vmatprep.mubr.bf16.mxu0 %v2314_v20  ;;  %7006 = vpow2.f32 %v2125_v37  ;;  %v12975_v4 = vld [vmem:[#allocation47_spill] sm:$0xff] }
 0x44c   : > { %v6997_v36 = vpop.eup %6996  ;;  %v2127_v41 = vmul.f32 1.442695, %v2041_v11  ;;  %v2129_v3 = vmul.f32 1.442695, %v2042_v54  ;;  %v9749_v23 = vpop.f32.mrb[160].mxu1 }
 0x44d   : > { %v6999_v25 = vpop.eup %6998  ;;  %2444 = vmatmul.mubr.bf16.gmra.mrb[76].mxu0 %v2313_v59  ;;  %v9751_v14 = vpop.f32.mrb[161].mxu1 }
 0x44e   : > { %v1961_v39 = vpop.xlane.xlu0 %1960  ;;  %7008 = vpow2.f32 %v2127_v41  ;;  %v9757_v53 = vpop.f32.mrb[162].mxu1  ;;  %v9761_v20 = vadd.f32 %v6999_v25, %v6997_v36 }
 0x44f   : > { %v7001_v6 = vpop.eup %7000  ;;  %v2043_v60 = vsub.f32 %v9405_v38, %v1961_v39  ;;  %v2044_v40 = vsub.f32 %v9407_v56, %v1961_v39  ;;  %12972 = vst [vmem:[#allocation85_spill] sm:$0xff] %v9757_v53  ;;  %7010 = vpow2.f32 %v2129_v3  ;;  %v1964_v54 = vpop.xlane.xlu1 %1963  ;;  %v7632_v53 = vld [vmem:[%s8203_s24 + $0x58] sm:$0xff]  }
 0x450   : > { %v7003_v43 = vpop.eup %7002  ;;  %v9759_v37 = vpop.f32.mrb[163].mxu1  ;;  %v2315_v59 = vpack.c.bf16 %v7001_v6, %v6997_v36  ;;  %12974 = vst [vmem:[#allocation86_spill] sm:$0xff] %v9761_v20  ;;  %v2045_v41 = vsub.f32 %v9411_v57, %v1964_v54  ;;  %v2046_v51 = vsub.f32 %v12975_v4, %v1964_v54  ;;  %v12977_v54 = vld [vmem:[#allocation25_spill] sm:$0xff]  ;;  %v12983_v20 = vld [vmem:[#allocation31_spill] sm:$0xff] }
 0x451   : > { %12973 = vst [vmem:[#allocation87_spill] sm:$0xff] %v9759_v37  ;;  %v2131_v0 = vmul.f32 1.442695, %v2043_v60  ;;  %v2133_v11 = vmul.f32 1.442695, %v2044_v40  ;;  %v2316_v56 = vpack.c.bf16 %v7003_v43, %v6999_v25  ;;  %v9767_v39 = vadd.f32 %v7003_v43, %v7001_v6  ;;  %v12978_v6 = vld [vmem:[#allocation59_spill] sm:$0xff] }
 0x452   : > { %v2135_v3 = vmul.f32 1.442695, %v2045_v41  ;;  %v2137_v62 = vmul.f32 1.442695, %v2046_v51  ;;  %v7631_v41 = vld [vmem:[%s8203_s24 + $0x10] sm:$0xff]   ;;  %v12982_v51 = vld [vmem:[#allocation30_spill] sm:$0xff] }
 0x453   : > { %12976 = vst [vmem:[#allocation47_spill] sm:$0xff] %v9767_v39  ;;  %7012 = vpow2.f32 %v2131_v0  ;;  %2451 = vmatprep.mubr.bf16.mxu0 %v2316_v56 }
 0x454   : > { %7014 = vpow2.f32 %v2133_v11  ;;  %v7005_v36 = vpop.eup %7004  ;;  %v9769_v60 = vpop.f32.mrb[164].mxu1 }
 0x455   : > { %7016 = vpow2.f32 %v2135_v3  ;;  %v7007_v40 = vpop.eup %7006  ;;  %2452 = vmatmul.mubr.bf16.gmra.mrb[80].mxu0 %v2315_v59  ;;  %v1967_v57 = vpop.xlane.xlu1 %1966 }
 0x456   : > { %7018 = vpow2.f32 %v2137_v62  ;;  %v9771_v4 = vpop.f32.mrb[165].mxu1  ;;  %v2047_v25 = vsub.f32 %v12977_v54, %v1967_v57  ;;  %v2048_v43 = vsub.f32 %v12978_v6, %v1967_v57  ;;  %v9779_v11 = vadd.f32 %v7007_v40, %v7005_v36 }
 0x457   : > { %v9777_v0 = vpop.f32.mrb[166].mxu1  ;;  %3385 = vrot.lane.b32.xlu1 %v7631_v41, %s7841_s16 }
 0x458   : > { %12979 = vst [vmem:[#allocation25_spill] sm:$0xff] %v9777_v0  ;;  %12980 = vst [vmem:[#allocation59_spill] sm:$0xff] %v9779_v11  ;;  %v9783_v62 = vpop.f32.mrb[167].mxu1  ;;  %v7009_v59 = vpop.eup %7008  ;;  %v2139_v56 = vmul.f32 1.442695, %v2047_v25 }
 0x459   : > { %12981 = vst [vmem:[#allocation126_spill] sm:$0xff] %v9783_v62  ;;  %v2141_v3 = vmul.f32 1.442695, %v2048_v43  ;;  %v7011_v57 = vpop.eup %7010  ;;  %v1970_v6 = vpop.xlane.xlu1 %1969  ;;  %v2317_v38 = vpack.c.bf16 %v7009_v59, %v7005_v36 }
 0x45a   : > { %7020 = vpow2.f32 %v2139_v56  ;;  %v2049_v39 = vsub.f32 %v12982_v51, %v1970_v6  ;;  %v2050_v11 = vsub.f32 %v12983_v20, %v1970_v6  ;;  %v2318_v37 = vpack.c.bf16 %v7011_v57, %v7007_v40  ;;  %v12985_v40 = vld [vmem:[#allocation36_spill] sm:$0xff] }
 0x45b   : > { %7022 = vpow2.f32 %v2141_v3  ;;  %3403 = vrot.lane.b32.xlu1 %v7632_v53, %s7841_s16  ;;  %v9791_v41 = vadd.f32 %v7011_v57, %v7009_v59  ;;  %v12986_v59 = vld [vmem:[#allocation37_spill] sm:$0xff] }
 0x45c   : > { %v2143_v43 = vmul.f32 1.442695, %v2049_v39  ;;  %v2145_v1 = vmul.f32 1.442695, %v2050_v11  ;;  %2459 = vmatprep.mubr.bf16.mxu0 %v2318_v37  ;;  %v9793_v54 = vpop.f32.mrb[168].mxu1 }
 0x45d   : > { %12984 = vst [vmem:[#allocation30_spill] sm:$0xff] %v9791_v41  ;;  %v7013_v25 = vpop.eup %7012  ;;  %2460 = vmatmul.mubr.bf16.gmra.mrb[84].mxu0 %v2317_v38  ;;  %v9795_v36 = vpop.f32.mrb[169].mxu1 }
 0x45e   : > { %v7015_v62 = vpop.eup %7014  ;;  %v1973_v51 = vpop.xlane.xlu0 %1972  ;;  %7024 = vpow2.f32 %v2143_v43  ;;  %v12990_v43 = vld [vmem:[#allocation42_spill] sm:$0xff] }
 0x45f   : > { %v7017_v56 = vpop.eup %7016  ;;  %v2051_v53 = vsub.f32 %v12985_v40, %v1973_v51  ;;  %v2052_v3 = vsub.f32 %v12986_v59, %v1973_v51  ;;  %v9801_v57 = vpop.f32.mrb[170].mxu1  ;;  %7026 = vpow2.f32 %v2145_v1  ;;  %v9805_v6 = vadd.f32 %v7015_v62, %v7013_v25 }
 0x460   : > { %12987 = vst [vmem:[#allocation31_spill] sm:$0xff] %v9801_v57  ;;  %v7019_v39 = vpop.eup %7018  ;;  %v1976_v37 = vpop.xlane.xlu1 %1975  ;;  %v2319_v38 = vpack.c.bf16 %v7017_v56, %v7013_v25  ;;  %v12992_v40 = vmax.f32 %v9604_v13, %v9606_v9 }
 0x461   : > { %v9803_v11 = vpop.f32.mrb[171].mxu1  ;;  %12989 = vst [vmem:[#allocation37_spill] sm:$0xff] %v9805_v6  ;;  %v2147_v41 = vmul.f32 1.442695, %v2051_v53  ;;  %v2149_v0 = vmul.f32 1.442695, %v2052_v3  ;;  %v2053_v55 = vsub.f32 %v12990_v43, %v1976_v37  ;;  %v2054_v20 = vsub.f32 %v12991_v27, %v1976_v37 }
 0x462   : > { %12988 = vst [vmem:[#allocation36_spill] sm:$0xff] %v9803_v11  ;;  %2981 = vmax.xlane.f32.xlu0 %v12992_v40  ;;  %v2320_v1 = vpack.c.bf16 %v7019_v39, %v7015_v62  ;;  %v9814_v59 = vadd.f32 %v7019_v39, %v7017_v56  ;;  %v12995_v40 = vld [vmem:[#allocation48_spill] sm:$0xff]  ;;  %v12996_v62 = vld [vmem:[#allocation49_spill] sm:$0xff] }
 0x463   : > { %7028 = vpow2.f32 %v2147_v41  ;;  %v2151_v31 = vmul.f32 1.442695, %v2053_v55  ;;  %v2153_v25 = vmul.f32 1.442695, %v2054_v20 }
 0x464   : > { %12993 = vst [vmem:[#allocation42_spill] sm:$0xff] %v9814_v59  ;;  %7030 = vpow2.f32 %v2149_v0  ;;  %2467 = vmatprep.mubr.bf16.mxu0 %v2320_v1  ;;  %v7021_v53 = vpop.eup %7020  ;;  %v9816_v3 = vpop.f32.mrb[172].mxu1  ;;  %v13000_v59 = vld [vmem:[#allocation60_spill] sm:$0xff] }
 0x465   : > { %7032 = vpow2.f32 %v2151_v31  ;;  %v7023_v27 = vpop.eup %7022  ;;  %2468 = vmatmul.mubr.bf16.gmra.mrb[88].mxu0 %v2319_v38  ;;  %v1979_v37 = vpop.xlane.xlu1 %1978 }
 0x466   : > { %7034 = vpow2.f32 %v2153_v25  ;;  %v9818_v43 = vpop.f32.mrb[173].mxu1  ;;  %v2055_v51 = vsub.f32 %v12995_v40, %v1979_v37  ;;  %v2056_v56 = vsub.f32 %v12996_v62, %v1979_v37  ;;  %v9826_v0 = vadd.f32 %v7023_v27, %v7021_v53  ;;  %v13001_v37 = vld [vmem:[#allocation52_spill] sm:$0xff] }
 0x467   : > { %12994 = vst [vmem:[#allocation43_spill] sm:$0xff] %v9818_v43  ;;  %v9824_v41 = vpop.f32.mrb[174].mxu1  ;;  %v1982_v20 = vpop.xlane.xlu0 %1981 }
 0x468   : > { %12997 = vst [vmem:[#allocation48_spill] sm:$0xff] %v9824_v41  ;;  %12998 = vst [vmem:[#allocation49_spill] sm:$0xff] %v9826_v0  ;;  %v9828_v31 = vpop.f32.mrb[175].mxu1  ;;  %v7025_v39 = vpop.eup %7024  ;;  %v2155_v1 = vmul.f32 1.442695, %v2055_v51  ;;  %v2057_v40 = vsub.f32 %v13000_v59, %v1982_v20  ;;  %v2058_v62 = vsub.f32 %v13001_v37, %v1982_v20 }
 0x469   : > { %12999 = vst [vmem:[#allocation127_spill] sm:$0xff] %v9828_v31  ;;  %v2157_v38 = vmul.f32 1.442695, %v2056_v56  ;;  %v7027_v6 = vpop.eup %7026  ;;  %v2321_v11 = vpack.c.bf16 %v7025_v39, %v7021_v53  ;;  %v13005_v53 = vld [vmem:[#allocation64_spill] sm:$0xff] }
 0x46a   : > { %7036 = vpow2.f32 %v2155_v1  ;;  %v2159_v55 = vmul.f32 1.442695, %v2057_v40  ;;  %v2322_v57 = vpack.c.bf16 %v7027_v6, %v7023_v27  ;;  %v9834_v34 = vadd.f32 %v7027_v6, %v7025_v39  ;;  %v13006_v40 = vld [vmem:[#allocation61_spill] sm:$0xff] }
 0x46b   : > { %7038 = vpow2.f32 %v2157_v38  ;;  %v2161_v0 = vmul.f32 1.442695, %v2058_v62 }
 0x46c   : > { %13002 = vst [vmem:[#allocation60_spill] sm:$0xff] %v9834_v34  ;;  %7040 = vpow2.f32 %v2159_v55  ;;  %2475 = vmatprep.mubr.bf16.mxu0 %v2322_v57  ;;  %v9836_v51 = vpop.f32.mrb[176].mxu1 }
 0x46d   : > { %v7029_v43 = vpop.eup %7028  ;;  %13003 = vst [vmem:[#allocation52_spill] sm:$0xff] %v9836_v51  ;;  %7042 = vpow2.f32 %v2161_v0  ;;  %2476 = vmatmul.mubr.bf16.gmra.mrb[92].mxu0 %v2321_v11  ;;  %v1985_v59 = vpop.xlane.xlu1 %1984 }
 0x46e   : > { %v7031_v56 = vpop.eup %7030  ;;  %v9838_v25 = vpop.f32.mrb[177].mxu1  ;;  %v2059_v1 = vsub.f32 %v13005_v53, %v1985_v59  ;;  %v2060_v27 = vsub.f32 %v13006_v40, %v1985_v59  ;;  %v13010_v53 = vld [vmem:[#allocation51_spill] sm:$0xff]  ;;  %v13011_v59 = vld [vmem:[#allocation65_spill] sm:$0xff] }
 0x46f   : > { %13004 = vst [vmem:[#allocation128_spill] sm:$0xff] %v9838_v25  ;;  %v7033_v20 = vpop.eup %7032  ;;  %v9844_v39 = vpop.f32.mrb[178].mxu1  ;;  %v9846_v55 = vadd.f32 %v7031_v56, %v7029_v43 }
 0x470   : > { %13007 = vst [vmem:[#allocation64_spill] sm:$0xff] %v9844_v39  ;;  %v7035_v57 = vpop.eup %7034  ;;  %v9848_v38 = vpop.f32.mrb[179].mxu1  ;;  %v2323_v11 = vpack.c.bf16 %v7033_v20, %v7029_v43  ;;  %v2163_v37 = vmul.f32 1.442695, %v2059_v1  ;;  %v2165_v62 = vmul.f32 1.442695, %v2060_v27 }
 0x471   : > { %13008 = vst [vmem:[#allocation61_spill] sm:$0xff] %v9846_v55  ;;  %13009 = vst [vmem:[#allocation129_spill] sm:$0xff] %v9848_v38  ;;  %v1988_v0 = vpop.xlane.xlu0 %1987  ;;  %v2324_v41 = vpack.c.bf16 %v7035_v57, %v7031_v56  ;;  %v9854_v6 = vadd.f32 %v7035_v57, %v7033_v20  ;;  %v13015_v56 = vld [vmem:[#allocation66_spill] sm:$0xff] }
 0x472   : > { %v2061_v31 = vsub.f32 %v13010_v53, %v1988_v0  ;;  %v2062_v40 = vsub.f32 %v13011_v59, %v1988_v0  ;;  %7044 = vpow2.f32 %v2163_v37  ;;  %v13016_v57 = vld [vmem:[#allocation54_spill] sm:$0xff] }
 0x473   : > { %13012 = vst [vmem:[#allocation51_spill] sm:$0xff] %v9854_v6  ;;  %7046 = vpow2.f32 %v2165_v62  ;;  %2483 = vmatprep.mubr.bf16.mxu0 %v2324_v41  ;;  %v7633_v62 = vld [vmem:[%s8203_s24 + $0x60] sm:$0xff]  }
 0x474   : > { %v2167_v25 = vmul.f32 1.442695, %v2061_v31  ;;  %v2169_v55 = vmul.f32 1.442695, %v2062_v40  ;;  %v7037_v51 = vpop.eup %7036  ;;  %v9856_v43 = vpop.f32.mrb[180].mxu1  ;;  %v13021_v6 = vld [vmem:[#allocation67_spill] sm:$0xff] }
 0x475   : > { %13013 = vst [vmem:[#allocation65_spill] sm:$0xff] %v9856_v43  ;;  %v7039_v1 = vpop.eup %7038  ;;  %2484 = vmatmul.mubr.bf16.gmra.mrb[96].mxu0 %v2323_v11  ;;  %v1991_v27 = vpop.xlane.xlu1 %1990  ;;  %v7634_v43 = vld [vmem:[%s8203_s24 + $0x28] sm:$0xff]  }
 0x476   : > { %7048 = vpow2.f32 %v2167_v25  ;;  %v9858_v53 = vpop.f32.mrb[181].mxu1  ;;  %v7041_v0 = vpop.eup %7040  ;;  %v2063_v20 = vsub.f32 %v13015_v56, %v1991_v27  ;;  %v2064_v37 = vsub.f32 %v13016_v57, %v1991_v27  ;;  %v9868_v25 = vadd.f32 %v7039_v1, %v7037_v51  ;;  %v13020_v57 = vld [vmem:[#allocation70_spill] sm:$0xff] }
 0x477   : > { %7050 = vpow2.f32 %v2169_v55  ;;  %13014 = vst [vmem:[#allocation130_spill] sm:$0xff] %v9858_v53  ;;  %v9866_v41 = vpop.f32.mrb[182].mxu1  ;;  %v7043_v55 = vpop.eup %7042  ;;  %v2325_v40 = vpack.c.bf16 %v7041_v0, %v7037_v51 }
 0x478   : > { %3405 = vrot.lane.b32.xlu0 %v7633_v62, %s7841_s16  ;;  %13017 = vst [vmem:[#allocation66_spill] sm:$0xff] %v9866_v41  ;;  %13018 = vst [vmem:[#allocation54_spill] sm:$0xff] %v9868_v25  ;;  %v9870_v11 = vpop.f32.mrb[183].mxu1  ;;  %v1994_v59 = vpop.xlane.xlu0 %1993  ;;  %v2171_v34 = vmul.f32 1.442695, %v2063_v20  ;;  %v2326_v39 = vpack.c.bf16 %v7043_v55, %v7039_v1  ;;  %v9876_v53 = vadd.f32 %v7043_v55, %v7041_v0 }
 0x479   : > { %13019 = vst [vmem:[#allocation131_spill] sm:$0xff] %v9870_v11  ;;  %v2173_v56 = vmul.f32 1.442695, %v2064_v37  ;;  %v2065_v31 = vsub.f32 %v13020_v57, %v1994_v59  ;;  %v2066_v38 = vsub.f32 %v13021_v6, %v1994_v59  ;;  %v3382_v62 = vpop.permute.xlu1 %3381 }
 0x47a   : > { %13022 = vst [vmem:[#allocation70_spill] sm:$0xff] %v9876_v53  ;;  %7052 = vpow2.f32 %v2171_v34  ;;  %2491 = vmatprep.mubr.bf16.mxu0 %v2326_v39 }
 0x47b   : > { %v2175_v25 = vmul.f32 1.442695, %v2065_v31  ;;  %7054 = vpow2.f32 %v2173_v56  ;;  %v2177_v51 = vmul.f32 1.442695, %v2066_v38  ;;  %v13025_v31 = vmax.f32 %v9596_v44, %v9598_v7 }
 0x47c   : > { %3391 = vrot.lane.b32.xlu0 %v7634_v43, %s7841_s16  ;;  %v3398_v20 = vpop.permute.xlu0 %3397  ;;  %v7045_v37 = vpop.eup %7044 }
 0x47d   : > { %7056 = vpow2.f32 %v2175_v25  ;;  %v9880_v27 = vpop.f32.mrb[184].mxu1  ;;  %6150 = vmatprep.subr.bf16.mxu0 %v3398_v20  ;;  %v7047_v57 = vpop.eup %7046  ;;  %2492 = vmatmul.mubr.bf16.gmra.mrb[100].mxu0 %v2325_v40 }
 0x47e   : > { %7058 = vpow2.f32 %v2177_v51  ;;  %v3400_v6 = vpop.permute.xlu1 %3399  ;;  %v9882_v1 = vpop.f32.mrb[185].mxu1  ;;  %6151 = vmatpush3.bf16.msra.mxu0 %v3382_v62  ;;  %v9888_v39 = vadd.f32 %v7047_v57, %v7045_v37 }
 0x47f   : > { %v9886_v43 = vpop.f32.mrb[186].mxu1  ;;  %2978 = vmax.xlane.f32.xlu1 %v13025_v31  ;;  %6152 = vmatprep.subr.bf16.mxu0 %v3400_v6 }
 0x480   : > { %v7049_v34 = vpop.eup %7048  ;;  %13023 = vst [vmem:[#allocation67_spill] sm:$0xff] %v9886_v43  ;;  %13024 = vst [vmem:[#allocation132_spill] sm:$0xff] %v9888_v39  ;;  %v9893_v25 = vpop.f32.mrb[187].mxu1 }
 0x481   : > { %v7051_v38 = vpop.eup %7050  ;;  %13026 = vst [vmem:[#allocation133_spill] sm:$0xff] %v9893_v25  ;;  %v2327_v55 = vpack.c.bf16 %v7049_v34, %v7045_v37  ;;  %v3384_v59 = vpop.permute.xlu0 %3383 }
 0x482   : > { %v2328_v56 = vpack.c.bf16 %v7051_v38, %v7047_v57  ;;  %v9897_v51 = vadd.f32 %v7051_v38, %v7049_v34  ;;  %6153 = vmatpush3.bf16.msra.mxu0 %v3384_v59  ;;  %v7635_v59 = vld [vmem:[%s8203_s24 + $0x20] sm:$0xff]  }
 0x484   : > { %13027 = vst [vmem:[#allocation134_spill] sm:$0xff] %v9897_v51  ;;  %2499 = vmatprep.mubr.bf16.mxu0 %v2328_v56  ;;  %v7053_v62 = vpop.eup %7052  ;;  %v9899_v20 = vpop.f32.mrb[188].mxu1 }
 0x485   : > { %v7055_v0 = vpop.eup %7054  ;;  %2500 = vmatmul.mubr.bf16.gmra.mrb[104].mxu0 %v2327_v55  ;;  %v9901_v53 = vpop.f32.mrb[189].mxu1 }
 0x486   : > { %v9905_v31 = vpop.f32.mrb[190].mxu1  ;;  %v9907_v40 = vadd.f32 %v7055_v0, %v7053_v62 }
 0x487   : > { %v7057_v6 = vpop.eup %7056  ;;  %13028 = vst [vmem:[#allocation135_spill] sm:$0xff] %v9905_v31  ;;  %v9909_v34 = vpop.f32.mrb[191].mxu1 }
 0x488   : > { %13029 = vst [vmem:[#allocation136_spill] sm:$0xff] %v9907_v40  ;;  %v7059_v57 = vpop.eup %7058  ;;  %13030 = vst [vmem:[#allocation137_spill] sm:$0xff] %v9909_v34  ;;  %v2329_v38 = vpack.c.bf16 %v7057_v6, %v7053_v62 }
 0x489   : > { %v2330_v55 = vpack.c.bf16 %v7059_v57, %v7055_v0  ;;  %v9913_v56 = vadd.f32 %v7059_v57, %v7057_v6  ;;  %v7636_v0 = vld [vmem:[%s8203_s24 + $0x68] sm:$0xff]  }
 0x48b   : > { %13031 = vst [vmem:[#allocation138_spill] sm:$0xff] %v9913_v56  ;;  %2507 = vmatprep.mubr.bf16.mxu0 %v2330_v55 }
 0x48c   : > { %v9915_v51 = vpop.f32.mrb[192].mxu1 }
 0x48d   : > { %13032 = vst [vmem:[#allocation139_spill] sm:$0xff] %v9915_v51  ;;  %2508 = vmatmul.mubr.bf16.gmra.mrb[108].mxu0 %v2329_v38  ;;  %v9917_v37 = vpop.f32.mrb[193].mxu1 }
 0x48e   : > { %13033 = vst [vmem:[#allocation140_spill] sm:$0xff] %v9917_v37  ;;  %v9921_v39 = vpop.f32.mrb[194].mxu1 }
 0x48f   : > { %13034 = vst [vmem:[#allocation141_spill] sm:$0xff] %v9921_v39  ;;  %v9923_v25 = vpop.f32.mrb[195].mxu1 }
 0x490   : > { %13035 = vst [vmem:[#allocation142_spill] sm:$0xff] %v9923_v25  ;;  %3389 = vrot.lane.b32.xlu1 %v7635_v59, %s7841_s16  ;;  %v13040_v59 = vmax.f32 %v9628_v45, %v9630_v49 }
 0x494   : > { %3407 = vrot.lane.b32.xlu1 %v7636_v0, %s7841_s16  ;;  %v9931_v6 = vpop.f32.mrb[196].mxu1 }
 0x495   : > { %13036 = vst [vmem:[#allocation143_spill] sm:$0xff] %v9931_v6  ;;  %v9933_v57 = vpop.f32.mrb[197].mxu1 }
 0x496   : > { %13037 = vst [vmem:[#allocation144_spill] sm:$0xff] %v9933_v57  ;;  %v9937_v55 = vpop.f32.mrb[198].mxu1  ;;  %v13053_v57 = vld [vmem:[#allocation71_spill] sm:$0xff] }
 0x497   : > { %13038 = vst [vmem:[#allocation145_spill] sm:$0xff] %v9937_v55  ;;  %v9939_v40 = vpop.f32.mrb[199].mxu1 }
 0x498   : > { %13039 = vst [vmem:[#allocation146_spill] sm:$0xff] %v9939_v40 }
 0x49b   : > { %2987 = vmax.xlane.f32.xlu0 %v13040_v59 }
 0x49c   : > { %v9946_v56 = vpop.f32.mrb[200].mxu1 }
 0x49d   : > { %13041 = vst [vmem:[#allocation147_spill] sm:$0xff] %v9946_v56  ;;  %v9948_v0 = vpop.f32.mrb[201].mxu1 }
 0x49e   : > { %13042 = vst [vmem:[#allocation148_spill] sm:$0xff] %v9948_v0  ;;  %v9952_v39 = vpop.f32.mrb[202].mxu1 }
 0x49f   : > { %13043 = vst [vmem:[#allocation149_spill] sm:$0xff] %v9952_v39  ;;  %v9954_v38 = vpop.f32.mrb[203].mxu1 }
 0x4a0   : > { %13044 = vst [vmem:[#allocation150_spill] sm:$0xff] %v9954_v38 }
 0x4a4   : > { %v9958_v62 = vpop.f32.mrb[204].mxu1 }
 0x4a5   : > { %13045 = vst [vmem:[#allocation151_spill] sm:$0xff] %v9958_v62  ;;  %v9960_v6 = vpop.f32.mrb[205].mxu1 }
 0x4a6   : > { %13046 = vst [vmem:[#allocation152_spill] sm:$0xff] %v9960_v6  ;;  %v9964_v40 = vpop.f32.mrb[206].mxu1  ;;  %v7637_v6 = vld [vmem:[%s8203_s24 + $0x70] sm:$0xff]  }
 0x4a7   : > { %13047 = vst [vmem:[#allocation153_spill] sm:$0xff] %v9964_v40  ;;  %v9966_v55 = vpop.f32.mrb[207].mxu1 }
 0x4a8   : > { %13048 = vst [vmem:[#allocation154_spill] sm:$0xff] %v9966_v55 }
 0x4ac   : > { %v9970_v0 = vpop.f32.mrb[208].mxu1 }
 0x4ad   : > { %13049 = vst [vmem:[#allocation155_spill] sm:$0xff] %v9970_v0  ;;  %v9972_v56 = vpop.f32.mrb[209].mxu1  ;;  %v13054_v0 = vld [vmem:[#allocation72_spill] sm:$0xff] }
 0x4ae   : > { %13050 = vst [vmem:[#allocation156_spill] sm:$0xff] %v9972_v56  ;;  %v1997_v38 = vpop.xlane.xlu1 %1996  ;;  %v9976_v39 = vpop.f32.mrb[210].mxu1 }
 0x4af   : > { %13051 = vst [vmem:[#allocation157_spill] sm:$0xff] %v9976_v39  ;;  %v2067_v49 = vsub.f32 %v9501_v16, %v1997_v38  ;;  %v2068_v59 = vsub.f32 %v9503_v17, %v1997_v38  ;;  %v9982_v62 = vpop.f32.mrb[211].mxu1  ;;  %v7638_v38 = vld [vmem:[%s8203_s24 + $0x38] sm:$0xff]  }
 0x4b0   : > { %13052 = vst [vmem:[#allocation158_spill] sm:$0xff] %v9982_v62  ;;  %v2967_v55 = vpop.xlane.xlu0 %2966 }
 0x4b1   : > { %3409 = vrot.lane.b32.xlu0 %v7637_v6, %s7841_s16  ;;  %v2179_v40 = vmul.f32 1.442695, %v2067_v49  ;;  %v2181_v45 = vmul.f32 1.442695, %v2068_v59  ;;  %v3061_v56 = vsub.f32 %v13053_v57, %v2967_v55  ;;  %v3062_v34 = vsub.f32 %v13054_v0, %v2967_v55  ;;  %v13056_v57 = vld [vmem:[#allocation56_spill] sm:$0xff] }
 0x4b2   : > { %v2000_v31 = vpop.xlane.xlu1 %1999  ;;  %v13057_v55 = vld [vmem:[#allocation76_spill] sm:$0xff] }
 0x4b3   : > { %7060 = vpow2.f32 %v2179_v40  ;;  %v3125_v16 = vmul.f32 1.442695, %v3061_v56  ;;  %v3127_v43 = vmul.f32 1.442695, %v3062_v34  ;;  %v2069_v17 = vsub.f32 %v9507_v21, %v2000_v31 }
 0x4b4   : > { %7062 = vpow2.f32 %v2181_v45  ;;  %v2070_v6 = vsub.f32 %v9509_v18, %v2000_v31  ;;  %v9992_v25 = vpop.f32.mrb[212].mxu1  ;;  %v2976_v49 = vpop.xlane.xlu0 %2975 }
 0x4b5   : > { %3395 = vrot.lane.b32.xlu0 %v7638_v38, %s7841_s16  ;;  %13055 = vst [vmem:[#allocation71_spill] sm:$0xff] %v9992_v25  ;;  %7064 = vpow2.f32 %v3125_v16  ;;  %v2183_v59 = vmul.f32 1.442695, %v2069_v17  ;;  %v3067_v62 = vsub.f32 %v13056_v57, %v2976_v49  ;;  %v3068_v0 = vsub.f32 %v13057_v55, %v2976_v49  ;;  %v9996_v40 = vpop.f32.mrb[213].mxu1  ;;  %v13062_v55 = vld [vmem:[#allocation53_spill] sm:$0xff] }
 0x4b6   : > { %13058 = vst [vmem:[#allocation72_spill] sm:$0xff] %v9996_v40  ;;  %7066 = vpow2.f32 %v3127_v43  ;;  %v2185_v34 = vmul.f32 1.442695, %v2070_v6  ;;  %v2003_v56 = vpop.xlane.xlu1 %2002  ;;  %v10000_v45 = vpop.f32.mrb[214].mxu1  ;;  %v13061_v6 = vmax.f32 %v9617_v33, %v9622_v50  ;;  %v13153_v40 = vld [vmem:[#allocation36_spill] sm:$0xff] }
 0x4b7   : > { %13059 = vst [vmem:[#allocation56_spill] sm:$0xff] %v10000_v45  ;;  %7068 = vpow2.f32 %v2183_v59  ;;  %v3137_v18 = vmul.f32 1.442695, %v3067_v62  ;;  %v3139_v31 = vmul.f32 1.442695, %v3068_v0  ;;  %v2071_v16 = vsub.f32 %v9516_v46, %v2003_v56  ;;  %v10003_v17 = vpop.f32.mrb[215].mxu1 }
 0x4b8   : > { %13060 = vst [vmem:[#allocation76_spill] sm:$0xff] %v10003_v17  ;;  %7070 = vpow2.f32 %v2185_v34  ;;  %v2072_v38 = vsub.f32 %v9518_v8, %v2003_v56  ;;  %2984 = vmax.xlane.f32.xlu1 %v13061_v6  ;;  %v3402_v49 = vpop.permute.xlu0 %3401 }
 0x4b9   : > { %7072 = vpow2.f32 %v3137_v18  ;;  %v2187_v57 = vmul.f32 1.442695, %v2071_v16  ;;  %6154 = vmatprep.subr.bf16.mxu0 %v3402_v49 }
 0x4ba   : > { %7074 = vpow2.f32 %v3139_v31  ;;  %v2189_v62 = vmul.f32 1.442695, %v2072_v38  ;;  %v2006_v59 = vpop.xlane.xlu1 %2005 }
 0x4bb   : > { %7076 = vpow2.f32 %v2187_v57  ;;  %v2073_v46 = vsub.f32 %v9522_v22, %v2006_v59  ;;  %v2074_v0 = vsub.f32 %v13062_v55, %v2006_v59 }
 0x4bc   : > { %7078 = vpow2.f32 %v2189_v62  ;;  %v10013_v8 = vpop.f32.mrb[216].mxu1 }
 0x4bd   : > { %13063 = vst [vmem:[#allocation53_spill] sm:$0xff] %v10013_v8  ;;  %v7061_v34 = vpop.eup %7060  ;;  %v2191_v56 = vmul.f32 1.442695, %v2073_v46  ;;  %v2193_v43 = vmul.f32 1.442695, %v2074_v0  ;;  %v10015_v21 = vpop.f32.mrb[217].mxu1 }
 0x4be   : > { %13064 = vst [vmem:[#allocation159_spill] sm:$0xff] %v10015_v21  ;;  %v7063_v6 = vpop.eup %7062  ;;  %v2009_v31 = vpop.xlane.xlu1 %2008 }
 0x4bf   : > { %v10019_v16 = vpop.f32.mrb[218].mxu1  ;;  %v10021_v38 = vpop.eup %7064  ;;  %7080 = vpow2.f32 %v2191_v56  ;;  %v2075_v22 = vsub.f32 %v9532_v2, %v2009_v31  ;;  %v2076_v49 = vsub.f32 %v9536_v26, %v2009_v31  ;;  %v10027_v62 = vadd.f32 %v7063_v6, %v7061_v34 }
 0x4c0   : > { %13065 = vst [vmem:[#allocation160_spill] sm:$0xff] %v10019_v16  ;;  %v10025_v57 = vpop.f32.mrb[219].mxu1  ;;  %v10029_v59 = vpop.eup %7066  ;;  %7082 = vpow2.f32 %v2193_v43  ;;  %v13113_v16 = vld [vmem:[#allocation78_spill] sm:$0xff] }
 0x4c1   : > { %13066 = vst [vmem:[#allocation161_spill] sm:$0xff] %v10025_v57  ;;  %13067 = vst [vmem:[#allocation162_spill] sm:$0xff] %v10027_v62  ;;  %v7069_v55 = vpop.eup %7068  ;;  %v2195_v0 = vmul.f32 1.442695, %v2075_v22  ;;  %v2197_v18 = vmul.f32 1.442695, %v2076_v49  ;;  %v10035_v56 = vadd.f32 %v10029_v59, %v10021_v38 }
 0x4c2   : > { %v7071_v2 = vpop.eup %7070  ;;  %v2012_v17 = vpop.xlane.xlu1 %2011  ;;  %v2331_v26 = vpack.c.bf16 %v7069_v55, %v7061_v34 }
 0x4c3   : > { %13068 = vst [vmem:[#allocation163_spill] sm:$0xff] %v10035_v56  ;;  %v10037_v31 = vpop.eup %7072  ;;  %7084 = vpow2.f32 %v2195_v0  ;;  %v2077_v62 = vsub.f32 %v9540_v29, %v2012_v17  ;;  %v2078_v43 = vsub.f32 %v9542_v52, %v2012_v17  ;;  %v2332_v45 = vpack.c.bf16 %v7071_v2, %v7063_v6  ;;  %v7639_v17 = vld [vmem:[%s8203_s24 + $0x30] sm:$0xff]  }
 0x4c4   : > { %v10041_v21 = vpop.eup %7074  ;;  %7086 = vpow2.f32 %v2197_v18  ;;  %v10043_v22 = vpop.f32.mrb[220].mxu1  ;;  %v10045_v49 = vadd.f32 %v7071_v2, %v7069_v55 }
 0x4c5   : > { %13069 = vst [vmem:[#allocation164_spill] sm:$0xff] %v10043_v22  ;;  %v7077_v46 = vpop.eup %7076  ;;  %v2199_v56 = vmul.f32 1.442695, %v2077_v62  ;;  %v2201_v57 = vmul.f32 1.442695, %v2078_v43  ;;  %2515 = vmatprep.mubr.bf16.mxu0 %v2332_v45  ;;  %v10047_v34 = vpop.f32.mrb[221].mxu1  ;;  %v10051_v0 = vadd.f32 %v10041_v21, %v10037_v31 }
 0x4c6   : > { %13070 = vst [vmem:[#allocation165_spill] sm:$0xff] %v10045_v49  ;;  %13071 = vst [vmem:[#allocation166_spill] sm:$0xff] %v10047_v34  ;;  %v7079_v29 = vpop.eup %7078  ;;  %2516 = vmatmul.mubr.bf16.gmra.mrb[112].mxu0 %v2331_v26  ;;  %v2015_v52 = vpop.xlane.xlu1 %2014 }
 0x4c7   : > { %13072 = vst [vmem:[#allocation167_spill] sm:$0xff] %v10051_v0  ;;  %v10055_v6 = vpop.f32.mrb[222].mxu1  ;;  %7088 = vpow2.f32 %v2199_v56  ;;  %v2079_v18 = vsub.f32 %v9552_v24, %v2015_v52  ;;  %v2080_v45 = vsub.f32 %v9554_v19, %v2015_v52  ;;  %v10061_v55 = vadd.f32 %v7079_v29, %v7077_v46 }
 0x4c8   : > { %13073 = vst [vmem:[#allocation168_spill] sm:$0xff] %v10055_v6  ;;  %v10059_v62 = vpop.f32.mrb[223].mxu1  ;;  %7090 = vpow2.f32 %v2201_v57 }
 0x4c9   : > { %13074 = vst [vmem:[#allocation169_spill] sm:$0xff] %v10059_v62  ;;  %13075 = vst [vmem:[#allocation170_spill] sm:$0xff] %v10061_v55  ;;  %v7081_v26 = vpop.eup %7080  ;;  %v2203_v43 = vmul.f32 1.442695, %v2079_v18  ;;  %v2205_v0 = vmul.f32 1.442695, %v2080_v45  ;;  %3393 = vrot.lane.b32.xlu1 %v7639_v17, %s7841_s16 }
 0x4ca   : > { %v7083_v56 = vpop.eup %7082  ;;  %v2333_v49 = vpack.c.bf16 %v7081_v26, %v7077_v46  ;;  %v7640_v18 = vld [vmem:[%s8203_s24 + $0x78] sm:$0xff]  }
 0x4cb   : > { %7092 = vpow2.f32 %v2203_v43  ;;  %v2018_v24 = vpop.xlane.xlu1 %2017  ;;  %v2334_v19 = vpack.c.bf16 %v7083_v56, %v7079_v29  ;;  %v10067_v52 = vadd.f32 %v7083_v56, %v7081_v26 }
 0x4cc   : > { %7094 = vpow2.f32 %v2205_v0  ;;  %v2081_v57 = vsub.f32 %v9558_v47, %v2018_v24  ;;  %v2082_v55 = vsub.f32 %v9560_v48, %v2018_v24  ;;  %v10071_v2 = vpop.f32.mrb[224].mxu1  ;;  %v13082_v0 = vmax.f32 %v9653_v5, %v9657_v12 }
 0x4cd   : > { %13076 = vst [vmem:[#allocation171_spill] sm:$0xff] %v10067_v52  ;;  %13077 = vst [vmem:[#allocation172_spill] sm:$0xff] %v10071_v2  ;;  %v7085_v62 = vpop.eup %7084  ;;  %3411 = vrot.lane.b32.xlu1 %v7640_v18, %s7841_s16  ;;  %2523 = vmatprep.mubr.bf16.mxu0 %v2334_v19  ;;  %v10075_v17 = vpop.f32.mrb[225].mxu1  ;;  %v13142_v2 = vld [vmem:[#allocation87_spill] sm:$0xff] }
 0x4ce   : > { %13078 = vst [vmem:[#allocation173_spill] sm:$0xff] %v10075_v17  ;;  %v7087_v46 = vpop.eup %7086  ;;  %v2207_v45 = vmul.f32 1.442695, %v2081_v57  ;;  %v2209_v43 = vmul.f32 1.442695, %v2082_v55  ;;  %2524 = vmatmul.mubr.bf16.gmra.mrb[116].mxu0 %v2333_v49  ;;  %v10079_v29 = vpop.f32.mrb[226].mxu1 }
 0x4cf   : > { %13079 = vst [vmem:[#allocation174_spill] sm:$0xff] %v10079_v29  ;;  %v2970_v47 = vpop.xlane.xlu1 %2969  ;;  %v10081_v48 = vpop.f32.mrb[227].mxu1  ;;  %v10083_v26 = vadd.f32 %v7087_v46, %v7085_v62  ;;  %v13112_v29 = vld [vmem:[#allocation77_spill] sm:$0xff] }
 0x4d0   : > { %13080 = vst [vmem:[#allocation175_spill] sm:$0xff] %v10081_v48  ;;  %7096 = vpow2.f32 %v2207_v45  ;;  %v3063_v56 = vsub.f32 %v9572_v15, %v2970_v47  ;;  %v3064_v24 = vsub.f32 %v9574_v58, %v2970_v47  ;;  %v13123_v48 = vld [vmem:[#allocation65_spill] sm:$0xff] }
 0x4d1   : > { %13081 = vst [vmem:[#allocation176_spill] sm:$0xff] %v10083_v26  ;;  %v7089_v55 = vpop.eup %7088  ;;  %7098 = vpow2.f32 %v2209_v43  ;;  %v13141_v17 = vld [vmem:[#allocation85_spill] sm:$0xff] }
 0x4d2   : > { %v7091_v49 = vpop.eup %7090  ;;  %v3129_v57 = vmul.f32 1.442695, %v3063_v56  ;;  %v3131_v18 = vmul.f32 1.442695, %v3064_v24  ;;  %v2335_v52 = vpack.c.bf16 %v7089_v55, %v7085_v62  ;;  %v13086_v62 = vmax.f32 %v9670_v30, %v9675_v63 }
 0x4d3   : > { %v2973_v6 = vpop.xlane.xlu1 %2972  ;;  %v2336_v26 = vpack.c.bf16 %v7091_v49, %v7087_v46  ;;  %v10092_v45 = vadd.f32 %v7091_v49, %v7089_v55  ;;  %v13090_v49 = vmax.f32 %v9696_v32, %v9700_v10  ;;  %v13143_v34 = vmax.f32 %v13141_v17, %v13142_v2  ;;  %v13158_v2 = vld [vmem:[#allocation127_spill] sm:$0xff] }
 0x4d4   : > { %2993 = vmax.xlane.f32.xlu0 %v13082_v0  ;;  %7100 = vpow2.f32 %v3129_v57  ;;  %v3065_v58 = vsub.f32 %v9580_v42, %v2973_v6  ;;  %v3066_v15 = vsub.f32 %v9582_v35, %v2973_v6  ;;  %v10096_v47 = vpop.f32.mrb[228].mxu1 }
 0x4d5   : > { %13083 = vst [vmem:[#allocation177_spill] sm:$0xff] %v10092_v45  ;;  %13084 = vst [vmem:[#allocation178_spill] sm:$0xff] %v10096_v47  ;;  %v7093_v43 = vpop.eup %7092  ;;  %7102 = vpow2.f32 %v3131_v18  ;;  %2531 = vmatprep.mubr.bf16.mxu0 %v2336_v26  ;;  %v10098_v56 = vpop.f32.mrb[229].mxu1 }
 0x4d6   : > { %13085 = vst [vmem:[#allocation179_spill] sm:$0xff] %v10098_v56  ;;  %v7095_v24 = vpop.eup %7094  ;;  %v3133_v19 = vmul.f32 1.442695, %v3065_v58  ;;  %v3135_v0 = vmul.f32 1.442695, %v3066_v15  ;;  %2532 = vmatmul.mubr.bf16.gmra.mrb[120].mxu0 %v2335_v52  ;;  %v10105_v46 = vpop.f32.mrb[230].mxu1 }
 0x4d7   : > { %13087 = vst [vmem:[#allocation180_spill] sm:$0xff] %v10105_v46  ;;  %v3386_v35 = vpop.permute.xlu1 %3385  ;;  %v10107_v6 = vpop.f32.mrb[231].mxu1  ;;  %v10109_v55 = vadd.f32 %v7095_v24, %v7093_v43 }
 0x4d8   : > { %2996 = vmax.xlane.f32.xlu0 %v13086_v62  ;;  %13088 = vst [vmem:[#allocation181_spill] sm:$0xff] %v10107_v6  ;;  %7104 = vpow2.f32 %v3133_v19  ;;  %6155 = vmatpush3.bf16.msra.mxu0 %v3386_v35  ;;  %v3388_v15 = vpop.permute.xlu0 %3387  ;;  %v13108_v6 = vld [vmem:[#allocation43_spill] sm:$0xff] }
 0x4d9   : > { %13089 = vst [vmem:[#allocation182_spill] sm:$0xff] %v10109_v55  ;;  %7106 = vpow2.f32 %v3135_v0  ;;  %v13109_v46 = vmax.f32 %v9816_v3, %v13108_v6 }
 0x4da   : > { %v7097_v52 = vpop.eup %7096 }
 0x4db   : > { %v7099_v57 = vpop.eup %7098  ;;  %v3404_v18 = vpop.permute.xlu1 %3403  ;;  %v2337_v58 = vpack.c.bf16 %v7097_v52, %v7093_v43 }
 0x4dc   : > { %3002 = vmax.xlane.f32.xlu0 %v13090_v49  ;;  %6156 = vmatprep.subr.bf16.mxu0 %v3404_v18  ;;  %v2338_v62 = vpack.c.bf16 %v7099_v57, %v7095_v24  ;;  %v10116_v42 = vpop.f32.mrb[232].mxu1  ;;  %v10118_v45 = vadd.f32 %v7099_v57, %v7097_v52  ;;  %v13094_v49 = vmax.f32 %v9726_v61, %v9728_v28 }
 0x4dd   : > { %13091 = vst [vmem:[#allocation183_spill] sm:$0xff] %v10116_v42  ;;  %6157 = vmatpush3.bf16.msra.mxu0 %v3388_v15  ;;  %v10120_v19 = vpop.f32.mrb[233].mxu1 }
 0x4de   : > { %13092 = vst [vmem:[#allocation184_spill] sm:$0xff] %v10118_v45  ;;  %13093 = vst [vmem:[#allocation185_spill] sm:$0xff] %v10120_v19  ;;  %v10122_v35 = vpop.eup %7100  ;;  %2539 = vmatprep.mubr.bf16.mxu0 %v2338_v62  ;;  %v10129_v43 = vpop.f32.mrb[234].mxu1  ;;  %v13105_v45 = vmax.f32 %v9793_v54, %v9795_v36 }
 0x4df   : > { %13095 = vst [vmem:[#allocation186_spill] sm:$0xff] %v10129_v43  ;;  %v7103_v24 = vpop.eup %7102  ;;  %2540 = vmatmul.mubr.bf16.gmra.mrb[124].mxu0 %v2337_v58  ;;  %v10131_v18 = vpop.f32.mrb[235].mxu1 }
 0x4e0   : > { %3008 = vmax.xlane.f32.xlu0 %v13094_v49  ;;  %13096 = vst [vmem:[#allocation187_spill] sm:$0xff] %v10131_v18  ;;  %v3350_v15 = vpack.c.bf16 %v7103_v24, %v10029_v59  ;;  %v10139_v62 = vadd.f32 %v7103_v24, %v10122_v35  ;;  %v13098_v49 = vmax.f32 %v9749_v23, %v9751_v14 }
 0x4e2   : > { %13097 = vst [vmem:[#allocation188_spill] sm:$0xff] %v10139_v62  ;;  %v10141_v26 = vpop.eup %7104  ;;  %3461 = vmatprep.mubr.bf16.mxu0 %v3350_v15  ;;  %v13102_v15 = vmax.f32 %v9769_v60, %v9771_v4 }
 0x4e3   : > { %v10146_v58 = vpop.eup %7106 }
 0x4e4   : > { %3014 = vmax.xlane.f32.xlu0 %v13098_v49  ;;  %v10150_v52 = vpop.f32.mrb[236].mxu1  ;;  %v10156_v24 = vadd.f32 %v10146_v58, %v10141_v26 }
 0x4e5   : > { %13099 = vst [vmem:[#allocation189_spill] sm:$0xff] %v10150_v52  ;;  %v10158_v57 = vpop.f32.mrb[237].mxu1  ;;  %v13129_v52 = vld [vmem:[#allocation74_spill] sm:$0xff] }
 0x4e6   : > { %13100 = vst [vmem:[#allocation190_spill] sm:$0xff] %v10156_v24  ;;  %13101 = vst [vmem:[#allocation191_spill] sm:$0xff] %v10158_v57  ;;  %v10165_v62 = vpop.f32.mrb[238].mxu1 }
 0x4e7   : > { %13103 = vst [vmem:[#allocation192_spill] sm:$0xff] %v10165_v62  ;;  %v10167_v0 = vpop.f32.mrb[239].mxu1 }
 0x4e8   : > { %3020 = vmax.xlane.f32.xlu0 %v13102_v15  ;;  %13104 = vst [vmem:[#allocation193_spill] sm:$0xff] %v10167_v0  ;;  %v13114_v15 = vmax.f32 %v13112_v29, %v13113_v16 }
 0x4ec   : > { %3026 = vmax.xlane.f32.xlu0 %v13105_v45  ;;  %v10174_v24 = vpop.f32.mrb[240].mxu1 }
 0x4ed   : > { %13106 = vst [vmem:[#allocation194_spill] sm:$0xff] %v10174_v24  ;;  %v10176_v55 = vpop.f32.mrb[241].mxu1  ;;  %v13119_v24 = vld [vmem:[#allocation79_spill] sm:$0xff] }
 0x4ee   : > { %13107 = vst [vmem:[#allocation195_spill] sm:$0xff] %v10176_v55  ;;  %v10185_v59 = vpop.f32.mrb[242].mxu1 }
 0x4ef   : > { %v2982_v18 = vpop.xlane.xlu0 %2981  ;;  %13110 = vst [vmem:[#allocation43_spill] sm:$0xff] %v10185_v59  ;;  %v10187_v0 = vpop.f32.mrb[243].mxu1 }
 0x4f0   : > { %v3071_v49 = vsub.f32 %v9604_v13, %v2982_v18  ;;  %v3072_v43 = vsub.f32 %v9606_v9, %v2982_v18  ;;  %3032 = vmax.xlane.f32.xlu0 %v13109_v46  ;;  %13111 = vst [vmem:[#allocation196_spill] sm:$0xff] %v10187_v0  ;;  %v13115_v9 = vld [vmem:[#allocation52_spill] sm:$0xff]  ;;  %v13124_v0 = vld [vmem:[#allocation130_spill] sm:$0xff] }
 0x4f1   : > { %2990 = vmax.xlane.f32.xlu1 %v13114_v15  ;;  %v13116_v18 = vld [vmem:[#allocation128_spill] sm:$0xff]  ;;  %v13125_v59 = vmax.f32 %v13123_v48, %v13124_v0 }
 0x4f2   : > { %v3145_v45 = vmul.f32 1.442695, %v3071_v49  ;;  %v3147_v62 = vmul.f32 1.442695, %v3072_v43  ;;  %v13117_v55 = vmax.f32 %v13115_v9, %v13116_v18  ;;  %v13120_v49 = vld [vmem:[#allocation62_spill] sm:$0xff] }
 0x4f3   : > { %v3406_v13 = vpop.permute.xlu0 %3405  ;;  %v13121_v43 = vmax.f32 %v13119_v24, %v13120_v49 }
 0x4f4   : > { %7108 = vpow2.f32 %v3145_v45  ;;  %3038 = vmax.xlane.f32.xlu0 %v13117_v55  ;;  %6158 = vmatprep.subr.bf16.mxu0 %v3406_v13  ;;  %v10197_v46 = vpop.f32.mrb[244].mxu1  ;;  %v13128_v13 = vld [vmem:[#allocation68_spill] sm:$0xff] }
 0x4f5   : > { %7110 = vpow2.f32 %v3147_v62  ;;  %13118 = vst [vmem:[#allocation77_spill] sm:$0xff] %v10197_v46  ;;  %2999 = vmax.xlane.f32.xlu1 %v13121_v43  ;;  %v10202_v57 = vpop.f32.mrb[245].mxu1  ;;  %v13130_v19 = vmax.f32 %v13128_v13, %v13129_v52  ;;  %v13131_v43 = vmax.f32 %v9880_v27, %v9882_v1  ;;  %v13134_v46 = vld [vmem:[#allocation83_spill] sm:$0xff]  ;;  %v13144_v62 = vmax.f32 %v9915_v51, %v9917_v37  ;;  %v13157_v51 = vld [vmem:[#allocation48_spill] sm:$0xff] }
 0x4f6   : > { %13122 = vst [vmem:[#allocation78_spill] sm:$0xff] %v10202_v57  ;;  %v10209_v45 = vpop.f32.mrb[246].mxu1  ;;  %v13133_v57 = vld [vmem:[#allocation80_spill] sm:$0xff]  ;;  %v13159_v17 = vmax.f32 %v13157_v51, %v13158_v2 }
 0x4f7   : > { %13126 = vst [vmem:[#allocation52_spill] sm:$0xff] %v10209_v45  ;;  %v10211_v55 = vpop.f32.mrb[247].mxu1  ;;  %v13135_v56 = vmax.f32 %v13133_v57, %v13134_v46 }
 0x4f8   : > { %3044 = vmax.xlane.f32.xlu0 %v13125_v59  ;;  %13127 = vst [vmem:[#allocation128_spill] sm:$0xff] %v10211_v55 }
 0x4f9   : > { %3005 = vmax.xlane.f32.xlu1 %v13130_v19  ;;  %v13137_v19 = vmax.f32 %v9899_v20, %v9901_v53 }
 0x4fc   : > { %3050 = vmax.xlane.f32.xlu0 %v13131_v43  ;;  %v10223_v59 = vpop.f32.mrb[248].mxu1 }
 0x4fd   : > { %13132 = vst [vmem:[#allocation79_spill] sm:$0xff] %v10223_v59  ;;  %3011 = vmax.xlane.f32.xlu1 %v13135_v56  ;;  %v10230_v47 = vpop.f32.mrb[249].mxu1  ;;  %v13147_v59 = vld [vmem:[#allocation126_spill] sm:$0xff] }
 0x4fe   : > { %v10221_v42 = vpop.eup %7108  ;;  %13136 = vst [vmem:[#allocation62_spill] sm:$0xff] %v10230_v47  ;;  %v10237_v43 = vpop.f32.mrb[250].mxu1  ;;  %v13146_v47 = vld [vmem:[#allocation25_spill] sm:$0xff] }
 0x4ff   : > { %v10225_v15 = vpop.eup %7110  ;;  %13138 = vst [vmem:[#allocation65_spill] sm:$0xff] %v10237_v43  ;;  %v10243_v45 = vpop.f32.mrb[251].mxu1  ;;  %v13148_v22 = vmax.f32 %v13146_v47, %v13147_v59 }
 0x500   : > { %3056 = vmax.xlane.f32.xlu0 %v13137_v19  ;;  %v10241_v55 = vadd.f32 %v10225_v15, %v10221_v42  ;;  %13140 = vst [vmem:[#allocation68_spill] sm:$0xff] %v10243_v45 }
 0x501   : > { %3017 = vmax.xlane.f32.xlu1 %v13143_v34 }
 0x502   : > { %13139 = vst [vmem:[#allocation130_spill] sm:$0xff] %v10241_v55 }
 0x504   : > { %4008 = vmax.xlane.f32.xlu0 %v13144_v62  ;;  %v10253_v19 = vpop.f32.mrb[252].mxu1  ;;  %v13152_v62 = vld [vmem:[#allocation31_spill] sm:$0xff] }
 0x505   : > { %13145 = vst [vmem:[#allocation74_spill] sm:$0xff] %v10253_v19  ;;  %3023 = vmax.xlane.f32.xlu1 %v13148_v22  ;;  %v10258_v55 = vpop.f32.mrb[253].mxu1  ;;  %v13154_v25 = vmax.f32 %v13152_v62, %v13153_v40 }
 0x506   : > { %13149 = vst [vmem:[#allocation80_spill] sm:$0xff] %v10258_v55  ;;  %v10262_v56 = vpop.f32.mrb[254].mxu1 }
 0x507   : > { %13150 = vst [vmem:[#allocation83_spill] sm:$0xff] %v10262_v56  ;;  %v10264_v45 = vpop.f32.mrb[255].mxu1 }
 0x508   : > { %13151 = vst [vmem:[#allocation197_spill] sm:$0xff] %v10264_v45  ;;  %v6006_v34 = vpop.f32.mrb[64].mxu0 }
 0x509   : > { %3029 = vmax.xlane.f32.xlu1 %v13154_v25  ;;  %v6007_v39 = vpop.f32.mrb[65].mxu0 }
 0x50a   : > { %v10271_v59 = vadd.f32 %v6007_v39, %v6006_v34  ;;  %v6009_v22 = vpop.f32.mrb[66].mxu0  ;;  %v13160_v39 = vld [vmem:[#allocation64_spill] sm:$0xff]  ;;  %v13161_v34 = vld [vmem:[#allocation129_spill] sm:$0xff] }
 0x50b   : > { %v6010_v47 = vpop.f32.mrb[67].mxu0 }
 0x50c   : > { %13155 = vst [vmem:[#allocation198_spill] sm:$0xff] %v10271_v59  ;;  %v10273_v37 = vadd.f32 %v6010_v47, %v6009_v22  ;;  %v2979_v8 = vpop.xlane.xlu1 %2978  ;;  %v13162_v59 = vmax.f32 %v13160_v39, %v13161_v34 }
 0x50d   : > { %v3069_v55 = vsub.f32 %v9596_v44, %v2979_v8  ;;  %v3070_v19 = vsub.f32 %v9598_v7, %v2979_v8  ;;  %3035 = vmax.xlane.f32.xlu1 %v13159_v17 }
 0x50e   : > { %13156 = vst [vmem:[#allocation199_spill] sm:$0xff] %v10273_v37 }
 0x50f   : > { %v3141_v43 = vmul.f32 1.442695, %v3069_v55  ;;  %v3143_v45 = vmul.f32 1.442695, %v3070_v19  ;;  %v3392_v55 = vpop.permute.xlu0 %3391  ;;  %v13165_v19 = vmax.f32 %v9866_v41, %v9870_v11 }
 0x510   : > { %v3390_v56 = vpop.permute.xlu1 %3389  ;;  %v6012_v25 = vpop.f32.mrb[68].mxu0 }
 0x511   : > { %7112 = vpow2.f32 %v3141_v43  ;;  %3041 = vmax.xlane.f32.xlu1 %v13162_v59  ;;  %v6013_v47 = vpop.f32.mrb[69].mxu0  ;;  %6159 = vmatpush3.bf16.msra.mxu0 %v3390_v56  ;;  %v7641_v59 = vld [vmem:[%s8203_s24 + $0x40] sm:$0xff]   ;;  %v13167_v56 = vld [vmem:[#allocation133_spill] sm:$0xff] }
 0x512   : > { %7114 = vpow2.f32 %v3143_v45  ;;  %v10283_v44 = vadd.f32 %v6013_v47, %v6012_v25  ;;  %v6015_v7 = vpop.f32.mrb[70].mxu0  ;;  %v13166_v45 = vld [vmem:[#allocation67_spill] sm:$0xff] }
 0x513   : > { %v6016_v8 = vpop.f32.mrb[71].mxu0  ;;  %v13168_v25 = vmax.f32 %v13166_v45, %v13167_v56  ;;  %v13172_v56 = vld [vmem:[#allocation137_spill] sm:$0xff] }
 0x514   : > { %13163 = vst [vmem:[#allocation200_spill] sm:$0xff] %v10283_v44  ;;  %v10285_v22 = vadd.f32 %v6016_v8, %v6015_v7  ;;  %v3408_v17 = vpop.permute.xlu1 %3407 }
 0x515   : > { %3047 = vmax.xlane.f32.xlu1 %v13165_v19  ;;  %6160 = vmatprep.subr.bf16.mxu0 %v3408_v17  ;;  %v7642_v17 = vld [vmem:[%s8203_s24 + $0x8] sm:$0xff]  }
 0x516   : > { %13164 = vst [vmem:[#allocation201_spill] sm:$0xff] %v10285_v22  ;;  %6161 = vmatpush3.bf16.msra.mxu0 %v3392_v55 }
 0x518   : > { %v6018_v43 = vpop.f32.mrb[72].mxu0 }
 0x519   : > { %3053 = vmax.xlane.f32.xlu1 %v13168_v25  ;;  %v6019_v47 = vpop.f32.mrb[73].mxu0 }
 0x51a   : > { %4439 = vrot.lane.b32.xlu0 %v7641_v59, %s7842_s20  ;;  %v10295_v7 = vadd.f32 %v6019_v47, %v6018_v43  ;;  %v6021_v8 = vpop.f32.mrb[74].mxu0  ;;  %v13171_v59 = vld [vmem:[#allocation135_spill] sm:$0xff] }
 0x51b   : > { %v10297_v22 = vpop.eup %7112  ;;  %v6022_v37 = vpop.f32.mrb[75].mxu0  ;;  %v13173_v25 = vmax.f32 %v13171_v59, %v13172_v56  ;;  %v13180_v56 = vld [vmem:[#allocation73_spill] sm:$0xff]  ;;  %v13181_v43 = vld [vmem:[#allocation55_spill] sm:$0xff] }
 0x51c   : > { %13169 = vst [vmem:[#allocation202_spill] sm:$0xff] %v10295_v7  ;;  %v10299_v44 = vpop.eup %7114  ;;  %v10301_v19 = vadd.f32 %v6022_v37, %v6021_v8  ;;  %v13175_v37 = vld [vmem:[#allocation141_spill] sm:$0xff]  ;;  %v13176_v8 = vld [vmem:[#allocation142_spill] sm:$0xff] }
 0x51d   : > { %3059 = vmax.xlane.f32.xlu1 %v13173_v25  ;;  %v10314_v47 = vadd.f32 %v10299_v44, %v10297_v22 }
 0x51e   : > { %13170 = vst [vmem:[#allocation203_spill] sm:$0xff] %v10301_v19  ;;  %4425 = vrot.lane.b32.xlu0 %v7642_v17, %s7842_s20  ;;  %v13177_v19 = vmax.f32 %v13175_v37, %v13176_v8 }
 0x51f   : > { %13174 = vst [vmem:[#allocation204_spill] sm:$0xff] %v10314_v47 }
 0x520   : > { %v6024_v7 = vpop.f32.mrb[76].mxu0 }
 0x521   : > { %4011 = vmax.xlane.f32.xlu1 %v13177_v19  ;;  %v6025_v17 = vpop.f32.mrb[77].mxu0 }
 0x522   : > { %v10319_v45 = vadd.f32 %v6025_v17, %v6024_v7  ;;  %v6027_v55 = vpop.f32.mrb[78].mxu0 }
 0x523   : > { %v6028_v11 = vpop.f32.mrb[79].mxu0 }
 0x524   : > { %13178 = vst [vmem:[#allocation205_spill] sm:$0xff] %v10319_v45  ;;  %v10321_v41 = vadd.f32 %v6028_v11, %v6027_v55 }
 0x526   : > { %13179 = vst [vmem:[#allocation206_spill] sm:$0xff] %v10321_v41 }
 0x528   : > { %v2988_v25 = vpop.xlane.xlu0 %2987  ;;  %v6030_v39 = vpop.f32.mrb[80].mxu0 }
 0x529   : > { %v3075_v59 = vsub.f32 %v13180_v56, %v2988_v25  ;;  %v3076_v34 = vsub.f32 %v13181_v43, %v2988_v25  ;;  %v6031_v51 = vpop.f32.mrb[81].mxu0  ;;  %v7643_v43 = vld [vmem:[%s8203_s24] sm:$0xff]  }
 0x52a   : > { %v10325_v40 = vadd.f32 %v6031_v51, %v6030_v39  ;;  %v6033_v19 = vpop.f32.mrb[82].mxu0 }
 0x52b   : > { %v3153_v47 = vmul.f32 1.442695, %v3075_v59  ;;  %v3155_v2 = vmul.f32 1.442695, %v3076_v34  ;;  %v6034_v7 = vpop.f32.mrb[83].mxu0 }
 0x52c   : > { %13182 = vst [vmem:[#allocation73_spill] sm:$0xff] %v10325_v40  ;;  %v3410_v8 = vpop.permute.xlu0 %3409  ;;  %v10327_v11 = vadd.f32 %v6034_v7, %v6033_v19 }
 0x52d   : > { %7116 = vpow2.f32 %v3153_v47  ;;  %6162 = vmatprep.subr.bf16.mxu0 %v3410_v8  ;;  %v7644_v47 = vld [vmem:[%s8203_s24 + $0x48] sm:$0xff]  }
 0x52e   : > { %7118 = vpow2.f32 %v3155_v2  ;;  %13183 = vst [vmem:[#allocation55_spill] sm:$0xff] %v10327_v11 }
 0x530   : > { %v6036_v55 = vpop.f32.mrb[84].mxu0 }
 0x531   : > { %v6037_v56 = vpop.f32.mrb[85].mxu0 }
 0x532   : > { %v10329_v17 = vadd.f32 %v6037_v56, %v6036_v55  ;;  %4423 = vrot.lane.b32.xlu1 %v7643_v43, %s7842_s20  ;;  %v6039_v34 = vpop.f32.mrb[86].mxu0  ;;  %v13188_v43 = vld [vmem:[#allocation145_spill] sm:$0xff] }
 0x533   : > { %v6040_v59 = vpop.f32.mrb[87].mxu0 }
 0x534   : > { %13184 = vst [vmem:[#allocation207_spill] sm:$0xff] %v10329_v17  ;;  %v10333_v51 = vadd.f32 %v6040_v59, %v6039_v34  ;;  %v13189_v34 = vld [vmem:[#allocation146_spill] sm:$0xff] }
 0x535   : > { %v13190_v59 = vmax.f32 %v13188_v43, %v13189_v34 }
 0x536   : > { %13185 = vst [vmem:[#allocation208_spill] sm:$0xff] %v10333_v51  ;;  %4441 = vrot.lane.b32.xlu1 %v7644_v47, %s7842_s20 }
 0x537   : > { %v10335_v39 = vpop.eup %7116 }
 0x538   : > { %v10337_v25 = vpop.eup %7118  ;;  %v6042_v8 = vpop.f32.mrb[88].mxu0 }
 0x539   : > { %v10343_v2 = vadd.f32 %v10337_v25, %v10335_v39  ;;  %v6043_v19 = vpop.f32.mrb[89].mxu0 }
 0x53a   : > { %v10345_v7 = vadd.f32 %v6043_v19, %v6042_v8  ;;  %v6045_v55 = vpop.f32.mrb[90].mxu0 }
 0x53b   : > { %13186 = vst [vmem:[#allocation209_spill] sm:$0xff] %v10343_v2  ;;  %v6046_v56 = vpop.f32.mrb[91].mxu0 }
 0x53c   : > { %13187 = vst [vmem:[#allocation210_spill] sm:$0xff] %v10345_v7  ;;  %v10350_v51 = vadd.f32 %v6046_v56, %v6045_v55 }
 0x53d   : > { %4017 = vmax.xlane.f32.xlu0 %v13190_v59 }
 0x53e   : > { %13191 = vst [vmem:[#allocation145_spill] sm:$0xff] %v10350_v51 }
 0x540   : > { %v6048_v11 = vpop.f32.mrb[92].mxu0 }
 0x541   : > { %v6049_v41 = vpop.f32.mrb[93].mxu0 }
 0x542   : > { %v10352_v17 = vadd.f32 %v6049_v41, %v6048_v11  ;;  %v6051_v47 = vpop.f32.mrb[94].mxu0 }
 0x543   : > { %v6052_v40 = vpop.f32.mrb[95].mxu0 }
 0x544   : > { %13192 = vst [vmem:[#allocation146_spill] sm:$0xff] %v10352_v17  ;;  %v10354_v45 = vadd.f32 %v6052_v40, %v6051_v47 }
 0x545   : > { %v2985_v2 = vpop.xlane.xlu1 %2984 }
 0x546   : > { %13193 = vst [vmem:[#allocation211_spill] sm:$0xff] %v10354_v45  ;;  %v3073_v8 = vsub.f32 %v9617_v33, %v2985_v2  ;;  %v3074_v19 = vsub.f32 %v9622_v50, %v2985_v2  ;;  %v3396_v33 = vpop.permute.xlu0 %3395 }
 0x548   : > { %v3149_v7 = vmul.f32 1.442695, %v3073_v8  ;;  %v3151_v37 = vmul.f32 1.442695, %v3074_v19  ;;  %v6054_v62 = vpop.f32.mrb[96].mxu0  ;;  %v7645_v8 = vld [vmem:[%s8203_s24 + $0x50] sm:$0xff]  }
 0x549   : > { %v3394_v59 = vpop.permute.xlu1 %3393  ;;  %v6055_v55 = vpop.f32.mrb[97].mxu0 }
 0x54a   : > { %7120 = vpow2.f32 %v3149_v7  ;;  %v10358_v56 = vadd.f32 %v6055_v55, %v6054_v62  ;;  %v6057_v41 = vpop.f32.mrb[98].mxu0  ;;  %6163 = vmatpush3.bf16.msra.mxu0 %v3394_v59  ;;  %v13197_v7 = vpack.c.bf16 %v10122_v35, %v10021_v38  ;;  %v13198_v59 = vpack.c.bf16 %v10041_v21, %v10146_v58  ;;  %v13202_v21 = vld [vmem:[#allocation144_spill] sm:$0xff] }
 0x54b   : > { %7122 = vpow2.f32 %v3151_v37  ;;  %v6058_v11 = vpop.f32.mrb[99].mxu0 }
 0x54c   : > { %13194 = vst [vmem:[#allocation212_spill] sm:$0xff] %v10358_v56  ;;  %v10360_v40 = vadd.f32 %v6058_v11, %v6057_v41  ;;  %v13235_v56 = vld [vmem:[#allocation131_spill] sm:$0xff] }
 0x54d   : > { %v3412_v47 = vpop.permute.xlu1 %3411 }
 0x54e   : > { %13195 = vst [vmem:[#allocation213_spill] sm:$0xff] %v10360_v40  ;;  %6164 = vmatprep.subr.bf16.mxu0 %v3412_v47  ;;  %v7646_v47 = vld [vmem:[%s8203_s24 + $0x18] sm:$0xff]  }
 0x54f   : > { %6165 = vmatpush3.bf16.msra.mxu0 %v3396_v33 }
 0x550   : > { %v6060_v50 = vpop.f32.mrb[100].mxu0 }
 0x551   : > { %v6061_v2 = vpop.f32.mrb[101].mxu0 }
 0x552   : > { %v10364_v19 = vadd.f32 %v6061_v2, %v6060_v50  ;;  %v6063_v62 = vpop.f32.mrb[102].mxu0  ;;  %3462 = vmatmul.mubr.bf16.vlgmr.msra.gmra.mrb[128].mxu0 %v13197_v7  ;;  %v13201_v7 = vld [vmem:[#allocation143_spill] sm:$0xff] }
 0x553   : > { %4443 = vrot.lane.b32.xlu0 %v7645_v8, %s7842_s20  ;;  %v6064_v37 = vpop.f32.mrb[103].mxu0  ;;  %3469 = vmatprep.mubr.bf16.mxu0 %v13198_v59  ;;  %v13203_v58 = vmax.f32 %v13201_v7, %v13202_v21 }
 0x554   : > { %13196 = vst [vmem:[#allocation214_spill] sm:$0xff] %v10364_v19  ;;  %v7121_v55 = vpop.eup %7120  ;;  %v10372_v41 = vadd.f32 %v6064_v37, %v6063_v62  ;;  %v13204_v37 = vpack.c.bf16 %v10037_v31, %v10141_v26  ;;  %v13208_v26 = vpack.c.bf16 %v10221_v42, %v10297_v22 }
 0x555   : > { %v7123_v11 = vpop.eup %7122  ;;  %v3355_v33 = vpack.c.bf16 %v10335_v39, %v7121_v55  ;;  %v13205_v39 = vpack.c.bf16 %v10225_v15, %v10299_v44 }
 0x556   : > { %13199 = vst [vmem:[#allocation215_spill] sm:$0xff] %v10372_v41  ;;  %v3356_v50 = vpack.c.bf16 %v10337_v25, %v7123_v11  ;;  %v10378_v2 = vadd.f32 %v7123_v11, %v7121_v55 }
 0x557   : > { %4429 = vrot.lane.b32.xlu0 %v7646_v47, %s7842_s20 }
 0x558   : > { %v6066_v38 = vpop.f32.mrb[104].mxu0 }
 0x559   : > { %v6067_v35 = vpop.f32.mrb[105].mxu0 }
 0x55a   : > { %v10380_v8 = vadd.f32 %v6067_v35, %v6066_v38  ;;  %4014 = vmax.xlane.f32.xlu1 %v13203_v58  ;;  %v6069_v62 = vpop.f32.mrb[106].mxu0  ;;  %3470 = vmatmul.mubr.bf16.gmra.mrb[132].mxu0 %v13204_v37 }
 0x55b   : > { %v6070_v59 = vpop.f32.mrb[107].mxu0  ;;  %3477 = vmatprep.mubr.bf16.mxu0 %v13205_v39 }
 0x55c   : > { %13200 = vst [vmem:[#allocation216_spill] sm:$0xff] %v10380_v8  ;;  %v10391_v25 = vadd.f32 %v6070_v59, %v6069_v62 }
 0x55e   : > { %13206 = vst [vmem:[#allocation143_spill] sm:$0xff] %v10391_v25 }
 0x560   : > { %v6072_v11 = vpop.f32.mrb[108].mxu0 }
 0x561   : > { %v2994_v55 = vpop.xlane.xlu0 %2993  ;;  %v6073_v35 = vpop.f32.mrb[109].mxu0 }
 0x562   : > { %v3079_v47 = vsub.f32 %v9653_v5, %v2994_v55  ;;  %v3080_v38 = vsub.f32 %v9657_v12, %v2994_v55  ;;  %v10395_v40 = vadd.f32 %v6073_v35, %v6072_v11  ;;  %v6075_v31 = vpop.f32.mrb[110].mxu0  ;;  %3478 = vmatmul.mubr.bf16.gmra.mrb[136].mxu0 %v13208_v26  ;;  %v7647_v11 = vld [vmem:[%s8203_s24 + $0x10] sm:$0xff]   ;;  %v7648_v35 = vld [vmem:[%s8203_s24 + $0x58] sm:$0xff]  }
 0x563   : > { %v6076_v15 = vpop.f32.mrb[111].mxu0  ;;  %3485 = vmatprep.mubr.bf16.mxu0 %v3356_v50 }
 0x564   : > { %v3161_v58 = vmul.f32 1.442695, %v3079_v47  ;;  %v3163_v41 = vmul.f32 1.442695, %v3080_v38  ;;  %13207 = vst [vmem:[#allocation144_spill] sm:$0xff] %v10395_v40  ;;  %v10400_v62 = vadd.f32 %v6076_v15, %v6075_v31 }
 0x565   : > { %v2997_v44 = vpop.xlane.xlu0 %2996 }
 0x566   : > { %7124 = vpow2.f32 %v3161_v58  ;;  %13209 = vst [vmem:[#allocation217_spill] sm:$0xff] %v10400_v62  ;;  %v3081_v5 = vsub.f32 %v9670_v30, %v2997_v44  ;;  %v3082_v12 = vsub.f32 %v9675_v63, %v2997_v44 }
 0x567   : > { %7126 = vpow2.f32 %v3163_v41 }
 0x568   : > { %v3165_v37 = vmul.f32 1.442695, %v3081_v5  ;;  %v3167_v59 = vmul.f32 1.442695, %v3082_v12 }
 0x569   : > { %v3003_v39 = vpop.xlane.xlu0 %3002 }
 0x56a   : > { %7128 = vpow2.f32 %v3165_v37  ;;  %v3085_v55 = vsub.f32 %v9696_v32, %v3003_v39  ;;  %v3086_v42 = vsub.f32 %v9700_v10, %v3003_v39  ;;  %3486 = vmatmul.mubr.bf16.gmra.mrb[140].mxu0 %v3355_v33 }
 0x56b   : > { %7130 = vpow2.f32 %v3167_v59  ;;  %4427 = vrot.lane.b32.xlu1 %v7647_v11, %s7842_s20  ;;  %v13211_v59 = vld [vmem:[#allocation150_spill] sm:$0xff] }
 0x56c   : > { %v3173_v22 = vmul.f32 1.442695, %v3085_v55  ;;  %v3175_v50 = vmul.f32 1.442695, %v3086_v42 }
 0x56d   : > { %v3009_v30 = vpop.xlane.xlu0 %3008 }
 0x56e   : > { %7132 = vpow2.f32 %v3173_v22  ;;  %v3089_v63 = vsub.f32 %v9726_v61, %v3009_v30  ;;  %v3090_v41 = vsub.f32 %v9728_v28, %v3009_v30 }
 0x56f   : > { %7134 = vpow2.f32 %v3175_v50  ;;  %4445 = vrot.lane.b32.xlu1 %v7648_v35, %s7842_s20 }
 0x570   : > { %v10410_v47 = vpop.eup %7124  ;;  %v3181_v32 = vmul.f32 1.442695, %v3089_v63  ;;  %v3183_v38 = vmul.f32 1.442695, %v3090_v41 }
 0x571   : > { %v10412_v10 = vpop.eup %7126  ;;  %v3015_v33 = vpop.xlane.xlu0 %3014 }
 0x572   : > { %7136 = vpow2.f32 %v3181_v32  ;;  %v3093_v58 = vsub.f32 %v9749_v23, %v3015_v33  ;;  %v3094_v31 = vsub.f32 %v9751_v14, %v3015_v33  ;;  %v10420_v61 = vadd.f32 %v10412_v10, %v10410_v47  ;;  %v13210_v23 = vld [vmem:[#allocation149_spill] sm:$0xff] }
 0x573   : > { %7138 = vpow2.f32 %v3183_v38  ;;  %v13212_v14 = vmax.f32 %v13210_v23, %v13211_v59 }
 0x574   : > { %v10422_v28 = vpop.eup %7128  ;;  %v3189_v26 = vmul.f32 1.442695, %v3093_v58  ;;  %v3191_v15 = vmul.f32 1.442695, %v3094_v31 }
 0x575   : > { %v10424_v44 = vpop.eup %7130  ;;  %v3021_v5 = vpop.xlane.xlu0 %3020 }
 0x576   : > { %7140 = vpow2.f32 %v3189_v26  ;;  %v3097_v12 = vsub.f32 %v9769_v60, %v3021_v5  ;;  %v3098_v37 = vsub.f32 %v9771_v4, %v3021_v5  ;;  %4023 = vmax.xlane.f32.xlu0 %v13212_v14  ;;  %v10433_v39 = vadd.f32 %v10424_v44, %v10422_v28 }
 0x577   : > { %7142 = vpow2.f32 %v3191_v15 }
 0x578   : > { %v10435_v55 = vpop.eup %7132  ;;  %v3197_v42 = vmul.f32 1.442695, %v3097_v12  ;;  %v3199_v22 = vmul.f32 1.442695, %v3098_v37 }
 0x579   : > { %v10437_v50 = vpop.eup %7134  ;;  %v3027_v11 = vpop.xlane.xlu0 %3026 }
 0x57a   : > { %7144 = vpow2.f32 %v3197_v42  ;;  %v3101_v60 = vsub.f32 %v9793_v54, %v3027_v11  ;;  %v3102_v4 = vsub.f32 %v9795_v36, %v3027_v11  ;;  %v10443_v30 = vadd.f32 %v10437_v50, %v10435_v55 }
 0x57b   : > { %7146 = vpow2.f32 %v3199_v22 }
 0x57c   : > { %v10445_v63 = vpop.eup %7136  ;;  %v3205_v41 = vmul.f32 1.442695, %v3101_v60  ;;  %v3207_v32 = vmul.f32 1.442695, %v3102_v4 }
 0x57d   : > { %v10447_v38 = vpop.eup %7138  ;;  %v3033_v35 = vpop.xlane.xlu0 %3032 }
 0x57e   : > { %7148 = vpow2.f32 %v3205_v41  ;;  %v3105_v33 = vsub.f32 %v9816_v3, %v3033_v35  ;;  %v3106_v58 = vsub.f32 %v13108_v6, %v3033_v35  ;;  %v10453_v54 = vadd.f32 %v10447_v38, %v10445_v63  ;;  %v2991_v15 = vpop.xlane.xlu1 %2990 }
 0x57f   : > { %7150 = vpow2.f32 %v3207_v32  ;;  %v3077_v12 = vsub.f32 %v13112_v29, %v2991_v15  ;;  %v3078_v37 = vsub.f32 %v13113_v16, %v2991_v15 }
 0x580   : > { %v10455_v36 = vpop.eup %7140  ;;  %v3213_v31 = vmul.f32 1.442695, %v3105_v33  ;;  %v3215_v26 = vmul.f32 1.442695, %v3106_v58 }
 0x581   : > { %v10457_v5 = vpop.eup %7142  ;;  %v3039_v14 = vpop.xlane.xlu0 %3038  ;;  %v3157_v22 = vmul.f32 1.442695, %v3077_v12  ;;  %v3159_v11 = vmul.f32 1.442695, %v3078_v37 }
 0x582   : > { %7152 = vpow2.f32 %v3213_v31  ;;  %v3109_v3 = vsub.f32 %v13115_v9, %v3039_v14  ;;  %v3110_v6 = vsub.f32 %v13116_v18, %v3039_v14  ;;  %v10465_v42 = vadd.f32 %v10457_v5, %v10455_v36  ;;  %v3000_v29 = vpop.xlane.xlu1 %2999 }
 0x583   : > { %7154 = vpow2.f32 %v3215_v26  ;;  %v3083_v16 = vsub.f32 %v13119_v24, %v3000_v29  ;;  %v3084_v9 = vsub.f32 %v13120_v49, %v3000_v29 }
 0x584   : > { %v10467_v60 = vpop.eup %7144  ;;  %v3221_v4 = vmul.f32 1.442695, %v3109_v3  ;;  %v3223_v41 = vmul.f32 1.442695, %v3110_v6  ;;  %7156 = vpow2.f32 %v3157_v22 }
 0x585   : > { %v10469_v32 = vpop.eup %7146  ;;  %v3045_v18 = vpop.xlane.xlu0 %3044  ;;  %7158 = vpow2.f32 %v3159_v11  ;;  %v3169_v31 = vmul.f32 1.442695, %v3083_v16  ;;  %v3171_v26 = vmul.f32 1.442695, %v3084_v9 }
 0x586   : > { %v3113_v35 = vsub.f32 %v13123_v48, %v3045_v18  ;;  %v3114_v33 = vsub.f32 %v13124_v0, %v3045_v18  ;;  %v10477_v58 = vadd.f32 %v10469_v32, %v10467_v60  ;;  %7160 = vpow2.f32 %v3221_v4  ;;  %v3006_v37 = vpop.xlane.xlu1 %3005 }
 0x587   : > { %7162 = vpow2.f32 %v3223_v41  ;;  %v3087_v48 = vsub.f32 %v13128_v13, %v3006_v37  ;;  %v3088_v0 = vsub.f32 %v13129_v52, %v3006_v37  ;;  %v7649_v52 = vld [vmem:[%s8203_s24 + $0x60] sm:$0xff]  }
 0x588   : > { %v10479_v15 = vpop.eup %7148  ;;  %v3229_v12 = vmul.f32 1.442695, %v3113_v35  ;;  %v3231_v24 = vmul.f32 1.442695, %v3114_v33  ;;  %7164 = vpow2.f32 %v3169_v31 }
 0x589   : > { %v10481_v49 = vpop.eup %7150  ;;  %v3051_v14 = vpop.xlane.xlu0 %3050  ;;  %7166 = vpow2.f32 %v3171_v26  ;;  %v3177_v11 = vmul.f32 1.442695, %v3087_v48  ;;  %v3179_v4 = vmul.f32 1.442695, %v3088_v0 }
 0x58a   : > { %v3117_v3 = vsub.f32 %v9880_v27, %v3051_v14  ;;  %v3118_v6 = vsub.f32 %v9882_v1, %v3051_v14  ;;  %v10489_v22 = vadd.f32 %v10481_v49, %v10479_v15  ;;  %7168 = vpow2.f32 %v3229_v12  ;;  %v3012_v16 = vpop.xlane.xlu1 %3011 }
 0x58b   : > { %7170 = vpow2.f32 %v3231_v24  ;;  %v3091_v27 = vsub.f32 %v13133_v57, %v3012_v16  ;;  %v3092_v1 = vsub.f32 %v13134_v46, %v3012_v16  ;;  %v7650_v46 = vld [vmem:[%s8203_s24 + $0x28] sm:$0xff]  }
 0x58c   : > { %v10491_v41 = vpop.eup %7152  ;;  %v3237_v29 = vmul.f32 1.442695, %v3117_v3  ;;  %v3239_v13 = vmul.f32 1.442695, %v3118_v6  ;;  %4447 = vrot.lane.b32.xlu0 %v7649_v52, %s7842_s20  ;;  %7172 = vpow2.f32 %v3177_v11  ;;  %v13214_v6 = vld [vmem:[#allocation87_spill] sm:$0xff] }
 0x58d   : > { %v10495_v9 = vpop.eup %7154  ;;  %v3057_v18 = vpop.xlane.xlu0 %3056  ;;  %7174 = vpow2.f32 %v3179_v4  ;;  %v3185_v12 = vmul.f32 1.442695, %v3091_v27  ;;  %v3187_v24 = vmul.f32 1.442695, %v3092_v1  ;;  %v13216_v27 = vld [vmem:[#allocation140_spill] sm:$0xff] }
 0x58e   : > { %v3121_v35 = vsub.f32 %v9899_v20, %v3057_v18  ;;  %v3122_v33 = vsub.f32 %v9901_v53, %v3057_v18  ;;  %v10503_v31 = vadd.f32 %v10495_v9, %v10491_v41  ;;  %v7157_v26 = vpop.eup %7156  ;;  %7176 = vpow2.f32 %v3237_v29  ;;  %v3018_v0 = vpop.xlane.xlu1 %3017  ;;  %v13213_v53 = vld [vmem:[#allocation85_spill] sm:$0xff] }
 0x58f   : > { %v7159_v37 = vpop.eup %7158  ;;  %7178 = vpow2.f32 %v3239_v13  ;;  %v3357_v20 = vpack.c.bf16 %v10410_v47, %v7157_v26  ;;  %v3095_v3 = vsub.f32 %v13213_v53, %v3018_v0  ;;  %v3096_v11 = vsub.f32 %v13214_v6, %v3018_v0  ;;  %v13215_v13 = vld [vmem:[#allocation139_spill] sm:$0xff] }
 0x590   : > { %v3245_v57 = vmul.f32 1.442695, %v3121_v35  ;;  %v3247_v48 = vmul.f32 1.442695, %v3122_v33  ;;  %4433 = vrot.lane.b32.xlu0 %v7650_v46, %s7842_s20  ;;  %v10508_v14 = vpop.eup %7160  ;;  %7180 = vpow2.f32 %v3185_v12  ;;  %v3358_v4 = vpack.c.bf16 %v10412_v10, %v7159_v37 }
 0x591   : > { %v4009_v29 = vpop.xlane.xlu0 %4008  ;;  %v10513_v16 = vpop.eup %7162  ;;  %7182 = vpow2.f32 %v3187_v24  ;;  %v10517_v18 = vadd.f32 %v7159_v37, %v7157_v26  ;;  %v3193_v35 = vmul.f32 1.442695, %v3095_v3  ;;  %v3195_v33 = vmul.f32 1.442695, %v3096_v11  ;;  %v13217_v26 = vld [vmem:[#allocation25_spill] sm:$0xff]  ;;  %v13219_v11 = vld [vmem:[#allocation147_spill] sm:$0xff] }
 0x592   : > { %v4103_v52 = vsub.f32 %v13215_v13, %v4009_v29  ;;  %v4104_v1 = vsub.f32 %v13216_v27, %v4009_v29  ;;  %v7165_v47 = vpop.eup %7164  ;;  %7184 = vpow2.f32 %v3245_v57  ;;  %3493 = vmatprep.mubr.bf16.mxu0 %v3358_v4  ;;  %v10521_v12 = vadd.f32 %v10513_v16, %v10508_v14  ;;  %v3024_v24 = vpop.xlane.xlu1 %3023  ;;  %v13218_v57 = vld [vmem:[#allocation126_spill] sm:$0xff]  ;;  %v13220_v4 = vld [vmem:[#allocation148_spill] sm:$0xff] }
 0x593   : > { %v7167_v10 = vpop.eup %7166  ;;  %7186 = vpow2.f32 %v3247_v48  ;;  %3494 = vmatmul.mubr.bf16.gmra.mrb[144].mxu0 %v3357_v20  ;;  %v3359_v53 = vpack.c.bf16 %v7165_v47, %v10422_v28  ;;  %v3099_v37 = vsub.f32 %v13217_v26, %v3024_v24  ;;  %v3100_v3 = vsub.f32 %v13218_v57, %v3024_v24 }
 0x594   : > { %v4167_v0 = vmul.f32 1.442695, %v4103_v52  ;;  %v4169_v46 = vmul.f32 1.442695, %v4104_v1  ;;  %v10524_v6 = vpop.eup %7168  ;;  %7188 = vpow2.f32 %v3193_v35  ;;  %v13221_v29 = vmax.f32 %v13219_v11, %v13220_v4 }
 0x595   : > { %v3360_v13 = vpack.c.bf16 %v7167_v10, %v10424_v44  ;;  %v4440_v48 = vpop.permute.xlu0 %4439  ;;  %v10532_v52 = vpop.eup %7170  ;;  %7190 = vpow2.f32 %v3195_v33  ;;  %v10534_v28 = vadd.f32 %v7167_v10, %v7165_v47  ;;  %v3201_v27 = vmul.f32 1.442695, %v3099_v37  ;;  %v13222_v33 = vld [vmem:[#allocation31_spill] sm:$0xff]  ;;  %v13223_v10 = vld [vmem:[#allocation36_spill] sm:$0xff] }
 0x596   : > { %4020 = vmax.xlane.f32.xlu1 %v13221_v29  ;;  %6310 = vmatprep.subr.bf16.mxu0 %v4440_v48  ;;  %v7173_v20 = vpop.eup %7172  ;;  %7192 = vpow2.f32 %v4167_v0  ;;  %v3203_v1 = vmul.f32 1.442695, %v3100_v3  ;;  %v10538_v35 = vadd.f32 %v10532_v52, %v10524_v6  ;;  %v3030_v44 = vpop.xlane.xlu1 %3029 }
 0x597   : > { %6422 = vmatprep.subr.bf16.mxu1 %v4440_v48  ;;  %3501 = vmatprep.mubr.bf16.mxu0 %v3360_v13  ;;  %v7175_v24 = vpop.eup %7174  ;;  %7194 = vpow2.f32 %v4169_v46  ;;  %v3361_v26 = vpack.c.bf16 %v7173_v20, %v10435_v55  ;;  %v3103_v47 = vsub.f32 %v13222_v33, %v3030_v44  ;;  %v3104_v29 = vsub.f32 %v13223_v10, %v3030_v44 }
 0x598   : > { %v10541_v57 = vpop.eup %7176  ;;  %7196 = vpow2.f32 %v3201_v27  ;;  %v3362_v0 = vpack.c.bf16 %v7175_v24, %v10437_v50  ;;  %v10548_v3 = vadd.f32 %v7175_v24, %v7173_v20  ;;  %v13224_v20 = vld [vmem:[#allocation48_spill] sm:$0xff]  ;;  %v13225_v24 = vld [vmem:[#allocation127_spill] sm:$0xff] }
 0x599   : > { %v10546_v37 = vpop.eup %7178  ;;  %7198 = vpow2.f32 %v3203_v1  ;;  %v3209_v46 = vmul.f32 1.442695, %v3103_v47  ;;  %v3211_v48 = vmul.f32 1.442695, %v3104_v29  ;;  %v6078_v62 = vpop.f32.mrb[112].mxu0 }
 0x59a   : > { %v10550_v13 = vpop.eup %7180  ;;  %v10554_v55 = vadd.f32 %v10546_v37, %v10541_v57  ;;  %v3036_v33 = vpop.xlane.xlu1 %3035 }
 0x59b   : > { %v7183_v27 = vpop.eup %7182  ;;  %3502 = vmatmul.mubr.bf16.gmra.mrb[148].mxu0 %v3359_v53  ;;  %v6079_v44 = vpop.f32.mrb[113].mxu0  ;;  %7200 = vpow2.f32 %v3209_v46  ;;  %v3107_v1 = vsub.f32 %v13224_v20, %v3036_v33  ;;  %v3108_v47 = vsub.f32 %v13225_v24, %v3036_v33  ;;  %v13231_v24 = vld [vmem:[#allocation129_spill] sm:$0xff] }
 0x59c   : > { %v10558_v10 = vpop.eup %7184  ;;  %v10562_v29 = vadd.f32 %v6079_v44, %v6078_v62  ;;  %3509 = vmatprep.mubr.bf16.mxu0 %v3362_v0  ;;  %v6081_v25 = vpop.f32.mrb[114].mxu0  ;;  %7202 = vpow2.f32 %v3211_v48  ;;  %v3364_v51 = vpack.c.bf16 %v7183_v27, %v10447_v38  ;;  %v10568_v40 = vadd.f32 %v7183_v27, %v10550_v13  ;;  %v13230_v38 = vld [vmem:[#allocation64_spill] sm:$0xff] }
 0x59d   : > { %v10564_v45 = vpop.eup %7186  ;;  %v6082_v53 = vpop.f32.mrb[115].mxu0  ;;  %v3217_v46 = vmul.f32 1.442695, %v3107_v1  ;;  %v3219_v8 = vmul.f32 1.442695, %v3108_v47 }
 0x59e   : > { %13226 = vst [vmem:[#allocation149_spill] sm:$0xff] %v10562_v29  ;;  %13227 = vst [vmem:[#allocation150_spill] sm:$0xff] %v10568_v40  ;;  %v10570_v50 = vpop.eup %7188  ;;  %v10572_v20 = vadd.f32 %v6082_v53, %v6081_v25  ;;  %v10576_v62 = vadd.f32 %v10564_v45, %v10558_v10  ;;  %v3042_v33 = vpop.xlane.xlu1 %3041 }
 0x59f   : > { %v7191_v0 = vpop.eup %7190  ;;  %7204 = vpow2.f32 %v3217_v46  ;;  %v3111_v27 = vsub.f32 %v13230_v38, %v3042_v33  ;;  %v3112_v29 = vsub.f32 %v13231_v24, %v3042_v33 }
 0x5a0   : > { %13228 = vst [vmem:[#allocation85_spill] sm:$0xff] %v10572_v20  ;;  %13229 = vst [vmem:[#allocation87_spill] sm:$0xff] %v10576_v62  ;;  %v10580_v44 = vpop.eup %7192  ;;  %v3366_v1 = vpack.c.bf16 %v7191_v0, %v10457_v5  ;;  %7206 = vpow2.f32 %v3219_v8  ;;  %v10588_v47 = vadd.f32 %v7191_v0, %v10570_v50  ;;  %v13234_v0 = vld [vmem:[#allocation66_spill] sm:$0xff] }
 0x5a1   : > { %v10585_v25 = vpop.eup %7194  ;;  %v3225_v20 = vmul.f32 1.442695, %v3111_v27  ;;  %v3227_v48 = vmul.f32 1.442695, %v3112_v29  ;;  %v6084_v19 = vpop.f32.mrb[116].mxu0 }
 0x5a2   : > { %13232 = vst [vmem:[#allocation139_spill] sm:$0xff] %v10588_v47  ;;  %v10590_v53 = vpop.eup %7196  ;;  %v10594_v46 = vadd.f32 %v10585_v25, %v10580_v44  ;;  %v3048_v5 = vpop.xlane.xlu1 %3047  ;;  %v7651_v47 = vld [vmem:[%s8203_s24 + $0x20] sm:$0xff]  }
 0x5a3   : > { %v10596_v38 = vpop.eup %7198  ;;  %3510 = vmatmul.mubr.bf16.gmra.mrb[152].mxu0 %v3361_v26  ;;  %v6085_v33 = vpop.f32.mrb[117].mxu0  ;;  %7208 = vpow2.f32 %v3225_v20  ;;  %v3115_v24 = vsub.f32 %v13234_v0, %v3048_v5  ;;  %v3116_v27 = vsub.f32 %v13235_v56, %v3048_v5 }
 0x5a4   : > { %13233 = vst [vmem:[#allocation140_spill] sm:$0xff] %v10594_v46  ;;  %v10602_v17 = vadd.f32 %v6085_v33, %v6084_v19  ;;  %3517 = vmatprep.mubr.bf16.mxu0 %v3364_v51  ;;  %v6087_v29 = vpop.f32.mrb[118].mxu0  ;;  %7210 = vpow2.f32 %v3227_v48  ;;  %v3368_v46 = vpack.c.bf16 %v10596_v38, %v10469_v32  ;;  %v10610_v20 = vadd.f32 %v10596_v38, %v10590_v53  ;;  %v13239_v33 = vld [vmem:[#allocation67_spill] sm:$0xff]  ;;  %v13240_v32 = vld [vmem:[#allocation133_spill] sm:$0xff] }
 0x5a5   : > { %v6088_v26 = vpop.f32.mrb[119].mxu0  ;;  %v10612_v0 = vpop.eup %7200  ;;  %v3233_v56 = vmul.f32 1.442695, %v3115_v24  ;;  %v3235_v19 = vmul.f32 1.442695, %v3116_v27 }
 0x5a6   : > { %13236 = vst [vmem:[#allocation25_spill] sm:$0xff] %v10602_v17  ;;  %13237 = vst [vmem:[#allocation126_spill] sm:$0xff] %v10610_v20  ;;  %v10614_v5 = vadd.f32 %v6088_v26, %v6087_v29  ;;  %v10616_v51 = vpop.eup %7202  ;;  %v3054_v48 = vpop.xlane.xlu1 %3053  ;;  %v7652_v20 = vld [vmem:[%s8203_s24 + $0x68] sm:$0xff]  }
 0x5a7   : > { %4431 = vrot.lane.b32.xlu1 %v7651_v47, %s7842_s20  ;;  %7212 = vpow2.f32 %v3233_v56  ;;  %v3119_v8 = vsub.f32 %v13239_v33, %v3054_v48  ;;  %v3120_v17 = vsub.f32 %v13240_v32, %v3054_v48  ;;  %v10628_v24 = vadd.f32 %v10616_v51, %v10612_v0  ;;  %v13243_v32 = vld [vmem:[#allocation135_spill] sm:$0xff] }
 0x5a8   : > { %13238 = vst [vmem:[#allocation147_spill] sm:$0xff] %v10614_v5  ;;  %7214 = vpow2.f32 %v3235_v19  ;;  %v13242_v48 = vpack.c.bf16 %v10550_v13, %v10445_v63  ;;  %v13244_v5 = vld [vmem:[#allocation137_spill] sm:$0xff] }
 0x5a9   : > { %13241 = vst [vmem:[#allocation148_spill] sm:$0xff] %v10628_v24  ;;  %v10630_v27 = vpop.eup %7204  ;;  %v3241_v29 = vmul.f32 1.442695, %v3119_v8  ;;  %v3243_v26 = vmul.f32 1.442695, %v3120_v17  ;;  %v6090_v56 = vpop.f32.mrb[120].mxu0 }
 0x5aa   : > { %v10632_v47 = vpop.eup %7206  ;;  %v3060_v33 = vpop.xlane.xlu1 %3059 }
 0x5ab   : > { %4449 = vrot.lane.b32.xlu1 %v7652_v20, %s7842_s20  ;;  %3518 = vmatmul.mubr.bf16.gmra.mrb[156].mxu0 %v13242_v48  ;;  %v6091_v19 = vpop.f32.mrb[121].mxu0  ;;  %7216 = vpow2.f32 %v3241_v29  ;;  %v3123_v38 = vsub.f32 %v13243_v32, %v3060_v33  ;;  %v3124_v24 = vsub.f32 %v13244_v5, %v3060_v33  ;;  %v3372_v63 = vpack.c.bf16 %v10632_v47, %v10495_v9  ;;  %v13248_v5 = vld [vmem:[#allocation153_spill] sm:$0xff] }
 0x5ac   : > { %v10641_v62 = vadd.f32 %v6091_v19, %v6090_v56  ;;  %3525 = vmatprep.mubr.bf16.mxu0 %v3366_v1  ;;  %v6093_v17 = vpop.f32.mrb[122].mxu0  ;;  %7218 = vpow2.f32 %v3243_v26  ;;  %v10647_v13 = vadd.f32 %v10632_v47, %v10630_v27  ;;  %v13249_v56 = vld [vmem:[#allocation154_spill] sm:$0xff]  ;;  %v13251_v19 = vld [vmem:[#allocation141_spill] sm:$0xff] }
 0x5ad   : > { %v6094_v8 = vpop.f32.mrb[123].mxu0  ;;  %v10649_v48 = vpop.eup %7208  ;;  %v3249_v29 = vmul.f32 1.442695, %v3123_v38  ;;  %v3251_v20 = vmul.f32 1.442695, %v3124_v24  ;;  %v13250_v33 = vmax.f32 %v13248_v5, %v13249_v56 }
 0x5ae   : > { %13245 = vst [vmem:[#allocation31_spill] sm:$0xff] %v10641_v62  ;;  %13246 = vst [vmem:[#allocation36_spill] sm:$0xff] %v10647_v13  ;;  %v10651_v32 = vadd.f32 %v6094_v8, %v6093_v17  ;;  %v10656_v1 = vpop.eup %7210  ;;  %v4012_v26 = vpop.xlane.xlu1 %4011  ;;  %v3373_v9 = vpack.c.bf16 %v10649_v48, %v10508_v14  ;;  %v13252_v62 = vld [vmem:[#allocation142_spill] sm:$0xff]  ;;  %v13269_v14 = vld [vmem:[#allocation157_spill] sm:$0xff] }
 0x5af   : > { %4029 = vmax.xlane.f32.xlu0 %v13250_v33  ;;  %7220 = vpow2.f32 %v3249_v29  ;;  %v4105_v47 = vsub.f32 %v13251_v19, %v4012_v26  ;;  %v4106_v13 = vsub.f32 %v13252_v62, %v4012_v26  ;;  %v3374_v38 = vpack.c.bf16 %v10656_v1, %v10513_v16 }
 0x5b0   : > { %13247 = vst [vmem:[#allocation48_spill] sm:$0xff] %v10651_v32  ;;  %7222 = vpow2.f32 %v3251_v20  ;;  %v10666_v24 = vadd.f32 %v10656_v1, %v10649_v48  ;;  %v13254_v29 = vpack.c.bf16 %v10570_v50, %v10455_v36  ;;  %v13270_v48 = vld [vmem:[#allocation158_spill] sm:$0xff] }
 0x5b1   : > { %v10668_v17 = vpop.eup %7212  ;;  %v4171_v8 = vmul.f32 1.442695, %v4105_v47  ;;  %v4173_v33 = vmul.f32 1.442695, %v4106_v13 }
 0x5b2   : > { %13253 = vst [vmem:[#allocation127_spill] sm:$0xff] %v10666_v24  ;;  %v7215_v32 = vpop.eup %7214  ;;  %v6096_v40 = vpop.f32.mrb[124].mxu0  ;;  %v3375_v62 = vpack.c.bf16 %v10668_v17, %v10524_v6  ;;  %v13313_v24 = vld [vmem:[#allocation169_spill] sm:$0xff] }
 0x5b3   : > { %3526 = vmatmul.mubr.bf16.gmra.mrb[160].mxu0 %v13254_v29  ;;  %v4424_v19 = vpop.permute.xlu1 %4423  ;;  %7224 = vpow2.f32 %v4171_v8  ;;  %v6097_v16 = vpop.f32.mrb[125].mxu0  ;;  %v3376_v20 = vpack.c.bf16 %v7215_v32, %v10532_v52  ;;  %v10677_v1 = vadd.f32 %v7215_v32, %v10668_v17 }
 0x5b4   : > { %3533 = vmatprep.mubr.bf16.mxu0 %v3368_v46  ;;  %6311 = vmatpush3.bf16.msra.mxu0 %v4424_v19  ;;  %7226 = vpow2.f32 %v4173_v33  ;;  %v10679_v13 = vadd.f32 %v6097_v16, %v6096_v40  ;;  %v6099_v26 = vpop.f32.mrb[126].mxu0  ;;  %v4426_v46 = vpop.permute.xlu0 %4425  ;;  %v13259_v33 = vpack.c.bf16 %v10590_v53, %v10467_v60 }
 0x5b5   : > { %13255 = vst [vmem:[#allocation64_spill] sm:$0xff] %v10677_v1  ;;  %6430 = vmatpush3.bf16.msra.mxu1 %v4424_v19  ;;  %v7217_v36 = vpop.eup %7216  ;;  %v6100_v50 = vpop.f32.mrb[127].mxu0 }
 0x5b6   : > { %13256 = vst [vmem:[#allocation129_spill] sm:$0xff] %v10679_v13  ;;  %v7219_v47 = vpop.eup %7218  ;;  %v10681_v29 = vadd.f32 %v6100_v50, %v6099_v26  ;;  %v3377_v8 = vpack.c.bf16 %v7217_v36, %v10541_v57  ;;  %v13260_v57 = vpack.c.bf16 %v10616_v51, %v10481_v49  ;;  %v7653_v49 = vld [vmem:[%s8203_s24 + $0x70] sm:$0xff]   ;;  %v13295_v50 = vld [vmem:[#allocation156_spill] sm:$0xff]  ;;  %v13297_v13 = vld [vmem:[#allocation194_spill] sm:$0xff] }
 0x5b7   : > { %v4442_v6 = vpop.permute.xlu1 %4441  ;;  %v3378_v52 = vpack.c.bf16 %v7219_v47, %v10546_v37  ;;  %v10685_v32 = vadd.f32 %v7219_v47, %v7217_v36 }
 0x5b8   : > { %13257 = vst [vmem:[#allocation66_spill] sm:$0xff] %v10681_v29  ;;  %6312 = vmatprep.subr.bf16.mxu0 %v4442_v6  ;;  %6423 = vmatprep.subr.bf16.mxu1 %v4442_v6 }
 0x5b9   : > { %13258 = vst [vmem:[#allocation131_spill] sm:$0xff] %v10685_v32  ;;  %6313 = vmatpush3.bf16.msra.mxu0 %v4426_v46  ;;  %6431 = vmatpush3.bf16.msra.mxu1 %v4426_v46  ;;  %v7221_v40 = vpop.eup %7220  ;;  %v13310_v32 = vld [vmem:[#allocation78_spill] sm:$0xff] }
 0x5ba   : > { %v7223_v17 = vpop.eup %7222  ;;  %v3379_v19 = vpack.c.bf16 %v7221_v40, %v10558_v10  ;;  %v13263_v10 = vpack.c.bf16 %v10612_v0, %v10479_v15  ;;  %v13265_v0 = vld [vmem:[#allocation151_spill] sm:$0xff] }
 0x5bb   : > { %3534 = vmatmul.mubr.bf16.gmra.mrb[164].mxu0 %v13259_v33  ;;  %v3380_v37 = vpack.c.bf16 %v7223_v17, %v10564_v45  ;;  %v10695_v16 = vadd.f32 %v7223_v17, %v7221_v40  ;;  %v7654_v45 = vld [vmem:[%s8203_s24 + $0x38] sm:$0xff]  }
 0x5bc   : > { %3541 = vmatprep.mubr.bf16.mxu0 %v13260_v57 }
 0x5bd   : > { %13261 = vst [vmem:[#allocation67_spill] sm:$0xff] %v10695_v16  ;;  %v10697_v26 = vpop.eup %7224  ;;  %v13307_v16 = vld [vmem:[#allocation161_spill] sm:$0xff] }
 0x5be   : > { %v7227_v36 = vpop.eup %7226 }
 0x5bf   : > { %v4392_v47 = vpack.c.bf16 %v7227_v36, %v10585_v25  ;;  %v10703_v60 = vadd.f32 %v7227_v36, %v10697_v26  ;;  %v13264_v25 = vpack.c.bf16 %v10630_v27, %v10491_v41  ;;  %v7655_v27 = vld [vmem:[%s8203_s24 + $0x30] sm:$0xff]  }
 0x5c1   : > { %13262 = vst [vmem:[#allocation133_spill] sm:$0xff] %v10703_v60  ;;  %v13306_v60 = vld [vmem:[#allocation160_spill] sm:$0xff] }
 0x5c3   : > { %3542 = vmatmul.mubr.bf16.gmra.mrb[168].mxu0 %v13263_v10  ;;  %v13273_v10 = vld [vmem:[#allocation72_spill] sm:$0xff] }
 0x5c4   : > { %3549 = vmatprep.mubr.bf16.mxu0 %v3372_v63  ;;  %v13266_v63 = vld [vmem:[#allocation152_spill] sm:$0xff] }
 0x5c5   : > { %4451 = vrot.lane.b32.xlu0 %v7653_v49, %s7842_s20  ;;  %v13267_v40 = vmax.f32 %v13265_v0, %v13266_v63 }
 0x5c9   : > { %4437 = vrot.lane.b32.xlu0 %v7654_v45, %s7842_s20 }
 0x5ca   : > { %v4018_v53 = vpop.xlane.xlu0 %4017 }
 0x5cb   : > { %v4109_v51 = vsub.f32 %v13188_v43, %v4018_v53  ;;  %v4110_v6 = vsub.f32 %v13189_v34, %v4018_v53  ;;  %3550 = vmatmul.mubr.bf16.gmra.mrb[172].mxu0 %v13264_v25  ;;  %v13281_v25 = vld [vmem:[#allocation172_spill] sm:$0xff] }
 0x5cc   : > { %3557 = vmatprep.mubr.bf16.mxu0 %v3374_v38  ;;  %v7656_v38 = vld [vmem:[%s8203_s24 + $0x78] sm:$0xff]  }
 0x5cd   : > { %v4179_v46 = vmul.f32 1.442695, %v4109_v51  ;;  %v4181_v15 = vmul.f32 1.442695, %v4110_v6 }
 0x5ce   : > { %v4444_v17 = vpop.permute.xlu0 %4443 }
 0x5cf   : > { %4026 = vmax.xlane.f32.xlu1 %v13267_v40  ;;  %7228 = vpow2.f32 %v4179_v46  ;;  %6314 = vmatprep.subr.bf16.mxu0 %v4444_v17  ;;  %v13282_v46 = vld [vmem:[#allocation173_spill] sm:$0xff] }
 0x5d0   : > { %6424 = vmatprep.subr.bf16.mxu1 %v4444_v17  ;;  %7230 = vpow2.f32 %v4181_v15  ;;  %v13283_v15 = vmax.f32 %v13281_v25, %v13282_v46 }
 0x5d2   : > { %v4430_v51 = vpop.permute.xlu0 %4429 }
 0x5d3   : > { %3558 = vmatmul.mubr.bf16.gmra.mrb[176].mxu0 %v3373_v9  ;;  %v13271_v9 = vmax.f32 %v13269_v14, %v13270_v48 }
 0x5d4   : > { %3565 = vmatprep.mubr.bf16.mxu0 %v3376_v20 }
 0x5d9   : > { %v10723_v43 = vpop.eup %7228 }
 0x5da   : > { %v10725_v34 = vpop.eup %7230 }
 0x5db   : > { %v10729_v41 = vadd.f32 %v10725_v34, %v10723_v43  ;;  %3566 = vmatmul.mubr.bf16.gmra.mrb[180].mxu0 %v3375_v62 }
 0x5dc   : > { %3573 = vmatprep.mubr.bf16.mxu0 %v3378_v52  ;;  %v13272_v52 = vld [vmem:[#allocation71_spill] sm:$0xff] }
 0x5dd   : > { %13268 = vst [vmem:[#allocation135_spill] sm:$0xff] %v10729_v41  ;;  %v13274_v49 = vmax.f32 %v13272_v52, %v13273_v10  ;;  %v13298_v41 = vld [vmem:[#allocation195_spill] sm:$0xff] }
 0x5e0   : > { %4435 = vrot.lane.b32.xlu1 %v7655_v27, %s7842_s20  ;;  %v13294_v27 = vld [vmem:[#allocation155_spill] sm:$0xff] }
 0x5e1   : > { %v13296_v29 = vmax.f32 %v13294_v27, %v13295_v50 }
 0x5e3   : > { %3574 = vmatmul.mubr.bf16.gmra.mrb[184].mxu0 %v3377_v8  ;;  %v13275_v8 = vld [vmem:[#allocation53_spill] sm:$0xff] }
 0x5e4   : > { %4453 = vrot.lane.b32.xlu1 %v7656_v38, %s7842_s20  ;;  %3581 = vmatprep.mubr.bf16.mxu0 %v3380_v37  ;;  %v13276_v37 = vld [vmem:[#allocation159_spill] sm:$0xff] }
 0x5e5   : > { %v13277_v53 = vmax.f32 %v13275_v8, %v13276_v37 }
 0x5e7   : > { %v4015_v20 = vpop.xlane.xlu1 %4014 }
 0x5e8   : > { %4035 = vmax.xlane.f32.xlu0 %v13271_v9  ;;  %v4107_v33 = vsub.f32 %v13201_v7, %v4015_v20  ;;  %v4108_v57 = vsub.f32 %v13202_v21, %v4015_v20  ;;  %v13278_v21 = vld [vmem:[#allocation164_spill] sm:$0xff]  ;;  %v13285_v9 = vld [vmem:[#allocation178_spill] sm:$0xff]  ;;  %v13286_v20 = vld [vmem:[#allocation179_spill] sm:$0xff] }
 0x5ea   : > { %v4175_v36 = vmul.f32 1.442695, %v4107_v33  ;;  %v4177_v62 = vmul.f32 1.442695, %v4108_v57  ;;  %v13287_v33 = vmax.f32 %v13285_v9, %v13286_v20  ;;  %v13288_v57 = vld [vmem:[#allocation183_spill] sm:$0xff] }
 0x5eb   : > { %3582 = vmatmul.mubr.bf16.gmra.mrb[188].mxu0 %v3379_v19  ;;  %v4428_v45 = vpop.permute.xlu1 %4427  ;;  %v13279_v19 = vld [vmem:[#allocation166_spill] sm:$0xff] }
 0x5ec   : > { %4038 = vmax.xlane.f32.xlu0 %v13274_v49  ;;  %4503 = vmatprep.mubr.bf16.mxu0 %v4392_v47  ;;  %7232 = vpow2.f32 %v4175_v36  ;;  %v13280_v6 = vmax.f32 %v13278_v21, %v13279_v19  ;;  %v13289_v36 = vld [vmem:[#allocation185_spill] sm:$0xff] }
 0x5ed   : > { %6315 = vmatpush3.bf16.msra.mxu0 %v4428_v45  ;;  %6432 = vmatpush3.bf16.msra.mxu1 %v4428_v45  ;;  %7234 = vpow2.f32 %v4177_v62  ;;  %v13290_v62 = vmax.f32 %v13288_v57, %v13289_v36 }
 0x5ef   : > { %v4446_v7 = vpop.permute.xlu1 %4445 }
 0x5f0   : > { %4044 = vmax.xlane.f32.xlu0 %v13277_v53  ;;  %6316 = vmatprep.subr.bf16.mxu0 %v4446_v7 }
 0x5f1   : > { %6425 = vmatprep.subr.bf16.mxu1 %v4446_v7  ;;  %6317 = vmatpush3.bf16.msra.mxu0 %v4430_v51  ;;  %v13291_v7 = vld [vmem:[#allocation189_spill] sm:$0xff] }
 0x5f2   : > { %6433 = vmatpush3.bf16.msra.mxu1 %v4430_v51  ;;  %v13292_v51 = vld [vmem:[#allocation191_spill] sm:$0xff] }
 0x5f4   : > { %4050 = vmax.xlane.f32.xlu0 %v13280_v6  ;;  %v13293_v6 = vmax.f32 %v13291_v7, %v13292_v51 }
 0x5f6   : > { %v10749_v47 = vpop.eup %7232 }
 0x5f7   : > { %v10754_v40 = vpop.eup %7234 }
 0x5f8   : > { %4056 = vmax.xlane.f32.xlu0 %v13283_v15  ;;  %v10762_v38 = vadd.f32 %v10754_v40, %v10749_v47 }
 0x5fa   : > { %13284 = vst [vmem:[#allocation137_spill] sm:$0xff] %v10762_v38 }
 0x5fc   : > { %4062 = vmax.xlane.f32.xlu0 %v13287_v33 }
 0x600   : > { %4068 = vmax.xlane.f32.xlu0 %v13290_v62  ;;  %v13299_v62 = vmax.f32 %v13297_v13, %v13298_v41 }
 0x603   : > { %v4024_v49 = vpop.xlane.xlu0 %4023 }
 0x604   : > { %v4113_v45 = vsub.f32 %v13210_v23, %v4024_v49  ;;  %v4114_v53 = vsub.f32 %v13211_v59, %v4024_v49  ;;  %4074 = vmax.xlane.f32.xlu0 %v13293_v6  ;;  %v13300_v23 = vld [vmem:[#allocation56_spill] sm:$0xff]  ;;  %v13303_v6 = vld [vmem:[#allocation79_spill] sm:$0xff] }
 0x605   : > { %v13301_v59 = vld [vmem:[#allocation76_spill] sm:$0xff] }
 0x606   : > { %v4187_v15 = vmul.f32 1.442695, %v4113_v45  ;;  %v4189_v17 = vmul.f32 1.442695, %v4114_v53  ;;  %v13302_v49 = vmax.f32 %v13300_v23, %v13301_v59  ;;  %v13304_v45 = vld [vmem:[#allocation62_spill] sm:$0xff]  ;;  %v13316_v59 = vld [vmem:[#allocation80_spill] sm:$0xff] }
 0x607   : > { %v4448_v33 = vpop.permute.xlu0 %4447  ;;  %v13305_v53 = vmax.f32 %v13303_v6, %v13304_v45  ;;  %v13334_v23 = vld [vmem:[#allocation82_spill] sm:$0xff] }
 0x608   : > { %4032 = vmax.xlane.f32.xlu1 %v13296_v29  ;;  %7236 = vpow2.f32 %v4187_v15  ;;  %4080 = vmax.xlane.f32.xlu0 %v13299_v62  ;;  %v13308_v29 = vmax.f32 %v13306_v60, %v13307_v16  ;;  %v13309_v15 = vld [vmem:[#allocation77_spill] sm:$0xff]  ;;  %v13320_v16 = vld [vmem:[#allocation175_spill] sm:$0xff] }
 0x609   : > { %6318 = vmatprep.subr.bf16.mxu0 %v4448_v33  ;;  %7238 = vpow2.f32 %v4189_v17  ;;  %6426 = vmatprep.subr.bf16.mxu1 %v4448_v33  ;;  %v13311_v1 = vmax.f32 %v13309_v15, %v13310_v32  ;;  %v13312_v33 = vld [vmem:[#allocation168_spill] sm:$0xff]  ;;  %v13324_v60 = vld [vmem:[#allocation181_spill] sm:$0xff] }
 0x60a   : > { %v13314_v38 = vmax.f32 %v13312_v33, %v13313_v24  ;;  %v13323_v15 = vld [vmem:[#allocation180_spill] sm:$0xff]  ;;  %v13326_v24 = vld [vmem:[#allocation57_spill] sm:$0xff]  ;;  %v13328_v33 = vld [vmem:[#allocation187_spill] sm:$0xff] }
 0x60b   : > { %v13325_v6 = vmax.f32 %v13323_v15, %v13324_v60  ;;  %v13335_v15 = vld [vmem:[#allocation43_spill] sm:$0xff] }
 0x60c   : > { %4041 = vmax.xlane.f32.xlu1 %v13302_v49  ;;  %4092 = vmax.xlane.f32.xlu0 %v13305_v53  ;;  %v13315_v49 = vld [vmem:[#allocation74_spill] sm:$0xff] }
 0x60d   : > { %v13317_v45 = vmax.f32 %v13315_v49, %v13316_v59 }
 0x610   : > { %4047 = vmax.xlane.f32.xlu1 %v13308_v29  ;;  %4086 = vmax.xlane.f32.xlu0 %v13311_v1  ;;  %v13319_v29 = vld [vmem:[#allocation174_spill] sm:$0xff] }
 0x611   : > { %v13321_v32 = vmax.f32 %v13319_v29, %v13320_v16  ;;  %v13322_v1 = vld [vmem:[#allocation58_spill] sm:$0xff]  ;;  %v13332_v29 = vld [vmem:[#allocation193_spill] sm:$0xff] }
 0x612   : > { %v10793_v62 = vpop.eup %7236 }
 0x613   : > { %v10795_v17 = vpop.eup %7238 }
 0x614   : > { %4053 = vmax.xlane.f32.xlu1 %v13314_v38  ;;  %4098 = vmax.xlane.f32.xlu0 %v13317_v45  ;;  %v10805_v53 = vadd.f32 %v10795_v17, %v10793_v62  ;;  %v13327_v38 = vld [vmem:[#allocation186_spill] sm:$0xff]  ;;  %v13330_v45 = vld [vmem:[#allocation69_spill] sm:$0xff] }
 0x615   : > { %v13329_v59 = vmax.f32 %v13327_v38, %v13328_v33  ;;  %v13336_v33 = vld [vmem:[#allocation196_spill] sm:$0xff] }
 0x616   : > { %13318 = vst [vmem:[#allocation153_spill] sm:$0xff] %v10805_v53 }
 0x618   : > { %4059 = vmax.xlane.f32.xlu1 %v13321_v32  ;;  %2212 = vadd.xlane.f32.xlu0 %v13322_v1  ;;  %v13331_v32 = vld [vmem:[#allocation192_spill] sm:$0xff] }
 0x619   : > { %v13333_v1 = vmax.f32 %v13331_v32, %v13332_v29  ;;  %v13342_v32 = vld [vmem:[#allocation68_spill] sm:$0xff] }
 0x61c   : > { %4065 = vmax.xlane.f32.xlu1 %v13325_v6  ;;  %2218 = vadd.xlane.f32.xlu0 %v13326_v24 }
 0x620   : > { %4071 = vmax.xlane.f32.xlu1 %v13329_v59  ;;  %2224 = vadd.xlane.f32.xlu0 %v13330_v45  ;;  %v13337_v59 = vmax.f32 %v13335_v15, %v13336_v33 }
 0x623   : > { %v4021_v49 = vpop.xlane.xlu1 %4020 }
 0x624   : > { %v4111_v53 = vsub.f32 %v13219_v11, %v4021_v49  ;;  %v4112_v16 = vsub.f32 %v13220_v4, %v4021_v49  ;;  %4077 = vmax.xlane.f32.xlu1 %v13333_v1  ;;  %2230 = vadd.xlane.f32.xlu0 %v13334_v23  ;;  %v13338_v4 = vld [vmem:[#allocation86_spill] sm:$0xff] }
 0x625   : > { %v6166_v45 = vpop.f32.mrb[128].mxu0 }
 0x626   : > { %v4183_v6 = vmul.f32 1.442695, %v4111_v53  ;;  %v4185_v60 = vmul.f32 1.442695, %v4112_v16  ;;  %v6167_v11 = vpop.f32.mrb[129].mxu0  ;;  %v4434_v53 = vpop.permute.xlu0 %4433 }
 0x627   : > { %v4432_v24 = vpop.permute.xlu1 %4431  ;;  %v10829_v49 = vadd.f32 %v6167_v11, %v6166_v45  ;;  %v6169_v1 = vpop.f32.mrb[130].mxu0 }
 0x628   : > { %7240 = vpow2.f32 %v4183_v6  ;;  %4083 = vmax.xlane.f32.xlu1 %v13337_v59  ;;  %6319 = vmatpush3.bf16.msra.mxu0 %v4432_v24  ;;  %v6170_v23 = vpop.f32.mrb[131].mxu0  ;;  %v13341_v6 = vld [vmem:[#allocation65_spill] sm:$0xff]  ;;  %v13346_v59 = vld [vmem:[#allocation128_spill] sm:$0xff] }
 0x629   : > { %7242 = vpow2.f32 %v4185_v60  ;;  %6434 = vmatpush3.bf16.msra.mxu1 %v4432_v24  ;;  %2236 = vadd.xlane.f32.xlu0 %v13338_v4  ;;  %13339 = vst [vmem:[#allocation154_spill] sm:$0xff] %v10829_v49  ;;  %v10831_v16 = vadd.f32 %v6170_v23, %v6169_v1  ;;  %v13343_v38 = vmax.f32 %v13341_v6, %v13342_v32  ;;  %v13344_v60 = vld [vmem:[#allocation59_spill] sm:$0xff]  ;;  %v13345_v24 = vld [vmem:[#allocation52_spill] sm:$0xff]  ;;  %v13349_v23 = vld [vmem:[#allocation37_spill] sm:$0xff] }
 0x62a   : > { %v13347_v45 = vmax.f32 %v13345_v24, %v13346_v59  ;;  %v13351_v32 = vld [vmem:[#allocation83_spill] sm:$0xff]  ;;  %v13352_v59 = vld [vmem:[#allocation197_spill] sm:$0xff] }
 0x62b   : > { %v4450_v29 = vpop.permute.xlu1 %4449  ;;  %13340 = vst [vmem:[#allocation141_spill] sm:$0xff] %v10831_v16 }
 0x62c   : > { %4095 = vmax.xlane.f32.xlu1 %v13343_v38  ;;  %6320 = vmatprep.subr.bf16.mxu0 %v4450_v29 }
 0x62d   : > { %6427 = vmatprep.subr.bf16.mxu1 %v4450_v29  ;;  %6321 = vmatpush3.bf16.msra.mxu0 %v4434_v53  ;;  %v6172_v11 = vpop.f32.mrb[132].mxu0 }
 0x62e   : > { %6435 = vmatpush3.bf16.msra.mxu1 %v4434_v53  ;;  %2242 = vadd.xlane.f32.xlu0 %v13344_v60  ;;  %v6173_v4 = vpop.f32.mrb[133].mxu0 }
 0x62f   : > { %v10842_v1 = vadd.f32 %v6173_v4, %v6172_v11  ;;  %v6175_v16 = vpop.f32.mrb[134].mxu0  ;;  %v13355_v4 = vld [vmem:[#allocation49_spill] sm:$0xff] }
 0x630   : > { %4089 = vmax.xlane.f32.xlu1 %v13347_v45  ;;  %v6176_v29 = vpop.f32.mrb[135].mxu0  ;;  %v13353_v45 = vmax.f32 %v13351_v32, %v13352_v59  ;;  %v13359_v59 = vld [vmem:[#allocation63_spill] sm:$0xff]  ;;  %v13360_v32 = vld [vmem:[#allocation54_spill] sm:$0xff] }
 0x631   : > { %13348 = vst [vmem:[#allocation142_spill] sm:$0xff] %v10842_v1  ;;  %v10849_v60 = vadd.f32 %v6176_v29, %v6175_v16  ;;  %v13358_v16 = vld [vmem:[#allocation61_spill] sm:$0xff] }
 0x632   : > { %v10840_v49 = vpop.eup %7240  ;;  %2248 = vadd.xlane.f32.xlu0 %v13349_v23  ;;  %v13356_v23 = vld [vmem:[#allocation81_spill] sm:$0xff] }
 0x633   : > { %v10845_v38 = vpop.eup %7242  ;;  %13350 = vst [vmem:[#allocation151_spill] sm:$0xff] %v10849_v60 }
 0x634   : > { %4101 = vmax.xlane.f32.xlu1 %v13353_v45  ;;  %v10858_v11 = vadd.f32 %v10845_v38, %v10840_v49 }
 0x635   : > { %v6178_v1 = vpop.f32.mrb[136].mxu0 }
 0x636   : > { %13354 = vst [vmem:[#allocation152_spill] sm:$0xff] %v10858_v11  ;;  %2254 = vadd.xlane.f32.xlu0 %v13355_v4  ;;  %v6179_v6 = vpop.f32.mrb[137].mxu0  ;;  %v13361_v11 = vld [vmem:[#allocation75_spill] sm:$0xff] }
 0x637   : > { %v10862_v53 = vadd.f32 %v6179_v6, %v6178_v1  ;;  %v6181_v29 = vpop.f32.mrb[138].mxu0 }
 0x638   : > { %2215 = vadd.xlane.f32.xlu1 %v13356_v23  ;;  %v6182_v60 = vpop.f32.mrb[139].mxu0 }
 0x639   : > { %13357 = vst [vmem:[#allocation157_spill] sm:$0xff] %v10862_v53  ;;  %v10865_v45 = vadd.f32 %v6182_v60, %v6181_v29  ;;  %v13363_v60 = vld [vmem:[#allocation132_spill] sm:$0xff] }
 0x63a   : > { %2260 = vadd.xlane.f32.xlu0 %v13358_v16 }
 0x63c   : > { %2221 = vadd.xlane.f32.xlu1 %v13359_v59  ;;  %v4030_v24 = vpop.xlane.xlu0 %4029 }
 0x63d   : > { %v4117_v33 = vsub.f32 %v13248_v5, %v4030_v24  ;;  %v4118_v4 = vsub.f32 %v13249_v56, %v4030_v24  ;;  %v6184_v6 = vpop.f32.mrb[140].mxu0  ;;  %v13365_v56 = vld [vmem:[#allocation84_spill] sm:$0xff]  ;;  %v13367_v24 = vld [vmem:[#allocation47_spill] sm:$0xff] }
 0x63e   : > { %2266 = vadd.xlane.f32.xlu0 %v13360_v32  ;;  %v6185_v1 = vpop.f32.mrb[141].mxu0 }
 0x63f   : > { %v4195_v23 = vmul.f32 1.442695, %v4117_v33  ;;  %v4197_v15 = vmul.f32 1.442695, %v4118_v4  ;;  %v10872_v53 = vadd.f32 %v6185_v1, %v6184_v6  ;;  %v6187_v59 = vpop.f32.mrb[142].mxu0  ;;  %v13366_v33 = vld [vmem:[#allocation136_spill] sm:$0xff] }
 0x640   : > { %2227 = vadd.xlane.f32.xlu1 %v13361_v11  ;;  %v4452_v16 = vpop.permute.xlu0 %4451  ;;  %v6188_v32 = vpop.f32.mrb[143].mxu0  ;;  %v13368_v11 = vld [vmem:[#allocation162_spill] sm:$0xff] }
 0x641   : > { %7244 = vpow2.f32 %v4195_v23  ;;  %13362 = vst [vmem:[#allocation158_spill] sm:$0xff] %v10872_v53  ;;  %6322 = vmatprep.subr.bf16.mxu0 %v4452_v16  ;;  %6428 = vmatprep.subr.bf16.mxu1 %v4452_v16  ;;  %v10875_v5 = vadd.f32 %v6188_v32, %v6187_v59  ;;  %v13369_v4 = vld [vmem:[#allocation30_spill] sm:$0xff]  ;;  %v13372_v16 = vld [vmem:[#allocation176_spill] sm:$0xff]  ;;  %v13375_v32 = vld [vmem:[#allocation51_spill] sm:$0xff] }
 0x642   : > { %2272 = vadd.xlane.f32.xlu0 %v13363_v60  ;;  %7246 = vpow2.f32 %v4197_v15  ;;  %v13370_v6 = vld [vmem:[#allocation170_spill] sm:$0xff]  ;;  %v13373_v60 = vld [vmem:[#allocation60_spill] sm:$0xff] }
 0x643   : > { %13364 = vst [vmem:[#allocation71_spill] sm:$0xff] %v10875_v5  ;;  %v13371_v1 = vld [vmem:[#allocation42_spill] sm:$0xff] }
 0x644   : > { %2233 = vadd.xlane.f32.xlu1 %v13365_v56  ;;  %v13374_v59 = vld [vmem:[#allocation182_spill] sm:$0xff]  ;;  %v13376_v56 = vld [vmem:[#allocation163_spill] sm:$0xff] }
 0x645   : > { %v13379_v53 = vld [vmem:[#allocation134_spill] sm:$0xff] }
 0x646   : > { %2278 = vadd.xlane.f32.xlu0 %v13366_v33 }
 0x648   : > { %2239 = vadd.xlane.f32.xlu1 %v13367_v24  ;;  %v13377_v24 = vld [vmem:[#allocation70_spill] sm:$0xff] }
 0x64a   : > { %2284 = vadd.xlane.f32.xlu0 %v13368_v11 }
 0x64b   : > { %v10881_v29 = vpop.eup %7244 }
 0x64c   : > { %2245 = vadd.xlane.f32.xlu1 %v13369_v4  ;;  %v10884_v23 = vpop.eup %7246 }
 0x64d   : > { %v10889_v15 = vadd.f32 %v10884_v23, %v10881_v29 }
 0x64e   : > { %2290 = vadd.xlane.f32.xlu0 %v13370_v6  ;;  %v13378_v6 = vld [vmem:[#allocation190_spill] sm:$0xff] }
 0x650   : > { %2251 = vadd.xlane.f32.xlu1 %v13371_v1 }
 0x652   : > { %2296 = vadd.xlane.f32.xlu0 %v13372_v16 }
 0x654   : > { %2257 = vadd.xlane.f32.xlu1 %v13373_v60  ;;  %v13380_v60 = vld [vmem:[#allocation204_spill] sm:$0xff] }
 0x656   : > { %2302 = vadd.xlane.f32.xlu0 %v13374_v59 }
 0x658   : > { %2263 = vadd.xlane.f32.xlu1 %v13375_v32  ;;  %v13381_v32 = vld [vmem:[#allocation138_spill] sm:$0xff] }
 0x65a   : > { %3254 = vadd.xlane.f32.xlu0 %v13376_v56  ;;  %v4438_v56 = vpop.permute.xlu0 %4437 }
 0x65c   : > { %v4027_v33 = vpop.xlane.xlu1 %4026  ;;  %2269 = vadd.xlane.f32.xlu1 %v13377_v24 }
 0x65d   : > { %v4115_v11 = vsub.f32 %v13265_v0, %v4027_v33  ;;  %v4116_v4 = vsub.f32 %v13266_v63, %v4027_v33  ;;  %v13382_v63 = vld [vmem:[#allocation165_spill] sm:$0xff]  ;;  %v13383_v33 = vpack.c.bf16 %v10697_v26, %v10580_v44 }
 0x65e   : > { %3260 = vadd.xlane.f32.xlu0 %v13378_v6 }
 0x65f   : > { %v4191_v1 = vmul.f32 1.442695, %v4115_v11  ;;  %v4193_v5 = vmul.f32 1.442695, %v4116_v4  ;;  %v13384_v11 = vpack.c.bf16 %v10725_v34, %v10754_v40  ;;  %v13387_v40 = vpack.c.bf16 %v10723_v43, %v10749_v47 }
 0x660   : > { %v4436_v16 = vpop.permute.xlu1 %4435  ;;  %2275 = vadd.xlane.f32.xlu1 %v13379_v53 }
 0x661   : > { %7248 = vpow2.f32 %v4191_v1  ;;  %6323 = vmatpush3.bf16.msra.mxu0 %v4436_v16  ;;  %6436 = vmatpush3.bf16.msra.mxu1 %v4436_v16  ;;  %v13385_v16 = vld [vmem:[#allocation171_spill] sm:$0xff] }
 0x662   : > { %7250 = vpow2.f32 %v4193_v5  ;;  %3266 = vadd.xlane.f32.xlu0 %v13380_v60 }
 0x664   : > { %v4454_v59 = vpop.permute.xlu1 %4453  ;;  %2281 = vadd.xlane.f32.xlu1 %v13381_v32 }
 0x665   : > { %6324 = vmatprep.subr.bf16.mxu0 %v4454_v59  ;;  %6429 = vmatprep.subr.bf16.mxu1 %v4454_v59  ;;  %v13386_v59 = vld [vmem:[#allocation177_spill] sm:$0xff] }
 0x666   : > { %3272 = vadd.xlane.f32.xlu0 %v10378_v2  ;;  %6325 = vmatpush3.bf16.msra.mxu0 %v4438_v56  ;;  %v6190_v0 = vpop.f32.mrb[144].mxu0 }
 0x667   : > { %6437 = vmatpush3.bf16.msra.mxu1 %v4438_v56  ;;  %v6191_v53 = vpop.f32.mrb[145].mxu0 }
 0x668   : > { %2287 = vadd.xlane.f32.xlu1 %v13382_v63  ;;  %v10909_v5 = vadd.f32 %v6191_v53, %v6190_v0  ;;  %v6193_v24 = vpop.f32.mrb[146].mxu0 }
 0x669   : > { %4504 = vmatmul.mubr.bf16.vlgmr.msra.gmra.mrb[192].mxu0 %v13383_v33  ;;  %v6194_v4 = vpop.f32.mrb[147].mxu0  ;;  %v13390_v33 = vld [vmem:[#allocation188_spill] sm:$0xff] }
 0x66a   : > { %3278 = vadd.xlane.f32.xlu0 %v10517_v18  ;;  %4511 = vmatprep.mubr.bf16.mxu0 %v13384_v11  ;;  %v10915_v1 = vadd.f32 %v6194_v4, %v6193_v24 }
 0x66b   : > { %v7249_v2 = vpop.eup %7248 }
 0x66c   : > { %v7251_v6 = vpop.eup %7250  ;;  %2293 = vadd.xlane.f32.xlu1 %v13385_v16  ;;  %v4397_v60 = vpack.c.bf16 %v10881_v29, %v7249_v2  ;;  %v13388_v29 = vpack.c.bf16 %v10795_v17, %v10845_v38  ;;  %v13391_v17 = vpack.c.bf16 %v10793_v62, %v10840_v49  ;;  %v13394_v16 = vld [vmem:[#allocation167_spill] sm:$0xff] }
 0x66d   : > { %v4398_v44 = vpack.c.bf16 %v10884_v23, %v7251_v6  ;;  %v10920_v26 = vadd.f32 %v7251_v6, %v7249_v2 }
 0x66e   : > { %3284 = vadd.xlane.f32.xlu0 %v10433_v39  ;;  %v6196_v18 = vpop.f32.mrb[148].mxu0  ;;  %v13389_v39 = vld [vmem:[#allocation184_spill] sm:$0xff] }
 0x66f   : > { %v6197_v34 = vpop.f32.mrb[149].mxu0 }
 0x670   : > { %2299 = vadd.xlane.f32.xlu1 %v13386_v59  ;;  %v10927_v32 = vadd.f32 %v6197_v34, %v6196_v18  ;;  %v6199_v56 = vpop.f32.mrb[150].mxu0 }
 0x671   : > { %4512 = vmatmul.mubr.bf16.gmra.mrb[196].mxu0 %v13387_v40  ;;  %v6200_v23 = vpop.f32.mrb[151].mxu0 }
 0x672   : > { %3290 = vadd.xlane.f32.xlu0 %v10443_v30  ;;  %4519 = vmatprep.mubr.bf16.mxu0 %v13388_v29  ;;  %v10933_v0 = vadd.f32 %v6200_v23, %v6199_v56 }
 0x674   : > { %2305 = vadd.xlane.f32.xlu1 %v13389_v39 }
 0x675   : > { %v4036_v63 = vpop.xlane.xlu0 %4035 }
 0x676   : > { %3296 = vadd.xlane.f32.xlu0 %v10453_v54  ;;  %v4121_v43 = vsub.f32 %v13269_v14, %v4036_v63  ;;  %v4122_v47 = vsub.f32 %v13270_v48, %v4036_v63  ;;  %v6202_v53 = vpop.f32.mrb[152].mxu0  ;;  %v13398_v63 = vld [vmem:[#allocation209_spill] sm:$0xff] }
 0x677   : > { %v6203_v11 = vpop.f32.mrb[153].mxu0 }
 0x678   : > { %3257 = vadd.xlane.f32.xlu1 %v13390_v33  ;;  %v4203_v30 = vmul.f32 1.442695, %v4121_v43  ;;  %v4205_v24 = vmul.f32 1.442695, %v4122_v47  ;;  %v10943_v38 = vadd.f32 %v6203_v11, %v6202_v53  ;;  %v6205_v2 = vpop.f32.mrb[154].mxu0 }
 0x679   : > { %4520 = vmatmul.mubr.bf16.gmra.mrb[200].mxu0 %v13391_v17  ;;  %v4039_v54 = vpop.xlane.xlu0 %4038  ;;  %v6206_v14 = vpop.f32.mrb[155].mxu0 }
 0x67a   : > { %13392 = vst [vmem:[#allocation72_spill] sm:$0xff] %v10943_v38  ;;  %3302 = vadd.xlane.f32.xlu0 %v10465_v42  ;;  %4527 = vmatprep.mubr.bf16.mxu0 %v4398_v44  ;;  %7252 = vpow2.f32 %v4203_v30  ;;  %v4123_v48 = vsub.f32 %v13272_v52, %v4039_v54  ;;  %v4124_v4 = vsub.f32 %v13273_v10, %v4039_v54  ;;  %v13395_v52 = vld [vmem:[#allocation130_spill] sm:$0xff] }
 0x67b   : > { %7254 = vpow2.f32 %v4205_v24  ;;  %v10948_v6 = vadd.f32 %v6206_v14, %v6205_v2 }
 0x67c   : > { %3263 = vadd.xlane.f32.xlu1 %v13394_v16  ;;  %v4207_v62 = vmul.f32 1.442695, %v4123_v48  ;;  %v4209_v49 = vmul.f32 1.442695, %v4124_v4 }
 0x67d   : > { %13393 = vst [vmem:[#allocation53_spill] sm:$0xff] %v10948_v6  ;;  %v4045_v18 = vpop.xlane.xlu0 %4044 }
 0x67e   : > { %3308 = vadd.xlane.f32.xlu0 %v10477_v58  ;;  %7256 = vpow2.f32 %v4207_v62  ;;  %v4127_v42 = vsub.f32 %v13275_v8, %v4045_v18  ;;  %v4128_v44 = vsub.f32 %v13276_v37, %v4045_v18  ;;  %v6208_v59 = vpop.f32.mrb[156].mxu0 }
 0x67f   : > { %7258 = vpow2.f32 %v4209_v49  ;;  %v6209_v40 = vpop.f32.mrb[157].mxu0 }
 0x680   : > { %3269 = vadd.xlane.f32.xlu1 %v13395_v52  ;;  %v4215_v10 = vmul.f32 1.442695, %v4127_v42  ;;  %v4217_v34 = vmul.f32 1.442695, %v4128_v44  ;;  %v10955_v56 = vadd.f32 %v6209_v40, %v6208_v59  ;;  %v6211_v29 = vpop.f32.mrb[158].mxu0 }
 0x681   : > { %4528 = vmatmul.mubr.bf16.gmra.mrb[204].mxu0 %v4397_v60  ;;  %v4051_v58 = vpop.xlane.xlu0 %4050  ;;  %v6212_v23 = vpop.f32.mrb[159].mxu0 }
 0x682   : > { %13396 = vst [vmem:[#allocation159_spill] sm:$0xff] %v10955_v56  ;;  %3314 = vadd.xlane.f32.xlu0 %v10489_v22  ;;  %7260 = vpow2.f32 %v4215_v10  ;;  %v4131_v8 = vsub.f32 %v13278_v21, %v4051_v58  ;;  %v4132_v37 = vsub.f32 %v13279_v19, %v4051_v58  ;;  %v10960_v39 = vadd.f32 %v6212_v23, %v6211_v29 }
 0x683   : > { %7262 = vpow2.f32 %v4217_v34 }
 0x684   : > { %13397 = vst [vmem:[#allocation164_spill] sm:$0xff] %v10960_v39  ;;  %3275 = vadd.xlane.f32.xlu1 %v13398_v63  ;;  %v10963_v43 = vpop.eup %7252  ;;  %v4223_v60 = vmul.f32 1.442695, %v4131_v8  ;;  %v4225_v47 = vmul.f32 1.442695, %v4132_v37  ;;  %v13403_v37 = vld [vmem:[#allocation150_spill] sm:$0xff] }
 0x685   : > { %v10965_v53 = vpop.eup %7254  ;;  %v4057_v22 = vpop.xlane.xlu0 %4056 }
 0x686   : > { %3320 = vadd.xlane.f32.xlu0 %v10503_v31  ;;  %7264 = vpow2.f32 %v4223_v60  ;;  %v4135_v33 = vsub.f32 %v13281_v25, %v4057_v22  ;;  %v4136_v21 = vsub.f32 %v13282_v46, %v4057_v22  ;;  %v10972_v19 = vadd.f32 %v10965_v53, %v10963_v43  ;;  %v6214_v30 = vpop.f32.mrb[160].mxu0 }
 0x687   : > { %7266 = vpow2.f32 %v4225_v47  ;;  %v6215_v2 = vpop.f32.mrb[161].mxu0 }
 0x688   : > { %3281 = vadd.xlane.f32.xlu1 %v10420_v61  ;;  %v10975_v24 = vpop.eup %7256  ;;  %v4231_v11 = vmul.f32 1.442695, %v4135_v33  ;;  %v4233_v17 = vmul.f32 1.442695, %v4136_v21  ;;  %v10979_v54 = vadd.f32 %v6215_v2, %v6214_v30  ;;  %v6217_v25 = vpop.f32.mrb[162].mxu0  ;;  %v13404_v33 = vld [vmem:[#allocation87_spill] sm:$0xff] }
 0x689   : > { %v10977_v31 = vpop.eup %7258  ;;  %v4063_v46 = vpop.xlane.xlu0 %4062 }
 0x68a   : > { %13399 = vst [vmem:[#allocation166_spill] sm:$0xff] %v10979_v54  ;;  %3326 = vadd.xlane.f32.xlu0 %v10521_v12  ;;  %7268 = vpow2.f32 %v4231_v11  ;;  %v6218_v14 = vpop.f32.mrb[163].mxu0  ;;  %v4139_v48 = vsub.f32 %v13285_v9, %v4063_v46  ;;  %v4140_v4 = vsub.f32 %v13286_v20, %v4063_v46  ;;  %v10986_v61 = vadd.f32 %v10977_v31, %v10975_v24  ;;  %v13452_v54 = vld [vmem:[#allocation68_spill] sm:$0xff] }
 0x68b   : > { %7270 = vpow2.f32 %v4233_v17  ;;  %v10988_v16 = vadd.f32 %v6218_v14, %v6217_v25  ;;  %v13405_v14 = vld [vmem:[#allocation139_spill] sm:$0xff] }
 0x68c   : > { %3287 = vadd.xlane.f32.xlu1 %v10534_v28  ;;  %v10991_v62 = vpop.eup %7260  ;;  %v4239_v49 = vmul.f32 1.442695, %v4139_v48  ;;  %v4241_v12 = vmul.f32 1.442695, %v4140_v4 }
 0x68d   : > { %13400 = vst [vmem:[#allocation172_spill] sm:$0xff] %v10988_v16  ;;  %v10993_v18 = vpop.eup %7262  ;;  %v4069_v9 = vpop.xlane.xlu0 %4068 }
 0x68e   : > { %3332 = vadd.xlane.f32.xlu0 %v10538_v35  ;;  %7272 = vpow2.f32 %v4239_v49  ;;  %v4143_v20 = vsub.f32 %v13288_v57, %v4069_v9  ;;  %v4144_v42 = vsub.f32 %v13289_v36, %v4069_v9  ;;  %v11000_v44 = vadd.f32 %v10993_v18, %v10991_v62  ;;  %v6220_v28 = vpop.f32.mrb[164].mxu0 }
 0x68f   : > { %7274 = vpow2.f32 %v4241_v12  ;;  %v6221_v34 = vpop.f32.mrb[165].mxu0 }
 0x690   : > { %3293 = vadd.xlane.f32.xlu1 %v10548_v3  ;;  %v11003_v59 = vpop.eup %7264  ;;  %v4247_v52 = vmul.f32 1.442695, %v4143_v20  ;;  %v4249_v10 = vmul.f32 1.442695, %v4144_v42  ;;  %v11007_v40 = vadd.f32 %v6221_v34, %v6220_v28  ;;  %v6223_v57 = vpop.f32.mrb[166].mxu0  ;;  %v13408_v20 = vld [vmem:[#allocation76_spill] sm:$0xff] }
 0x691   : > { %v11005_v35 = vpop.eup %7266  ;;  %v4075_v36 = vpop.xlane.xlu0 %4074 }
 0x692   : > { %13401 = vst [vmem:[#allocation173_spill] sm:$0xff] %v11007_v40  ;;  %3338 = vadd.xlane.f32.xlu0 %v10554_v55  ;;  %7276 = vpow2.f32 %v4247_v52  ;;  %v6224_v29 = vpop.f32.mrb[167].mxu0  ;;  %v4147_v58 = vsub.f32 %v13291_v7, %v4075_v36  ;;  %v4148_v23 = vsub.f32 %v13292_v51, %v4075_v36  ;;  %v11014_v3 = vadd.f32 %v11005_v35, %v11003_v59  ;;  %v13409_v52 = vld [vmem:[#allocation140_spill] sm:$0xff] }
 0x693   : > { %7278 = vpow2.f32 %v4249_v10  ;;  %v11016_v8 = vadd.f32 %v6224_v29, %v6223_v57  ;;  %v13410_v57 = vld [vmem:[#allocation79_spill] sm:$0xff]  ;;  %v13411_v29 = vld [vmem:[#allocation62_spill] sm:$0xff] }
 0x694   : > { %3299 = vadd.xlane.f32.xlu1 %v13403_v37  ;;  %v11019_v63 = vpop.eup %7268  ;;  %v4255_v60 = vmul.f32 1.442695, %v4147_v58  ;;  %v4257_v55 = vmul.f32 1.442695, %v4148_v23 }
 0x695   : > { %13402 = vst [vmem:[#allocation178_spill] sm:$0xff] %v11016_v8  ;;  %v4033_v47 = vpop.xlane.xlu1 %4032  ;;  %v11021_v22 = vpop.eup %7270 }
 0x696   : > { %v4119_v7 = vsub.f32 %v13294_v27, %v4033_v47  ;;  %v4120_v51 = vsub.f32 %v13295_v50, %v4033_v47  ;;  %3344 = vadd.xlane.f32.xlu0 %v13404_v33  ;;  %v4081_v21 = vpop.xlane.xlu0 %4080  ;;  %7280 = vpow2.f32 %v4255_v60  ;;  %v11030_v17 = vadd.f32 %v11021_v22, %v11019_v63  ;;  %v6226_v46 = vpop.f32.mrb[168].mxu0  ;;  %v13413_v47 = vld [vmem:[#allocation126_spill] sm:$0xff] }
 0x697   : > { %v4151_v30 = vsub.f32 %v13297_v13, %v4081_v21  ;;  %v4152_v11 = vsub.f32 %v13298_v41, %v4081_v21  ;;  %7282 = vpow2.f32 %v4257_v55  ;;  %v6227_v4 = vpop.f32.mrb[169].mxu0  ;;  %v13407_v41 = vld [vmem:[#allocation56_spill] sm:$0xff] }
 0x698   : > { %v4199_v2 = vmul.f32 1.442695, %v4119_v7  ;;  %v4201_v25 = vmul.f32 1.442695, %v4120_v51  ;;  %3305 = vadd.xlane.f32.xlu1 %v13405_v14  ;;  %v11033_v27 = vpop.eup %7272  ;;  %v11037_v13 = vadd.f32 %v6227_v4, %v6226_v46  ;;  %v6229_v28 = vpop.f32.mrb[170].mxu0  ;;  %v13416_v14 = vld [vmem:[#allocation137_spill] sm:$0xff] }
 0x699   : > { %v4263_v50 = vmul.f32 1.442695, %v4151_v30  ;;  %v4265_v48 = vmul.f32 1.442695, %v4152_v11  ;;  %v4042_v49 = vpop.xlane.xlu1 %4041  ;;  %v11035_v12 = vpop.eup %7274  ;;  %v13414_v11 = vld [vmem:[#allocation160_spill] sm:$0xff]  ;;  %v13417_v4 = vld [vmem:[#allocation77_spill] sm:$0xff] }
 0x69a   : > { %7284 = vpow2.f32 %v4199_v2  ;;  %13406 = vst [vmem:[#allocation179_spill] sm:$0xff] %v11037_v13  ;;  %v4125_v9 = vsub.f32 %v13407_v41, %v4042_v49  ;;  %v4126_v42 = vsub.f32 %v13408_v20, %v4042_v49  ;;  %4296 = vadd.xlane.f32.xlu0 %v13409_v52  ;;  %v4093_v10 = vpop.xlane.xlu0 %4092  ;;  %v6230_v34 = vpop.f32.mrb[171].mxu0  ;;  %v11046_v23 = vadd.f32 %v11035_v12, %v11033_v27  ;;  %v13418_v41 = vld [vmem:[#allocation78_spill] sm:$0xff]  ;;  %v13419_v52 = vld [vmem:[#allocation148_spill] sm:$0xff] }
 0x69b   : > { %7286 = vpow2.f32 %v4201_v25  ;;  %v4159_v36 = vsub.f32 %v13410_v57, %v4093_v10  ;;  %v4160_v58 = vsub.f32 %v13411_v29, %v4093_v10  ;;  %v11048_v55 = vadd.f32 %v6230_v34, %v6229_v28  ;;  %v13415_v25 = vld [vmem:[#allocation161_spill] sm:$0xff] }
 0x69c   : > { %7288 = vpow2.f32 %v4263_v50  ;;  %v4211_v37 = vmul.f32 1.442695, %v4125_v9  ;;  %v4213_v60 = vmul.f32 1.442695, %v4126_v42  ;;  %3311 = vadd.xlane.f32.xlu1 %v13413_v47  ;;  %v11051_v7 = vpop.eup %7276 }
 0x69d   : > { %13412 = vst [vmem:[#allocation183_spill] sm:$0xff] %v11048_v55  ;;  %7290 = vpow2.f32 %v4265_v48  ;;  %v4279_v51 = vmul.f32 1.442695, %v4159_v36  ;;  %v4281_v33 = vmul.f32 1.442695, %v4160_v58  ;;  %v4048_v21 = vpop.xlane.xlu1 %4047  ;;  %v11053_v30 = vpop.eup %7278 }
 0x69e   : > { %7292 = vpow2.f32 %v4211_v37  ;;  %v4129_v2 = vsub.f32 %v13414_v11, %v4048_v21  ;;  %v4130_v46 = vsub.f32 %v13415_v25, %v4048_v21  ;;  %4302 = vadd.xlane.f32.xlu0 %v13416_v14  ;;  %v4087_v50 = vpop.xlane.xlu0 %4086  ;;  %v11062_v48 = vadd.f32 %v11053_v30, %v11051_v7  ;;  %v6232_v28 = vpop.f32.mrb[172].mxu0 }
 0x69f   : > { %7294 = vpow2.f32 %v4213_v60  ;;  %v4155_v49 = vsub.f32 %v13417_v4, %v4087_v50  ;;  %v4156_v9 = vsub.f32 %v13418_v41, %v4087_v50  ;;  %v6233_v36 = vpop.f32.mrb[173].mxu0  ;;  %v13421_v60 = vld [vmem:[#allocation168_spill] sm:$0xff] }
 0x6a0   : > { %7296 = vpow2.f32 %v4279_v51  ;;  %v4219_v20 = vmul.f32 1.442695, %v4129_v2  ;;  %v4221_v42 = vmul.f32 1.442695, %v4130_v46  ;;  %3317 = vadd.xlane.f32.xlu1 %v13419_v52  ;;  %v11065_v10 = vpop.eup %7280  ;;  %v11069_v37 = vadd.f32 %v6233_v36, %v6232_v28  ;;  %v13422_v51 = vld [vmem:[#allocation169_spill] sm:$0xff]  ;;  %v6235_v11 = vpop.f32.mrb[174].mxu0 }
 0x6a1   : > { %7298 = vpow2.f32 %v4281_v33  ;;  %v4271_v34 = vmul.f32 1.442695, %v4155_v49  ;;  %v4273_v57 = vmul.f32 1.442695, %v4156_v9  ;;  %v4054_v29 = vpop.xlane.xlu1 %4053  ;;  %v11067_v58 = vpop.eup %7282  ;;  %v13423_v2 = vld [vmem:[#allocation152_spill] sm:$0xff]  ;;  %v13424_v33 = vld [vmem:[#allocation74_spill] sm:$0xff] }
 0x6a2   : > { %7300 = vpow2.f32 %v4219_v20  ;;  %13420 = vst [vmem:[#allocation185_spill] sm:$0xff] %v11069_v37  ;;  %v4133_v47 = vsub.f32 %v13421_v60, %v4054_v29  ;;  %v4134_v21 = vsub.f32 %v13422_v51, %v4054_v29  ;;  %4308 = vadd.xlane.f32.xlu0 %v13423_v2  ;;  %v4099_v25 = vpop.xlane.xlu0 %4098  ;;  %v6236_v46 = vpop.f32.mrb[175].mxu0  ;;  %v13425_v50 = vld [vmem:[#allocation80_spill] sm:$0xff]  ;;  %v11078_v49 = vadd.f32 %v11067_v58, %v11065_v10 }
 0x6a3   : > { %7302 = vpow2.f32 %v4221_v42  ;;  %v4163_v14 = vsub.f32 %v13424_v33, %v4099_v25  ;;  %v4164_v4 = vsub.f32 %v13425_v50, %v4099_v25  ;;  %v11080_v28 = vadd.f32 %v6236_v46, %v6235_v11  ;;  %v13427_v52 = vld [vmem:[#allocation36_spill] sm:$0xff]  ;;  %v13428_v25 = vld [vmem:[#allocation174_spill] sm:$0xff]  ;;  %v13429_v50 = vld [vmem:[#allocation175_spill] sm:$0xff] }
 0x6a4   : > { %v7285_v41 = vpop.eup %7284  ;;  %7304 = vpow2.f32 %v4271_v34  ;;  %v4227_v9 = vmul.f32 1.442695, %v4133_v47  ;;  %v4229_v20 = vmul.f32 1.442695, %v4134_v21  ;;  %3323 = vadd.xlane.f32.xlu1 %v13427_v52 }
 0x6a5   : > { %13426 = vst [vmem:[#allocation189_spill] sm:$0xff] %v11080_v28  ;;  %v7287_v36 = vpop.eup %7286  ;;  %7306 = vpow2.f32 %v4273_v57  ;;  %v4287_v42 = vmul.f32 1.442695, %v4163_v14  ;;  %v4289_v29 = vmul.f32 1.442695, %v4164_v4  ;;  %v4060_v60 = vpop.xlane.xlu1 %4059  ;;  %v4399_v51 = vpack.c.bf16 %v10963_v43, %v7285_v41 }
 0x6a6   : > { %v11084_v2 = vpop.eup %7288  ;;  %7308 = vpow2.f32 %v4227_v9  ;;  %v4137_v33 = vsub.f32 %v13428_v25, %v4060_v60  ;;  %v4138_v34 = vsub.f32 %v13429_v50, %v4060_v60  ;;  %4314 = vadd.xlane.f32.xlu0 %v10920_v26  ;;  %v4400_v47 = vpack.c.bf16 %v10965_v53, %v7287_v36  ;;  %v2213_v21 = vpop.xlane.xlu0 %2212  ;;  %v13430_v9 = vld [vmem:[#allocation127_spill] sm:$0xff] }
 0x6a7   : > { %v11090_v11 = vpop.eup %7290  ;;  %7310 = vpow2.f32 %v4229_v20  ;;  %v4319_v57 = vadd.f32 %v7287_v36, %v7285_v41  ;;  %v6238_v4 = vpop.f32.mrb[176].mxu0 }
 0x6a8   : > { %v7293_v46 = vpop.eup %7292  ;;  %7312 = vpow2.f32 %v4287_v42  ;;  %v4235_v14 = vmul.f32 1.442695, %v4137_v33  ;;  %v4237_v43 = vmul.f32 1.442695, %v4138_v34  ;;  %4535 = vmatprep.mubr.bf16.mxu0 %v4400_v47  ;;  %3329 = vadd.xlane.f32.xlu1 %v13430_v9  ;;  %v11095_v52 = vadd.f32 %v11090_v11, %v11084_v2  ;;  %v6239_v53 = vpop.f32.mrb[177].mxu0  ;;  %v13432_v42 = vld [vmem:[#allocation180_spill] sm:$0xff] }
 0x6a9   : > { %v7295_v26 = vpop.eup %7294  ;;  %7314 = vpow2.f32 %v4289_v29  ;;  %4536 = vmatmul.mubr.bf16.gmra.mrb[208].mxu0 %v4399_v51  ;;  %v4066_v60 = vpop.xlane.xlu1 %4065  ;;  %v4401_v20 = vpack.c.bf16 %v7293_v46, %v10975_v24  ;;  %v11100_v36 = vadd.f32 %v6239_v53, %v6238_v4  ;;  %v13433_v33 = vld [vmem:[#allocation181_spill] sm:$0xff] }
 0x6aa   : > { %v11098_v41 = vpop.eup %7296  ;;  %7316 = vpow2.f32 %v4235_v14  ;;  %v4141_v25 = vsub.f32 %v13432_v42, %v4066_v60  ;;  %v4142_v50 = vsub.f32 %v13433_v33, %v4066_v60  ;;  %v6241_v34 = vpop.f32.mrb[178].mxu0  ;;  %4320 = vadd.xlane.f32.xlu0 %v4319_v57  ;;  %v4402_v51 = vpack.c.bf16 %v7295_v26, %v10977_v31  ;;  %v13435_v42 = vld [vmem:[#allocation64_spill] sm:$0xff] }
 0x6ab   : > { %13431 = vst [vmem:[#allocation191_spill] sm:$0xff] %v11100_v36  ;;  %v2219_v47 = vpop.xlane.xlu0 %2218  ;;  %v11104_v9 = vpop.eup %7298  ;;  %7318 = vpow2.f32 %v4237_v43  ;;  %v11107_v28 = vadd.f32 %v7295_v26, %v7293_v46 }
 0x6ac   : > { %v6242_v29 = vpop.f32.mrb[179].mxu0  ;;  %v11109_v24 = vpop.eup %7300  ;;  %7320 = vrcp.f32 %v2213_v21  ;;  %v4243_v14 = vmul.f32 1.442695, %v4141_v25  ;;  %v4245_v4 = vmul.f32 1.442695, %v4142_v50  ;;  %3335 = vadd.xlane.f32.xlu1 %v13435_v42  ;;  %4543 = vmatprep.mubr.bf16.mxu0 %v4402_v51  ;;  %v11118_v31 = vadd.f32 %v11104_v9, %v11098_v41  ;;  %v13436_v21 = vld [vmem:[#allocation186_spill] sm:$0xff] }
 0x6ad   : > { %v11111_v53 = vadd.f32 %v6242_v29, %v6241_v34  ;;  %v7303_v60 = vpop.eup %7302  ;;  %7322 = vrcp.f32 %v2219_v47  ;;  %v4072_v57 = vpop.xlane.xlu1 %4071  ;;  %v13437_v25 = vld [vmem:[#allocation187_spill] sm:$0xff]  ;;  %v13449_v16 = vpack.c.bf16 %v11109_v24, %v10991_v62 }
 0x6ae   : > { %v11120_v46 = vpop.eup %7304  ;;  %7324 = vpow2.f32 %v4243_v14  ;;  %v4145_v26 = vsub.f32 %v13436_v21, %v4072_v57  ;;  %v4146_v33 = vsub.f32 %v13437_v25, %v4072_v57  ;;  %4326 = vadd.xlane.f32.xlu0 %v10986_v61  ;;  %v4404_v34 = vpack.c.bf16 %v7303_v60, %v10993_v18  ;;  %v6244_v14 = vpop.f32.mrb[180].mxu0  ;;  %v13438_v21 = vld [vmem:[#allocation131_spill] sm:$0xff] }
 0x6af   : > { %13434 = vst [vmem:[#allocation155_spill] sm:$0xff] %v11111_v53  ;;  %v2225_v50 = vpop.xlane.xlu0 %2224  ;;  %v11126_v47 = vpop.eup %7306  ;;  %7326 = vpow2.f32 %v4245_v4  ;;  %v11129_v29 = vadd.f32 %v7303_v60, %v11109_v24  ;;  %v13441_v53 = vld [vmem:[#allocation193_spill] sm:$0xff] }
 0x6b0   : > { %v11131_v51 = vpop.eup %7308  ;;  %v4251_v42 = vmul.f32 1.442695, %v4145_v26  ;;  %v4253_v43 = vmul.f32 1.442695, %v4146_v33  ;;  %7328 = vrcp.f32 %v2225_v50  ;;  %3341 = vadd.xlane.f32.xlu1 %v13438_v21  ;;  %v11136_v61 = vadd.f32 %v11126_v47, %v11120_v46  ;;  %v6245_v18 = vpop.f32.mrb[181].mxu0  ;;  %v13440_v33 = vld [vmem:[#allocation192_spill] sm:$0xff] }
 0x6b1   : > { %v7311_v57 = vpop.eup %7310  ;;  %4544 = vmatmul.mubr.bf16.gmra.mrb[212].mxu0 %v4401_v20  ;;  %v4078_v25 = vpop.xlane.xlu1 %4077  ;;  %v11142_v26 = vadd.f32 %v6245_v18, %v6244_v14 }
 0x6b2   : > { %v11140_v60 = vpop.eup %7312  ;;  %7330 = vpow2.f32 %v4251_v42  ;;  %v4149_v50 = vsub.f32 %v13440_v33, %v4078_v25  ;;  %v4150_v21 = vsub.f32 %v13441_v53, %v4078_v25  ;;  %v6247_v36 = vpop.f32.mrb[182].mxu0  ;;  %4551 = vmatprep.mubr.bf16.mxu0 %v4404_v34  ;;  %4332 = vadd.xlane.f32.xlu0 %v11000_v44  ;;  %v4406_v4 = vpack.c.bf16 %v7311_v57, %v11005_v35  ;;  %v13443_v53 = vld [vmem:[#allocation67_spill] sm:$0xff] }
 0x6b3   : > { %13439 = vst [vmem:[#allocation156_spill] sm:$0xff] %v11142_v26  ;;  %v2231_v37 = vpop.xlane.xlu0 %2230  ;;  %v11147_v55 = vpop.eup %7314  ;;  %7332 = vpow2.f32 %v4253_v43  ;;  %v11151_v13 = vadd.f32 %v7311_v57, %v11131_v51  ;;  %v13444_v25 = vld [vmem:[#allocation43_spill] sm:$0xff] }
 0x6b4   : > { %v6248_v20 = vpop.f32.mrb[183].mxu0  ;;  %v11153_v42 = vpop.eup %7316  ;;  %v4259_v14 = vmul.f32 1.442695, %v4149_v50  ;;  %v4261_v18 = vmul.f32 1.442695, %v4150_v21  ;;  %7334 = vrcp.f32 %v2231_v37  ;;  %3347 = vadd.xlane.f32.xlu1 %v13443_v53  ;;  %v11164_v35 = vadd.f32 %v11147_v55, %v11140_v60  ;;  %v13445_v21 = vld [vmem:[#allocation196_spill] sm:$0xff] }
 0x6b5   : > { %v11155_v33 = vadd.f32 %v6248_v20, %v6247_v36  ;;  %v11158_v44 = vpop.eup %7318  ;;  %v4084_v34 = vpop.xlane.xlu1 %4083 }
 0x6b6   : > { %v7321_v57 = vpop.eup %7320  ;;  %7336 = vpow2.f32 %v4259_v14  ;;  %v4153_v50 = vsub.f32 %v13444_v25, %v4084_v34  ;;  %v4154_v36 = vsub.f32 %v13445_v21, %v4084_v34  ;;  %4338 = vadd.xlane.f32.xlu0 %v11014_v3  ;;  %v11173_v43 = vadd.f32 %v11158_v44, %v11153_v42  ;;  %v6250_v34 = vpop.f32.mrb[184].mxu0  ;;  %v13447_v3 = vld [vmem:[#allocation133_spill] sm:$0xff]  ;;  %v13448_v21 = vld [vmem:[#allocation200_spill] sm:$0xff] }
 0x6b7   : > { %13442 = vst [vmem:[#allocation194_spill] sm:$0xff] %v11155_v33  ;;  %v2237_v37 = vpop.xlane.xlu0 %2236  ;;  %v7323_v53 = vpop.eup %7322  ;;  %7338 = vpow2.f32 %v4261_v18  ;;  %v13446_v33 = vld [vmem:[#allocation198_spill] sm:$0xff]  ;;  %v13463_v38 = vpack.c.bf16 %v11158_v44, %v11021_v22 }
 0x6b8   : > { %v11176_v26 = vmul.f32 %v7321_v57, %v13446_v33  ;;  %v11178_v14 = vpop.eup %7324  ;;  %v4267_v25 = vmul.f32 1.442695, %v4153_v50  ;;  %v4269_v8 = vmul.f32 1.442695, %v4154_v36  ;;  %7340 = vrcp.f32 %v2237_v37  ;;  %4299 = vadd.xlane.f32.xlu1 %v13447_v3  ;;  %v6251_v18 = vpop.f32.mrb[185].mxu0  ;;  %v13451_v37 = vld [vmem:[#allocation65_spill] sm:$0xff] }
 0x6b9   : > { %v11182_v40 = vmul.f32 %v7323_v53, %v13448_v21  ;;  %v11184_v20 = vpop.eup %7326  ;;  %4552 = vmatmul.mubr.bf16.gmra.mrb[216].mxu0 %v13449_v16  ;;  %v4096_v33 = vpop.xlane.xlu1 %4095  ;;  %v11191_v36 = vadd.f32 %v6251_v18, %v6250_v34 }
 0x6ba   : > { %v7329_v50 = vpop.eup %7328  ;;  %7342 = vpow2.f32 %v4267_v25  ;;  %v4161_v3 = vsub.f32 %v13451_v37, %v4096_v33  ;;  %v4162_v53 = vsub.f32 %v13452_v54, %v4096_v33  ;;  %v6253_v21 = vpop.f32.mrb[186].mxu0  ;;  %4559 = vmatprep.mubr.bf16.mxu0 %v4406_v4  ;;  %4344 = vadd.xlane.f32.xlu0 %v11030_v17  ;;  %v11200_v24 = vadd.f32 %v11184_v20, %v11178_v14  ;;  %v13453_v25 = vld [vmem:[#allocation202_spill] sm:$0xff] }
 0x6bb   : > { %13450 = vst [vmem:[#allocation195_spill] sm:$0xff] %v11191_v36  ;;  %7344 = vpow2.f32 %v4269_v8  ;;  %v6254_v39 = vpop.f32.mrb[187].mxu0  ;;  %v2243_v62 = vpop.xlane.xlu0 %2242  ;;  %v11203_v34 = vmul.f32 %v7329_v50, %v13453_v25  ;;  %v13455_v8 = vld [vmem:[#allocation135_spill] sm:$0xff]  ;;  %v13456_v36 = vld [vmem:[#allocation52_spill] sm:$0xff] }
 0x6bc   : > { %v11205_v18 = vpop.eup %7330  ;;  %v4283_v54 = vmul.f32 1.442695, %v4161_v3  ;;  %v4285_v33 = vmul.f32 1.442695, %v4162_v53  ;;  %v11207_v4 = vadd.f32 %v6254_v39, %v6253_v21  ;;  %7346 = vrcp.f32 %v2243_v62  ;;  %4305 = vadd.xlane.f32.xlu1 %v13455_v8  ;;  %v13457_v25 = vld [vmem:[#allocation128_spill] sm:$0xff]  ;;  %v13458_v21 = vld [vmem:[#allocation205_spill] sm:$0xff] }
 0x6bd   : > { %v11210_v17 = vpop.eup %7332  ;;  %v4090_v37 = vpop.xlane.xlu1 %4089 }
 0x6be   : > { %13454 = vst [vmem:[#allocation58_spill] sm:$0xff] %v11207_v4  ;;  %v7335_v16 = vpop.eup %7334  ;;  %7348 = vpow2.f32 %v4283_v54  ;;  %v4157_v50 = vsub.f32 %v13456_v36, %v4090_v37  ;;  %v4158_v56 = vsub.f32 %v13457_v25, %v4090_v37  ;;  %4350 = vadd.xlane.f32.xlu0 %v11046_v23  ;;  %v11221_v53 = vadd.f32 %v11210_v17, %v11205_v18  ;;  %v6256_v57 = vpop.f32.mrb[188].mxu0  ;;  %v13459_v37 = vld [vmem:[#allocation153_spill] sm:$0xff] }
 0x6bf   : > { %7350 = vpow2.f32 %v4285_v33  ;;  %v2249_v3 = vpop.xlane.xlu0 %2248  ;;  %v11224_v62 = vmul.f32 %v7335_v16, %v13458_v21  ;;  %v6257_v25 = vpop.f32.mrb[189].mxu0  ;;  %v13460_v33 = vpack.c.bf16 %v11131_v51, %v11003_v59 }
 0x6c0   : > { %v11226_v8 = vpop.eup %7336  ;;  %v4275_v54 = vmul.f32 1.442695, %v4157_v50  ;;  %v4277_v36 = vmul.f32 1.442695, %v4158_v56  ;;  %7352 = vrcp.f32 %v2249_v3  ;;  %4311 = vadd.xlane.f32.xlu1 %v13459_v37  ;;  %v11236_v4 = vadd.f32 %v6257_v25, %v6256_v57  ;;  %v13461_v56 = vld [vmem:[#allocation83_spill] sm:$0xff]  ;;  %v13462_v3 = vld [vmem:[#allocation197_spill] sm:$0xff] }
 0x6c1   : > { %v11229_v23 = vpop.eup %7338  ;;  %4560 = vmatmul.mubr.bf16.gmra.mrb[220].mxu0 %v13460_v33  ;;  %v4102_v39 = vpop.xlane.xlu1 %4101  ;;  %v4413_v16 = vpack.c.bf16 %v11226_v8, %v11065_v10 }
 0x6c2   : > { %v7341_v21 = vpop.eup %7340  ;;  %7354 = vpow2.f32 %v4275_v54  ;;  %v4165_v50 = vsub.f32 %v13461_v56, %v4102_v39  ;;  %v4166_v6 = vsub.f32 %v13462_v3, %v4102_v39  ;;  %v6259_v37 = vpop.f32.mrb[190].mxu0  ;;  %4567 = vmatprep.mubr.bf16.mxu0 %v13463_v38  ;;  %4356 = vadd.xlane.f32.xlu0 %v11062_v48  ;;  %v4414_v33 = vpack.c.bf16 %v11229_v23, %v11067_v58  ;;  %v13464_v54 = vld [vmem:[#allocation73_spill] sm:$0xff]  ;;  %v13481_v58 = vld [vmem:[#allocation116_spill] sm:$0xff] }
 0x6c3   : > { %7356 = vpow2.f32 %v4277_v36  ;;  %v6260_v59 = vpop.f32.mrb[191].mxu0  ;;  %v2255_v51 = vpop.xlane.xlu0 %2254  ;;  %v11248_v57 = vadd.f32 %v11229_v23, %v11226_v8  ;;  %v11251_v25 = vmul.f32 %v7341_v21, %v13464_v54 }
 0x6c4   : > { %v11253_v39 = vpop.eup %7342  ;;  %v4291_v56 = vmul.f32 1.442695, %v4165_v50  ;;  %v4293_v22 = vmul.f32 1.442695, %v4166_v6  ;;  %v11255_v38 = vadd.f32 %v6260_v59, %v6259_v37  ;;  %7358 = vrcp.f32 %v2255_v51  ;;  %4317 = vadd.xlane.f32.xlu1 %v10889_v15  ;;  %v13465_v15 = vld [vmem:[#allocation207_spill] sm:$0xff] }
 0x6c5   : > { %v11258_v48 = vpop.eup %7344  ;;  %v2216_v44 = vpop.xlane.xlu1 %2215 }
 0x6c6   : > { %v7347_v3 = vpop.eup %7346  ;;  %7360 = vpow2.f32 %v4291_v56  ;;  %4362 = vadd.xlane.f32.xlu0 %v11078_v49  ;;  %v4416_v21 = vpack.c.bf16 %v11258_v48, %v11090_v11  ;;  %v11267_v6 = vadd.f32 %v11258_v48, %v11253_v39  ;;  %v13466_v49 = vpack.c.bf16 %v11153_v42, %v11019_v63  ;;  %v13487_v11 = vld [vmem:[#allocation120_spill] sm:$0xff] }
 0x6c7   : > { %7362 = vpow2.f32 %v4293_v22  ;;  %v2261_v50 = vpop.xlane.xlu0 %2260  ;;  %v11270_v37 = vmul.f32 %v7347_v3, %v13465_v15  ;;  %v13467_v22 = vpack.c.bf16 %v11184_v20, %v11035_v12 }
 0x6c8   : > { %v7349_v59 = vpop.eup %7348  ;;  %7364 = vrcp.f32 %v2216_v44  ;;  %4323 = vadd.xlane.f32.xlu1 %v10972_v19 }
 0x6c9   : > { %v7351_v51 = vpop.eup %7350  ;;  %v4419_v54 = vpack.c.bf16 %v7349_v59, %v11098_v41  ;;  %7366 = vrcp.f32 %v2261_v50  ;;  %4568 = vmatmul.mubr.bf16.gmra.mrb[224].mxu0 %v13466_v49  ;;  %v2222_v56 = vpop.xlane.xlu1 %2221  ;;  %v13468_v41 = vld [vmem:[#allocation210_spill] sm:$0xff] }
 0x6ca   : > { %v7353_v36 = vpop.eup %7352  ;;  %7368 = vrcp.f32 %v2222_v56  ;;  %4575 = vmatprep.mubr.bf16.mxu0 %v13467_v22  ;;  %4368 = vadd.xlane.f32.xlu0 %v11095_v52  ;;  %v4420_v44 = vpack.c.bf16 %v7351_v51, %v11104_v9  ;;  %v11282_v19 = vadd.f32 %v7351_v51, %v7349_v59 }
 0x6cb   : > { %v2267_v3 = vpop.xlane.xlu0 %2266  ;;  %v11285_v50 = vmul.f32 %v7353_v36, %v13468_v41 }
 0x6cc   : > { %v11287_v15 = vpop.eup %7354  ;;  %4615 = vmatprep.mubr.bf16.mxu1 %v4420_v44  ;;  %7370 = vrcp.f32 %v2267_v3  ;;  %4329 = vadd.xlane.f32.xlu1 %v11107_v28  ;;  %v13469_v28 = vld [vmem:[#allocation146_spill] sm:$0xff]  ;;  %v13471_v44 = vpack.c.bf16 %v11210_v17, %v11053_v30 }
 0x6cd   : > { %v11290_v63 = vpop.eup %7356  ;;  %4616 = vmatmul.mubr.bf16.vlgmr.msra.gmra.mrb[0].mxu1 %v4419_v54  ;;  %v2228_v12 = vpop.xlane.xlu1 %2227  ;;  %v4417_v52 = vpack.c.bf16 %v11287_v15, %v11120_v46  ;;  %v13497_v46 = vld [vmem:[#allocation89_spill] sm:$0xff] }
 0x6ce   : > { %v7359_v9 = vpop.eup %7358  ;;  %7372 = vrcp.f32 %v2228_v12  ;;  %4374 = vadd.xlane.f32.xlu0 %v11136_v61  ;;  %v4418_v42 = vpack.c.bf16 %v11290_v63, %v11126_v47  ;;  %v11299_v20 = vadd.f32 %v11290_v63, %v11287_v15  ;;  %v13470_v61 = vpack.c.bf16 %v11178_v14, %v11033_v27  ;;  %v13473_v14 = vld [vmem:[#allocation212_spill] sm:$0xff]  ;;  %v13529_v47 = vld [vmem:[#allocation158_spill] sm:$0xff] }
 0x6cf   : > { %v2273_v36 = vpop.xlane.xlu0 %2272  ;;  %v11302_v59 = vmul.f32 %v7359_v9, %v13469_v28 }
 0x6d0   : > { %v7361_v51 = vpop.eup %7360  ;;  %7374 = vrcp.f32 %v2273_v36  ;;  %4335 = vadd.xlane.f32.xlu1 %v11129_v29 }
 0x6d1   : > { %v7363_v54 = vpop.eup %7362  ;;  %v4421_v49 = vpack.c.bf16 %v7361_v51, %v11140_v60  ;;  %4576 = vmatmul.mubr.bf16.gmra.mrb[228].mxu0 %v13470_v61  ;;  %v2234_v56 = vpop.xlane.xlu1 %2233  ;;  %v13472_v60 = vld [vmem:[#allocation199_spill] sm:$0xff] }
 0x6d2   : > { %v7365_v22 = vpop.eup %7364  ;;  %7376 = vrcp.f32 %v2234_v56  ;;  %4583 = vmatprep.mubr.bf16.mxu0 %v13471_v44  ;;  %4380 = vadd.xlane.f32.xlu0 %v11118_v31  ;;  %v4422_v3 = vpack.c.bf16 %v7363_v54, %v11147_v55  ;;  %v11314_v41 = vadd.f32 %v7363_v54, %v7361_v51  ;;  %v13474_v31 = vld [vmem:[#allocation201_spill] sm:$0xff]  ;;  %v13475_v54 = vld [vmem:[#allocation214_spill] sm:$0xff]  ;;  %v13477_v44 = vld [vmem:[#allocation203_spill] sm:$0xff] }
 0x6d3   : > { %v7367_v29 = vpop.eup %7366  ;;  %v2279_v12 = vpop.xlane.xlu0 %2278  ;;  %v11317_v9 = vmul.f32 %v7365_v22, %v13472_v60  ;;  %v13479_v60 = vld [vmem:[#allocation216_spill] sm:$0xff] }
 0x6d4   : > { %v7369_v27 = vpop.eup %7368  ;;  %4623 = vmatprep.mubr.bf16.mxu1 %v4422_v3  ;;  %7378 = vrcp.f32 %v2279_v12  ;;  %4341 = vadd.xlane.f32.xlu1 %v11151_v13  ;;  %v11321_v36 = vmul.f32 %v7367_v29, %v13473_v14  ;;  %v13478_v29 = vld [vmem:[#allocation114_spill] sm:$0xff] }
 0x6d5   : > { %4624 = vmatmul.mubr.bf16.gmra.mrb[4].mxu1 %v4421_v49  ;;  %v2240_v30 = vpop.xlane.xlu1 %2239  ;;  %v11326_v17 = vmul.f32 %v7369_v27, %v13474_v31  ;;  %v13476_v49 = vpack.c.bf16 %v11205_v18, %v11051_v7  ;;  %v13480_v14 = vld [vmem:[#allocation206_spill] sm:$0xff] }
 0x6d6   : > { %v7371_v28 = vpop.eup %7370  ;;  %7380 = vrcp.f32 %v2240_v30  ;;  %4386 = vadd.xlane.f32.xlu0 %v11164_v35 }
 0x6d7   : > { %v2285_v51 = vpop.xlane.xlu0 %2284  ;;  %v11330_v61 = vmul.f32 %v7371_v28, %v13475_v54  ;;  %v13482_v28 = vld [vmem:[#allocation144_spill] sm:$0xff] }
 0x6d8   : > { %v7373_v56 = vpop.eup %7372  ;;  %7382 = vrcp.f32 %v2285_v51  ;;  %4347 = vadd.xlane.f32.xlu1 %v11173_v43 }
 0x6d9   : > { %4584 = vmatmul.mubr.bf16.gmra.mrb[232].mxu0 %v13476_v49  ;;  %v2246_v22 = vpop.xlane.xlu1 %2245  ;;  %v11339_v3 = vmul.f32 %v7373_v56, %v13477_v44  ;;  %v13483_v56 = vld [vmem:[#allocation55_spill] sm:$0xff]  ;;  %v13484_v44 = vld [vmem:[#allocation118_spill] sm:$0xff] }
 0x6da   : > { %v7375_v35 = vpop.eup %7374  ;;  %7384 = vrcp.f32 %v2246_v22  ;;  %4591 = vmatprep.mubr.bf16.mxu0 %v4414_v33  ;;  %1128 = vadd.xlane.f32.xlu0 %v13478_v29  ;;  %v13485_v29 = vld [vmem:[#allocation149_spill] sm:$0xff] }
 0x6db   : > { %v2291_v12 = vpop.xlane.xlu0 %2290  ;;  %v11348_v27 = vmul.f32 %v7375_v35, %v13479_v60 }
 0x6dc   : > { %v7377_v7 = vpop.eup %7376  ;;  %7386 = vrcp.f32 %v2291_v12  ;;  %4353 = vadd.xlane.f32.xlu1 %v11200_v24  ;;  %v13486_v12 = vld [vmem:[#allocation208_spill] sm:$0xff] }
 0x6dd   : > { %v2252_v18 = vpop.xlane.xlu1 %2251  ;;  %v11352_v30 = vmul.f32 %v7377_v7, %v13480_v14 }
 0x6de   : > { %v7379_v31 = vpop.eup %7378  ;;  %7388 = vrcp.f32 %v2252_v18  ;;  %1134 = vadd.xlane.f32.xlu0 %v13481_v58  ;;  %v13488_v18 = vld [vmem:[#allocation25_spill] sm:$0xff] }
 0x6df   : > { %v11355_v23 = vpop.xlane.xlu0 %2296  ;;  %v11360_v51 = vmul.f32 %v7379_v31, %v13482_v28  ;;  %v13490_v28 = vld [vmem:[#allocation145_spill] sm:$0xff] }
 0x6e0   : > { %v7381_v54 = vpop.eup %7380  ;;  %4359 = vadd.xlane.f32.xlu1 %v11221_v53 }
 0x6e1   : > { %4592 = vmatmul.mubr.bf16.gmra.mrb[236].mxu0 %v4413_v16  ;;  %v2258_v24 = vpop.xlane.xlu1 %2257  ;;  %v11367_v49 = vmul.f32 %v7381_v54, %v13483_v56 }
 0x6e2   : > { %v7383_v22 = vpop.eup %7382  ;;  %7390 = vrcp.f32 %v2258_v24  ;;  %4599 = vmatprep.mubr.bf16.mxu0 %v4416_v21  ;;  %1140 = vadd.xlane.f32.xlu0 %v13484_v44  ;;  %v13491_v24 = vld [vmem:[#allocation122_spill] sm:$0xff]  ;;  %v13526_v21 = vld [vmem:[#allocation157_spill] sm:$0xff] }
 0x6e3   : > { %v11373_v35 = vpop.xlane.xlu0 %2302  ;;  %v11378_v10 = vmul.f32 %v7383_v22, %v13485_v29  ;;  %v13493_v29 = vld [vmem:[#allocation124_spill] sm:$0xff] }
 0x6e4   : > { %v7385_v8 = vpop.eup %7384  ;;  %4365 = vadd.xlane.f32.xlu1 %v11248_v57  ;;  %v13489_v57 = vpack.c.bf16 %v11253_v39, %v11084_v2  ;;  %v13492_v39 = vld [vmem:[#allocation211_spill] sm:$0xff] }
 0x6e5   : > { %v2264_v16 = vpop.xlane.xlu1 %2263  ;;  %v11382_v60 = vmul.f32 %v7385_v8, %v13486_v12  ;;  %v13495_v12 = vld [vmem:[#allocation15_spill] sm:$0xff] }
 0x6e6   : > { %v7387_v7 = vpop.eup %7386  ;;  %7392 = vrcp.f32 %v2264_v16  ;;  %1146 = vadd.xlane.f32.xlu0 %v13487_v11 }
 0x6e7   : > { %v11385_v48 = vpop.xlane.xlu0 %3254  ;;  %v11390_v14 = vmul.f32 %v7387_v7, %v13488_v18 }
 0x6e8   : > { %v7389_v31 = vpop.eup %7388  ;;  %4371 = vadd.xlane.f32.xlu1 %v11267_v6 }
 0x6e9   : > { %4600 = vmatmul.mubr.bf16.gmra.mrb[240].mxu0 %v13489_v57  ;;  %v2270_v58 = vpop.xlane.xlu1 %2269  ;;  %v11397_v54 = vmul.f32 %v7389_v31, %v13490_v28  ;;  %v13496_v31 = vld [vmem:[#allocation215_spill] sm:$0xff] }
 0x6ea   : > { %7394 = vrcp.f32 %v2270_v58  ;;  %4607 = vmatprep.mubr.bf16.mxu0 %v4418_v42  ;;  %1152 = vadd.xlane.f32.xlu0 %v13491_v24  ;;  %v13498_v28 = vld [vmem:[#allocation115_spill] sm:$0xff] }
 0x6eb   : > { %v11403_v56 = vpop.xlane.xlu0 %3260 }
 0x6ec   : > { %v7391_v22 = vpop.eup %7390  ;;  %4377 = vadd.xlane.f32.xlu1 %v11299_v20  ;;  %v13494_v20 = vld [vmem:[#allocation213_spill] sm:$0xff] }
 0x6ed   : > { %v2276_v2 = vpop.xlane.xlu1 %2275  ;;  %v11409_v44 = vmul.f32 %v7391_v22, %v13492_v39  ;;  %v13499_v22 = vld [vmem:[#allocation143_spill] sm:$0xff] }
 0x6ee   : > { %7396 = vrcp.f32 %v2276_v2  ;;  %1158 = vadd.xlane.f32.xlu0 %v13493_v29 }
 0x6ef   : > { %v11412_v8 = vpop.xlane.xlu0 %3266 }
 0x6f0   : > { %v7393_v63 = vpop.eup %7392  ;;  %4383 = vadd.xlane.f32.xlu1 %v11282_v19 }
 0x6f1   : > { %4608 = vmatmul.mubr.bf16.gmra.mrb[244].mxu0 %v4417_v52  ;;  %v2282_v42 = vpop.xlane.xlu1 %2281  ;;  %v11421_v16 = vmul.f32 %v7393_v63, %v13494_v20 }
 0x6f2   : > { %7398 = vrcp.f32 %v2282_v42  ;;  %1164 = vadd.xlane.f32.xlu0 %v13495_v12  ;;  %v13501_v42 = vld [vmem:[#allocation117_spill] sm:$0xff] }
 0x6f3   : > { %v11424_v7 = vpop.xlane.xlu0 %3272  ;;  %v13502_v12 = vld [vmem:[#allocation217_spill] sm:$0xff] }
 0x6f4   : > { %v7395_v18 = vpop.eup %7394  ;;  %4389 = vadd.xlane.f32.xlu1 %v11314_v41  ;;  %v13500_v41 = vld [vmem:[#allocation90_spill] sm:$0xff] }
 0x6f5   : > { %v2288_v19 = vpop.xlane.xlu1 %2287  ;;  %v11430_v57 = vmul.f32 %v7395_v18, %v13496_v31 }
 0x6f6   : > { %7400 = vrcp.f32 %v2288_v19  ;;  %1170 = vadd.xlane.f32.xlu0 %v13497_v46  ;;  %v13503_v19 = vld [vmem:[#allocation16_spill] sm:$0xff] }
 0x6f7   : > { %v11433_v15 = vpop.xlane.xlu0 %3278 }
 0x6f8   : > { %v7397_v58 = vpop.eup %7396  ;;  %1131 = vadd.xlane.f32.xlu1 %v13498_v28  ;;  %v13504_v28 = vld [vmem:[#allocation119_spill] sm:$0xff] }
 0x6f9   : > { %v2294_v24 = vpop.xlane.xlu1 %2293  ;;  %v11439_v2 = vmul.f32 %v7397_v58, %v13499_v22 }
 0x6fa   : > { %7402 = vrcp.f32 %v2294_v24  ;;  %1176 = vadd.xlane.f32.xlu0 %v13500_v41  ;;  %v13505_v24 = vld [vmem:[#allocation85_spill] sm:$0xff] }
 0x6fb   : > { %v11442_v39 = vpop.xlane.xlu0 %3284  ;;  %7404 = vrcp.f32 %v11355_v23  ;;  %v13506_v41 = vld [vmem:[#allocation93_spill] sm:$0xff] }
 0x6fc   : > { %v7399_v63 = vpop.eup %7398  ;;  %1137 = vadd.xlane.f32.xlu1 %v13501_v42  ;;  %v13510_v42 = vld [vmem:[#allocation123_spill] sm:$0xff] }
 0x6fd   : > { %v2300_v20 = vpop.xlane.xlu1 %2299  ;;  %v11449_v18 = vmul.f32 %v7399_v63, %v13502_v12  ;;  %v13507_v12 = vld [vmem:[#allocation121_spill] sm:$0xff] }
 0x6fe   : > { %7406 = vrcp.f32 %v2300_v20  ;;  %1182 = vadd.xlane.f32.xlu0 %v13503_v19  ;;  %v13508_v19 = vld [vmem:[#allocation147_spill] sm:$0xff] }
 0x6ff   : > { %v11452_v31 = vpop.xlane.xlu0 %3290  ;;  %7408 = vrcp.f32 %v11373_v35 }
 0x700   : > { %v7401_v58 = vpop.eup %7400  ;;  %1143 = vadd.xlane.f32.xlu1 %v13504_v28 }
 0x701   : > { %v2306_v23 = vpop.xlane.xlu1 %2305  ;;  %v11459_v22 = vmul.f32 %v7401_v58, %v13505_v24  ;;  %v13509_v58 = vld [vmem:[#allocation94_spill] sm:$0xff] }
 0x702   : > { %7410 = vrcp.f32 %v2306_v23  ;;  %1188 = vadd.xlane.f32.xlu0 %v13506_v41 }
 0x703   : > { %v11462_v63 = vpop.xlane.xlu0 %3296  ;;  %7412 = vrcp.f32 %v11385_v48 }
 0x704   : > { %v7403_v20 = vpop.eup %7402  ;;  %1149 = vadd.xlane.f32.xlu1 %v13507_v12  ;;  %v13511_v12 = vld [vmem:[#allocation31_spill] sm:$0xff] }
 0x705   : > { %v3258_v35 = vpop.xlane.xlu1 %3257  ;;  %v11469_v28 = vmul.f32 %v7403_v20, %v13508_v19  ;;  %v7405_v29 = vpop.eup %7404  ;;  %v13512_v20 = vld [vmem:[#allocation48_spill] sm:$0xff] }
 0x706   : > { %7414 = vrcp.f32 %v3258_v35  ;;  %1194 = vadd.xlane.f32.xlu0 %v13509_v58  ;;  %v11479_v11 = vmul.f32 %v7405_v29, %v13511_v12  ;;  %v13513_v58 = vld [vmem:[#allocation96_spill] sm:$0xff]  ;;  %v13515_v29 = vld [vmem:[#allocation129_spill] sm:$0xff] }
 0x707   : > { %v11472_v23 = vpop.xlane.xlu0 %3302  ;;  %7416 = vrcp.f32 %v11403_v56  ;;  %v13514_v56 = vld [vmem:[#allocation125_spill] sm:$0xff] }
 0x708   : > { %v7407_v41 = vpop.eup %7406  ;;  %1155 = vadd.xlane.f32.xlu1 %v13510_v42 }
 0x709   : > { %v3264_v48 = vpop.xlane.xlu1 %3263  ;;  %v11482_v19 = vmul.f32 %v7407_v41, %v13512_v20  ;;  %v7409_v35 = vpop.eup %7408  ;;  %v13516_v41 = vld [vmem:[#allocation66_spill] sm:$0xff] }
 0x70a   : > { %7418 = vrcp.f32 %v3264_v48  ;;  %1200 = vadd.xlane.f32.xlu0 %v13513_v58  ;;  %v11492_v12 = vmul.f32 %v7409_v35, %v13515_v29  ;;  %v13517_v58 = vld [vmem:[#allocation98_spill] sm:$0xff] }
 0x70b   : > { %v11485_v6 = vpop.xlane.xlu0 %3308  ;;  %7420 = vrcp.f32 %v11412_v8  ;;  %v13518_v8 = vld [vmem:[#allocation88_spill] sm:$0xff]  ;;  %v13519_v35 = vld [vmem:[#allocation154_spill] sm:$0xff] }
 0x70c   : > { %v7411_v43 = vpop.eup %7410  ;;  %1161 = vadd.xlane.f32.xlu1 %v13514_v56 }
 0x70d   : > { %v3270_v42 = vpop.xlane.xlu1 %3269  ;;  %v11495_v20 = vmul.f32 %v7411_v43, %v13516_v41  ;;  %v7413_v48 = vpop.eup %7412  ;;  %v13520_v43 = vld [vmem:[#allocation141_spill] sm:$0xff] }
 0x70e   : > { %7422 = vrcp.f32 %v3270_v42  ;;  %1206 = vadd.xlane.f32.xlu0 %v13517_v58  ;;  %v11505_v29 = vmul.f32 %v7413_v48, %v13519_v35  ;;  %v13521_v58 = vld [vmem:[#allocation100_spill] sm:$0xff]  ;;  %v13523_v48 = vld [vmem:[#allocation142_spill] sm:$0xff] }
 0x70f   : > { %v11498_v13 = vpop.xlane.xlu0 %3314  ;;  %7424 = vrcp.f32 %v11424_v7  ;;  %v13522_v7 = vld [vmem:[#allocation18_spill] sm:$0xff] }
 0x710   : > { %v7415_v24 = vpop.eup %7414  ;;  %1167 = vadd.xlane.f32.xlu1 %v13518_v8 }
 0x711   : > { %v3276_v56 = vpop.xlane.xlu1 %3275  ;;  %v11508_v41 = vmul.f32 %v7415_v24, %v13520_v43  ;;  %v7417_v42 = vpop.eup %7416  ;;  %v13524_v24 = vld [vmem:[#allocation151_spill] sm:$0xff] }
 0x712   : > { %7426 = vrcp.f32 %v3276_v56  ;;  %1212 = vadd.xlane.f32.xlu0 %v13521_v58  ;;  %v11518_v35 = vmul.f32 %v7417_v42, %v13523_v48 }
 0x713   : > { %v11511_v46 = vpop.xlane.xlu0 %3320  ;;  %7428 = vrcp.f32 %v11433_v15  ;;  %v13525_v15 = vld [vmem:[#allocation91_spill] sm:$0xff] }
 0x714   : > { %v7419_v52 = vpop.eup %7418  ;;  %1173 = vadd.xlane.f32.xlu1 %v13522_v7 }
 0x715   : > { %v3282_v8 = vpop.xlane.xlu1 %3281  ;;  %v11521_v43 = vmul.f32 %v7419_v52, %v13524_v24  ;;  %v7421_v56 = vpop.eup %7420 }
 0x716   : > { %7430 = vrcp.f32 %v3282_v8  ;;  %v11530_v33 = vmul.f32 %v7421_v56, %v13526_v21  ;;  %v13530_v21 = vld [vmem:[#allocation71_spill] sm:$0xff] }
 0x717   : > { %v11523_v58 = vpop.xlane.xlu0 %3326  ;;  %7432 = vrcp.f32 %v11442_v39  ;;  %v13528_v39 = vld [vmem:[#allocation92_spill] sm:$0xff] }
 0x718   : > { %v7423_v53 = vpop.eup %7422  ;;  %1179 = vadd.xlane.f32.xlu1 %v13525_v15  ;;  %13527 = vst [vmem:[#allocation57_spill] sm:$0xff] %v11530_v33 }
 0x719   : > { %v3288_v7 = vpop.xlane.xlu1 %3287  ;;  %v11533_v42 = vmul.f32 %v7423_v53, %v10865_v45  ;;  %v7425_v52 = vpop.eup %7424 }
 0x71a   : > { %7434 = vrcp.f32 %v3288_v7  ;;  %v11542_v55 = vmul.f32 %v7425_v52, %v13529_v47 }
 0x71b   : > { %v11535_v8 = vpop.xlane.xlu0 %3332  ;;  %7436 = vrcp.f32 %v11452_v31  ;;  %v13531_v31 = vld [vmem:[#allocation27_spill] sm:$0xff] }
 0x71c   : > { %v7427_v24 = vpop.eup %7426  ;;  %1185 = vadd.xlane.f32.xlu1 %v13528_v39 }
 0x71d   : > { %v3294_v15 = vpop.xlane.xlu1 %3293  ;;  %v11545_v56 = vmul.f32 %v7427_v24, %v13530_v21  ;;  %v7429_v45 = vpop.eup %7428 }
 0x71e   : > { %7438 = vrcp.f32 %v3294_v15  ;;  %v11554_v33 = vmul.f32 %v7429_v45, %v10909_v5 }
 0x71f   : > { %v11547_v53 = vpop.xlane.xlu0 %3338  ;;  %7440 = vrcp.f32 %v11462_v63  ;;  %v13533_v63 = vld [vmem:[#allocation95_spill] sm:$0xff] }
 0x720   : > { %v7431_v48 = vpop.eup %7430  ;;  %1191 = vadd.xlane.f32.xlu1 %v13531_v31  ;;  %13532 = vst [vmem:[#allocation69_spill] sm:$0xff] %v11554_v33  ;;  %v13538_v33 = vld [vmem:[#allocation99_spill] sm:$0xff] }
 0x721   : > { %v3300_v39 = vpop.xlane.xlu1 %3299  ;;  %v11557_v47 = vmul.f32 %v7431_v48, %v10915_v1  ;;  %v7433_v52 = vpop.eup %7432 }
 0x722   : > { %7442 = vrcp.f32 %v3300_v39  ;;  %v11566_v7 = vmul.f32 %v7433_v52, %v10927_v32  ;;  %v13535_v32 = vpack.i.bf16 %v11317_v9, %v11176_v26  ;;  %v13539_v26 = vpack.i.bf16 %v11352_v30, %v11224_v62 }
 0x723   : > { %v11559_v24 = vpop.xlane.xlu0 %3344  ;;  %7444 = vrcp.f32 %v11472_v23  ;;  %v13534_v23 = vld [vmem:[#allocation97_spill] sm:$0xff]  ;;  %v13543_v62 = vpack.i.bf16 %v11382_v60, %v11270_v37  ;;  %v13546_v37 = vpack.i.bf16 %v11409_v44, %v11302_v59  ;;  %v13550_v59 = vpack.i.bf16 %v11430_v57, %v11330_v61 }
 0x724   : > { %v7435_v21 = vpop.eup %7434  ;;  %1197 = vadd.xlane.f32.xlu1 %v13533_v63  ;;  %v13537_v63 = vld [vmem:[#allocation53_spill] sm:$0xff]  ;;  %v13554_v61 = vpack.i.bf16 %v11449_v18, %v11360_v51 }
 0x725   : > { %v3306_v31 = vpop.xlane.xlu1 %3305  ;;  %v11569_v5 = vmul.f32 %v7435_v21, %v10933_v0  ;;  %v7437_v1 = vpop.eup %7436  ;;  %v13536_v0 = vld [vmem:[#allocation72_spill] sm:$0xff] }
 0x726   : > { %7446 = vrcp.f32 %v3306_v31  ;;  %v11582_v21 = vmul.f32 %v7437_v1, %v13536_v0  ;;  %v13540_v1 = vld [vmem:[#allocation159_spill] sm:$0xff] }
 0x727   : > { %v11571_v48 = vpop.xlane.xlu0 %4296  ;;  %7448 = vrcp.f32 %v11485_v6  ;;  %v13542_v6 = vld [vmem:[#allocation101_spill] sm:$0xff] }
 0x728   : > { %v7439_v39 = vpop.eup %7438  ;;  %1203 = vadd.xlane.f32.xlu1 %v13534_v23  ;;  %6549 = vrot.lane.b32.xlu0 %v13535_v32, %s7842_s20  ;;  %v13541_v32 = vld [vmem:[#allocation164_spill] sm:$0xff] }
 0x729   : > { %v3312_v52 = vpop.xlane.xlu1 %3311  ;;  %v11585_v31 = vmul.f32 %v7439_v39, %v13537_v63  ;;  %v7441_v15 = vpop.eup %7440 }
 0x72a   : > { %7450 = vrcp.f32 %v3312_v52  ;;  %v11598_v39 = vmul.f32 %v7441_v15, %v13540_v1  ;;  %v13544_v15 = vld [vmem:[#allocation166_spill] sm:$0xff] }
 0x72b   : > { %v11587_v45 = vpop.xlane.xlu0 %4302  ;;  %7452 = vrcp.f32 %v11498_v13 }
 0x72c   : > { %v7443_v23 = vpop.eup %7442  ;;  %1209 = vadd.xlane.f32.xlu1 %v13538_v33  ;;  %6564 = vrot.lane.b32.xlu0 %v13539_v26, %s7842_s20  ;;  %v13545_v26 = vld [vmem:[#allocation172_spill] sm:$0xff] }
 0x72d   : > { %v3318_v9 = vpop.xlane.xlu1 %3317  ;;  %v11601_v52 = vmul.f32 %v7443_v23, %v13541_v32  ;;  %v7445_v0 = vpop.eup %7444 }
 0x72e   : > { %7454 = vrcp.f32 %v3318_v9  ;;  %v11614_v23 = vmul.f32 %v7445_v0, %v13544_v15  ;;  %v13547_v0 = vld [vmem:[#allocation173_spill] sm:$0xff] }
 0x72f   : > { %v11603_v63 = vpop.xlane.xlu0 %4308  ;;  %7456 = vrcp.f32 %v11511_v46 }
 0x730   : > { %v7447_v33 = vpop.eup %7446  ;;  %1215 = vadd.xlane.f32.xlu1 %v13542_v6  ;;  %6574 = vrot.lane.b32.xlu0 %v13543_v62, %s7842_s20 }
 0x731   : > { %v3324_v30 = vpop.xlane.xlu1 %3323  ;;  %v11617_v9 = vmul.f32 %v7447_v33, %v13545_v26  ;;  %v7449_v1 = vpop.eup %7448  ;;  %v13548_v33 = vld [vmem:[#allocation178_spill] sm:$0xff] }
 0x732   : > { %7458 = vrcp.f32 %v3324_v30  ;;  %v11629_v62 = vmul.f32 %v7449_v1, %v13547_v0  ;;  %v13551_v1 = vld [vmem:[#allocation179_spill] sm:$0xff] }
 0x733   : > { %v11619_v32 = vpop.xlane.xlu0 %4314  ;;  %7460 = vrcp.f32 %v11523_v58 }
 0x734   : > { %v7451_v6 = vpop.eup %7450  ;;  %6584 = vrot.lane.b32.xlu0 %v13546_v37, %s7842_s20 }
 0x735   : > { %v3330_v60 = vpop.xlane.xlu1 %3329  ;;  %v11632_v15 = vmul.f32 %v7451_v6, %v13548_v33  ;;  %v7453_v30 = vpop.eup %7452  ;;  %v13552_v6 = vld [vmem:[#allocation183_spill] sm:$0xff] }
 0x736   : > { %7462 = vrcp.f32 %v3330_v60  ;;  %v11644_v37 = vmul.f32 %v7453_v30, %v13551_v1 }
 0x737   : > { %v11634_v26 = vpop.xlane.xlu0 %4320  ;;  %7464 = vrcp.f32 %v11535_v8 }
 0x738   : > { %13549 = vst [vmem:[#allocation82_spill] sm:$0xff] %v11634_v26  ;;  %v7455_v58 = vpop.eup %7454  ;;  %6594 = vrot.lane.b32.xlu0 %v13550_v59, %s7842_s20 }
 0x739   : > { %v3336_v44 = vpop.xlane.xlu1 %3335  ;;  %v11647_v0 = vmul.f32 %v7455_v58, %v13552_v6  ;;  %v7457_v60 = vpop.eup %7456  ;;  %v13555_v58 = vld [vmem:[#allocation185_spill] sm:$0xff] }
 0x73a   : > { %7466 = vrcp.f32 %v3336_v44  ;;  %v11659_v59 = vmul.f32 %v7457_v60, %v13555_v58  ;;  %v13556_v44 = vld [vmem:[#allocation189_spill] sm:$0xff]  ;;  %v13557_v60 = vpack.i.bf16 %v11469_v28, %v11390_v14  ;;  %v13560_v58 = vld [vmem:[#allocation155_spill] sm:$0xff] }
 0x73b   : > { %v11649_v33 = vpop.xlane.xlu0 %4326  ;;  %7468 = vrcp.f32 %v11547_v53 }
 0x73c   : > { %13553 = vst [vmem:[#allocation86_spill] sm:$0xff] %v11649_v33  ;;  %v7459_v8 = vpop.eup %7458  ;;  %v6326_v13 = vpop.f32.mrb[192].mxu0  ;;  %6604 = vrot.lane.b32.xlu0 %v13554_v61, %s7842_s20 }
 0x73d   : > { %v3342_v57 = vpop.xlane.xlu1 %3341  ;;  %v6327_v30 = vpop.f32.mrb[193].mxu0  ;;  %v11662_v1 = vmul.f32 %v7459_v8, %v13556_v44 }
 0x73e   : > { %v7461_v6 = vpop.eup %7460  ;;  %7470 = vrcp.f32 %v3342_v57  ;;  %v11664_v46 = vadd.f32 %v6327_v30, %v6326_v13  ;;  %v6329_v33 = vpop.f32.mrb[194].mxu0  ;;  %v13558_v13 = vpack.i.bf16 %v11326_v17, %v11182_v40  ;;  %v13559_v57 = vld [vmem:[#allocation191_spill] sm:$0xff]  ;;  %v13562_v40 = vpack.i.bf16 %v11495_v20, %v11492_v12 }
 0x73f   : > { %v6330_v53 = vpop.f32.mrb[195].mxu0  ;;  %v11666_v26 = vpop.xlane.xlu0 %4332  ;;  %7472 = vrcp.f32 %v11559_v24  ;;  %v11680_v30 = vmul.f32 %v7461_v6, %v13559_v57 }
 0x740   : > { %v7463_v18 = vpop.eup %7462  ;;  %v6331_v61 = vadd.f32 %v6330_v53, %v6329_v33  ;;  %6614 = vrot.lane.b32.xlu0 %v13557_v60, %s7842_s20  ;;  %v13563_v53 = vpack.i.bf16 %v11339_v3, %v11203_v34  ;;  %v13566_v34 = vpack.i.bf16 %v11521_v43, %v11518_v35 }
 0x741   : > { %v3348_v8 = vpop.xlane.xlu1 %3347  ;;  %6554 = vrot.lane.b32.xlu1 %v13558_v13, %s7842_s20  ;;  %v11683_v44 = vmul.f32 %v7463_v18, %v13560_v58  ;;  %v7465_v51 = vpop.eup %7464  ;;  %v13564_v18 = vld [vmem:[#allocation156_spill] sm:$0xff] }
 0x742   : > { %7474 = vrcp.f32 %v3348_v8  ;;  %v11699_v60 = vmul.f32 %v7465_v51, %v13564_v18  ;;  %v13565_v8 = vld [vmem:[#allocation194_spill] sm:$0xff]  ;;  %v13567_v51 = vpack.i.bf16 %v11367_v49, %v11251_v25  ;;  %v13570_v25 = vpack.i.bf16 %v11545_v56, %v11542_v55 }
 0x743   : > { %v11685_v24 = vpop.xlane.xlu0 %4338  ;;  %7476 = vrcp.f32 %v11571_v48 }
 0x744   : > { %13561 = vst [vmem:[#allocation59_spill] sm:$0xff] %v11685_v24  ;;  %v7467_v28 = vpop.eup %7466  ;;  %v6332_v33 = vpop.f32.mrb[196].mxu0  ;;  %6624 = vrot.lane.b32.xlu0 %v13562_v40, %s7842_s20 }
 0x745   : > { %v4300_v17 = vpop.xlane.xlu1 %4299  ;;  %v6333_v6 = vpop.f32.mrb[197].mxu0  ;;  %6559 = vrot.lane.b32.xlu1 %v13563_v53, %s7842_s20  ;;  %v11702_v13 = vmul.f32 %v7467_v28, %v13565_v8  ;;  %v13568_v28 = vld [vmem:[#allocation195_spill] sm:$0xff] }
 0x746   : > { %v7469_v57 = vpop.eup %7468  ;;  %7478 = vrcp.f32 %v4300_v17  ;;  %v6334_v58 = vadd.f32 %v6333_v6, %v6332_v33  ;;  %v6335_v12 = vpop.f32.mrb[198].mxu0  ;;  %v13569_v17 = vld [vmem:[#allocation58_spill] sm:$0xff] }
 0x747   : > { %v6336_v20 = vpop.f32.mrb[199].mxu0  ;;  %v11704_v40 = vpop.xlane.xlu0 %4344  ;;  %v6693_v48 = vpack.i.bf16 %v11702_v13, %v11699_v60  ;;  %7480 = vrcp.f32 %v11587_v45  ;;  %v11718_v33 = vmul.f32 %v7469_v57, %v13568_v28 }
 0x748   : > { %v7471_v14 = vpop.eup %7470  ;;  %v6337_v24 = vadd.f32 %v6336_v20, %v6335_v12  ;;  %6634 = vrot.lane.b32.xlu0 %v13566_v34, %s7841_s16 }
 0x749   : > { %v4306_v3 = vpop.xlane.xlu1 %4305  ;;  %6569 = vrot.lane.b32.xlu1 %v13567_v51, %s7842_s20  ;;  %v11721_v6 = vmul.f32 %v7471_v14, %v13569_v17  ;;  %v7473_v53 = vpop.eup %7472  ;;  %v13571_v14 = vpack.i.bf16 %v11397_v54, %v11285_v50  ;;  %v13572_v17 = vpack.i.bf16 %v11569_v5, %v11566_v7  ;;  %v13573_v50 = vpack.i.bf16 %v11421_v16, %v11321_v36 }
 0x74a   : > { %7482 = vrcp.f32 %v4306_v3  ;;  %v3651_v57 = vmul.f32 %v7473_v53, %v11236_v4  ;;  %v13575_v16 = vpack.i.bf16 %v11439_v2, %v11348_v27  ;;  %v13577_v2 = vpack.i.bf16 %v11459_v22, %v11378_v10 }
 0x74b   : > { %v11723_v18 = vpop.xlane.xlu0 %4350  ;;  %v6698_v35 = vpack.i.bf16 %v11721_v6, %v11718_v33  ;;  %7484 = vrcp.f32 %v11603_v63  ;;  %v13579_v10 = vpack.i.bf16 %v11482_v19, %v11479_v11  ;;  %v13581_v19 = vld [vmem:[#allocation57_spill] sm:$0xff] }
 0x74c   : > { %v7475_v43 = vpop.eup %7474  ;;  %v6338_v45 = vpop.f32.mrb[200].mxu0  ;;  %6644 = vrot.lane.b32.xlu0 %v13570_v25, %s7841_s16 }
 0x74d   : > { %v4312_v49 = vpop.xlane.xlu1 %4311  ;;  %v6339_v8 = vpop.f32.mrb[201].mxu0  ;;  %6579 = vrot.lane.b32.xlu1 %v13571_v14, %s7842_s20  ;;  %v3653_v12 = vmul.f32 %v7475_v43, %v11255_v38 }
 0x74e   : > { %7486 = vrcp.f32 %v4312_v49  ;;  %v6340_v20 = vadd.f32 %v6339_v8, %v6338_v45  ;;  %v6341_v34 = vpop.f32.mrb[202].mxu0  ;;  %v7477_v3 = vpop.eup %7476 }
 0x74f   : > { %v6342_v51 = vpop.f32.mrb[203].mxu0  ;;  %v11738_v55 = vpop.xlane.xlu0 %4356  ;;  %v6703_v56 = vpack.i.bf16 %v3653_v12, %v3651_v57  ;;  %7488 = vrcp.f32 %v11619_v32  ;;  %v11746_v4 = vmul.f32 %v7477_v3, %v11664_v46  ;;  %v13574_v46 = vpack.i.bf16 %v11601_v52, %v11598_v39 }
 0x750   : > { %v7479_v63 = vpop.eup %7478  ;;  %v6343_v28 = vadd.f32 %v6342_v51, %v6341_v34  ;;  %6654 = vrot.lane.b32.xlu0 %v13572_v17, %s7841_s16  ;;  %v13576_v39 = vpack.i.bf16 %v11632_v15, %v11629_v62  ;;  %v13578_v62 = vpack.i.bf16 %v11662_v1, %v11659_v59  ;;  %v13580_v59 = vpack.i.bf16 %v11508_v41, %v11505_v29  ;;  %v13583_v29 = vld [vmem:[#allocation69_spill] sm:$0xff] }
 0x751   : > { %v4318_v38 = vpop.xlane.xlu1 %4317  ;;  %6589 = vrot.lane.b32.xlu1 %v13573_v50, %s7842_s20  ;;  %v11752_v54 = vmul.f32 %v7479_v63, %v6331_v61  ;;  %v7481_v53 = vpop.eup %7480  ;;  %v13584_v41 = vpack.i.bf16 %v11557_v47, %v13583_v29  ;;  %v13586_v47 = vpack.i.bf16 %v11617_v9, %v11614_v23  ;;  %v13590_v23 = vld [vmem:[#allocation106_spill] sm:$0xff] }
 0x752   : > { %7490 = vrcp.f32 %v4318_v38  ;;  %v4637_v45 = vmul.f32 %v7481_v53, %v6334_v58 }
 0x753   : > { %v11754_v43 = vpop.xlane.xlu0 %4362  ;;  %v6708_v7 = vpack.i.bf16 %v11752_v54, %v11746_v4 }
 0x754   : > { %v7483_v5 = vpop.eup %7482  ;;  %v6344_v32 = vpop.f32.mrb[204].mxu0  ;;  %6664 = vrot.lane.b32.xlu0 %v13574_v46, %s7841_s16 }
 0x755   : > { %v6345_v25 = vpop.f32.mrb[205].mxu0  ;;  %v4324_v36 = vpop.xlane.xlu1 %4323  ;;  %6599 = vrot.lane.b32.xlu1 %v13575_v16, %s7842_s20  ;;  %v4639_v61 = vmul.f32 %v7483_v5, %v6337_v24  ;;  %v13582_v5 = vpack.i.bf16 %v11533_v42, %v13581_v19  ;;  %v13585_v42 = vpack.i.bf16 %v11585_v31, %v11582_v21  ;;  %v13587_v16 = vld [vmem:[#allocation104_spill] sm:$0xff]  ;;  %v13588_v21 = vpack.i.bf16 %v11647_v0, %v11644_v37 }
 0x756   : > { %v6346_v49 = vadd.f32 %v6345_v25, %v6344_v32  ;;  %v6347_v8 = vpop.f32.mrb[206].mxu0  ;;  %v7485_v14 = vpop.eup %7484  ;;  %v13592_v37 = vld [vmem:[#allocation108_spill] sm:$0xff] }
 0x757   : > { %v6348_v57 = vpop.f32.mrb[207].mxu0  ;;  %v11766_v12 = vpop.xlane.xlu0 %4368  ;;  %v6713_v34 = vpack.i.bf16 %v4639_v61, %v4637_v45  ;;  %v11772_v52 = vmul.f32 %v7485_v14, %v6340_v20 }
 0x758   : > { %v7487_v3 = vpop.eup %7486  ;;  %v6349_v51 = vadd.f32 %v6348_v57, %v6347_v8  ;;  %6674 = vrot.lane.b32.xlu0 %v13576_v39, %s7841_s16  ;;  %v13589_v8 = vld [vmem:[#allocation82_spill] sm:$0xff] }
 0x759   : > { %v11774_v58 = vmul.f32 %v7487_v3, %v6343_v28  ;;  %v4330_v27 = vpop.xlane.xlu1 %4329  ;;  %6609 = vrot.lane.b32.xlu1 %v13577_v2, %s7842_s20  ;;  %v7489_v24 = vpop.eup %7488 }
 0x75a   : > { %v4645_v15 = vmul.f32 %v7489_v24, %v6346_v49 }
 0x75b   : > { %v6718_v63 = vpack.i.bf16 %v11774_v58, %v11772_v52  ;;  %v11782_v17 = vpop.xlane.xlu0 %4374 }
 0x75c   : > { %v7491_v38 = vpop.eup %7490  ;;  %6684 = vrot.lane.b32.xlu0 %v13578_v62, %s7841_s16 }
 0x75d   : > { %v4647_v20 = vmul.f32 %v7491_v38, %v6349_v51  ;;  %v11788_v28 = vpop.xlane.xlu1 %4335  ;;  %6619 = vrot.lane.b32.xlu1 %v13579_v10, %s7842_s20  ;;  %v13593_v38 = vld [vmem:[#allocation86_spill] sm:$0xff] }
 0x75f   : > { %v6723_v22 = vpack.i.bf16 %v4647_v20, %v4645_v15  ;;  %v11794_v50 = vpop.xlane.xlu0 %4380  ;;  %v13594_v20 = vld [vmem:[#allocation110_spill] sm:$0xff] }
 0x760   : > { %6694 = vrot.lane.b32.xlu0 %v6693_v48, %s7841_s16 }
 0x761   : > { %v11800_v53 = vpop.xlane.xlu1 %4341  ;;  %6629 = vrot.lane.b32.xlu1 %v13580_v59, %s7841_s16 }
 0x763   : > { %v11806_v1 = vpop.xlane.xlu0 %4386 }
 0x764   : > { %6704 = vrot.lane.b32.xlu0 %v6703_v56, %s7841_s16 }
 0x765   : > { %v11809_v11 = vpop.xlane.xlu1 %4347  ;;  %6639 = vrot.lane.b32.xlu1 %v13582_v5, %s7841_s16 }
 0x767   : > { %v1129_v60 = vpop.xlane.xlu0 %1128 }
 0x768   : > { %7492 = vrcp.f32 %v1129_v60  ;;  %6714 = vrot.lane.b32.xlu0 %v6713_v34, %s7840_s18  ;;  %v13591_v34 = vpack.i.bf16 %v11683_v44, %v11680_v30  ;;  %v13595_v60 = vld [vmem:[#allocation112_spill] sm:$0xff] }
 0x769   : > { %v11816_v13 = vpop.xlane.xlu1 %4353  ;;  %6649 = vrot.lane.b32.xlu1 %v13584_v41, %s7841_s16 }
 0x76b   : > { %v1135_v48 = vpop.xlane.xlu0 %1134 }
 0x76c   : > { %7494 = vrcp.f32 %v1135_v48  ;;  %6724 = vrot.lane.b32.xlu0 %v6723_v22, %s7840_s18 }
 0x76d   : > { %v11823_v56 = vpop.xlane.xlu1 %4359  ;;  %6659 = vrot.lane.b32.xlu1 %v13585_v42, %s7841_s16 }
 0x76f   : > { %v1141_v32 = vpop.xlane.xlu0 %1140 }
 0x770   : > { %7496 = vrcp.f32 %v1141_v32 }
 0x771   : > { %v11829_v46 = vpop.xlane.xlu1 %4365  ;;  %6669 = vrot.lane.b32.xlu1 %v13586_v47, %s7841_s16 }
 0x772   : > { %v7493_v45 = vpop.eup %7492 }
 0x773   : > { %v1147_v25 = vpop.xlane.xlu0 %1146  ;;  %v11836_v61 = vmul.f32 %v7493_v45, %v13587_v16 }
 0x774   : > { %7498 = vrcp.f32 %v1147_v25  ;;  %v13596_v25 = vld [vmem:[#allocation17_spill] sm:$0xff] }
 0x775   : > { %v11838_v49 = vpop.xlane.xlu1 %4371  ;;  %6679 = vrot.lane.b32.xlu1 %v13588_v21, %s7841_s16  ;;  %7500 = vrcp.f32 %v13589_v8 }
 0x776   : > { %v7495_v31 = vpop.eup %7494  ;;  %7502 = vrcp.f32 %v4324_v36 }
 0x777   : > { %v1153_v14 = vpop.xlane.xlu0 %1152  ;;  %v11846_v9 = vmul.f32 %v7495_v31, %v13590_v23  ;;  %v13597_v23 = vld [vmem:[#allocation20_spill] sm:$0xff] }
 0x778   : > { %7504 = vrcp.f32 %v1153_v14 }
 0x779   : > { %v11848_v57 = vpop.xlane.xlu1 %4377  ;;  %6689 = vrot.lane.b32.xlu1 %v13591_v34, %s7841_s16 }
 0x77a   : > { %v7497_v3 = vpop.eup %7496 }
 0x77b   : > { %v1159_v51 = vpop.xlane.xlu0 %1158  ;;  %v11855_v0 = vmul.f32 %v7497_v3, %v13592_v37 }
 0x77c   : > { %v6350_v39 = vpop.f32.mrb[208].mxu0  ;;  %7506 = vrcp.f32 %v1159_v51  ;;  %v13598_v51 = vld [vmem:[#allocation59_spill] sm:$0xff] }
 0x77d   : > { %v6351_v36 = vpop.f32.mrb[209].mxu0  ;;  %v11857_v2 = vpop.xlane.xlu1 %4383  ;;  %6699 = vrot.lane.b32.xlu1 %v6698_v35, %s7841_s16  ;;  %7508 = vrcp.f32 %v13593_v38 }
 0x77e   : > { %v7499_v24 = vpop.eup %7498  ;;  %v6352_v30 = vadd.f32 %v6351_v36, %v6350_v39  ;;  %v6353_v44 = vpop.f32.mrb[210].mxu0  ;;  %7510 = vrcp.f32 %v4330_v27 }
 0x77f   : > { %v6354_v62 = vpop.f32.mrb[211].mxu0  ;;  %v1165_v15 = vpop.xlane.xlu0 %1164  ;;  %v11865_v10 = vmul.f32 %v7499_v24, %v13594_v20 }
 0x780   : > { %v7501_v22 = vpop.eup %7500  ;;  %v6355_v59 = vadd.f32 %v6354_v62, %v6353_v44  ;;  %7512 = vrcp.f32 %v1165_v15  ;;  %v13599_v15 = vld [vmem:[#allocation29_spill] sm:$0xff] }
 0x781   : > { %v7503_v19 = vpop.eup %7502  ;;  %v11867_v5 = vpop.xlane.xlu1 %4389  ;;  %6709 = vrot.lane.b32.xlu1 %v6708_v7, %s7840_s18  ;;  %v4649_v6 = vmul.f32 %v7501_v22, %v6352_v30 }
 0x782   : > { %v7505_v33 = vpop.eup %7504  ;;  %v4651_v35 = vmul.f32 %v7503_v19, %v6355_v59 }
 0x783   : > { %v1171_v27 = vpop.xlane.xlu0 %1170  ;;  %v11874_v29 = vmul.f32 %v7505_v33, %v13595_v60 }
 0x784   : > { %v6728_v41 = vpack.i.bf16 %v4651_v35, %v4649_v6  ;;  %v6356_v48 = vpop.f32.mrb[212].mxu0  ;;  %7514 = vrcp.f32 %v1171_v27  ;;  %v13600_v6 = vld [vmem:[#allocation22_spill] sm:$0xff]  ;;  %v13601_v27 = vld [vmem:[#allocation105_spill] sm:$0xff] }
 0x785   : > { %7516 = vrcp.f32 %v11666_v26  ;;  %v6357_v42 = vpop.f32.mrb[213].mxu0  ;;  %v1132_v32 = vpop.xlane.xlu1 %1131  ;;  %6719 = vrot.lane.b32.xlu1 %v6718_v63, %s7840_s18 }
 0x786   : > { %v7507_v4 = vpop.eup %7506  ;;  %v6358_v54 = vadd.f32 %v6357_v42, %v6356_v48  ;;  %7518 = vrcp.f32 %v1132_v32  ;;  %v6359_v7 = vpop.f32.mrb[214].mxu0  ;;  %v13603_v32 = vld [vmem:[#allocation33_spill] sm:$0xff] }
 0x787   : > { %7520 = vrcp.f32 %v11788_v28  ;;  %v6360_v47 = vpop.f32.mrb[215].mxu0  ;;  %v1177_v45 = vpop.xlane.xlu0 %1176  ;;  %v11883_v16 = vmul.f32 %v7507_v4, %v13596_v25 }
 0x788   : > { %v7509_v21 = vpop.eup %7508  ;;  %v6361_v26 = vadd.f32 %v6360_v47, %v6359_v7  ;;  %7522 = vrcp.f32 %v1177_v45 }
 0x789   : > { %v7511_v31 = vpop.eup %7510  ;;  %v1138_v8 = vpop.xlane.xlu1 %1137  ;;  %6729 = vrot.lane.b32.xlu1 %v6728_v41, %s7840_s18  ;;  %v4653_v58 = vmul.f32 %v7509_v21, %v6358_v54  ;;  %v13604_v21 = vld [vmem:[#allocation107_spill] sm:$0xff] }
 0x78a   : > { %v7513_v52 = vpop.eup %7512  ;;  %v4655_v63 = vmul.f32 %v7511_v31, %v6361_v26  ;;  %7524 = vrcp.f32 %v1138_v8 }
 0x78b   : > { %v1183_v14 = vpop.xlane.xlu0 %1182  ;;  %v11887_v34 = vmul.f32 %v7513_v52, %v13597_v23  ;;  %v13605_v23 = vld [vmem:[#allocation35_spill] sm:$0xff] }
 0x78c   : > { %v6733_v28 = vpack.i.bf16 %v4655_v63, %v4653_v58  ;;  %v6362_v3 = vpop.f32.mrb[216].mxu0  ;;  %7526 = vrcp.f32 %v1183_v14 }
 0x78d   : > { %7528 = vrcp.f32 %v13598_v51  ;;  %v6363_v37 = vpop.f32.mrb[217].mxu0  ;;  %v1144_v39 = vpop.xlane.xlu1 %1143 }
 0x78e   : > { %v7515_v36 = vpop.eup %7514  ;;  %v6364_v24 = vadd.f32 %v6363_v37, %v6362_v3  ;;  %7530 = vrcp.f32 %v1144_v39  ;;  %v6365_v38 = vpop.f32.mrb[218].mxu0  ;;  %6734 = vrot.lane.b32.xlu0 %v6733_v28, %s7840_s18 }
 0x78f   : > { %v7517_v30 = vpop.eup %7516  ;;  %7532 = vrcp.f32 %v11800_v53  ;;  %v6366_v44 = vpop.f32.mrb[219].mxu0  ;;  %v11893_v20 = vmul.f32 %v7515_v36, %v13599_v15  ;;  %v13602_v53 = vld [vmem:[#allocation38_spill] sm:$0xff]  ;;  %v13606_v36 = vld [vmem:[#allocation109_spill] sm:$0xff] }
 0x790   : > { %v1189_v62 = vpop.xlane.xlu0 %1188  ;;  %v7519_v22 = vpop.eup %7518  ;;  %v4657_v59 = vmul.f32 %v7517_v30, %v6364_v24  ;;  %v6367_v19 = vadd.f32 %v6366_v44, %v6365_v38 }
 0x791   : > { %7534 = vrcp.f32 %v1189_v62  ;;  %v7521_v33 = vpop.eup %7520  ;;  %v1150_v35 = vpop.xlane.xlu1 %1149  ;;  %v11897_v60 = vmul.f32 %v7519_v22, %v13601_v27  ;;  %v13607_v62 = vld [vmem:[#allocation39_spill] sm:$0xff] }
 0x792   : > { %7536 = vrcp.f32 %v13600_v6  ;;  %v7523_v41 = vpop.eup %7522  ;;  %v4659_v48 = vmul.f32 %v7521_v33, %v6367_v19 }
 0x793   : > { %7538 = vrcp.f32 %v1150_v35  ;;  %v11901_v4 = vmul.f32 %v7523_v41, %v13603_v32  ;;  %v13608_v35 = vld [vmem:[#allocation111_spill] sm:$0xff] }
 0x794   : > { %7540 = vrcp.f32 %v13602_v53  ;;  %v1195_v42 = vpop.xlane.xlu0 %1194  ;;  %v7525_v54 = vpop.eup %7524  ;;  %v6738_v7 = vpack.i.bf16 %v4659_v48, %v4657_v59 }
 0x795   : > { %v6368_v47 = vpop.f32.mrb[220].mxu0  ;;  %7542 = vrcp.f32 %v1195_v42  ;;  %v1156_v25 = vpop.xlane.xlu1 %1155  ;;  %v11905_v26 = vmul.f32 %v7525_v54, %v13604_v21  ;;  %v13609_v54 = vld [vmem:[#allocation24_spill] sm:$0xff] }
 0x796   : > { %7544 = vrcp.f32 %v11704_v40  ;;  %v6369_v45 = vpop.f32.mrb[221].mxu0  ;;  %v7527_v31 = vpop.eup %7526  ;;  %6739 = vrot.lane.b32.xlu1 %v6738_v7, %s7840_s18 }
 0x797   : > { %v6370_v8 = vadd.f32 %v6369_v45, %v6368_v47  ;;  %7546 = vrcp.f32 %v1156_v25  ;;  %v6371_v52 = vpop.f32.mrb[222].mxu0  ;;  %v7529_v58 = vpop.eup %7528  ;;  %v11910_v28 = vmul.f32 %v7527_v31, %v13605_v23 }
 0x798   : > { %7548 = vrcp.f32 %v11809_v11  ;;  %v6372_v63 = vpop.f32.mrb[223].mxu0  ;;  %v1201_v14 = vpop.xlane.xlu0 %1200 }
 0x799   : > { %v7531_v40 = vpop.eup %7530  ;;  %v4661_v3 = vmul.f32 %v7529_v58, %v6370_v8  ;;  %v6373_v51 = vadd.f32 %v6372_v63, %v6371_v52  ;;  %7550 = vrcp.f32 %v1201_v14  ;;  %v1162_v39 = vpop.xlane.xlu1 %1161  ;;  %v13610_v52 = vld [vmem:[#allocation113_spill] sm:$0xff] }
 0x79a   : > { %v7533_v37 = vpop.eup %7532  ;;  %7552 = vrcp.f32 %v11794_v50  ;;  %v11914_v24 = vmul.f32 %v7531_v40, %v13606_v36  ;;  %v13612_v36 = vld [vmem:[#allocation41_spill] sm:$0xff] }
 0x79b   : > { %v7535_v38 = vpop.eup %7534  ;;  %v4663_v30 = vmul.f32 %v7533_v37, %v6373_v51  ;;  %7554 = vrcp.f32 %v1162_v39 }
 0x79c   : > { %v7537_v11 = vpop.eup %7536  ;;  %7556 = vrcp.f32 %v11857_v2  ;;  %v1207_v44 = vpop.xlane.xlu0 %1206  ;;  %v11918_v15 = vmul.f32 %v7535_v38, %v13607_v62 }
 0x79d   : > { %v7539_v22 = vpop.eup %7538  ;;  %v6743_v59 = vpack.i.bf16 %v4663_v30, %v4661_v3  ;;  %v6374_v19 = vpop.f32.mrb[224].mxu0  ;;  %7558 = vrcp.f32 %v1207_v44  ;;  %v13611_v3 = vld [vmem:[#allocation103_spill] sm:$0xff] }
 0x79e   : > { %v7541_v33 = vpop.eup %7540  ;;  %7560 = vrcp.f32 %v11723_v18  ;;  %v6375_v50 = vpop.f32.mrb[225].mxu0  ;;  %v11922_v27 = vmul.f32 %v7539_v22, %v13608_v35 }
 0x79f   : > { %v1168_v6 = vpop.xlane.xlu1 %1167  ;;  %v7543_v41 = vpop.eup %7542  ;;  %v6376_v48 = vadd.f32 %v6375_v50, %v6374_v19  ;;  %6744 = vrot.lane.b32.xlu0 %v6743_v59, %s7840_s18  ;;  %v1509_v51 = vmul.f32 %v7541_v33, %v13611_v3  ;;  %v13613_v50 = vld [vmem:[#allocation102_spill] sm:$0xff] }
 0x7a0   : > { %7562 = vrcp.f32 %v1168_v6  ;;  %v6377_v2 = vpop.f32.mrb[226].mxu0  ;;  %v7545_v53 = vpop.eup %7544  ;;  %v11927_v7 = vmul.f32 %v7543_v41, %v13609_v54  ;;  %v1507_v6 = vmul.f32 %v7537_v11, %v13613_v50  ;;  %v13614_v41 = vld [vmem:[#allocation28_spill] sm:$0xff] }
 0x7a1   : > { %7564 = vrcp.f32 %v11816_v13  ;;  %v6378_v42 = vpop.f32.mrb[227].mxu0  ;;  %v1213_v32 = vpop.xlane.xlu0 %1212  ;;  %v4665_v47 = vmul.f32 %v7545_v53, %v6376_v48 }
 0x7a2   : > { %v7547_v18 = vpop.eup %7546  ;;  %v6379_v45 = vadd.f32 %v6378_v42, %v6377_v2  ;;  %v6410_v25 = vpop.f32.mrb[0].mxu1  ;;  %7566 = vrcp.f32 %v1213_v32 }
 0x7a3   : > { %v7549_v21 = vpop.eup %7548  ;;  %7568 = vrcp.f32 %v11806_v1  ;;  %v6411_v31 = vpop.f32.mrb[1].mxu1  ;;  %v11931_v58 = vmul.f32 %v7547_v18, %v13610_v52 }
 0x7a4   : > { %v1174_v8 = vpop.xlane.xlu1 %1173  ;;  %v7551_v63 = vpop.eup %7550  ;;  %v4667_v13 = vmul.f32 %v7549_v21, %v6379_v45  ;;  %v6412_v14 = vadd.f32 %v6411_v31, %v6410_v25  ;;  %v13615_v45 = vld [vmem:[#allocation45_spill] sm:$0xff] }
 0x7a5   : > { %7570 = vrcp.f32 %v1174_v8  ;;  %v6413_v23 = vpop.f32.mrb[2].mxu1  ;;  %v7553_v40 = vpop.eup %7552  ;;  %v11936_v38 = vmul.f32 %v7551_v63, %v13612_v36 }
 0x7a6   : > { %7572 = vrcp.f32 %v11867_v5  ;;  %v6414_v37 = vpop.f32.mrb[3].mxu1  ;;  %v6550_v39 = vpop.permute.xlu0 %6549  ;;  %v6748_v30 = vpack.i.bf16 %v4667_v13, %v4665_v47  ;;  %v11938_v44 = vmul.f32 %v7553_v40, %v6412_v14 }
 0x7a7   : > { %v7555_v1 = vpop.eup %7554  ;;  %v6415_v62 = vadd.f32 %v6414_v37, %v6413_v23  ;;  %v6380_v22 = vpop.f32.mrb[228].mxu0  ;;  %v6552_v59 = vunpack.i.h.bf16 %v6550_v39  ;;  %7574 = vrcp.f32 %v11738_v55  ;;  %v6551_v33 = vunpack.i.l.bf16 %v6550_v39 }
 0x7a8   : > { %v7557_v19 = vpop.eup %7556  ;;  %v6381_v35 = vpop.f32.mrb[229].mxu0  ;;  %v11943_v48 = vmul.f32 %v7555_v1, %v13614_v41  ;;  %6749 = vrot.lane.b32.xlu1 %v6748_v30, %s7840_s18 }
 0x7a9   : > { %v1180_v5 = vpop.xlane.xlu1 %1179  ;;  %v7559_v2 = vpop.eup %7558  ;;  %v11945_v53 = vmul.f32 %v7557_v19, %v6415_v62  ;;  %v11948_v42 = vsel %vm543_vm0, %v1509_v51, %v6552_v59  ;;  %v6382_v32 = vadd.f32 %v6381_v35, %v6380_v22  ;;  %v11953_v55 = vsel %vm543_vm0, %v1507_v6, %v6551_v33  ;;  %v13617_v62 = vld [vmem:[#allocation26_spill] sm:$0xff] }
 0x7aa   : > { %7576 = vrcp.f32 %v1180_v5  ;;  %v6383_v54 = vpop.f32.mrb[230].mxu0  ;;  %v7561_v11 = vpop.eup %7560  ;;  %v11958_v25 = vmul.f32 %v7559_v2, %v13615_v45 }
 0x7ab   : > { %7578 = vrcp.f32 %v11823_v56  ;;  %v6384_v18 = vpop.f32.mrb[231].mxu0  ;;  %v11955_v47 = vpop.permute.xlu0 %6564  ;;  %v6778_v31 = vpack.i.bf16 %v11945_v53, %v11938_v44  ;;  %v4669_v8 = vmul.f32 %v7561_v11, %v6382_v32  ;;  %v13616_v56 = vld [vmem:[#allocation32_spill] sm:$0xff] }
 0x7ac   : > { %v7563_v21 = vpop.eup %7562  ;;  %v6385_v52 = vadd.f32 %v6384_v18, %v6383_v54  ;;  %v6416_v63 = vpop.f32.mrb[4].mxu1  ;;  %v13618_v54 = vld [vmem:[#allocation19_spill] sm:$0xff] }
 0x7ad   : > { %v7565_v13 = vpop.eup %7564  ;;  %v6417_v14 = vpop.f32.mrb[5].mxu1  ;;  %v1537_v40 = vmul.f32 %v7563_v21, %v13616_v56 }
 0x7ae   : > { %v1186_v23 = vpop.xlane.xlu1 %1185  ;;  %v7567_v3 = vpop.eup %7566  ;;  %v4671_v51 = vmul.f32 %v7565_v13, %v6385_v52  ;;  %v6418_v37 = vadd.f32 %v6417_v14, %v6416_v63 }
 0x7af   : > { %7580 = vrcp.f32 %v1186_v23  ;;  %v6419_v39 = vpop.f32.mrb[6].mxu1  ;;  %v7569_v36 = vpop.eup %7568  ;;  %v11964_v22 = vmul.f32 %v7567_v3, %v13617_v62 }
 0x7b0   : > { %v6420_v1 = vpop.f32.mrb[7].mxu1  ;;  %v6575_v30 = vpop.permute.xlu0 %6574  ;;  %v6753_v19 = vpack.i.bf16 %v4671_v51, %v4669_v8  ;;  %v11966_v50 = vmul.f32 %v7569_v36, %v6418_v37  ;;  %7582 = vrcp.f32 %v11754_v43  ;;  %v13619_v36 = vld [vmem:[#allocation34_spill] sm:$0xff] }
 0x7b1   : > { %v7571_v59 = vpop.eup %7570  ;;  %v6421_v6 = vadd.f32 %v6420_v1, %v6419_v39  ;;  %v6386_v33 = vpop.f32.mrb[232].mxu0  ;;  %v6577_v35 = vunpack.i.h.bf16 %v6575_v30  ;;  %v6576_v41 = vunpack.i.l.bf16 %v6575_v30 }
 0x7b2   : > { %v7573_v5 = vpop.eup %7572  ;;  %v6387_v2 = vpop.f32.mrb[233].mxu0  ;;  %v11970_v11 = vmul.f32 %v7571_v59, %v13618_v54  ;;  %6754 = vrot.lane.b32.xlu0 %v6753_v19, %s7840_s18 }
 0x7b3   : > { %v1192_v32 = vpop.xlane.xlu1 %1191  ;;  %v11972_v18 = vmul.f32 %v7573_v5, %v6421_v6  ;;  %v11976_v45 = vsel %vm543_vm0, %v11931_v58, %v6577_v35  ;;  %v6388_v21 = vadd.f32 %v6387_v2, %v6386_v33  ;;  %v6389_v8 = vpop.f32.mrb[234].mxu0  ;;  %v11982_v43 = vsel %vm543_vm0, %v11874_v29, %v6576_v41  ;;  %v13620_v2 = vld [vmem:[#allocation21_spill] sm:$0xff] }
 0x7b4   : > { %7584 = vrcp.f32 %v1192_v32  ;;  %v7575_v52 = vpop.eup %7574  ;;  %v6390_v63 = vpop.f32.mrb[235].mxu0 }
 0x7b5   : > { %7586 = vrcp.f32 %v11829_v46  ;;  %v6585_v13 = vpop.permute.xlu0 %6584  ;;  %v7577_v14 = vpop.eup %7576  ;;  %v6783_v23 = vpack.i.bf16 %v11972_v18, %v11966_v50  ;;  %v4673_v58 = vmul.f32 %v7575_v52, %v6388_v21  ;;  %v6391_v56 = vadd.f32 %v6390_v63, %v6389_v8 }
 0x7b6   : > { %v6587_v3 = vunpack.i.h.bf16 %v6585_v13  ;;  %v7579_v51 = vpop.eup %7578  ;;  %v6586_v37 = vunpack.i.l.bf16 %v6585_v13  ;;  %v1545_v1 = vmul.f32 %v7577_v14, %v13619_v36  ;;  %v6392_v6 = vpop.f32.mrb[236].mxu0 }
 0x7b7   : > { %v1198_v39 = vpop.xlane.xlu1 %1197  ;;  %v4675_v30 = vmul.f32 %v7579_v51, %v6391_v56  ;;  %v6393_v5 = vpop.f32.mrb[237].mxu0  ;;  %v13621_v51 = vld [vmem:[#allocation40_spill] sm:$0xff] }
 0x7b8   : > { %v11988_v46 = vsel %vm543_vm0, %v1537_v40, %v6587_v3  ;;  %7588 = vrcp.f32 %v1198_v39  ;;  %v11992_v29 = vsel %vm543_vm0, %v11887_v34, %v6586_v37  ;;  %v6394_v54 = vadd.f32 %v6393_v5, %v6392_v6  ;;  %v6395_v21 = vpop.f32.mrb[238].mxu0 }
 0x7b9   : > { %v6595_v62 = vpop.permute.xlu0 %6594  ;;  %v7581_v59 = vpop.eup %7580  ;;  %v6758_v19 = vpack.i.bf16 %v4675_v30, %v4673_v58  ;;  %7590 = vrcp.f32 %v11766_v12 }
 0x7ba   : > { %v6597_v33 = vunpack.i.h.bf16 %v6595_v62  ;;  %v6596_v35 = vunpack.i.l.bf16 %v6595_v62  ;;  %v11996_v32 = vmul.f32 %v7581_v59, %v13620_v2  ;;  %v7583_v8 = vpop.eup %7582  ;;  %v6396_v12 = vpop.f32.mrb[239].mxu0 }
 0x7bb   : > { %v1204_v41 = vpop.xlane.xlu1 %1203  ;;  %6759 = vrot.lane.b32.xlu1 %v6758_v19, %s7840_s18  ;;  %v4677_v13 = vmul.f32 %v7583_v8, %v6394_v54  ;;  %v6397_v14 = vadd.f32 %v6396_v12, %v6395_v21 }
 0x7bc   : > { %v11999_v40 = vsel %vm543_vm0, %v1545_v1, %v6597_v33  ;;  %v12003_v34 = vsel %vm543_vm0, %v11901_v4, %v6596_v35  ;;  %7592 = vrcp.f32 %v1204_v41  ;;  %v6398_v59 = vpop.f32.mrb[240].mxu0  ;;  %v13622_v35 = vld [vmem:[#allocation44_spill] sm:$0xff] }
 0x7bd   : > { %7594 = vrcp.f32 %v11838_v49  ;;  %v6605_v52 = vpop.permute.xlu0 %6604  ;;  %v6399_v6 = vpop.f32.mrb[241].mxu0 }
 0x7be   : > { %v7585_v63 = vpop.eup %7584  ;;  %v6607_v58 = vunpack.i.h.bf16 %v6605_v52  ;;  %v6606_v56 = vunpack.i.l.bf16 %v6605_v52  ;;  %v6400_v41 = vadd.f32 %v6399_v6, %v6398_v59  ;;  %v6401_v2 = vpop.f32.mrb[242].mxu0 }
 0x7bf   : > { %v7587_v3 = vpop.eup %7586  ;;  %v1553_v37 = vmul.f32 %v7585_v63, %v13621_v51  ;;  %v1210_v4 = vpop.xlane.xlu1 %1209 }
 0x7c0   : > { %v4679_v39 = vmul.f32 %v7587_v3, %v6397_v14  ;;  %v12010_v36 = vsel %vm543_vm0, %v11918_v15, %v6606_v56  ;;  %7596 = vrcp.f32 %v1210_v4  ;;  %v6402_v21 = vpop.f32.mrb[243].mxu0  ;;  %v13623_v14 = vld [vmem:[#allocation23_spill] sm:$0xff] }
 0x7c1   : > { %v12013_v1 = vsel %vm543_vm0, %v1553_v37, %v6607_v58  ;;  %v6615_v49 = vpop.permute.xlu0 %6614  ;;  %7598 = vrcp.f32 %v11782_v17  ;;  %v6403_v52 = vadd.f32 %v6402_v21, %v6401_v2 }
 0x7c2   : > { %v7589_v30 = vpop.eup %7588  ;;  %v6763_v62 = vpack.i.bf16 %v4679_v39, %v4677_v13  ;;  %v6616_v19 = vunpack.i.l.bf16 %v6615_v49  ;;  %v6617_v56 = vunpack.i.h.bf16 %v6615_v49 }
 0x7c3   : > { %v1216_v33 = vpop.xlane.xlu1 %1215  ;;  %v12017_v5 = vmul.f32 %v7589_v30, %v13622_v35  ;;  %v7591_v54 = vpop.eup %7590 }
 0x7c4   : > { %v12021_v15 = vsel %vm543_vm0, %v11936_v38, %v6616_v19  ;;  %7600 = vrcp.f32 %v1216_v33  ;;  %6764 = vrot.lane.b32.xlu0 %v6763_v62, %s7840_s18  ;;  %v4681_v12 = vmul.f32 %v7591_v54, %v6400_v41  ;;  %v6404_v30 = vpop.f32.mrb[244].mxu0  ;;  %v13624_v19 = vld [vmem:[#allocation46_spill] sm:$0xff] }
 0x7c5   : > { %7602 = vrcp.f32 %v11848_v57  ;;  %v6625_v8 = vpop.permute.xlu0 %6624  ;;  %v6405_v62 = vpop.f32.mrb[245].mxu0 }
 0x7c6   : > { %v7593_v17 = vpop.eup %7592  ;;  %v6626_v63 = vunpack.i.l.bf16 %v6625_v8  ;;  %v6406_v6 = vadd.f32 %v6405_v62, %v6404_v30  ;;  %v6407_v33 = vpop.f32.mrb[246].mxu0 }
 0x7c7   : > { %v7595_v13 = vpop.eup %7594  ;;  %v1561_v58 = vmul.f32 %v7593_v17, %v13623_v14  ;;  %v12026_v38 = vpop.permute.xlu1 %6554 }
 0x7c8   : > { %v4683_v3 = vmul.f32 %v7595_v13, %v6403_v52  ;;  %v12030_v51 = vsel %vm543_vm0, %v11964_v22, %v6626_v63  ;;  %v6408_v35 = vpop.f32.mrb[247].mxu0  ;;  %v6627_v63 = vunpack.i.h.bf16 %v6625_v8 }
 0x7c9   : > { %v12033_v37 = vsel %vm543_vm0, %v1561_v58, %v6617_v56  ;;  %v12035_v57 = vpop.permute.xlu0 %6634  ;;  %v6409_v21 = vadd.f32 %v6408_v35, %v6407_v33 }
 0x7ca   : > { %v7597_v4 = vpop.eup %7596  ;;  %v6768_v39 = vpack.i.bf16 %v4683_v3, %v4681_v12  ;;  %v13625_v12 = vld [vmem:[#allocation50_spill] sm:$0xff] }
 0x7cb   : > { %v12037_v59 = vpop.permute.xlu1 %6559  ;;  %v12040_v49 = vmul.f32 %v7597_v4, %v13624_v19  ;;  %v7599_v22 = vpop.eup %7598 }
 0x7cc   : > { %6769 = vrot.lane.b32.xlu1 %v6768_v39, %s7840_s18  ;;  %v4685_v54 = vmul.f32 %v7599_v22, %v6406_v6 }
 0x7cd   : > { %v12043_v41 = vpop.permute.xlu0 %6644 }
 0x7ce   : > { %v7601_v2 = vpop.eup %7600 }
 0x7cf   : > { %v7603_v17 = vpop.eup %7602  ;;  %v1569_v52 = vmul.f32 %v7601_v2, %v13625_v12  ;;  %v12046_v13 = vpop.permute.xlu1 %6569 }
 0x7d0   : > { %v4687_v14 = vmul.f32 %v7603_v17, %v6409_v21  ;;  %6779 = vrot.lane.b32.xlu1 %v6778_v31, %s7840_s18 }
 0x7d1   : > { %v5111_v58 = vsel %vm543_vm0, %v1569_v52, %v6627_v63  ;;  %v12053_v56 = vpop.permute.xlu0 %6654 }
 0x7d2   : > { %v6773_v3 = vpack.i.bf16 %v4687_v14, %v4685_v54 }
 0x7d3   : > { %v12055_v4 = vpop.permute.xlu1 %6579 }
 0x7d4   : > { %6774 = vrot.lane.b32.xlu0 %v6773_v3, %s7840_s18 }
 0x7d5   : > { %v6665_v39 = vpop.permute.xlu0 %6664 }
 0x7d6   : > { %v6667_v30 = vunpack.i.h.bf16 %v6665_v39  ;;  %v6666_v8 = vunpack.i.l.bf16 %v6665_v39 }
 0x7d7   : > { %v6590_v62 = vpop.permute.xlu1 %6589 }
 0x7d8   : > { %v12060_v19 = vsel %vm5112_vm1, %v11992_v29, %v6666_v8  ;;  %v12064_v44 = vsel %vm5112_vm1, %v11988_v46, %v6667_v30  ;;  %v6592_v53 = vunpack.i.h.bf16 %v6590_v62  ;;  %v6591_v31 = vunpack.i.l.bf16 %v6590_v62  ;;  %6784 = vrot.lane.b32.xlu0 %v6783_v23, %s7840_s18 }
 0x7d9   : > { %v6675_v6 = vpop.permute.xlu0 %6674  ;;  %v6557_v30 = vunpack.i.h.bf16 %v12026_v38 }
 0x7da   : > { %v12072_v33 = vsel %vm543_vm0, %v11970_v11, %v6592_v53  ;;  %v12076_v29 = vsel %vm543_vm0, %v11893_v20, %v6591_v31  ;;  %v6677_v22 = vunpack.i.h.bf16 %v6675_v6  ;;  %v6676_v35 = vunpack.i.l.bf16 %v6675_v6 }
 0x7db   : > { %v6600_v46 = vpop.permute.xlu1 %6599 }
 0x7dc   : > { %v12080_v2 = vsel %vm5112_vm1, %v12003_v34, %v6676_v35  ;;  %v12084_v50 = vsel %vm5112_vm1, %v11999_v40, %v6677_v22  ;;  %v6602_v18 = vunpack.i.h.bf16 %v6600_v46  ;;  %v6601_v23 = vunpack.i.l.bf16 %v6600_v46 }
 0x7dd   : > { %v6685_v54 = vpop.permute.xlu0 %6684  ;;  %v6637_v35 = vunpack.i.h.bf16 %v12035_v57 }
 0x7de   : > { %v12088_v11 = vsel %vm543_vm0, %v11996_v32, %v6602_v18  ;;  %v12092_v20 = vsel %vm543_vm0, %v11910_v28, %v6601_v23  ;;  %v6687_v21 = vunpack.i.h.bf16 %v6685_v54  ;;  %v6686_v17 = vunpack.i.l.bf16 %v6685_v54 }
 0x7df   : > { %v6610_v12 = vpop.permute.xlu1 %6609  ;;  %v6567_v54 = vunpack.i.h.bf16 %v11955_v47 }
 0x7e0   : > { %v12096_v34 = vsel %vm5112_vm1, %v12010_v36, %v6686_v17  ;;  %v12100_v40 = vsel %vm5112_vm1, %v12013_v1, %v6687_v21  ;;  %v6612_v52 = vunpack.i.h.bf16 %v6610_v12  ;;  %v6611_v63 = vunpack.i.l.bf16 %v6610_v12 }
 0x7e1   : > { %v6695_v14 = vpop.permute.xlu0 %6694  ;;  %v6556_v36 = vunpack.i.l.bf16 %v12026_v38  ;;  %v6647_v12 = vunpack.i.h.bf16 %v12043_v41 }
 0x7e2   : > { %v5105_v32 = vsel %vm543_vm0, %v12017_v5, %v6612_v52  ;;  %v5104_v28 = vsel %vm543_vm0, %v11927_v7, %v6611_v63  ;;  %v6697_v3 = vunpack.i.h.bf16 %v6695_v14  ;;  %v6696_v39 = vunpack.i.l.bf16 %v6695_v14 }
 0x7e3   : > { %v6620_v8 = vpop.permute.xlu1 %6619  ;;  %v5082_v18 = vsel %vm543_vm0, %v11836_v61, %v6556_v36 }
 0x7e4   : > { %v12110_v1 = vsel %vm5112_vm1, %v12021_v15, %v6696_v39  ;;  %v12114_v62 = vsel %vm5112_vm1, %v12033_v37, %v6697_v3  ;;  %v6622_v53 = vunpack.i.h.bf16 %v6620_v8  ;;  %v6621_v5 = vunpack.i.l.bf16 %v6620_v8 }
 0x7e5   : > { %v6705_v31 = vpop.permute.xlu0 %6704  ;;  %v6636_v15 = vunpack.i.l.bf16 %v12035_v57  ;;  %v5083_v37 = vsel %vm543_vm0, %v11897_v60, %v6557_v30  ;;  %v6566_v57 = vunpack.i.l.bf16 %v11955_v47  ;;  %v5087_v47 = vsel %vm543_vm0, %v11914_v24, %v6567_v54 }
 0x7e6   : > { %v5109_v7 = vsel %vm543_vm0, %v12040_v49, %v6622_v53  ;;  %v5108_v6 = vsel %vm543_vm0, %v11958_v25, %v6621_v5  ;;  %v6707_v22 = vunpack.i.h.bf16 %v6705_v31  ;;  %v6706_v38 = vunpack.i.l.bf16 %v6705_v31 }
 0x7e7   : > { %v12122_v46 = vpop.permute.xlu1 %6629  ;;  %v5116_v60 = vsel %vm5112_vm1, %v5083_v37, %v6637_v35  ;;  %v5115_v61 = vsel %vm5112_vm1, %v5082_v18, %v6636_v15  ;;  %v5086_v39 = vsel %vm543_vm0, %v11855_v0, %v6566_v57 }
 0x7e8   : > { %v12130_v49 = vsel %vm5112_vm1, %v12030_v51, %v6706_v38  ;;  %v12133_v25 = vsel %vm5112_vm1, %v5111_v58, %v6707_v22  ;;  %v6646_v51 = vunpack.i.l.bf16 %v12043_v41  ;;  %v5120_v41 = vsel %vm5112_vm1, %v5087_v47, %v6647_v12 }
 0x7e9   : > { %v6715_v23 = vpop.permute.xlu0 %6714 }
 0x7ea   : > { %v6717_v21 = vunpack.i.h.bf16 %v6715_v23  ;;  %v6716_v17 = vunpack.i.l.bf16 %v6715_v23  ;;  %v5119_v8 = vsel %vm5112_vm1, %v5086_v39, %v6646_v51  ;;  %v6631_v51 = vunpack.i.l.bf16 %v12122_v46 }
 0x7eb   : > { %v12141_v52 = vpop.permute.xlu1 %6639 }
 0x7ec   : > { %v5148_v58 = vsel %vm5145_vm2, %v5115_v61, %v6716_v17  ;;  %v5149_v63 = vsel %vm5145_vm2, %v5116_v60, %v6717_v21  ;;  %v6657_v60 = vunpack.i.h.bf16 %v12053_v56  ;;  %v6656_v61 = vunpack.i.l.bf16 %v12053_v56 }
 0x7ed   : > { %v5695_v14 = vpack.c.bf16 %v5149_v63, %v5148_v58  ;;  %v6725_v3 = vpop.permute.xlu0 %6724  ;;  %v6562_v63 = vunpack.i.h.bf16 %v12037_v59 }
 0x7ee   : > { %v6727_v30 = vunpack.i.h.bf16 %v6725_v3  ;;  %v6726_v36 = vunpack.i.l.bf16 %v6725_v3  ;;  %v5123_v56 = vsel %vm5112_vm1, %v11982_v43, %v6656_v61  ;;  %v5124_v47 = vsel %vm5112_vm1, %v11976_v45, %v6657_v60 }
 0x7ef   : > { %5767 = vst [vmem:[%s12152_s5 + $0x8] sm:$0xff] %v5695_v14   ;;  %v12155_v53 = vpop.permute.xlu1 %6649  ;;  %v6561_v14 = vunpack.i.l.bf16 %v12037_v59 }
 0x7f0   : > { %v5152_v5 = vsel %vm5145_vm2, %v5119_v8, %v6726_v36  ;;  %v5153_v24 = vsel %vm5145_vm2, %v5120_v41, %v6727_v30  ;;  %v5113_v36 = vsel %vm5112_vm1, %v11953_v55, %v6631_v51  ;;  %v6642_v8 = vunpack.i.h.bf16 %v12141_v52 }
 0x7f1   : > { %v5705_v31 = vpack.c.bf16 %v5153_v24, %v5152_v5  ;;  %v6641_v41 = vunpack.i.l.bf16 %v12141_v52  ;;  %v5084_v52 = vsel %vm543_vm0, %v11846_v9, %v6561_v14  ;;  %v6652_v61 = vunpack.i.h.bf16 %v12155_v53 }
 0x7f3   : > { %5769 = vst [vmem:[%s12152_s5 + $0x18] sm:$0xff] %v5705_v31   ;;  %v12160_v0 = vpop.permute.xlu1 %6659  ;;  %v6572_v31 = vunpack.i.h.bf16 %v12046_v13  ;;  %v5117_v60 = vsel %vm5112_vm1, %v5084_v52, %v6641_v41 }
 0x7f5   : > { %v5089_v9 = vsel %vm543_vm0, %v11922_v27, %v6572_v31  ;;  %v6661_v27 = vunpack.i.l.bf16 %v12160_v0 }
 0x7f7   : > { %v12162_v22 = vpop.permute.xlu1 %6669 }
 0x7f8   : > { %v6672_v31 = vunpack.i.h.bf16 %v12162_v22 }
 0x7fa   : > { %v5130_v52 = vsel %vm5112_vm1, %v12072_v33, %v6672_v31 }
 0x7fb   : > { %v6680_v38 = vpop.permute.xlu1 %6679 }
 0x7fc   : > { %v6682_v35 = vunpack.i.h.bf16 %v6680_v38  ;;  %v6681_v15 = vunpack.i.l.bf16 %v6680_v38 }
 0x7fe   : > { %v12166_v37 = vsel %vm5112_vm1, %v12088_v11, %v6682_v35  ;;  %v12170_v18 = vsel %vm5112_vm1, %v12092_v20, %v6681_v15  ;;  %v6632_v11 = vunpack.i.h.bf16 %v12122_v46  ;;  %v5085_v15 = vsel %vm543_vm0, %v11905_v26, %v6562_v63 }
 0x7ff   : > { %v6690_v23 = vpop.permute.xlu1 %6689  ;;  %v6581_v63 = vunpack.i.l.bf16 %v12055_v4 }
 0x800   : > { %v6692_v54 = vunpack.i.h.bf16 %v6690_v23  ;;  %v6691_v57 = vunpack.i.l.bf16 %v6690_v23  ;;  %v6735_v3 = vpop.permute.xlu0 %6734  ;;  %v5114_v59 = vsel %vm5112_vm1, %v11948_v42, %v6632_v11  ;;  %v6571_v42 = vunpack.i.l.bf16 %v12046_v13 }
 0x801   : > { %v6737_v46 = vunpack.i.h.bf16 %v6735_v3  ;;  %v6736_v39 = vunpack.i.l.bf16 %v6735_v3  ;;  %v5122_v3 = vsel %vm5112_vm1, %v5089_v9, %v6652_v61 }
 0x802   : > { %v12173_v21 = vsel %vm5112_vm1, %v5105_v32, %v6692_v54  ;;  %v12176_v17 = vsel %vm5112_vm1, %v5104_v28, %v6691_v57  ;;  %v5118_v57 = vsel %vm5112_vm1, %v5085_v15, %v6642_v8  ;;  %v5088_v11 = vsel %vm543_vm0, %v11865_v10, %v6571_v42 }
 0x803   : > { %v6700_v12 = vpop.permute.xlu1 %6699  ;;  %v5156_v43 = vsel %vm5145_vm2, %v5123_v56, %v6736_v39  ;;  %v5157_v45 = vsel %vm5145_vm2, %v5124_v47, %v6737_v46  ;;  %v6662_v47 = vunpack.i.h.bf16 %v12160_v0  ;;  %v6671_v42 = vunpack.i.l.bf16 %v12162_v22 }
 0x804   : > { %v6702_v20 = vunpack.i.h.bf16 %v6700_v12  ;;  %v6701_v58 = vunpack.i.l.bf16 %v6700_v12  ;;  %v5715_v5 = vpack.c.bf16 %v5157_v45, %v5156_v43  ;;  %v6651_v12 = vunpack.i.l.bf16 %v12155_v53 }
 0x806   : > { %v12185_v32 = vsel %vm5112_vm1, %v5109_v7, %v6702_v20  ;;  %v12188_v28 = vsel %vm5112_vm1, %v5108_v6, %v6701_v58  ;;  %5771 = vst [vmem:[%s12152_s5 + $0x28] sm:$0xff] %v5715_v5   ;;  %v6582_v58 = vunpack.i.h.bf16 %v12055_v4  ;;  %v5121_v56 = vsel %vm5112_vm1, %v5088_v11, %v6651_v12 }
 0x807   : > { %v6710_v30 = vpop.permute.xlu1 %6709 }
 0x808   : > { %v6712_v7 = vunpack.i.h.bf16 %v6710_v30  ;;  %v6711_v6 = vunpack.i.l.bf16 %v6710_v30  ;;  %v5093_v4 = vsel %vm543_vm0, %v11943_v48, %v6582_v58 }
 0x80a   : > { %v5146_v24 = vsel %vm5145_vm2, %v5113_v36, %v6711_v6  ;;  %v5147_v55 = vsel %vm5145_vm2, %v5114_v59, %v6712_v7  ;;  %v5092_v36 = vsel %vm543_vm0, %v11883_v16, %v6581_v63  ;;  %v5126_v6 = vsel %vm5112_vm1, %v5093_v4, %v6662_v47 }
 0x80b   : > { %v5690_v38 = vpack.c.bf16 %v5147_v55, %v5146_v24  ;;  %v6720_v35 = vpop.permute.xlu1 %6719  ;;  %v5125_v0 = vsel %vm5112_vm1, %v5092_v36, %v6661_v27 }
 0x80c   : > { %v6722_v23 = vunpack.i.h.bf16 %v6720_v35  ;;  %v6721_v54 = vunpack.i.l.bf16 %v6720_v35 }
 0x80d   : > { %5691 = vst [vmem:[%s12152_s5] sm:$0xff] %v5690_v38  }
 0x80e   : > { %v5151_v13 = vsel %vm5145_vm2, %v5118_v57, %v6722_v23  ;;  %v5150_v26 = vsel %vm5145_vm2, %v5117_v60, %v6721_v54  ;;  %v5129_v23 = vsel %vm5112_vm1, %v12076_v29, %v6671_v42 }
 0x80f   : > { %v5700_v51 = vpack.c.bf16 %v5151_v13, %v5150_v26  ;;  %v6730_v20 = vpop.permute.xlu1 %6729 }
 0x810   : > { %v6732_v14 = vunpack.i.h.bf16 %v6730_v20  ;;  %v6731_v53 = vunpack.i.l.bf16 %v6730_v20 }
 0x811   : > { %5768 = vst [vmem:[%s12152_s5 + $0x10] sm:$0xff] %v5700_v51   ;;  %v6745_v43 = vpop.permute.xlu0 %6744 }
 0x812   : > { %v5155_v10 = vsel %vm5145_vm2, %v5122_v3, %v6732_v14  ;;  %v5154_v46 = vsel %vm5145_vm2, %v5121_v56, %v6731_v53  ;;  %v6747_v5 = vunpack.i.h.bf16 %v6745_v43  ;;  %v6746_v24 = vunpack.i.l.bf16 %v6745_v43 }
 0x813   : > { %v5710_v39 = vpack.c.bf16 %v5155_v10, %v5154_v46  ;;  %v6740_v30 = vpop.permute.xlu1 %6739 }
 0x814   : > { %v6742_v59 = vunpack.i.h.bf16 %v6740_v30  ;;  %v6741_v7 = vunpack.i.l.bf16 %v6740_v30  ;;  %v5160_v16 = vsel %vm5145_vm2, %v12060_v19, %v6746_v24  ;;  %v5161_v48 = vsel %vm5145_vm2, %v12064_v44, %v6747_v5 }
 0x815   : > { %5770 = vst [vmem:[%s12152_s5 + $0x20] sm:$0xff] %v5710_v39   ;;  %v5725_v55 = vpack.c.bf16 %v5161_v48, %v5160_v16 }
 0x816   : > { %v5159_v8 = vsel %vm5145_vm2, %v5126_v6, %v6742_v59  ;;  %v5158_v41 = vsel %vm5145_vm2, %v5125_v0, %v6741_v7 }
 0x817   : > { %v5720_v45 = vpack.c.bf16 %v5159_v8, %v5158_v41  ;;  %5773 = vst [vmem:[%s12152_s5 + $0x38] sm:$0xff] %v5725_v55  }
 0x819   : > { %5772 = vst [vmem:[%s12152_s5 + $0x30] sm:$0xff] %v5720_v45  }
 0x81a   : > { %v6750_v38 = vpop.permute.xlu1 %6749 }
 0x81b   : > { %v6752_v35 = vunpack.i.h.bf16 %v6750_v38  ;;  %v6751_v15 = vunpack.i.l.bf16 %v6750_v38 }
 0x81d   : > { %v5163_v19 = vsel %vm5145_vm2, %v5130_v52, %v6752_v35  ;;  %v5162_v44 = vsel %vm5145_vm2, %v5129_v23, %v6751_v15 }
 0x81e   : > { %v5730_v54 = vpack.c.bf16 %v5163_v19, %v5162_v44 }
 0x820   : > { %5774 = vst [vmem:[%s12152_s5 + $0x40] sm:$0xff] %v5730_v54  }
 0x824   : > { %v6755_v57 = vpop.permute.xlu0 %6754 }
 0x825   : > { %v6757_v22 = vunpack.i.h.bf16 %v6755_v57  ;;  %v6756_v60 = vunpack.i.l.bf16 %v6755_v57 }
 0x827   : > { %v5164_v61 = vsel %vm5145_vm2, %v12080_v2, %v6756_v60  ;;  %v5165_v12 = vsel %vm5145_vm2, %v12084_v50, %v6757_v22 }
 0x828   : > { %v5735_v33 = vpack.c.bf16 %v5165_v12, %v5164_v61 }
 0x82a   : > { %5775 = vst [vmem:[%s12152_s5 + $0x48] sm:$0xff] %v5735_v33  }
 0x82d   : > { %v6760_v29 = vpop.permute.xlu1 %6759 }
 0x82e   : > { %v6762_v13 = vunpack.i.h.bf16 %v6760_v29  ;;  %v6761_v26 = vunpack.i.l.bf16 %v6760_v29 }
 0x830   : > { %v5167_v9 = vsel %vm5145_vm2, %v12166_v37, %v6762_v13  ;;  %v5166_v11 = vsel %vm5145_vm2, %v12170_v18, %v6761_v26 }
 0x831   : > { %v5740_v51 = vpack.c.bf16 %v5167_v9, %v5166_v11 }
 0x833   : > { %5776 = vst [vmem:[%s12152_s5 + $0x50] sm:$0xff] %v5740_v51  }
 0x836   : > { %v6765_v20 = vpop.permute.xlu0 %6764 }
 0x837   : > { %v6767_v2 = vunpack.i.h.bf16 %v6765_v20  ;;  %v6766_v58 = vunpack.i.l.bf16 %v6765_v20 }
 0x839   : > { %v5168_v50 = vsel %vm5145_vm2, %v12096_v34, %v6766_v58  ;;  %v5169_v63 = vsel %vm5145_vm2, %v12100_v40, %v6767_v2 }
 0x83a   : > { %v5745_v14 = vpack.c.bf16 %v5169_v63, %v5168_v50 }
 0x83c   : > { %5777 = vst [vmem:[%s12152_s5 + $0x58] sm:$0xff] %v5745_v14  }
 0x83e   : > { %v6770_v53 = vpop.permute.xlu1 %6769 }
 0x83f   : > { %v6772_v37 = vunpack.i.h.bf16 %v6770_v53  ;;  %v6771_v3 = vunpack.i.l.bf16 %v6770_v53 }
 0x841   : > { %v5171_v18 = vsel %vm5145_vm2, %v12173_v21, %v6772_v37  ;;  %v5170_v56 = vsel %vm5145_vm2, %v12176_v17, %v6771_v3 }
 0x842   : > { %v5750_v47 = vpack.c.bf16 %v5171_v18, %v5170_v56  ;;  %v6780_v27 = vpop.permute.xlu1 %6779 }
 0x843   : > { %v6782_v10 = vunpack.i.h.bf16 %v6780_v27  ;;  %v6781_v34 = vunpack.i.l.bf16 %v6780_v27 }
 0x844   : > { %5778 = vst [vmem:[%s12152_s5 + $0x60] sm:$0xff] %v5750_v47  }
 0x845   : > { %v5175_v40 = vsel %vm5145_vm2, %v12185_v32, %v6782_v10  ;;  %v5174_v46 = vsel %vm5145_vm2, %v12188_v28, %v6781_v34 }
 0x846   : > { %v5760_v39 = vpack.c.bf16 %v5175_v40, %v5174_v46  ;;  %v6775_v30 = vpop.permute.xlu0 %6774 }
 0x847   : > { %v6777_v21 = vunpack.i.h.bf16 %v6775_v30  ;;  %v6776_v4 = vunpack.i.l.bf16 %v6775_v30 }
 0x848   : > { %5780 = vst [vmem:[%s12152_s5 + $0x70] sm:$0xff] %v5760_v39  }
 0x849   : > { %v5172_v17 = vsel %vm5145_vm2, %v12110_v1, %v6776_v4  ;;  %v5173_v36 = vsel %vm5145_vm2, %v12114_v62, %v6777_v21 }
 0x84a   : > { %v5755_v59 = vpack.c.bf16 %v5173_v36, %v5172_v17  ;;  %v6785_v7 = vpop.permute.xlu0 %6784 }
 0x84b   : > { %v6787_v32 = vunpack.i.h.bf16 %v6785_v7  ;;  %v6786_v6 = vunpack.i.l.bf16 %v6785_v7 }
 0x84c   : > { %5779 = vst [vmem:[%s12152_s5 + $0x68] sm:$0xff] %v5755_v59  }
 0x84d   : > { %v5176_v28 = vsel %vm5145_vm2, %v12130_v49, %v6786_v6  ;;  %v5177_v0 = vsel %vm5145_vm2, %v12133_v25, %v6787_v32 }
 0x84e   : > { %v5765_v1 = vpack.c.bf16 %v5177_v0, %v5176_v28 }
 0x850   : > { %5781 = vst [vmem:[%s12152_s5 + $0x78] sm:$0xff] %v5765_v1  }
 0x851   : > { %7760 = shalt.err (!%p7757_p13)
}
 0x852   : > { %s7761_s10 = scalar_lea.hbm %s12294_s26, 2048  ;;  %s7765_s11 = scalar_lea.hbm %s12351_s3, 4096 }
 0x853   : > { %p7762_p11 = scmp.ne.s32.totalorder %s12294_s26, %s7761_s10  ;;  %p7766_p7 = scmp.lt.u32.totalorder %s12294_s26, %s12351_s3 }
 0x854   : > { %p7767_p4 = scmp.lt.u32.totalorder %s7765_s11, %s7761_s10  ;;  %p7769_p0 = scmp.lt.u32.totalorder %s7761_s10, %s12294_s26 }
 0x855   : > { %p7763_p2 = pnand %p7762_p11, %p13626_p10 }
 0x856   : > { %p7768_p3 = por %p7767_p4, %p7766_p7 }
 0x857   : > { %p7764_p5 = pneg %p7763_p2 }
 0x858   : > { %p7770_p8 = por %p7769_p0, %p7768_p3 }
 0x85a   : > { %p7771_p9 = pnand %p7770_p8, %p7764_p5 }
 0x85c   : > { %7774 = shalt.err (!%p7771_p9)
}
 0x85d   : > { %s7844_s18 = smov 4  }
 0x85e   : > { %6476 = dma.vmem_to_hbm [thread:$0]  (%p13626_p10), %s12296_s30, 2048, %s12294_s26, %s5339_s15, %s7841_s16, %s7841_s16, %s7844_s18  }
 0x85f PF: > { %s5369_s24 = sand.u32 1, %s7813_s12   ;;  %p13627_p12 = scmp.ne.s32.totalorder %s12644_s27, 0 }
 0x860   : > { %p13628_p1 = scmp.ge.s32.totalorder %s7833_s17, 2  ;;  %s5370_s20 = scalar_lea.sflag [#allocation4], %s5369_s24 }
 0x862   : > { %p6489_p6 = pnand %p13628_p1, %p13627_p12 }
 0x864   : > { %7808 = dma.done.wait (!%p6489_p6), %s5370_s20, 2048  }
 0x865   : > { %7810 = vsyncadd (!%p6489_p6), %s5370_s20, 4294965248  ;;  %s22_s17 = sadd.s32 1, %s7833_s17   ;;  %s13629_s25 = sld [smem:[#allocation14_spill]] }
 0x866   : > { %p19_p13 = scmp.ge.s32.totalorder %s22_s17, 4   ;;  %s13630_s15 = sld [smem:[#allocation12_spill]] }
 0x867   : > { %s13631_s16 = sld [smem:[#allocation13_spill]]  ;;  %s13632_s12 = smov %s7817_s13 }
 0x868   : > { %s13633_s13 = smov %s7821_s14  ;;  %21 = sbr.rel (!%p19_p13) target bundleno = 10 (0xa), region = 101 }
 0x86b   : > { %s13634_s14 = smov %s13629_s25 }
 0x86f   :  { %5375 = vsyncpa [#allocation3], 1 }
 0x870   :  { %5377 = vsyncpa [#allocation3 + $0x1], 1 }
 0x871   :  { %5378 = vsyncpa [#allocation6], 1 }
 0x872   :  { %5380 = vsyncpa [#allocation6 + $0x1], 1 }
 0x873   :  { %5381 = vsyncpa [#allocation4], 1 }
 0x874   :  { %5383 = vsyncpa [#allocation4 + $0x1], 1 }

</bundles_post_ra>
